<compile_context>
chip_gen: v7x
topology: tpu7x:2x2x1
jax: 0.10.0
libtpu: 0.0.40
codegen_flags: <defaults>
</compile_context>

<pallas_src>
from functools import partial

import numpy as np
import jax
import jax.numpy as jnp
from jax.experimental import pallas as pl
from jax.experimental.pallas import tpu as pltpu


LANES = 128  # TPU lane width; all channel dims are padded to a multiple of this


def _round_up(x, m):
    return -(-x // m) * m


# ----------------------------------------------------------------------------
# Pallas kernel: fused conv (single K-concatenated tap matmul) + BN + ReLU + ECA
# ----------------------------------------------------------------------------
def _conv_kernel(x_ref, w_ref, s_ref, b_ref, m_ref, e_ref, o_ref, *,
                 offs, mc, act, eca, inv_area):
    """x_ref : (1, Mpad, Cin_eff) bf16  flattened padded NHWC slab (one image)
       w_ref : (ntaps*Cin_eff, Coutp) bf16  tap-major stacked weight matrix
       s_ref : (1, Coutp) f32  folded BN scale (or 1.0)
       b_ref : (1, Coutp) f32  folded BN shift (or conv bias)
       m_ref : (mc, 1)    f32  1.0 for valid output columns, 0.0 for tail cols
       e_ref : (Coutp, Coutp) bf16  banded 3-tap ECA channel-conv matrix
       o_ref : (1, mc, Coutp) bf16 flattened conv output rows

    Tap t reads rows [offs[t], offs[t]+mc) of the slab; the taps are stacked
    along K so a single bf16 MXU matmul with f32 accumulation produces the
    whole output.  Epilogue: BN scale/shift, ReLU, tail-column masking, fused
    ECA (mean -> banded matmul -> sigmoid -> gate), bf16 store."""
    taps = [x_ref[0, pl.ds(off, mc), :] for off in offs]
    lhs = taps[0] if len(taps) == 1 else jnp.concatenate(taps, axis=-1)
    out = jnp.dot(lhs, w_ref[...], preferred_element_type=jnp.float32)
    out = out * s_ref[...] + b_ref[...]
    if act:
        out = jnp.maximum(out, 0.0)
    out = out * m_ref[...]                      # zero invalid tail columns
    if eca:
        # GAP over valid positions -> 3-tap channel conv (banded matmul) ->
        # sigmoid -> per-channel gate, all fused before the store.
        y = (jnp.sum(out, axis=0, keepdims=True) * inv_area).astype(jnp.bfloat16)
        yc = jnp.dot(y, e_ref[...], preferred_element_type=jnp.float32)
        gate = 1.0 / (1.0 + jnp.exp(-yc))
        out = out * gate
    o_ref[0] = out.astype(o_ref.dtype)


def _conv_pallas(xf, w, scale, shift, mask, eca_e, *, offs, mc, act, eca, inv_area):
    """xf: (B, Mpad, Cin_eff) bf16 -> (B, mc, Coutp) bf16."""
    B, Mpad, Cin_eff = xf.shape
    K, Coutp = w.shape
    assert K == len(offs) * Cin_eff
    assert max(offs) + mc <= Mpad
    return pl.pallas_call(
        partial(_conv_kernel, offs=tuple(offs), mc=mc, act=act, eca=eca,
                inv_area=inv_area),
        out_shape=jax.ShapeDtypeStruct((B, mc, Coutp), jnp.bfloat16),
        grid=(B,),
        in_specs=[
            pl.BlockSpec((1, Mpad, Cin_eff), lambda b: (b, 0, 0)),
            pl.BlockSpec((K, Coutp), lambda b: (0, 0)),
            pl.BlockSpec((1, Coutp), lambda b: (0, 0)),
            pl.BlockSpec((1, Coutp), lambda b: (0, 0)),
            pl.BlockSpec((mc, 1), lambda b: (0, 0)),
            pl.BlockSpec((Coutp, Coutp), lambda b: (0, 0)),
        ],
        out_specs=pl.BlockSpec((1, mc, Coutp), lambda b: (b, 0, 0)),
        compiler_params=pltpu.CompilerParams(
            dimension_semantics=("parallel",),
            vmem_limit_bytes=48 * 1024 * 1024),
    )(xf, w, scale, shift, mask, eca_e)


# ----------------------------------------------------------------------------
# convolution_att block: Conv2d (+folded BN) (+ReLU) (+fused ECA)
# ----------------------------------------------------------------------------
def conv_block(x, p, *, act=True, eca=True):
    """x: (B, H, W, Cp) bf16 NHWC, channel-padded to 128 lanes."""
    B, H, W, Cp = x.shape
    k, s = p["k"], p["stride"]
    coutp = p["w"].shape[-1]

    if s == 1:
        pad = (k - 1) // 2
        xp = jnp.pad(x, ((0, 0), (pad, pad), (pad, pad), (0, 0))) if pad else x
        Hp, Wp = H + 2 * pad, W + 2 * pad
        Ho, Wo = H, W
        offs = tuple(dy * Wp + dx for dy in range(k) for dx in range(k))
        cin_eff = Cp
    else:
        # stride-2 3x3 conv == VALID stride-1 2x2 conv over the 4 space-to-depth
        # phases (channel blocks of size Cp, order py*2+px).
        assert H % 2 == 0 and W % 2 == 0, "stride-2 path requires even H and W"
        xp4 = jnp.pad(x, ((0, 0), (1, 1), (1, 1), (0, 0)))
        Hh, Wh = H // 2 + 1, W // 2 + 1
        xp = (xp4.reshape(B, Hh, 2, Wh, 2, Cp)
                 .transpose(0, 1, 3, 2, 4, 5)
                 .reshape(B, Hh, Wh, 4 * Cp))
        Hp, Wp = Hh, Wh
        Ho, Wo = H // 2, W // 2
        offs = (0, 1, Wp, Wp + 1)
        cin_eff = 4 * Cp

    mc = Ho * Wp                              # full row-stripes incl. (k-1)
    mpad = _round_up(max(offs) + mc, 16)      # bf16 sublane packing
    xf = xp.reshape(B, Hp * Wp, cin_eff)
    if mpad > Hp * Wp:
        xf = jnp.pad(xf, ((0, 0), (0, mpad - Hp * Wp), (0, 0)))

    # static validity mask for the (k-1) wrap-around tail columns of each row
    col = np.arange(mc) % Wp
    mask = jnp.asarray((col < Wo).astype(np.float32).reshape(mc, 1))

    out = _conv_pallas(xf, p["w"], p["scale"], p["shift"], mask, p["eca_e"],
                       offs=offs, mc=mc, act=act, eca=eca,
                       inv_area=1.0 / float(Ho * Wo))
    return out.reshape(B, Ho, Wp, coutp)[:, :, :Wo, :]   # drop zeroed tail cols


def upsample2(x):
    # nn.Upsample(scale_factor=2, mode='nearest') as broadcast + reshape.
    B, H, W, C = x.shape
    x = jnp.broadcast_to(x[:, :, None, :, None, :], (B, H, 2, W, 2, C))
    return x.reshape(B, 2 * H, 2 * W, C)


# ----------------------------------------------------------------------------
# Parameter init (deterministic, synthetic) in kernel-ready layout
# ----------------------------------------------------------------------------
def _pack_w_s1(w, cinp, coutp):
    """(k,k,cin,cout) np.f32 -> (k*k*cinp, coutp) bf16, tap-major along K."""
    k, _, cin, cout = w.shape
    w_eff = np.zeros((k * k, cinp, coutp), np.float32)
    for dy in range(k):
        for dx in range(k):
            w_eff[dy * k + dx, :cin, :cout] = w[dy, dx]
    return jnp.asarray(w_eff.reshape(k * k * cinp, coutp), dtype=jnp.bfloat16)


def _pack_w_s2(w, cinp, coutp):
    """stride-2 3x3 conv as a VALID 2x2 conv over 4 space-to-depth phases."""
    k, _, cin, cout = w.shape          # k == 3
    w_eff = np.zeros((4, 4 * cinp, coutp), np.float32)
    for a in range(2):
        for b in range(2):
            for py in range(2):
                for px in range(2):
                    dy, dx = 2 * a + py, 2 * b + px
                    if dy < k and dx < k:
                        blk = (py * 2 + px) * cinp
                        w_eff[a * 2 + b, blk:blk + cin, :cout] = w[dy, dx]
    return jnp.asarray(w_eff.reshape(4 * 4 * cinp, coutp), dtype=jnp.bfloat16)


def _conv_att_params(key, cin, cout, k, stride=1, bn=True):
    k1, k2, k3, k4, k5 = jax.random.split(key, 5)
    fan_in = cin * k * k
    w = np.asarray(jax.random.normal(k1, (k, k, cin, cout), jnp.float32)) / np.sqrt(fan_in)
    if bn:
        gamma = 1.0 + 0.1 * np.asarray(jax.random.normal(k2, (cout,), jnp.float32))
        beta = 0.05 * np.asarray(jax.random.normal(k3, (cout,), jnp.float32))
        rmean = 0.02 * np.asarray(jax.random.normal(k4, (cout,), jnp.float32))
        rvar = np.ones((cout,), np.float32)
        scale = gamma / np.sqrt(rvar + 1e-5)
        shift = beta - rmean * scale
    else:
        scale = np.ones((cout,), np.float32)
        shift = 0.05 * np.asarray(jax.random.normal(k2, (cout,), jnp.float32))  # bias
    ew = 0.5 * np.asarray(jax.random.normal(k5, (3,), jnp.float32))

    cinp = _round_up(cin, LANES)
    coutp = _round_up(cout, LANES)
    w_eff = _pack_w_s2(w, cinp, coutp) if stride == 2 else _pack_w_s1(w, cinp, coutp)

    sc = np.zeros((1, coutp), np.float32); sc[0, :cout] = scale
    sh = np.zeros((1, coutp), np.float32); sh[0, :cout] = shift

    # banded (tridiagonal) matrix implementing the ECA 3-tap channel conv with
    # zero padding at the channel boundaries: yc = y @ E.
    E = np.zeros((coutp, coutp), np.float32)
    j = np.arange(coutp)
    E[j, j] = ew[1]
    E[j[:-1], j[1:]] = ew[0]
    E[j[1:], j[:-1]] = ew[2]

    return {
        "k": k, "stride": stride, "cout": cout,
        "w": w_eff,
        "scale": jnp.asarray(sc),
        "shift": jnp.asarray(sh),
        "eca_e": jnp.asarray(E, dtype=jnp.bfloat16),
    }


def init_params(key, f=8, depth=3, depth_start_mult=2, depth_mult=2,
                downsample2in1=(1,)):
    fs = [f]
    curmult = depth_start_mult
    for _ in range(1, depth + 1):
        fs += [f * int(curmult)]
        curmult *= depth_mult

    keys = iter(jax.random.split(key, 64))
    params = {}
    params["base"] = _conv_att_params(next(keys), 3, f, 3, stride=1)

    down = []
    for i in range(1, depth + 1):
        if i not in downsample2in1:
            down.append([
                _conv_att_params(next(keys), fs[i - 1], fs[i], 3, stride=1),
                _conv_att_params(next(keys), fs[i], fs[i], 3, stride=2),
            ])
        else:
            down.append([
                _conv_att_params(next(keys), fs[i - 1], fs[i], 3, stride=2),
            ])
    params["down"] = down

    C = fs[-1]
    Cp = _round_up(C, LANES)
    kf1, kf2 = jax.random.split(next(keys), 2)
    wf = np.asarray(jax.random.normal(kf1, (C, C), jnp.float32)) / np.sqrt(C)
    wfull = np.zeros((Cp, Cp), np.float32); wfull[:C, :C] = wf
    bfull = np.zeros((1, Cp), np.float32)
    bfull[0, :C] = 0.05 * np.asarray(jax.random.normal(kf2, (C,), jnp.float32))
    params["fcatt_w"] = jnp.asarray(wfull)
    params["fcatt_b"] = jnp.asarray(bfull)

    up = []
    for _i in range(depth):
        i = -_i - 1
        up.append((
            _conv_att_params(next(keys), fs[i], fs[i], 3, stride=1),
            _conv_att_params(next(keys), fs[i], fs[i - 1], 1, stride=1),
        ))
    params["up"] = up

    params["tail0"] = _conv_att_params(next(keys), f, 8, 3, stride=1)
    params["tail1"] = _conv_att_params(next(keys), 8, 3, 1, stride=1, bn=False)
    return params, fs


# ----------------------------------------------------------------------------
# Full forward pass (matches DenoiserModel.forward)
# ----------------------------------------------------------------------------
def denoiser_forward(x_nchw, params):
    if x_nchw.ndim == 3:
        x_nchw = x_nchw[None]
    x = jnp.transpose(x_nchw, (0, 2, 3, 1)).astype(jnp.float32)    # -> NHWC
    B, H, W, Cin = x.shape
    x = jnp.pad(x, ((0, 0), (0, 0), (0, 0), (0, LANES - Cin))).astype(jnp.bfloat16)

    # layer_base
    x = conv_block(x, params["base"])
    base_x = x

    # downsample path
    xdi0 = []
    for lay in params["down"]:
        for p in lay:
            x = conv_block(x, p)
        xdi0.append(x)

    # fcatt gating on the bottleneck (GAP -> Linear -> sigmoid -> per-(b,c)
    # scale) -- plain jnp under jit; XLA fuses this tiny GEMV for free.
    m = x.astype(jnp.float32).mean(axis=(1, 2))                    # (B, Cp)
    att = jax.nn.sigmoid(m @ params["fcatt_w"] + params["fcatt_b"])
    x = x * att[:, None, None, :].astype(x.dtype)

    # upsample path
    for i, (p0, p1) in enumerate(params["up"]):
        skip = xdi0[-(i + 1)]
        x = skip + conv_block(x, p0)
        x = conv_block(x, p1)
        x = upsample2(x)

    x = base_x + x

    # tail
    x = conv_block(x, params["tail0"])
    x = conv_block(x, params["tail1"], act=False)
    x = jnp.clip(x.astype(jnp.float32), 0.0, 1.0)

    x = x[..., :3]                                                 # drop lane pad
    return jnp.transpose(x, (0, 3, 1, 2))                          # -> NCHW


# ----------------------------------------------------------------------------
if __name__ == "__main__":
    key = jax.random.PRNGKey(0)
    kx, kp = jax.random.split(key)

    # small shapes consistent with the module: RGB input, NCHW
    B, H, W = 2, 16, 16
    x = jax.random.uniform(kx, (B, 3, H, W), dtype=jnp.float32)

    params, fs = init_params(kp, f=8, depth=3, depth_start_mult=2,
                             depth_mult=2, downsample2in1=(1,))

    fwd = jax.jit(lambda xin: denoiser_forward(xin, params))
    out = jax.block_until_ready(fwd(x))

    assert out.shape == (B, 3, H, W), out.shape
    assert bool(jnp.all(out >= 0.0)) and bool(jnp.all(out <= 1.0))
    print("KERNEL_OK")
</pallas_src>

<mosaic_0001>
module attributes {stable_mosaic.version = 11 : i64} {
  func.func @_conv_kernel(%arg0: i32, %arg1: memref<1x336x128xbf16, #tpu.memory_space<vmem>>, %arg2: memref<1152x128xbf16, #tpu.memory_space<vmem>>, %arg3: memref<1x128xf32, #tpu.memory_space<vmem>>, %arg4: memref<1x128xf32, #tpu.memory_space<vmem>>, %arg5: memref<288x1xf32, #tpu.memory_space<vmem>>, %arg6: memref<128x128xbf16, #tpu.memory_space<vmem>>, %arg7: memref<1x288x128xbf16, #tpu.memory_space<vmem>>) attributes {dimension_semantics = [#tpu.dimension_semantics<parallel>], iteration_bounds = array<i64: 2>, scalar_prefetch = 0 : i64, scratch_operands = 0 : i64, tpu.core_type = #tpu.core_type<tc>, window_params = [{transform_indices = @transform_0, window_bounds = array<i64: 1, 336, 128>}, {pipeline_mode = #tpu.pipeline_mode<synchronous>, transform_indices = @transform_1, window_bounds = array<i64: 1152, 128>}, {pipeline_mode = #tpu.pipeline_mode<synchronous>, transform_indices = @transform_2, window_bounds = array<i64: 1, 128>}, {pipeline_mode = #tpu.pipeline_mode<synchronous>, transform_indices = @transform_3, window_bounds = array<i64: 1, 128>}, {pipeline_mode = #tpu.pipeline_mode<synchronous>, transform_indices = @transform_4, window_bounds = array<i64: 288, 1>}, {pipeline_mode = #tpu.pipeline_mode<synchronous>, transform_indices = @transform_5, window_bounds = array<i64: 128, 128>}, {transform_indices = @transform_6, window_bounds = array<i64: 1, 288, 128>}]} {
    %c0 = arith.constant 0 : index
    %c0_0 = arith.constant 0 : index
    %c0_1 = arith.constant 0 : index
    %0 = vector.load %arg1[%c0, %c0_0, %c0_1] : memref<1x336x128xbf16, #tpu.memory_space<vmem>>, vector<1x288x128xbf16>
    %1 = vector.shape_cast %0 : vector<1x288x128xbf16> to vector<288x128xbf16>
    %c0_2 = arith.constant 0 : index
    %c1 = arith.constant 1 : index
    %c0_3 = arith.constant 0 : index
    %2 = vector.load %arg1[%c0_2, %c1, %c0_3] : memref<1x336x128xbf16, #tpu.memory_space<vmem>>, vector<1x288x128xbf16>
    %3 = vector.shape_cast %2 : vector<1x288x128xbf16> to vector<288x128xbf16>
    %c0_4 = arith.constant 0 : index
    %c2 = arith.constant 2 : index
    %c0_5 = arith.constant 0 : index
    %4 = vector.load %arg1[%c0_4, %c2, %c0_5] : memref<1x336x128xbf16, #tpu.memory_space<vmem>>, vector<1x288x128xbf16>
    %5 = vector.shape_cast %4 : vector<1x288x128xbf16> to vector<288x128xbf16>
    %c0_6 = arith.constant 0 : index
    %c18 = arith.constant 18 : index
    %c0_7 = arith.constant 0 : index
    %6 = vector.load %arg1[%c0_6, %c18, %c0_7] : memref<1x336x128xbf16, #tpu.memory_space<vmem>>, vector<1x288x128xbf16>
    %7 = vector.shape_cast %6 : vector<1x288x128xbf16> to vector<288x128xbf16>
    %c0_8 = arith.constant 0 : index
    %c19 = arith.constant 19 : index
    %c0_9 = arith.constant 0 : index
    %8 = vector.load %arg1[%c0_8, %c19, %c0_9] : memref<1x336x128xbf16, #tpu.memory_space<vmem>>, vector<1x288x128xbf16>
    %9 = vector.shape_cast %8 : vector<1x288x128xbf16> to vector<288x128xbf16>
    %c0_10 = arith.constant 0 : index
    %c20 = arith.constant 20 : index
    %c0_11 = arith.constant 0 : index
    %10 = vector.load %arg1[%c0_10, %c20, %c0_11] : memref<1x336x128xbf16, #tpu.memory_space<vmem>>, vector<1x288x128xbf16>
    %11 = vector.shape_cast %10 : vector<1x288x128xbf16> to vector<288x128xbf16>
    %c0_12 = arith.constant 0 : index
    %c36 = arith.constant 36 : index
    %c0_13 = arith.constant 0 : index
    %12 = vector.load %arg1[%c0_12, %c36, %c0_13] : memref<1x336x128xbf16, #tpu.memory_space<vmem>>, vector<1x288x128xbf16>
    %13 = vector.shape_cast %12 : vector<1x288x128xbf16> to vector<288x128xbf16>
    %c0_14 = arith.constant 0 : index
    %c37 = arith.constant 37 : index
    %c0_15 = arith.constant 0 : index
    %14 = vector.load %arg1[%c0_14, %c37, %c0_15] : memref<1x336x128xbf16, #tpu.memory_space<vmem>>, vector<1x288x128xbf16>
    %15 = vector.shape_cast %14 : vector<1x288x128xbf16> to vector<288x128xbf16>
    %c0_16 = arith.constant 0 : index
    %c38 = arith.constant 38 : index
    %c0_17 = arith.constant 0 : index
    %16 = vector.load %arg1[%c0_16, %c38, %c0_17] : memref<1x336x128xbf16, #tpu.memory_space<vmem>>, vector<1x288x128xbf16>
    %17 = vector.shape_cast %16 : vector<1x288x128xbf16> to vector<288x128xbf16>
    %18 = tpu.concatenate %1, %3, %5, %7, %9, %11, %13, %15, %17 in 1 : vector<288x128xbf16>, vector<288x128xbf16>, vector<288x128xbf16>, vector<288x128xbf16>, vector<288x128xbf16>, vector<288x128xbf16>, vector<288x128xbf16>, vector<288x128xbf16>, vector<288x128xbf16> -> vector<288x1152xbf16>
    %c0_18 = arith.constant 0 : index
    %c0_19 = arith.constant 0 : index
    %19 = vector.load %arg2[%c0_18, %c0_19] : memref<1152x128xbf16, #tpu.memory_space<vmem>>, vector<1152x128xbf16>
    %cst = arith.constant dense<0.000000e+00> : vector<288x128xf32>
    %20 = tpu.matmul %18, %19, %cst {dimension_numbers = #tpu.dot_dimension_numbers<[1], [0], [0], [1], [0, 0, 1, 1], [], []>} : vector<288x1152xbf16>, vector<1152x128xbf16>, vector<288x128xf32> -> vector<288x128xf32>
    %c0_20 = arith.constant 0 : index
    %c0_21 = arith.constant 0 : index
    %21 = vector.load %arg3[%c0_20, %c0_21] : memref<1x128xf32, #tpu.memory_space<vmem>>, vector<1x128xf32>
    %22 = vector.broadcast %21 : vector<1x128xf32> to vector<288x128xf32>
    %23 = arith.mulf %20, %22 : vector<288x128xf32>
    %c0_22 = arith.constant 0 : index
    %c0_23 = arith.constant 0 : index
    %24 = vector.load %arg4[%c0_22, %c0_23] : memref<1x128xf32, #tpu.memory_space<vmem>>, vector<1x128xf32>
    %25 = vector.broadcast %24 : vector<1x128xf32> to vector<288x128xf32>
    %26 = arith.addf %23, %25 : vector<288x128xf32>
    %cst_24 = arith.constant 0.000000e+00 : f32
    %27 = vector.broadcast %cst_24 : f32 to vector<288x128xf32>
    %28 = arith.maximumf %26, %27 : vector<288x128xf32>
    %c0_25 = arith.constant 0 : index
    %c0_26 = arith.constant 0 : index
    %29 = vector.load %arg5[%c0_25, %c0_26] : memref<288x1xf32, #tpu.memory_space<vmem>>, vector<288x1xf32>
    %30 = vector.broadcast %29 : vector<288x1xf32> to vector<288x128xf32>
    %31 = arith.mulf %28, %30 : vector<288x128xf32>
    %cst_27 = arith.constant dense<0.000000e+00> : vector<128xf32>
    %32 = vector.multi_reduction <add>, %31, %cst_27 [0] : vector<288x128xf32> to vector<128xf32>
    %33 = vector.shape_cast %32 : vector<128xf32> to vector<1x128xf32>
    %cst_28 = arith.constant 3.906250e-03 : f32
    %34 = vector.broadcast %cst_28 : f32 to vector<1x128xf32>
    %35 = arith.mulf %33, %34 : vector<1x128xf32>
    %36 = arith.truncf %35 : vector<1x128xf32> to vector<1x128xbf16>
    %c0_29 = arith.constant 0 : index
    %c0_30 = arith.constant 0 : index
    %37 = vector.load %arg6[%c0_29, %c0_30] : memref<128x128xbf16, #tpu.memory_space<vmem>>, vector<128x128xbf16>
    %cst_31 = arith.constant dense<0.000000e+00> : vector<1x128xf32>
    %38 = tpu.matmul %36, %37, %cst_31 {dimension_numbers = #tpu.dot_dimension_numbers<[1], [0], [0], [1], [0, 0, 1, 1], [], []>} : vector<1x128xbf16>, vector<128x128xbf16>, vector<1x128xf32> -> vector<1x128xf32>
    %cst_32 = arith.constant 0.000000e+00 : f32
    %39 = vector.broadcast %cst_32 : f32 to vector<1x128xf32>
    %40 = arith.subf %39, %38 : vector<1x128xf32>
    %41 = math.exp %40 : vector<1x128xf32>
    %cst_33 = arith.constant 1.000000e+00 : f32
    %42 = vector.broadcast %cst_33 : f32 to vector<1x128xf32>
    %43 = arith.addf %42, %41 : vector<1x128xf32>
    %cst_34 = arith.constant 1.000000e+00 : f32
    %44 = vector.broadcast %cst_34 : f32 to vector<1x128xf32>
    %45 = arith.divf %44, %43 : vector<1x128xf32>
    %46 = vector.broadcast %45 : vector<1x128xf32> to vector<288x128xf32>
    %47 = arith.mulf %31, %46 : vector<288x128xf32>
    %48 = arith.truncf %47 : vector<288x128xf32> to vector<288x128xbf16>
    %c0_35 = arith.constant 0 : index
    %c0_36 = arith.constant 0 : index
    %c0_37 = arith.constant 0 : index
    %49 = vector.load %arg7[%c0_35, %c0_36, %c0_37] : memref<1x288x128xbf16, #tpu.memory_space<vmem>>, vector<1x288x128xbf16>
    %50 = vector.shape_cast %49 : vector<1x288x128xbf16> to vector<288x128xbf16>
    %51 = vector.shape_cast %48 : vector<288x128xbf16> to vector<1x288x128xbf16>
    tpu.vector_store %arg7[%c0_35, %c0_36, %c0_37], %51 {strides = array<i32>} : memref<1x288x128xbf16, #tpu.memory_space<vmem>>, vector<1x288x128xbf16>,
    return
  }
  func.func @transform_0(%arg0: i32) -> (i32, i32, i32) {
    %c0_i32 = arith.constant 0 : i32
    %c0_i32_0 = arith.constant 0 : i32
    %c0_i32_1 = arith.constant 0 : i32
    return %arg0, %c0_i32, %c0_i32_0 : i32, i32, i32
  }
  func.func @transform_1(%arg0: i32) -> (i32, i32) {
    %c0_i32 = arith.constant 0 : i32
    %c0_i32_0 = arith.constant 0 : i32
    %c0_i32_1 = arith.constant 0 : i32
    return %c0_i32, %c0_i32_0 : i32, i32
  }
  func.func @transform_2(%arg0: i32) -> (i32, i32) {
    %c0_i32 = arith.constant 0 : i32
    %c0_i32_0 = arith.constant 0 : i32
    %c0_i32_1 = arith.constant 0 : i32
    return %c0_i32, %c0_i32_0 : i32, i32
  }
  func.func @transform_3(%arg0: i32) -> (i32, i32) {
    %c0_i32 = arith.constant 0 : i32
    %c0_i32_0 = arith.constant 0 : i32
    %c0_i32_1 = arith.constant 0 : i32
    return %c0_i32, %c0_i32_0 : i32, i32
  }
  func.func @transform_4(%arg0: i32) -> (i32, i32) {
    %c0_i32 = arith.constant 0 : i32
    %c0_i32_0 = arith.constant 0 : i32
    %c0_i32_1 = arith.constant 0 : i32
    return %c0_i32, %c0_i32_0 : i32, i32
  }
  func.func @transform_5(%arg0: i32) -> (i32, i32) {
    %c0_i32 = arith.constant 0 : i32
    %c0_i32_0 = arith.constant 0 : i32
    %c0_i32_1 = arith.constant 0 : i32
    return %c0_i32, %c0_i32_0 : i32, i32
  }
  func.func @transform_6(%arg0: i32) -> (i32, i32, i32) {
    %c0_i32 = arith.constant 0 : i32
    %c0_i32_0 = arith.constant 0 : i32
    %c0_i32_1 = arith.constant 0 : i32
    return %arg0, %c0_i32, %c0_i32_0 : i32, i32, i32
  }
}

module attributes {stable_mosaic.version = 11 : i64} {
  func.func @_conv_kernel(%arg0: i32, %arg1: memref<1x96x512xbf16, #tpu.memory_space<vmem>>, %arg2: memref<2048x128xbf16, #tpu.memory_space<vmem>>, %arg3: memref<1x128xf32, #tpu.memory_space<vmem>>, %arg4: memref<1x128xf32, #tpu.memory_space<vmem>>, %arg5: memref<72x1xf32, #tpu.memory_space<vmem>>, %arg6: memref<128x128xbf16, #tpu.memory_space<vmem>>, %arg7: memref<1x72x128xbf16, #tpu.memory_space<vmem>>) attributes {dimension_semantics = [#tpu.dimension_semantics<parallel>], iteration_bounds = array<i64: 2>, scalar_prefetch = 0 : i64, scratch_operands = 0 : i64, tpu.core_type = #tpu.core_type<tc>, window_params = [{transform_indices = @transform_0, window_bounds = array<i64: 1, 96, 512>}, {pipeline_mode = #tpu.pipeline_mode<synchronous>, transform_indices = @transform_1, window_bounds = array<i64: 2048, 128>}, {pipeline_mode = #tpu.pipeline_mode<synchronous>, transform_indices = @transform_2, window_bounds = array<i64: 1, 128>}, {pipeline_mode = #tpu.pipeline_mode<synchronous>, transform_indices = @transform_3, window_bounds = array<i64: 1, 128>}, {pipeline_mode = #tpu.pipeline_mode<synchronous>, transform_indices = @transform_4, window_bounds = array<i64: 72, 1>}, {pipeline_mode = #tpu.pipeline_mode<synchronous>, transform_indices = @transform_5, window_bounds = array<i64: 128, 128>}, {transform_indices = @transform_6, window_bounds = array<i64: 1, 72, 128>}]} {
    %c0 = arith.constant 0 : index
    %c0_0 = arith.constant 0 : index
    %c0_1 = arith.constant 0 : index
    %0 = vector.load %arg1[%c0, %c0_0, %c0_1] : memref<1x96x512xbf16, #tpu.memory_space<vmem>>, vector<1x72x512xbf16>
    %1 = vector.shape_cast %0 : vector<1x72x512xbf16> to vector<72x512xbf16>
    %c0_2 = arith.constant 0 : index
    %c1 = arith.constant 1 : index
    %c0_3 = arith.constant 0 : index
    %2 = vector.load %arg1[%c0_2, %c1, %c0_3] : memref<1x96x512xbf16, #tpu.memory_space<vmem>>, vector<1x72x512xbf16>
    %3 = vector.shape_cast %2 : vector<1x72x512xbf16> to vector<72x512xbf16>
    %c0_4 = arith.constant 0 : index
    %c9 = arith.constant 9 : index
    %c0_5 = arith.constant 0 : index
    %4 = vector.load %arg1[%c0_4, %c9, %c0_5] : memref<1x96x512xbf16, #tpu.memory_space<vmem>>, vector<1x72x512xbf16>
    %5 = vector.shape_cast %4 : vector<1x72x512xbf16> to vector<72x512xbf16>
    %c0_6 = arith.constant 0 : index
    %c10 = arith.constant 10 : index
    %c0_7 = arith.constant 0 : index
    %6 = vector.load %arg1[%c0_6, %c10, %c0_7] : memref<1x96x512xbf16, #tpu.memory_space<vmem>>, vector<1x72x512xbf16>
    %7 = vector.shape_cast %6 : vector<1x72x512xbf16> to vector<72x512xbf16>
    %8 = tpu.concatenate %1, %3, %5, %7 in 1 : vector<72x512xbf16>, vector<72x512xbf16>, vector<72x512xbf16>, vector<72x512xbf16> -> vector<72x2048xbf16>
    %c0_8 = arith.constant 0 : index
    %c0_9 = arith.constant 0 : index
    %9 = vector.load %arg2[%c0_8, %c0_9] : memref<2048x128xbf16, #tpu.memory_space<vmem>>, vector<2048x128xbf16>
    %cst = arith.constant dense<0.000000e+00> : vector<72x128xf32>
    %10 = tpu.matmul %8, %9, %cst {dimension_numbers = #tpu.dot_dimension_numbers<[1], [0], [0], [1], [0, 0, 1, 1], [], []>} : vector<72x2048xbf16>, vector<2048x128xbf16>, vector<72x128xf32> -> vector<72x128xf32>
    %c0_10 = arith.constant 0 : index
    %c0_11 = arith.constant 0 : index
    %11 = vector.load %arg3[%c0_10, %c0_11] : memref<1x128xf32, #tpu.memory_space<vmem>>, vector<1x128xf32>
    %12 = vector.broadcast %11 : vector<1x128xf32> to vector<72x128xf32>
    %13 = arith.mulf %10, %12 : vector<72x128xf32>
    %c0_12 = arith.constant 0 : index
    %c0_13 = arith.constant 0 : index
    %14 = vector.load %arg4[%c0_12, %c0_13] : memref<1x128xf32, #tpu.memory_space<vmem>>, vector<1x128xf32>
    %15 = vector.broadcast %14 : vector<1x128xf32> to vector<72x128xf32>
    %16 = arith.addf %13, %15 : vector<72x128xf32>
    %cst_14 = arith.constant 0.000000e+00 : f32
    %17 = vector.broadcast %cst_14 : f32 to vector<72x128xf32>
    %18 = arith.maximumf %16, %17 : vector<72x128xf32>
    %c0_15 = arith.constant 0 : index
    %c0_16 = arith.constant 0 : index
    %19 = vector.load %arg5[%c0_15, %c0_16] : memref<72x1xf32, #tpu.memory_space<vmem>>, vector<72x1xf32>
    %20 = vector.broadcast %19 : vector<72x1xf32> to vector<72x128xf32>
    %21 = arith.mulf %18, %20 : vector<72x128xf32>
    %cst_17 = arith.constant dense<0.000000e+00> : vector<128xf32>
    %22 = vector.multi_reduction <add>, %21, %cst_17 [0] : vector<72x128xf32> to vector<128xf32>
    %23 = vector.shape_cast %22 : vector<128xf32> to vector<1x128xf32>
    %cst_18 = arith.constant 1.562500e-02 : f32
    %24 = vector.broadcast %cst_18 : f32 to vector<1x128xf32>
    %25 = arith.mulf %23, %24 : vector<1x128xf32>
    %26 = arith.truncf %25 : vector<1x128xf32> to vector<1x128xbf16>
    %c0_19 = arith.constant 0 : index
    %c0_20 = arith.constant 0 : index
    %27 = vector.load %arg6[%c0_19, %c0_20] : memref<128x128xbf16, #tpu.memory_space<vmem>>, vector<128x128xbf16>
    %cst_21 = arith.constant dense<0.000000e+00> : vector<1x128xf32>
    %28 = tpu.matmul %26, %27, %cst_21 {dimension_numbers = #tpu.dot_dimension_numbers<[1], [0], [0], [1], [0, 0, 1, 1], [], []>} : vector<1x128xbf16>, vector<128x128xbf16>, vector<1x128xf32> -> vector<1x128xf32>
    %cst_22 = arith.constant 0.000000e+00 : f32
    %29 = vector.broadcast %cst_22 : f32 to vector<1x128xf32>
    %30 = arith.subf %29, %28 : vector<1x128xf32>
    %31 = math.exp %30 : vector<1x128xf32>
    %cst_23 = arith.constant 1.000000e+00 : f32
    %32 = vector.broadcast %cst_23 : f32 to vector<1x128xf32>
    %33 = arith.addf %32, %31 : vector<1x128xf32>
    %cst_24 = arith.constant 1.000000e+00 : f32
    %34 = vector.broadcast %cst_24 : f32 to vector<1x128xf32>
    %35 = arith.divf %34, %33 : vector<1x128xf32>
    %36 = vector.broadcast %35 : vector<1x128xf32> to vector<72x128xf32>
    %37 = arith.mulf %21, %36 : vector<72x128xf32>
    %38 = arith.truncf %37 : vector<72x128xf32> to vector<72x128xbf16>
    %c0_25 = arith.constant 0 : index
    %c0_26 = arith.constant 0 : index
    %c0_27 = arith.constant 0 : index
    %39 = vector.load %arg7[%c0_25, %c0_26, %c0_27] : memref<1x72x128xbf16, #tpu.memory_space<vmem>>, vector<1x72x128xbf16>
    %40 = vector.shape_cast %39 : vector<1x72x128xbf16> to vector<72x128xbf16>
    %41 = vector.shape_cast %38 : vector<72x128xbf16> to vector<1x72x128xbf16>
    tpu.vector_store %arg7[%c0_25, %c0_26, %c0_27], %41 {strides = array<i32>} : memref<1x72x128xbf16, #tpu.memory_space<vmem>>, vector<1x72x128xbf16>,
    return
  }
  func.func @transform_0(%arg0: i32) -> (i32, i32, i32) {
    %c0_i32 = arith.constant 0 : i32
    %c0_i32_0 = arith.constant 0 : i32
    %c0_i32_1 = arith.constant 0 : i32
    return %arg0, %c0_i32, %c0_i32_0 : i32, i32, i32
  }
  func.func @transform_1(%arg0: i32) -> (i32, i32) {
    %c0_i32 = arith.constant 0 : i32
    %c0_i32_0 = arith.constant 0 : i32
    %c0_i32_1 = arith.constant 0 : i32
    return %c0_i32, %c0_i32_0 : i32, i32
  }
  func.func @transform_2(%arg0: i32) -> (i32, i32) {
    %c0_i32 = arith.constant 0 : i32
    %c0_i32_0 = arith.constant 0 : i32
    %c0_i32_1 = arith.constant 0 : i32
    return %c0_i32, %c0_i32_0 : i32, i32
  }
  func.func @transform_3(%arg0: i32) -> (i32, i32) {
    %c0_i32 = arith.constant 0 : i32
    %c0_i32_0 = arith.constant 0 : i32
    %c0_i32_1 = arith.constant 0 : i32
    return %c0_i32, %c0_i32_0 : i32, i32
  }
  func.func @transform_4(%arg0: i32) -> (i32, i32) {
    %c0_i32 = arith.constant 0 : i32
    %c0_i32_0 = arith.constant 0 : i32
    %c0_i32_1 = arith.constant 0 : i32
    return %c0_i32, %c0_i32_0 : i32, i32
  }
  func.func @transform_5(%arg0: i32) -> (i32, i32) {
    %c0_i32 = arith.constant 0 : i32
    %c0_i32_0 = arith.constant 0 : i32
    %c0_i32_1 = arith.constant 0 : i32
    return %c0_i32, %c0_i32_0 : i32, i32
  }
  func.func @transform_6(%arg0: i32) -> (i32, i32, i32) {
    %c0_i32 = arith.constant 0 : i32
    %c0_i32_0 = arith.constant 0 : i32
    %c0_i32_1 = arith.constant 0 : i32
    return %arg0, %c0_i32, %c0_i32_0 : i32, i32, i32
  }
}

module attributes {stable_mosaic.version = 11 : i64} {
  func.func @_conv_kernel(%arg0: i32, %arg1: memref<1x112x128xbf16, #tpu.memory_space<vmem>>, %arg2: memref<1152x128xbf16, #tpu.memory_space<vmem>>, %arg3: memref<1x128xf32, #tpu.memory_space<vmem>>, %arg4: memref<1x128xf32, #tpu.memory_space<vmem>>, %arg5: memref<80x1xf32, #tpu.memory_space<vmem>>, %arg6: memref<128x128xbf16, #tpu.memory_space<vmem>>, %arg7: memref<1x80x128xbf16, #tpu.memory_space<vmem>>) attributes {dimension_semantics = [#tpu.dimension_semantics<parallel>], iteration_bounds = array<i64: 2>, scalar_prefetch = 0 : i64, scratch_operands = 0 : i64, tpu.core_type = #tpu.core_type<tc>, window_params = [{transform_indices = @transform_0, window_bounds = array<i64: 1, 112, 128>}, {pipeline_mode = #tpu.pipeline_mode<synchronous>, transform_indices = @transform_1, window_bounds = array<i64: 1152, 128>}, {pipeline_mode = #tpu.pipeline_mode<synchronous>, transform_indices = @transform_2, window_bounds = array<i64: 1, 128>}, {pipeline_mode = #tpu.pipeline_mode<synchronous>, transform_indices = @transform_3, window_bounds = array<i64: 1, 128>}, {pipeline_mode = #tpu.pipeline_mode<synchronous>, transform_indices = @transform_4, window_bounds = array<i64: 80, 1>}, {pipeline_mode = #tpu.pipeline_mode<synchronous>, transform_indices = @transform_5, window_bounds = array<i64: 128, 128>}, {transform_indices = @transform_6, window_bounds = array<i64: 1, 80, 128>}]} {
    %c0 = arith.constant 0 : index
    %c0_0 = arith.constant 0 : index
    %c0_1 = arith.constant 0 : index
    %0 = vector.load %arg1[%c0, %c0_0, %c0_1] : memref<1x112x128xbf16, #tpu.memory_space<vmem>>, vector<1x80x128xbf16>
    %1 = vector.shape_cast %0 : vector<1x80x128xbf16> to vector<80x128xbf16>
    %c0_2 = arith.constant 0 : index
    %c1 = arith.constant 1 : index
    %c0_3 = arith.constant 0 : index
    %2 = vector.load %arg1[%c0_2, %c1, %c0_3] : memref<1x112x128xbf16, #tpu.memory_space<vmem>>, vector<1x80x128xbf16>
    %3 = vector.shape_cast %2 : vector<1x80x128xbf16> to vector<80x128xbf16>
    %c0_4 = arith.constant 0 : index
    %c2 = arith.constant 2 : index
    %c0_5 = arith.constant 0 : index
    %4 = vector.load %arg1[%c0_4, %c2, %c0_5] : memref<1x112x128xbf16, #tpu.memory_space<vmem>>, vector<1x80x128xbf16>
    %5 = vector.shape_cast %4 : vector<1x80x128xbf16> to vector<80x128xbf16>
    %c0_6 = arith.constant 0 : index
    %c10 = arith.constant 10 : index
    %c0_7 = arith.constant 0 : index
    %6 = vector.load %arg1[%c0_6, %c10, %c0_7] : memref<1x112x128xbf16, #tpu.memory_space<vmem>>, vector<1x80x128xbf16>
    %7 = vector.shape_cast %6 : vector<1x80x128xbf16> to vector<80x128xbf16>
    %c0_8 = arith.constant 0 : index
    %c11 = arith.constant 11 : index
    %c0_9 = arith.constant 0 : index
    %8 = vector.load %arg1[%c0_8, %c11, %c0_9] : memref<1x112x128xbf16, #tpu.memory_space<vmem>>, vector<1x80x128xbf16>
    %9 = vector.shape_cast %8 : vector<1x80x128xbf16> to vector<80x128xbf16>
    %c0_10 = arith.constant 0 : index
    %c12 = arith.constant 12 : index
    %c0_11 = arith.constant 0 : index
    %10 = vector.load %arg1[%c0_10, %c12, %c0_11] : memref<1x112x128xbf16, #tpu.memory_space<vmem>>, vector<1x80x128xbf16>
    %11 = vector.shape_cast %10 : vector<1x80x128xbf16> to vector<80x128xbf16>
    %c0_12 = arith.constant 0 : index
    %c20 = arith.constant 20 : index
    %c0_13 = arith.constant 0 : index
    %12 = vector.load %arg1[%c0_12, %c20, %c0_13] : memref<1x112x128xbf16, #tpu.memory_space<vmem>>, vector<1x80x128xbf16>
    %13 = vector.shape_cast %12 : vector<1x80x128xbf16> to vector<80x128xbf16>
    %c0_14 = arith.constant 0 : index
    %c21 = arith.constant 21 : index
    %c0_15 = arith.constant 0 : index
    %14 = vector.load %arg1[%c0_14, %c21, %c0_15] : memref<1x112x128xbf16, #tpu.memory_space<vmem>>, vector<1x80x128xbf16>
    %15 = vector.shape_cast %14 : vector<1x80x128xbf16> to vector<80x128xbf16>
    %c0_16 = arith.constant 0 : index
    %c22 = arith.constant 22 : index
    %c0_17 = arith.constant 0 : index
    %16 = vector.load %arg1[%c0_16, %c22, %c0_17] : memref<1x112x128xbf16, #tpu.memory_space<vmem>>, vector<1x80x128xbf16>
    %17 = vector.shape_cast %16 : vector<1x80x128xbf16> to vector<80x128xbf16>
    %18 = tpu.concatenate %1, %3, %5, %7, %9, %11, %13, %15, %17 in 1 : vector<80x128xbf16>, vector<80x128xbf16>, vector<80x128xbf16>, vector<80x128xbf16>, vector<80x128xbf16>, vector<80x128xbf16>, vector<80x128xbf16>, vector<80x128xbf16>, vector<80x128xbf16> -> vector<80x1152xbf16>
    %c0_18 = arith.constant 0 : index
    %c0_19 = arith.constant 0 : index
    %19 = vector.load %arg2[%c0_18, %c0_19] : memref<1152x128xbf16, #tpu.memory_space<vmem>>, vector<1152x128xbf16>
    %cst = arith.constant dense<0.000000e+00> : vector<80x128xf32>
    %20 = tpu.matmul %18, %19, %cst {dimension_numbers = #tpu.dot_dimension_numbers<[1], [0], [0], [1], [0, 0, 1, 1], [], []>} : vector<80x1152xbf16>, vector<1152x128xbf16>, vector<80x128xf32> -> vector<80x128xf32>
    %c0_20 = arith.constant 0 : index
    %c0_21 = arith.constant 0 : index
    %21 = vector.load %arg3[%c0_20, %c0_21] : memref<1x128xf32, #tpu.memory_space<vmem>>, vector<1x128xf32>
    %22 = vector.broadcast %21 : vector<1x128xf32> to vector<80x128xf32>
    %23 = arith.mulf %20, %22 : vector<80x128xf32>
    %c0_22 = arith.constant 0 : index
    %c0_23 = arith.constant 0 : index
    %24 = vector.load %arg4[%c0_22, %c0_23] : memref<1x128xf32, #tpu.memory_space<vmem>>, vector<1x128xf32>
    %25 = vector.broadcast %24 : vector<1x128xf32> to vector<80x128xf32>
    %26 = arith.addf %23, %25 : vector<80x128xf32>
    %cst_24 = arith.constant 0.000000e+00 : f32
    %27 = vector.broadcast %cst_24 : f32 to vector<80x128xf32>
    %28 = arith.maximumf %26, %27 : vector<80x128xf32>
    %c0_25 = arith.constant 0 : index
    %c0_26 = arith.constant 0 : index
    %29 = vector.load %arg5[%c0_25, %c0_26] : memref<80x1xf32, #tpu.memory_space<vmem>>, vector<80x1xf32>
    %30 = vector.broadcast %29 : vector<80x1xf32> to vector<80x128xf32>
    %31 = arith.mulf %28, %30 : vector<80x128xf32>
    %cst_27 = arith.constant dense<0.000000e+00> : vector<128xf32>
    %32 = vector.multi_reduction <add>, %31, %cst_27 [0] : vector<80x128xf32> to vector<128xf32>
    %33 = vector.shape_cast %32 : vector<128xf32> to vector<1x128xf32>
    %cst_28 = arith.constant 1.562500e-02 : f32
    %34 = vector.broadcast %cst_28 : f32 to vector<1x128xf32>
    %35 = arith.mulf %33, %34 : vector<1x128xf32>
    %36 = arith.truncf %35 : vector<1x128xf32> to vector<1x128xbf16>
    %c0_29 = arith.constant 0 : index
    %c0_30 = arith.constant 0 : index
    %37 = vector.load %arg6[%c0_29, %c0_30] : memref<128x128xbf16, #tpu.memory_space<vmem>>, vector<128x128xbf16>
    %cst_31 = arith.constant dense<0.000000e+00> : vector<1x128xf32>
    %38 = tpu.matmul %36, %37, %cst_31 {dimension_numbers = #tpu.dot_dimension_numbers<[1], [0], [0], [1], [0, 0, 1, 1], [], []>} : vector<1x128xbf16>, vector<128x128xbf16>, vector<1x128xf32> -> vector<1x128xf32>
    %cst_32 = arith.constant 0.000000e+00 : f32
    %39 = vector.broadcast %cst_32 : f32 to vector<1x128xf32>
    %40 = arith.subf %39, %38 : vector<1x128xf32>
    %41 = math.exp %40 : vector<1x128xf32>
    %cst_33 = arith.constant 1.000000e+00 : f32
    %42 = vector.broadcast %cst_33 : f32 to vector<1x128xf32>
    %43 = arith.addf %42, %41 : vector<1x128xf32>
    %cst_34 = arith.constant 1.000000e+00 : f32
    %44 = vector.broadcast %cst_34 : f32 to vector<1x128xf32>
    %45 = arith.divf %44, %43 : vector<1x128xf32>
    %46 = vector.broadcast %45 : vector<1x128xf32> to vector<80x128xf32>
    %47 = arith.mulf %31, %46 : vector<80x128xf32>
    %48 = arith.truncf %47 : vector<80x128xf32> to vector<80x128xbf16>
    %c0_35 = arith.constant 0 : index
    %c0_36 = arith.constant 0 : index
    %c0_37 = arith.constant 0 : index
    %49 = vector.load %arg7[%c0_35, %c0_36, %c0_37] : memref<1x80x128xbf16, #tpu.memory_space<vmem>>, vector<1x80x128xbf16>
    %50 = vector.shape_cast %49 : vector<1x80x128xbf16> to vector<80x128xbf16>
    %51 = vector.shape_cast %48 : vector<80x128xbf16> to vector<1x80x128xbf16>
    tpu.vector_store %arg7[%c0_35, %c0_36, %c0_37], %51 {strides = array<i32>} : memref<1x80x128xbf16, #tpu.memory_space<vmem>>, vector<1x80x128xbf16>,
    return
  }
  func.func @transform_0(%arg0: i32) -> (i32, i32, i32) {
    %c0_i32 = arith.constant 0 : i32
    %c0_i32_0 = arith.constant 0 : i32
    %c0_i32_1 = arith.constant 0 : i32
    return %arg0, %c0_i32, %c0_i32_0 : i32, i32, i32
  }
  func.func @transform_1(%arg0: i32) -> (i32, i32) {
    %c0_i32 = arith.constant 0 : i32
    %c0_i32_0 = arith.constant 0 : i32
    %c0_i32_1 = arith.constant 0 : i32
    return %c0_i32, %c0_i32_0 : i32, i32
  }
  func.func @transform_2(%arg0: i32) -> (i32, i32) {
    %c0_i32 = arith.constant 0 : i32
    %c0_i32_0 = arith.constant 0 : i32
    %c0_i32_1 = arith.constant 0 : i32
    return %c0_i32, %c0_i32_0 : i32, i32
  }
  func.func @transform_3(%arg0: i32) -> (i32, i32) {
    %c0_i32 = arith.constant 0 : i32
    %c0_i32_0 = arith.constant 0 : i32
    %c0_i32_1 = arith.constant 0 : i32
    return %c0_i32, %c0_i32_0 : i32, i32
  }
  func.func @transform_4(%arg0: i32) -> (i32, i32) {
    %c0_i32 = arith.constant 0 : i32
    %c0_i32_0 = arith.constant 0 : i32
    %c0_i32_1 = arith.constant 0 : i32
    return %c0_i32, %c0_i32_0 : i32, i32
  }
  func.func @transform_5(%arg0: i32) -> (i32, i32) {
    %c0_i32 = arith.constant 0 : i32
    %c0_i32_0 = arith.constant 0 : i32
    %c0_i32_1 = arith.constant 0 : i32
    return %c0_i32, %c0_i32_0 : i32, i32
  }
  func.func @transform_6(%arg0: i32) -> (i32, i32, i32) {
    %c0_i32 = arith.constant 0 : i32
    %c0_i32_0 = arith.constant 0 : i32
    %c0_i32_1 = arith.constant 0 : i32
    return %arg0, %c0_i32, %c0_i32_0 : i32, i32, i32
  }
}

module attributes {stable_mosaic.version = 11 : i64} {
  func.func @_conv_kernel(%arg0: i32, %arg1: memref<1x32x512xbf16, #tpu.memory_space<vmem>>, %arg2: memref<2048x128xbf16, #tpu.memory_space<vmem>>, %arg3: memref<1x128xf32, #tpu.memory_space<vmem>>, %arg4: memref<1x128xf32, #tpu.memory_space<vmem>>, %arg5: memref<20x1xf32, #tpu.memory_space<vmem>>, %arg6: memref<128x128xbf16, #tpu.memory_space<vmem>>, %arg7: memref<1x20x128xbf16, #tpu.memory_space<vmem>>) attributes {dimension_semantics = [#tpu.dimension_semantics<parallel>], iteration_bounds = array<i64: 2>, scalar_prefetch = 0 : i64, scratch_operands = 0 : i64, tpu.core_type = #tpu.core_type<tc>, window_params = [{transform_indices = @transform_0, window_bounds = array<i64: 1, 32, 512>}, {pipeline_mode = #tpu.pipeline_mode<synchronous>, transform_indices = @transform_1, window_bounds = array<i64: 2048, 128>}, {pipeline_mode = #tpu.pipeline_mode<synchronous>, transform_indices = @transform_2, window_bounds = array<i64: 1, 128>}, {pipeline_mode = #tpu.pipeline_mode<synchronous>, transform_indices = @transform_3, window_bounds = array<i64: 1, 128>}, {pipeline_mode = #tpu.pipeline_mode<synchronous>, transform_indices = @transform_4, window_bounds = array<i64: 20, 1>}, {pipeline_mode = #tpu.pipeline_mode<synchronous>, transform_indices = @transform_5, window_bounds = array<i64: 128, 128>}, {transform_indices = @transform_6, window_bounds = array<i64: 1, 20, 128>}]} {
    %c0 = arith.constant 0 : index
    %c0_0 = arith.constant 0 : index
    %c0_1 = arith.constant 0 : index
    %0 = vector.load %arg1[%c0, %c0_0, %c0_1] : memref<1x32x512xbf16, #tpu.memory_space<vmem>>, vector<1x20x512xbf16>
    %1 = vector.shape_cast %0 : vector<1x20x512xbf16> to vector<20x512xbf16>
    %c0_2 = arith.constant 0 : index
    %c1 = arith.constant 1 : index
    %c0_3 = arith.constant 0 : index
    %2 = vector.load %arg1[%c0_2, %c1, %c0_3] : memref<1x32x512xbf16, #tpu.memory_space<vmem>>, vector<1x20x512xbf16>
    %3 = vector.shape_cast %2 : vector<1x20x512xbf16> to vector<20x512xbf16>
    %c0_4 = arith.constant 0 : index
    %c5 = arith.constant 5 : index
    %c0_5 = arith.constant 0 : index
    %4 = vector.load %arg1[%c0_4, %c5, %c0_5] : memref<1x32x512xbf16, #tpu.memory_space<vmem>>, vector<1x20x512xbf16>
    %5 = vector.shape_cast %4 : vector<1x20x512xbf16> to vector<20x512xbf16>
    %c0_6 = arith.constant 0 : index
    %c6 = arith.constant 6 : index
    %c0_7 = arith.constant 0 : index
    %6 = vector.load %arg1[%c0_6, %c6, %c0_7] : memref<1x32x512xbf16, #tpu.memory_space<vmem>>, vector<1x20x512xbf16>
    %7 = vector.shape_cast %6 : vector<1x20x512xbf16> to vector<20x512xbf16>
    %8 = tpu.concatenate %1, %3, %5, %7 in 1 : vector<20x512xbf16>, vector<20x512xbf16>, vector<20x512xbf16>, vector<20x512xbf16> -> vector<20x2048xbf16>
    %c0_8 = arith.constant 0 : index
    %c0_9 = arith.constant 0 : index
    %9 = vector.load %arg2[%c0_8, %c0_9] : memref<2048x128xbf16, #tpu.memory_space<vmem>>, vector<2048x128xbf16>
    %cst = arith.constant dense<0.000000e+00> : vector<20x128xf32>
    %10 = tpu.matmul %8, %9, %cst {dimension_numbers = #tpu.dot_dimension_numbers<[1], [0], [0], [1], [0, 0, 1, 1], [], []>} : vector<20x2048xbf16>, vector<2048x128xbf16>, vector<20x128xf32> -> vector<20x128xf32>
    %c0_10 = arith.constant 0 : index
    %c0_11 = arith.constant 0 : index
    %11 = vector.load %arg3[%c0_10, %c0_11] : memref<1x128xf32, #tpu.memory_space<vmem>>, vector<1x128xf32>
    %12 = vector.broadcast %11 : vector<1x128xf32> to vector<20x128xf32>
    %13 = arith.mulf %10, %12 : vector<20x128xf32>
    %c0_12 = arith.constant 0 : index
    %c0_13 = arith.constant 0 : index
    %14 = vector.load %arg4[%c0_12, %c0_13] : memref<1x128xf32, #tpu.memory_space<vmem>>, vector<1x128xf32>
    %15 = vector.broadcast %14 : vector<1x128xf32> to vector<20x128xf32>
    %16 = arith.addf %13, %15 : vector<20x128xf32>
    %cst_14 = arith.constant 0.000000e+00 : f32
    %17 = vector.broadcast %cst_14 : f32 to vector<20x128xf32>
    %18 = arith.maximumf %16, %17 : vector<20x128xf32>
    %c0_15 = arith.constant 0 : index
    %c0_16 = arith.constant 0 : index
    %19 = vector.load %arg5[%c0_15, %c0_16] : memref<20x1xf32, #tpu.memory_space<vmem>>, vector<20x1xf32>
    %20 = vector.broadcast %19 : vector<20x1xf32> to vector<20x128xf32>
    %21 = arith.mulf %18, %20 : vector<20x128xf32>
    %cst_17 = arith.constant dense<0.000000e+00> : vector<128xf32>
    %22 = vector.multi_reduction <add>, %21, %cst_17 [0] : vector<20x128xf32> to vector<128xf32>
    %23 = vector.shape_cast %22 : vector<128xf32> to vector<1x128xf32>
    %cst_18 = arith.constant 6.250000e-02 : f32
    %24 = vector.broadcast %cst_18 : f32 to vector<1x128xf32>
    %25 = arith.mulf %23, %24 : vector<1x128xf32>
    %26 = arith.truncf %25 : vector<1x128xf32> to vector<1x128xbf16>
    %c0_19 = arith.constant 0 : index
    %c0_20 = arith.constant 0 : index
    %27 = vector.load %arg6[%c0_19, %c0_20] : memref<128x128xbf16, #tpu.memory_space<vmem>>, vector<128x128xbf16>
    %cst_21 = arith.constant dense<0.000000e+00> : vector<1x128xf32>
    %28 = tpu.matmul %26, %27, %cst_21 {dimension_numbers = #tpu.dot_dimension_numbers<[1], [0], [0], [1], [0, 0, 1, 1], [], []>} : vector<1x128xbf16>, vector<128x128xbf16>, vector<1x128xf32> -> vector<1x128xf32>
    %cst_22 = arith.constant 0.000000e+00 : f32
    %29 = vector.broadcast %cst_22 : f32 to vector<1x128xf32>
    %30 = arith.subf %29, %28 : vector<1x128xf32>
    %31 = math.exp %30 : vector<1x128xf32>
    %cst_23 = arith.constant 1.000000e+00 : f32
    %32 = vector.broadcast %cst_23 : f32 to vector<1x128xf32>
    %33 = arith.addf %32, %31 : vector<1x128xf32>
    %cst_24 = arith.constant 1.000000e+00 : f32
    %34 = vector.broadcast %cst_24 : f32 to vector<1x128xf32>
    %35 = arith.divf %34, %33 : vector<1x128xf32>
    %36 = vector.broadcast %35 : vector<1x128xf32> to vector<20x128xf32>
    %37 = arith.mulf %21, %36 : vector<20x128xf32>
    %38 = arith.truncf %37 : vector<20x128xf32> to vector<20x128xbf16>
    %c0_25 = arith.constant 0 : index
    %c0_26 = arith.constant 0 : index
    %c0_27 = arith.constant 0 : index
    %39 = vector.load %arg7[%c0_25, %c0_26, %c0_27] : memref<1x20x128xbf16, #tpu.memory_space<vmem>>, vector<1x20x128xbf16>
    %40 = vector.shape_cast %39 : vector<1x20x128xbf16> to vector<20x128xbf16>
    %41 = vector.shape_cast %38 : vector<20x128xbf16> to vector<1x20x128xbf16>
    tpu.vector_store %arg7[%c0_25, %c0_26, %c0_27], %41 {strides = array<i32>} : memref<1x20x128xbf16, #tpu.memory_space<vmem>>, vector<1x20x128xbf16>,
    return
  }
  func.func @transform_0(%arg0: i32) -> (i32, i32, i32) {
    %c0_i32 = arith.constant 0 : i32
    %c0_i32_0 = arith.constant 0 : i32
    %c0_i32_1 = arith.constant 0 : i32
    return %arg0, %c0_i32, %c0_i32_0 : i32, i32, i32
  }
  func.func @transform_1(%arg0: i32) -> (i32, i32) {
    %c0_i32 = arith.constant 0 : i32
    %c0_i32_0 = arith.constant 0 : i32
    %c0_i32_1 = arith.constant 0 : i32
    return %c0_i32, %c0_i32_0 : i32, i32
  }
  func.func @transform_2(%arg0: i32) -> (i32, i32) {
    %c0_i32 = arith.constant 0 : i32
    %c0_i32_0 = arith.constant 0 : i32
    %c0_i32_1 = arith.constant 0 : i32
    return %c0_i32, %c0_i32_0 : i32, i32
  }
  func.func @transform_3(%arg0: i32) -> (i32, i32) {
    %c0_i32 = arith.constant 0 : i32
    %c0_i32_0 = arith.constant 0 : i32
    %c0_i32_1 = arith.constant 0 : i32
    return %c0_i32, %c0_i32_0 : i32, i32
  }
  func.func @transform_4(%arg0: i32) -> (i32, i32) {
    %c0_i32 = arith.constant 0 : i32
    %c0_i32_0 = arith.constant 0 : i32
    %c0_i32_1 = arith.constant 0 : i32
    return %c0_i32, %c0_i32_0 : i32, i32
  }
  func.func @transform_5(%arg0: i32) -> (i32, i32) {
    %c0_i32 = arith.constant 0 : i32
    %c0_i32_0 = arith.constant 0 : i32
    %c0_i32_1 = arith.constant 0 : i32
    return %c0_i32, %c0_i32_0 : i32, i32
  }
  func.func @transform_6(%arg0: i32) -> (i32, i32, i32) {
    %c0_i32 = arith.constant 0 : i32
    %c0_i32_0 = arith.constant 0 : i32
    %c0_i32_1 = arith.constant 0 : i32
    return %arg0, %c0_i32, %c0_i32_0 : i32, i32, i32
  }
}

module attributes {stable_mosaic.version = 11 : i64} {
  func.func @_conv_kernel(%arg0: i32, %arg1: memref<1x48x128xbf16, #tpu.memory_space<vmem>>, %arg2: memref<1152x128xbf16, #tpu.memory_space<vmem>>, %arg3: memref<1x128xf32, #tpu.memory_space<vmem>>, %arg4: memref<1x128xf32, #tpu.memory_space<vmem>>, %arg5: memref<24x1xf32, #tpu.memory_space<vmem>>, %arg6: memref<128x128xbf16, #tpu.memory_space<vmem>>, %arg7: memref<1x24x128xbf16, #tpu.memory_space<vmem>>) attributes {dimension_semantics = [#tpu.dimension_semantics<parallel>], iteration_bounds = array<i64: 2>, scalar_prefetch = 0 : i64, scratch_operands = 0 : i64, tpu.core_type = #tpu.core_type<tc>, window_params = [{transform_indices = @transform_0, window_bounds = array<i64: 1, 48, 128>}, {pipeline_mode = #tpu.pipeline_mode<synchronous>, transform_indices = @transform_1, window_bounds = array<i64: 1152, 128>}, {pipeline_mode = #tpu.pipeline_mode<synchronous>, transform_indices = @transform_2, window_bounds = array<i64: 1, 128>}, {pipeline_mode = #tpu.pipeline_mode<synchronous>, transform_indices = @transform_3, window_bounds = array<i64: 1, 128>}, {pipeline_mode = #tpu.pipeline_mode<synchronous>, transform_indices = @transform_4, window_bounds = array<i64: 24, 1>}, {pipeline_mode = #tpu.pipeline_mode<synchronous>, transform_indices = @transform_5, window_bounds = array<i64: 128, 128>}, {transform_indices = @transform_6, window_bounds = array<i64: 1, 24, 128>}]} {
    %c0 = arith.constant 0 : index
    %c0_0 = arith.constant 0 : index
    %c0_1 = arith.constant 0 : index
    %0 = vector.load %arg1[%c0, %c0_0, %c0_1] : memref<1x48x128xbf16, #tpu.memory_space<vmem>>, vector<1x24x128xbf16>
    %1 = vector.shape_cast %0 : vector<1x24x128xbf16> to vector<24x128xbf16>
    %c0_2 = arith.constant 0 : index
    %c1 = arith.constant 1 : index
    %c0_3 = arith.constant 0 : index
    %2 = vector.load %arg1[%c0_2, %c1, %c0_3] : memref<1x48x128xbf16, #tpu.memory_space<vmem>>, vector<1x24x128xbf16>
    %3 = vector.shape_cast %2 : vector<1x24x128xbf16> to vector<24x128xbf16>
    %c0_4 = arith.constant 0 : index
    %c2 = arith.constant 2 : index
    %c0_5 = arith.constant 0 : index
    %4 = vector.load %arg1[%c0_4, %c2, %c0_5] : memref<1x48x128xbf16, #tpu.memory_space<vmem>>, vector<1x24x128xbf16>
    %5 = vector.shape_cast %4 : vector<1x24x128xbf16> to vector<24x128xbf16>
    %c0_6 = arith.constant 0 : index
    %c6 = arith.constant 6 : index
    %c0_7 = arith.constant 0 : index
    %6 = vector.load %arg1[%c0_6, %c6, %c0_7] : memref<1x48x128xbf16, #tpu.memory_space<vmem>>, vector<1x24x128xbf16>
    %7 = vector.shape_cast %6 : vector<1x24x128xbf16> to vector<24x128xbf16>
    %c0_8 = arith.constant 0 : index
    %c7 = arith.constant 7 : index
    %c0_9 = arith.constant 0 : index
    %8 = vector.load %arg1[%c0_8, %c7, %c0_9] : memref<1x48x128xbf16, #tpu.memory_space<vmem>>, vector<1x24x128xbf16>
    %9 = vector.shape_cast %8 : vector<1x24x128xbf16> to vector<24x128xbf16>
    %c0_10 = arith.constant 0 : index
    %c8 = arith.constant 8 : index
    %c0_11 = arith.constant 0 : index
    %10 = vector.load %arg1[%c0_10, %c8, %c0_11] : memref<1x48x128xbf16, #tpu.memory_space<vmem>>, vector<1x24x128xbf16>
    %11 = vector.shape_cast %10 : vector<1x24x128xbf16> to vector<24x128xbf16>
    %c0_12 = arith.constant 0 : index
    %c12 = arith.constant 12 : index
    %c0_13 = arith.constant 0 : index
    %12 = vector.load %arg1[%c0_12, %c12, %c0_13] : memref<1x48x128xbf16, #tpu.memory_space<vmem>>, vector<1x24x128xbf16>
    %13 = vector.shape_cast %12 : vector<1x24x128xbf16> to vector<24x128xbf16>
    %c0_14 = arith.constant 0 : index
    %c13 = arith.constant 13 : index
    %c0_15 = arith.constant 0 : index
    %14 = vector.load %arg1[%c0_14, %c13, %c0_15] : memref<1x48x128xbf16, #tpu.memory_space<vmem>>, vector<1x24x128xbf16>
    %15 = vector.shape_cast %14 : vector<1x24x128xbf16> to vector<24x128xbf16>
    %c0_16 = arith.constant 0 : index
    %c14 = arith.constant 14 : index
    %c0_17 = arith.constant 0 : index
    %16 = vector.load %arg1[%c0_16, %c14, %c0_17] : memref<1x48x128xbf16, #tpu.memory_space<vmem>>, vector<1x24x128xbf16>
    %17 = vector.shape_cast %16 : vector<1x24x128xbf16> to vector<24x128xbf16>
    %18 = tpu.concatenate %1, %3, %5, %7, %9, %11, %13, %15, %17 in 1 : vector<24x128xbf16>, vector<24x128xbf16>, vector<24x128xbf16>, vector<24x128xbf16>, vector<24x128xbf16>, vector<24x128xbf16>, vector<24x128xbf16>, vector<24x128xbf16>, vector<24x128xbf16> -> vector<24x1152xbf16>
    %c0_18 = arith.constant 0 : index
    %c0_19 = arith.constant 0 : index
    %19 = vector.load %arg2[%c0_18, %c0_19] : memref<1152x128xbf16, #tpu.memory_space<vmem>>, vector<1152x128xbf16>
    %cst = arith.constant dense<0.000000e+00> : vector<24x128xf32>
    %20 = tpu.matmul %18, %19, %cst {dimension_numbers = #tpu.dot_dimension_numbers<[1], [0], [0], [1], [0, 0, 1, 1], [], []>} : vector<24x1152xbf16>, vector<1152x128xbf16>, vector<24x128xf32> -> vector<24x128xf32>
    %c0_20 = arith.constant 0 : index
    %c0_21 = arith.constant 0 : index
    %21 = vector.load %arg3[%c0_20, %c0_21] : memref<1x128xf32, #tpu.memory_space<vmem>>, vector<1x128xf32>
    %22 = vector.broadcast %21 : vector<1x128xf32> to vector<24x128xf32>
    %23 = arith.mulf %20, %22 : vector<24x128xf32>
    %c0_22 = arith.constant 0 : index
    %c0_23 = arith.constant 0 : index
    %24 = vector.load %arg4[%c0_22, %c0_23] : memref<1x128xf32, #tpu.memory_space<vmem>>, vector<1x128xf32>
    %25 = vector.broadcast %24 : vector<1x128xf32> to vector<24x128xf32>
    %26 = arith.addf %23, %25 : vector<24x128xf32>
    %cst_24 = arith.constant 0.000000e+00 : f32
    %27 = vector.broadcast %cst_24 : f32 to vector<24x128xf32>
    %28 = arith.maximumf %26, %27 : vector<24x128xf32>
    %c0_25 = arith.constant 0 : index
    %c0_26 = arith.constant 0 : index
    %29 = vector.load %arg5[%c0_25, %c0_26] : memref<24x1xf32, #tpu.memory_space<vmem>>, vector<24x1xf32>
    %30 = vector.broadcast %29 : vector<24x1xf32> to vector<24x128xf32>
    %31 = arith.mulf %28, %30 : vector<24x128xf32>
    %cst_27 = arith.constant dense<0.000000e+00> : vector<128xf32>
    %32 = vector.multi_reduction <add>, %31, %cst_27 [0] : vector<24x128xf32> to vector<128xf32>
    %33 = vector.shape_cast %32 : vector<128xf32> to vector<1x128xf32>
    %cst_28 = arith.constant 6.250000e-02 : f32
    %34 = vector.broadcast %cst_28 : f32 to vector<1x128xf32>
    %35 = arith.mulf %33, %34 : vector<1x128xf32>
    %36 = arith.truncf %35 : vector<1x128xf32> to vector<1x128xbf16>
    %c0_29 = arith.constant 0 : index
    %c0_30 = arith.constant 0 : index
    %37 = vector.load %arg6[%c0_29, %c0_30] : memref<128x128xbf16, #tpu.memory_space<vmem>>, vector<128x128xbf16>
    %cst_31 = arith.constant dense<0.000000e+00> : vector<1x128xf32>
    %38 = tpu.matmul %36, %37, %cst_31 {dimension_numbers = #tpu.dot_dimension_numbers<[1], [0], [0], [1], [0, 0, 1, 1], [], []>} : vector<1x128xbf16>, vector<128x128xbf16>, vector<1x128xf32> -> vector<1x128xf32>
    %cst_32 = arith.constant 0.000000e+00 : f32
    %39 = vector.broadcast %cst_32 : f32 to vector<1x128xf32>
    %40 = arith.subf %39, %38 : vector<1x128xf32>
    %41 = math.exp %40 : vector<1x128xf32>
    %cst_33 = arith.constant 1.000000e+00 : f32
    %42 = vector.broadcast %cst_33 : f32 to vector<1x128xf32>
    %43 = arith.addf %42, %41 : vector<1x128xf32>
    %cst_34 = arith.constant 1.000000e+00 : f32
    %44 = vector.broadcast %cst_34 : f32 to vector<1x128xf32>
    %45 = arith.divf %44, %43 : vector<1x128xf32>
    %46 = vector.broadcast %45 : vector<1x128xf32> to vector<24x128xf32>
    %47 = arith.mulf %31, %46 : vector<24x128xf32>
    %48 = arith.truncf %47 : vector<24x128xf32> to vector<24x128xbf16>
    %c0_35 = arith.constant 0 : index
    %c0_36 = arith.constant 0 : index
    %c0_37 = arith.constant 0 : index
    %49 = vector.load %arg7[%c0_35, %c0_36, %c0_37] : memref<1x24x128xbf16, #tpu.memory_space<vmem>>, vector<1x24x128xbf16>
    %50 = vector.shape_cast %49 : vector<1x24x128xbf16> to vector<24x128xbf16>
    %51 = vector.shape_cast %48 : vector<24x128xbf16> to vector<1x24x128xbf16>
    tpu.vector_store %arg7[%c0_35, %c0_36, %c0_37], %51 {strides = array<i32>} : memref<1x24x128xbf16, #tpu.memory_space<vmem>>, vector<1x24x128xbf16>,
    return
  }
  func.func @transform_0(%arg0: i32) -> (i32, i32, i32) {
    %c0_i32 = arith.constant 0 : i32
    %c0_i32_0 = arith.constant 0 : i32
    %c0_i32_1 = arith.constant 0 : i32
    return %arg0, %c0_i32, %c0_i32_0 : i32, i32, i32
  }
  func.func @transform_1(%arg0: i32) -> (i32, i32) {
    %c0_i32 = arith.constant 0 : i32
    %c0_i32_0 = arith.constant 0 : i32
    %c0_i32_1 = arith.constant 0 : i32
    return %c0_i32, %c0_i32_0 : i32, i32
  }
  func.func @transform_2(%arg0: i32) -> (i32, i32) {
    %c0_i32 = arith.constant 0 : i32
    %c0_i32_0 = arith.constant 0 : i32
    %c0_i32_1 = arith.constant 0 : i32
    return %c0_i32, %c0_i32_0 : i32, i32
  }
  func.func @transform_3(%arg0: i32) -> (i32, i32) {
    %c0_i32 = arith.constant 0 : i32
    %c0_i32_0 = arith.constant 0 : i32
    %c0_i32_1 = arith.constant 0 : i32
    return %c0_i32, %c0_i32_0 : i32, i32
  }
  func.func @transform_4(%arg0: i32) -> (i32, i32) {
    %c0_i32 = arith.constant 0 : i32
    %c0_i32_0 = arith.constant 0 : i32
    %c0_i32_1 = arith.constant 0 : i32
    return %c0_i32, %c0_i32_0 : i32, i32
  }
  func.func @transform_5(%arg0: i32) -> (i32, i32) {
    %c0_i32 = arith.constant 0 : i32
    %c0_i32_0 = arith.constant 0 : i32
    %c0_i32_1 = arith.constant 0 : i32
    return %c0_i32, %c0_i32_0 : i32, i32
  }
  func.func @transform_6(%arg0: i32) -> (i32, i32, i32) {
    %c0_i32 = arith.constant 0 : i32
    %c0_i32_0 = arith.constant 0 : i32
    %c0_i32_1 = arith.constant 0 : i32
    return %arg0, %c0_i32, %c0_i32_0 : i32, i32, i32
  }
}

module attributes {stable_mosaic.version = 11 : i64} {
  func.func @_conv_kernel(%arg0: i32, %arg1: memref<1x16x512xbf16, #tpu.memory_space<vmem>>, %arg2: memref<2048x128xbf16, #tpu.memory_space<vmem>>, %arg3: memref<1x128xf32, #tpu.memory_space<vmem>>, %arg4: memref<1x128xf32, #tpu.memory_space<vmem>>, %arg5: memref<6x1xf32, #tpu.memory_space<vmem>>, %arg6: memref<128x128xbf16, #tpu.memory_space<vmem>>, %arg7: memref<1x6x128xbf16, #tpu.memory_space<vmem>>) attributes {dimension_semantics = [#tpu.dimension_semantics<parallel>], iteration_bounds = array<i64: 2>, scalar_prefetch = 0 : i64, scratch_operands = 0 : i64, tpu.core_type = #tpu.core_type<tc>, window_params = [{transform_indices = @transform_0, window_bounds = array<i64: 1, 16, 512>}, {pipeline_mode = #tpu.pipeline_mode<synchronous>, transform_indices = @transform_1, window_bounds = array<i64: 2048, 128>}, {pipeline_mode = #tpu.pipeline_mode<synchronous>, transform_indices = @transform_2, window_bounds = array<i64: 1, 128>}, {pipeline_mode = #tpu.pipeline_mode<synchronous>, transform_indices = @transform_3, window_bounds = array<i64: 1, 128>}, {pipeline_mode = #tpu.pipeline_mode<synchronous>, transform_indices = @transform_4, window_bounds = array<i64: 6, 1>}, {pipeline_mode = #tpu.pipeline_mode<synchronous>, transform_indices = @transform_5, window_bounds = array<i64: 128, 128>}, {transform_indices = @transform_6, window_bounds = array<i64: 1, 6, 128>}]} {
    %c0 = arith.constant 0 : index
    %c0_0 = arith.constant 0 : index
    %c0_1 = arith.constant 0 : index
    %0 = vector.load %arg1[%c0, %c0_0, %c0_1] : memref<1x16x512xbf16, #tpu.memory_space<vmem>>, vector<1x6x512xbf16>
    %1 = vector.shape_cast %0 : vector<1x6x512xbf16> to vector<6x512xbf16>
    %c0_2 = arith.constant 0 : index
    %c1 = arith.constant 1 : index
    %c0_3 = arith.constant 0 : index
    %2 = vector.load %arg1[%c0_2, %c1, %c0_3] : memref<1x16x512xbf16, #tpu.memory_space<vmem>>, vector<1x6x512xbf16>
    %3 = vector.shape_cast %2 : vector<1x6x512xbf16> to vector<6x512xbf16>
    %c0_4 = arith.constant 0 : index
    %c3 = arith.constant 3 : index
    %c0_5 = arith.constant 0 : index
    %4 = vector.load %arg1[%c0_4, %c3, %c0_5] : memref<1x16x512xbf16, #tpu.memory_space<vmem>>, vector<1x6x512xbf16>
    %5 = vector.shape_cast %4 : vector<1x6x512xbf16> to vector<6x512xbf16>
    %c0_6 = arith.constant 0 : index
    %c4 = arith.constant 4 : index
    %c0_7 = arith.constant 0 : index
    %6 = vector.load %arg1[%c0_6, %c4, %c0_7] : memref<1x16x512xbf16, #tpu.memory_space<vmem>>, vector<1x6x512xbf16>
    %7 = vector.shape_cast %6 : vector<1x6x512xbf16> to vector<6x512xbf16>
    %8 = tpu.concatenate %1, %3, %5, %7 in 1 : vector<6x512xbf16>, vector<6x512xbf16>, vector<6x512xbf16>, vector<6x512xbf16> -> vector<6x2048xbf16>
    %c0_8 = arith.constant 0 : index
    %c0_9 = arith.constant 0 : index
    %9 = vector.load %arg2[%c0_8, %c0_9] : memref<2048x128xbf16, #tpu.memory_space<vmem>>, vector<2048x128xbf16>
    %cst = arith.constant dense<0.000000e+00> : vector<6x128xf32>
    %10 = tpu.matmul %8, %9, %cst {dimension_numbers = #tpu.dot_dimension_numbers<[1], [0], [0], [1], [0, 0, 1, 1], [], []>} : vector<6x2048xbf16>, vector<2048x128xbf16>, vector<6x128xf32> -> vector<6x128xf32>
    %c0_10 = arith.constant 0 : index
    %c0_11 = arith.constant 0 : index
    %11 = vector.load %arg3[%c0_10, %c0_11] : memref<1x128xf32, #tpu.memory_space<vmem>>, vector<1x128xf32>
    %12 = vector.broadcast %11 : vector<1x128xf32> to vector<6x128xf32>
    %13 = arith.mulf %10, %12 : vector<6x128xf32>
    %c0_12 = arith.constant 0 : index
    %c0_13 = arith.constant 0 : index
    %14 = vector.load %arg4[%c0_12, %c0_13] : memref<1x128xf32, #tpu.memory_space<vmem>>, vector<1x128xf32>
    %15 = vector.broadcast %14 : vector<1x128xf32> to vector<6x128xf32>
    %16 = arith.addf %13, %15 : vector<6x128xf32>
    %cst_14 = arith.constant 0.000000e+00 : f32
    %17 = vector.broadcast %cst_14 : f32 to vector<6x128xf32>
    %18 = arith.maximumf %16, %17 : vector<6x128xf32>
    %c0_15 = arith.constant 0 : index
    %c0_16 = arith.constant 0 : index
    %19 = vector.load %arg5[%c0_15, %c0_16] : memref<6x1xf32, #tpu.memory_space<vmem>>, vector<6x1xf32>
    %20 = vector.broadcast %19 : vector<6x1xf32> to vector<6x128xf32>
    %21 = arith.mulf %18, %20 : vector<6x128xf32>
    %cst_17 = arith.constant dense<0.000000e+00> : vector<128xf32>
    %22 = vector.multi_reduction <add>, %21, %cst_17 [0] : vector<6x128xf32> to vector<128xf32>
    %23 = vector.shape_cast %22 : vector<128xf32> to vector<1x128xf32>
    %cst_18 = arith.constant 2.500000e-01 : f32
    %24 = vector.broadcast %cst_18 : f32 to vector<1x128xf32>
    %25 = arith.mulf %23, %24 : vector<1x128xf32>
    %26 = arith.truncf %25 : vector<1x128xf32> to vector<1x128xbf16>
    %c0_19 = arith.constant 0 : index
    %c0_20 = arith.constant 0 : index
    %27 = vector.load %arg6[%c0_19, %c0_20] : memref<128x128xbf16, #tpu.memory_space<vmem>>, vector<128x128xbf16>
    %cst_21 = arith.constant dense<0.000000e+00> : vector<1x128xf32>
    %28 = tpu.matmul %26, %27, %cst_21 {dimension_numbers = #tpu.dot_dimension_numbers<[1], [0], [0], [1], [0, 0, 1, 1], [], []>} : vector<1x128xbf16>, vector<128x128xbf16>, vector<1x128xf32> -> vector<1x128xf32>
    %cst_22 = arith.constant 0.000000e+00 : f32
    %29 = vector.broadcast %cst_22 : f32 to vector<1x128xf32>
    %30 = arith.subf %29, %28 : vector<1x128xf32>
    %31 = math.exp %30 : vector<1x128xf32>
    %cst_23 = arith.constant 1.000000e+00 : f32
    %32 = vector.broadcast %cst_23 : f32 to vector<1x128xf32>
    %33 = arith.addf %32, %31 : vector<1x128xf32>
    %cst_24 = arith.constant 1.000000e+00 : f32
    %34 = vector.broadcast %cst_24 : f32 to vector<1x128xf32>
    %35 = arith.divf %34, %33 : vector<1x128xf32>
    %36 = vector.broadcast %35 : vector<1x128xf32> to vector<6x128xf32>
    %37 = arith.mulf %21, %36 : vector<6x128xf32>
    %38 = arith.truncf %37 : vector<6x128xf32> to vector<6x128xbf16>
    %c0_25 = arith.constant 0 : index
    %c0_26 = arith.constant 0 : index
    %c0_27 = arith.constant 0 : index
    %39 = vector.load %arg7[%c0_25, %c0_26, %c0_27] : memref<1x6x128xbf16, #tpu.memory_space<vmem>>, vector<1x6x128xbf16>
    %40 = vector.shape_cast %39 : vector<1x6x128xbf16> to vector<6x128xbf16>
    %41 = vector.shape_cast %38 : vector<6x128xbf16> to vector<1x6x128xbf16>
    tpu.vector_store %arg7[%c0_25, %c0_26, %c0_27], %41 {strides = array<i32>} : memref<1x6x128xbf16, #tpu.memory_space<vmem>>, vector<1x6x128xbf16>,
    return
  }
  func.func @transform_0(%arg0: i32) -> (i32, i32, i32) {
    %c0_i32 = arith.constant 0 : i32
    %c0_i32_0 = arith.constant 0 : i32
    %c0_i32_1 = arith.constant 0 : i32
    return %arg0, %c0_i32, %c0_i32_0 : i32, i32, i32
  }
  func.func @transform_1(%arg0: i32) -> (i32, i32) {
    %c0_i32 = arith.constant 0 : i32
    %c0_i32_0 = arith.constant 0 : i32
    %c0_i32_1 = arith.constant 0 : i32
    return %c0_i32, %c0_i32_0 : i32, i32
  }
  func.func @transform_2(%arg0: i32) -> (i32, i32) {
    %c0_i32 = arith.constant 0 : i32
    %c0_i32_0 = arith.constant 0 : i32
    %c0_i32_1 = arith.constant 0 : i32
    return %c0_i32, %c0_i32_0 : i32, i32
  }
  func.func @transform_3(%arg0: i32) -> (i32, i32) {
    %c0_i32 = arith.constant 0 : i32
    %c0_i32_0 = arith.constant 0 : i32
    %c0_i32_1 = arith.constant 0 : i32
    return %c0_i32, %c0_i32_0 : i32, i32
  }
  func.func @transform_4(%arg0: i32) -> (i32, i32) {
    %c0_i32 = arith.constant 0 : i32
    %c0_i32_0 = arith.constant 0 : i32
    %c0_i32_1 = arith.constant 0 : i32
    return %c0_i32, %c0_i32_0 : i32, i32
  }
  func.func @transform_5(%arg0: i32) -> (i32, i32) {
    %c0_i32 = arith.constant 0 : i32
    %c0_i32_0 = arith.constant 0 : i32
    %c0_i32_1 = arith.constant 0 : i32
    return %c0_i32, %c0_i32_0 : i32, i32
  }
  func.func @transform_6(%arg0: i32) -> (i32, i32, i32) {
    %c0_i32 = arith.constant 0 : i32
    %c0_i32_0 = arith.constant 0 : i32
    %c0_i32_1 = arith.constant 0 : i32
    return %arg0, %c0_i32, %c0_i32_0 : i32, i32, i32
  }
}

module attributes {stable_mosaic.version = 11 : i64} {
  func.func @_conv_kernel(%arg0: i32, %arg1: memref<1x32x128xbf16, #tpu.memory_space<vmem>>, %arg2: memref<1152x128xbf16, #tpu.memory_space<vmem>>, %arg3: memref<1x128xf32, #tpu.memory_space<vmem>>, %arg4: memref<1x128xf32, #tpu.memory_space<vmem>>, %arg5: memref<8x1xf32, #tpu.memory_space<vmem>>, %arg6: memref<128x128xbf16, #tpu.memory_space<vmem>>, %arg7: memref<1x8x128xbf16, #tpu.memory_space<vmem>>) attributes {dimension_semantics = [#tpu.dimension_semantics<parallel>], iteration_bounds = array<i64: 2>, scalar_prefetch = 0 : i64, scratch_operands = 0 : i64, tpu.core_type = #tpu.core_type<tc>, window_params = [{transform_indices = @transform_0, window_bounds = array<i64: 1, 32, 128>}, {pipeline_mode = #tpu.pipeline_mode<synchronous>, transform_indices = @transform_1, window_bounds = array<i64: 1152, 128>}, {pipeline_mode = #tpu.pipeline_mode<synchronous>, transform_indices = @transform_2, window_bounds = array<i64: 1, 128>}, {pipeline_mode = #tpu.pipeline_mode<synchronous>, transform_indices = @transform_3, window_bounds = array<i64: 1, 128>}, {pipeline_mode = #tpu.pipeline_mode<synchronous>, transform_indices = @transform_4, window_bounds = array<i64: 8, 1>}, {pipeline_mode = #tpu.pipeline_mode<synchronous>, transform_indices = @transform_5, window_bounds = array<i64: 128, 128>}, {transform_indices = @transform_6, window_bounds = array<i64: 1, 8, 128>}]} {
    %c0 = arith.constant 0 : index
    %c0_0 = arith.constant 0 : index
    %c0_1 = arith.constant 0 : index
    %0 = vector.load %arg1[%c0, %c0_0, %c0_1] : memref<1x32x128xbf16, #tpu.memory_space<vmem>>, vector<1x8x128xbf16>
    %1 = vector.shape_cast %0 : vector<1x8x128xbf16> to vector<8x128xbf16>
    %c0_2 = arith.constant 0 : index
    %c1 = arith.constant 1 : index
    %c0_3 = arith.constant 0 : index
    %2 = vector.load %arg1[%c0_2, %c1, %c0_3] : memref<1x32x128xbf16, #tpu.memory_space<vmem>>, vector<1x8x128xbf16>
    %3 = vector.shape_cast %2 : vector<1x8x128xbf16> to vector<8x128xbf16>
    %c0_4 = arith.constant 0 : index
    %c2 = arith.constant 2 : index
    %c0_5 = arith.constant 0 : index
    %4 = vector.load %arg1[%c0_4, %c2, %c0_5] : memref<1x32x128xbf16, #tpu.memory_space<vmem>>, vector<1x8x128xbf16>
    %5 = vector.shape_cast %4 : vector<1x8x128xbf16> to vector<8x128xbf16>
    %c0_6 = arith.constant 0 : index
    %c4 = arith.constant 4 : index
    %c0_7 = arith.constant 0 : index
    %6 = vector.load %arg1[%c0_6, %c4, %c0_7] : memref<1x32x128xbf16, #tpu.memory_space<vmem>>, vector<1x8x128xbf16>
    %7 = vector.shape_cast %6 : vector<1x8x128xbf16> to vector<8x128xbf16>
    %c0_8 = arith.constant 0 : index
    %c5 = arith.constant 5 : index
    %c0_9 = arith.constant 0 : index
    %8 = vector.load %arg1[%c0_8, %c5, %c0_9] : memref<1x32x128xbf16, #tpu.memory_space<vmem>>, vector<1x8x128xbf16>
    %9 = vector.shape_cast %8 : vector<1x8x128xbf16> to vector<8x128xbf16>
    %c0_10 = arith.constant 0 : index
    %c6 = arith.constant 6 : index
    %c0_11 = arith.constant 0 : index
    %10 = vector.load %arg1[%c0_10, %c6, %c0_11] : memref<1x32x128xbf16, #tpu.memory_space<vmem>>, vector<1x8x128xbf16>
    %11 = vector.shape_cast %10 : vector<1x8x128xbf16> to vector<8x128xbf16>
    %c0_12 = arith.constant 0 : index
    %c8 = arith.constant 8 : index
    %c0_13 = arith.constant 0 : index
    %12 = vector.load %arg1[%c0_12, %c8, %c0_13] : memref<1x32x128xbf16, #tpu.memory_space<vmem>>, vector<1x8x128xbf16>
    %13 = vector.shape_cast %12 : vector<1x8x128xbf16> to vector<8x128xbf16>
    %c0_14 = arith.constant 0 : index
    %c9 = arith.constant 9 : index
    %c0_15 = arith.constant 0 : index
    %14 = vector.load %arg1[%c0_14, %c9, %c0_15] : memref<1x32x128xbf16, #tpu.memory_space<vmem>>, vector<1x8x128xbf16>
    %15 = vector.shape_cast %14 : vector<1x8x128xbf16> to vector<8x128xbf16>
    %c0_16 = arith.constant 0 : index
    %c10 = arith.constant 10 : index
    %c0_17 = arith.constant 0 : index
    %16 = vector.load %arg1[%c0_16, %c10, %c0_17] : memref<1x32x128xbf16, #tpu.memory_space<vmem>>, vector<1x8x128xbf16>
    %17 = vector.shape_cast %16 : vector<1x8x128xbf16> to vector<8x128xbf16>
    %18 = tpu.concatenate %1, %3, %5, %7, %9, %11, %13, %15, %17 in 1 : vector<8x128xbf16>, vector<8x128xbf16>, vector<8x128xbf16>, vector<8x128xbf16>, vector<8x128xbf16>, vector<8x128xbf16>, vector<8x128xbf16>, vector<8x128xbf16>, vector<8x128xbf16> -> vector<8x1152xbf16>
    %c0_18 = arith.constant 0 : index
    %c0_19 = arith.constant 0 : index
    %19 = vector.load %arg2[%c0_18, %c0_19] : memref<1152x128xbf16, #tpu.memory_space<vmem>>, vector<1152x128xbf16>
    %cst = arith.constant dense<0.000000e+00> : vector<8x128xf32>
    %20 = tpu.matmul %18, %19, %cst {dimension_numbers = #tpu.dot_dimension_numbers<[1], [0], [0], [1], [0, 0, 1, 1], [], []>} : vector<8x1152xbf16>, vector<1152x128xbf16>, vector<8x128xf32> -> vector<8x128xf32>
    %c0_20 = arith.constant 0 : index
    %c0_21 = arith.constant 0 : index
    %21 = vector.load %arg3[%c0_20, %c0_21] : memref<1x128xf32, #tpu.memory_space<vmem>>, vector<1x128xf32>
    %22 = vector.broadcast %21 : vector<1x128xf32> to vector<8x128xf32>
    %23 = arith.mulf %20, %22 : vector<8x128xf32>
    %c0_22 = arith.constant 0 : index
    %c0_23 = arith.constant 0 : index
    %24 = vector.load %arg4[%c0_22, %c0_23] : memref<1x128xf32, #tpu.memory_space<vmem>>, vector<1x128xf32>
    %25 = vector.broadcast %24 : vector<1x128xf32> to vector<8x128xf32>
    %26 = arith.addf %23, %25 : vector<8x128xf32>
    %cst_24 = arith.constant 0.000000e+00 : f32
    %27 = vector.broadcast %cst_24 : f32 to vector<8x128xf32>
    %28 = arith.maximumf %26, %27 : vector<8x128xf32>
    %c0_25 = arith.constant 0 : index
    %c0_26 = arith.constant 0 : index
    %29 = vector.load %arg5[%c0_25, %c0_26] : memref<8x1xf32, #tpu.memory_space<vmem>>, vector<8x1xf32>
    %30 = vector.broadcast %29 : vector<8x1xf32> to vector<8x128xf32>
    %31 = arith.mulf %28, %30 : vector<8x128xf32>
    %cst_27 = arith.constant dense<0.000000e+00> : vector<128xf32>
    %32 = vector.multi_reduction <add>, %31, %cst_27 [0] : vector<8x128xf32> to vector<128xf32>
    %33 = vector.shape_cast %32 : vector<128xf32> to vector<1x128xf32>
    %cst_28 = arith.constant 2.500000e-01 : f32
    %34 = vector.broadcast %cst_28 : f32 to vector<1x128xf32>
    %35 = arith.mulf %33, %34 : vector<1x128xf32>
    %36 = arith.truncf %35 : vector<1x128xf32> to vector<1x128xbf16>
    %c0_29 = arith.constant 0 : index
    %c0_30 = arith.constant 0 : index
    %37 = vector.load %arg6[%c0_29, %c0_30] : memref<128x128xbf16, #tpu.memory_space<vmem>>, vector<128x128xbf16>
    %cst_31 = arith.constant dense<0.000000e+00> : vector<1x128xf32>
    %38 = tpu.matmul %36, %37, %cst_31 {dimension_numbers = #tpu.dot_dimension_numbers<[1], [0], [0], [1], [0, 0, 1, 1], [], []>} : vector<1x128xbf16>, vector<128x128xbf16>, vector<1x128xf32> -> vector<1x128xf32>
    %cst_32 = arith.constant 0.000000e+00 : f32
    %39 = vector.broadcast %cst_32 : f32 to vector<1x128xf32>
    %40 = arith.subf %39, %38 : vector<1x128xf32>
    %41 = math.exp %40 : vector<1x128xf32>
    %cst_33 = arith.constant 1.000000e+00 : f32
    %42 = vector.broadcast %cst_33 : f32 to vector<1x128xf32>
    %43 = arith.addf %42, %41 : vector<1x128xf32>
    %cst_34 = arith.constant 1.000000e+00 : f32
    %44 = vector.broadcast %cst_34 : f32 to vector<1x128xf32>
    %45 = arith.divf %44, %43 : vector<1x128xf32>
    %46 = vector.broadcast %45 : vector<1x128xf32> to vector<8x128xf32>
    %47 = arith.mulf %31, %46 : vector<8x128xf32>
    %48 = arith.truncf %47 : vector<8x128xf32> to vector<8x128xbf16>
    %c0_35 = arith.constant 0 : index
    %c0_36 = arith.constant 0 : index
    %c0_37 = arith.constant 0 : index
    %49 = vector.load %arg7[%c0_35, %c0_36, %c0_37] : memref<1x8x128xbf16, #tpu.memory_space<vmem>>, vector<1x8x128xbf16>
    %50 = vector.shape_cast %49 : vector<1x8x128xbf16> to vector<8x128xbf16>
    %51 = vector.shape_cast %48 : vector<8x128xbf16> to vector<1x8x128xbf16>
    tpu.vector_store %arg7[%c0_35, %c0_36, %c0_37], %51 {strides = array<i32>} : memref<1x8x128xbf16, #tpu.memory_space<vmem>>, vector<1x8x128xbf16>,
    return
  }
  func.func @transform_0(%arg0: i32) -> (i32, i32, i32) {
    %c0_i32 = arith.constant 0 : i32
    %c0_i32_0 = arith.constant 0 : i32
    %c0_i32_1 = arith.constant 0 : i32
    return %arg0, %c0_i32, %c0_i32_0 : i32, i32, i32
  }
  func.func @transform_1(%arg0: i32) -> (i32, i32) {
    %c0_i32 = arith.constant 0 : i32
    %c0_i32_0 = arith.constant 0 : i32
    %c0_i32_1 = arith.constant 0 : i32
    return %c0_i32, %c0_i32_0 : i32, i32
  }
  func.func @transform_2(%arg0: i32) -> (i32, i32) {
    %c0_i32 = arith.constant 0 : i32
    %c0_i32_0 = arith.constant 0 : i32
    %c0_i32_1 = arith.constant 0 : i32
    return %c0_i32, %c0_i32_0 : i32, i32
  }
  func.func @transform_3(%arg0: i32) -> (i32, i32) {
    %c0_i32 = arith.constant 0 : i32
    %c0_i32_0 = arith.constant 0 : i32
    %c0_i32_1 = arith.constant 0 : i32
    return %c0_i32, %c0_i32_0 : i32, i32
  }
  func.func @transform_4(%arg0: i32) -> (i32, i32) {
    %c0_i32 = arith.constant 0 : i32
    %c0_i32_0 = arith.constant 0 : i32
    %c0_i32_1 = arith.constant 0 : i32
    return %c0_i32, %c0_i32_0 : i32, i32
  }
  func.func @transform_5(%arg0: i32) -> (i32, i32) {
    %c0_i32 = arith.constant 0 : i32
    %c0_i32_0 = arith.constant 0 : i32
    %c0_i32_1 = arith.constant 0 : i32
    return %c0_i32, %c0_i32_0 : i32, i32
  }
  func.func @transform_6(%arg0: i32) -> (i32, i32, i32) {
    %c0_i32 = arith.constant 0 : i32
    %c0_i32_0 = arith.constant 0 : i32
    %c0_i32_1 = arith.constant 0 : i32
    return %arg0, %c0_i32, %c0_i32_0 : i32, i32, i32
  }
}

module attributes {stable_mosaic.version = 11 : i64} {
  func.func @_conv_kernel(%arg0: i32, %arg1: memref<1x16x128xbf16, #tpu.memory_space<vmem>>, %arg2: memref<128x128xbf16, #tpu.memory_space<vmem>>, %arg3: memref<1x128xf32, #tpu.memory_space<vmem>>, %arg4: memref<1x128xf32, #tpu.memory_space<vmem>>, %arg5: memref<4x1xf32, #tpu.memory_space<vmem>>, %arg6: memref<128x128xbf16, #tpu.memory_space<vmem>>, %arg7: memref<1x4x128xbf16, #tpu.memory_space<vmem>>) attributes {dimension_semantics = [#tpu.dimension_semantics<parallel>], iteration_bounds = array<i64: 2>, scalar_prefetch = 0 : i64, scratch_operands = 0 : i64, tpu.core_type = #tpu.core_type<tc>, window_params = [{transform_indices = @transform_0, window_bounds = array<i64: 1, 16, 128>}, {pipeline_mode = #tpu.pipeline_mode<synchronous>, transform_indices = @transform_1, window_bounds = array<i64: 128, 128>}, {pipeline_mode = #tpu.pipeline_mode<synchronous>, transform_indices = @transform_2, window_bounds = array<i64: 1, 128>}, {pipeline_mode = #tpu.pipeline_mode<synchronous>, transform_indices = @transform_3, window_bounds = array<i64: 1, 128>}, {pipeline_mode = #tpu.pipeline_mode<synchronous>, transform_indices = @transform_4, window_bounds = array<i64: 4, 1>}, {pipeline_mode = #tpu.pipeline_mode<synchronous>, transform_indices = @transform_5, window_bounds = array<i64: 128, 128>}, {transform_indices = @transform_6, window_bounds = array<i64: 1, 4, 128>}]} {
    %c0 = arith.constant 0 : index
    %c0_0 = arith.constant 0 : index
    %c0_1 = arith.constant 0 : index
    %0 = vector.load %arg1[%c0, %c0_0, %c0_1] : memref<1x16x128xbf16, #tpu.memory_space<vmem>>, vector<1x4x128xbf16>
    %1 = vector.shape_cast %0 : vector<1x4x128xbf16> to vector<4x128xbf16>
    %c0_2 = arith.constant 0 : index
    %c0_3 = arith.constant 0 : index
    %2 = vector.load %arg2[%c0_2, %c0_3] : memref<128x128xbf16, #tpu.memory_space<vmem>>, vector<128x128xbf16>
    %cst = arith.constant dense<0.000000e+00> : vector<4x128xf32>
    %3 = tpu.matmul %1, %2, %cst {dimension_numbers = #tpu.dot_dimension_numbers<[1], [0], [0], [1], [0, 0, 1, 1], [], []>} : vector<4x128xbf16>, vector<128x128xbf16>, vector<4x128xf32> -> vector<4x128xf32>
    %c0_4 = arith.constant 0 : index
    %c0_5 = arith.constant 0 : index
    %4 = vector.load %arg3[%c0_4, %c0_5] : memref<1x128xf32, #tpu.memory_space<vmem>>, vector<1x128xf32>
    %5 = vector.broadcast %4 : vector<1x128xf32> to vector<4x128xf32>
    %6 = arith.mulf %3, %5 : vector<4x128xf32>
    %c0_6 = arith.constant 0 : index
    %c0_7 = arith.constant 0 : index
    %7 = vector.load %arg4[%c0_6, %c0_7] : memref<1x128xf32, #tpu.memory_space<vmem>>, vector<1x128xf32>
    %8 = vector.broadcast %7 : vector<1x128xf32> to vector<4x128xf32>
    %9 = arith.addf %6, %8 : vector<4x128xf32>
    %cst_8 = arith.constant 0.000000e+00 : f32
    %10 = vector.broadcast %cst_8 : f32 to vector<4x128xf32>
    %11 = arith.maximumf %9, %10 : vector<4x128xf32>
    %c0_9 = arith.constant 0 : index
    %c0_10 = arith.constant 0 : index
    %12 = vector.load %arg5[%c0_9, %c0_10] : memref<4x1xf32, #tpu.memory_space<vmem>>, vector<4x1xf32>
    %13 = vector.broadcast %12 : vector<4x1xf32> to vector<4x128xf32>
    %14 = arith.mulf %11, %13 : vector<4x128xf32>
    %cst_11 = arith.constant dense<0.000000e+00> : vector<128xf32>
    %15 = vector.multi_reduction <add>, %14, %cst_11 [0] : vector<4x128xf32> to vector<128xf32>
    %16 = vector.shape_cast %15 : vector<128xf32> to vector<1x128xf32>
    %cst_12 = arith.constant 2.500000e-01 : f32
    %17 = vector.broadcast %cst_12 : f32 to vector<1x128xf32>
    %18 = arith.mulf %16, %17 : vector<1x128xf32>
    %19 = arith.truncf %18 : vector<1x128xf32> to vector<1x128xbf16>
    %c0_13 = arith.constant 0 : index
    %c0_14 = arith.constant 0 : index
    %20 = vector.load %arg6[%c0_13, %c0_14] : memref<128x128xbf16, #tpu.memory_space<vmem>>, vector<128x128xbf16>
    %cst_15 = arith.constant dense<0.000000e+00> : vector<1x128xf32>
    %21 = tpu.matmul %19, %20, %cst_15 {dimension_numbers = #tpu.dot_dimension_numbers<[1], [0], [0], [1], [0, 0, 1, 1], [], []>} : vector<1x128xbf16>, vector<128x128xbf16>, vector<1x128xf32> -> vector<1x128xf32>
    %cst_16 = arith.constant 0.000000e+00 : f32
    %22 = vector.broadcast %cst_16 : f32 to vector<1x128xf32>
    %23 = arith.subf %22, %21 : vector<1x128xf32>
    %24 = math.exp %23 : vector<1x128xf32>
    %cst_17 = arith.constant 1.000000e+00 : f32
    %25 = vector.broadcast %cst_17 : f32 to vector<1x128xf32>
    %26 = arith.addf %25, %24 : vector<1x128xf32>
    %cst_18 = arith.constant 1.000000e+00 : f32
    %27 = vector.broadcast %cst_18 : f32 to vector<1x128xf32>
    %28 = arith.divf %27, %26 : vector<1x128xf32>
    %29 = vector.broadcast %28 : vector<1x128xf32> to vector<4x128xf32>
    %30 = arith.mulf %14, %29 : vector<4x128xf32>
    %31 = arith.truncf %30 : vector<4x128xf32> to vector<4x128xbf16>
    %c0_19 = arith.constant 0 : index
    %c0_20 = arith.constant 0 : index
    %c0_21 = arith.constant 0 : index
    %32 = vector.load %arg7[%c0_19, %c0_20, %c0_21] : memref<1x4x128xbf16, #tpu.memory_space<vmem>>, vector<1x4x128xbf16>
    %33 = vector.shape_cast %32 : vector<1x4x128xbf16> to vector<4x128xbf16>
    %34 = vector.shape_cast %31 : vector<4x128xbf16> to vector<1x4x128xbf16>
    tpu.vector_store %arg7[%c0_19, %c0_20, %c0_21], %34 {strides = array<i32>} : memref<1x4x128xbf16, #tpu.memory_space<vmem>>, vector<1x4x128xbf16>,
    return
  }
  func.func @transform_0(%arg0: i32) -> (i32, i32, i32) {
    %c0_i32 = arith.constant 0 : i32
    %c0_i32_0 = arith.constant 0 : i32
    %c0_i32_1 = arith.constant 0 : i32
    return %arg0, %c0_i32, %c0_i32_0 : i32, i32, i32
  }
  func.func @transform_1(%arg0: i32) -> (i32, i32) {
    %c0_i32 = arith.constant 0 : i32
    %c0_i32_0 = arith.constant 0 : i32
    %c0_i32_1 = arith.constant 0 : i32
    return %c0_i32, %c0_i32_0 : i32, i32
  }
  func.func @transform_2(%arg0: i32) -> (i32, i32) {
    %c0_i32 = arith.constant 0 : i32
    %c0_i32_0 = arith.constant 0 : i32
    %c0_i32_1 = arith.constant 0 : i32
    return %c0_i32, %c0_i32_0 : i32, i32
  }
  func.func @transform_3(%arg0: i32) -> (i32, i32) {
    %c0_i32 = arith.constant 0 : i32
    %c0_i32_0 = arith.constant 0 : i32
    %c0_i32_1 = arith.constant 0 : i32
    return %c0_i32, %c0_i32_0 : i32, i32
  }
  func.func @transform_4(%arg0: i32) -> (i32, i32) {
    %c0_i32 = arith.constant 0 : i32
    %c0_i32_0 = arith.constant 0 : i32
    %c0_i32_1 = arith.constant 0 : i32
    return %c0_i32, %c0_i32_0 : i32, i32
  }
  func.func @transform_5(%arg0: i32) -> (i32, i32) {
    %c0_i32 = arith.constant 0 : i32
    %c0_i32_0 = arith.constant 0 : i32
    %c0_i32_1 = arith.constant 0 : i32
    return %c0_i32, %c0_i32_0 : i32, i32
  }
  func.func @transform_6(%arg0: i32) -> (i32, i32, i32) {
    %c0_i32 = arith.constant 0 : i32
    %c0_i32_0 = arith.constant 0 : i32
    %c0_i32_1 = arith.constant 0 : i32
    return %arg0, %c0_i32, %c0_i32_0 : i32, i32, i32
  }
}

module attributes {stable_mosaic.version = 11 : i64} {
  func.func @_conv_kernel(%arg0: i32, %arg1: memref<1x16x128xbf16, #tpu.memory_space<vmem>>, %arg2: memref<128x128xbf16, #tpu.memory_space<vmem>>, %arg3: memref<1x128xf32, #tpu.memory_space<vmem>>, %arg4: memref<1x128xf32, #tpu.memory_space<vmem>>, %arg5: memref<16x1xf32, #tpu.memory_space<vmem>>, %arg6: memref<128x128xbf16, #tpu.memory_space<vmem>>, %arg7: memref<1x16x128xbf16, #tpu.memory_space<vmem>>) attributes {dimension_semantics = [#tpu.dimension_semantics<parallel>], iteration_bounds = array<i64: 2>, scalar_prefetch = 0 : i64, scratch_operands = 0 : i64, tpu.core_type = #tpu.core_type<tc>, window_params = [{transform_indices = @transform_0, window_bounds = array<i64: 1, 16, 128>}, {pipeline_mode = #tpu.pipeline_mode<synchronous>, transform_indices = @transform_1, window_bounds = array<i64: 128, 128>}, {pipeline_mode = #tpu.pipeline_mode<synchronous>, transform_indices = @transform_2, window_bounds = array<i64: 1, 128>}, {pipeline_mode = #tpu.pipeline_mode<synchronous>, transform_indices = @transform_3, window_bounds = array<i64: 1, 128>}, {pipeline_mode = #tpu.pipeline_mode<synchronous>, transform_indices = @transform_4, window_bounds = array<i64: 16, 1>}, {pipeline_mode = #tpu.pipeline_mode<synchronous>, transform_indices = @transform_5, window_bounds = array<i64: 128, 128>}, {transform_indices = @transform_6, window_bounds = array<i64: 1, 16, 128>}]} {
    %c0 = arith.constant 0 : index
    %c0_0 = arith.constant 0 : index
    %c0_1 = arith.constant 0 : index
    %0 = vector.load %arg1[%c0, %c0_0, %c0_1] : memref<1x16x128xbf16, #tpu.memory_space<vmem>>, vector<1x16x128xbf16>
    %1 = vector.shape_cast %0 : vector<1x16x128xbf16> to vector<16x128xbf16>
    %c0_2 = arith.constant 0 : index
    %c0_3 = arith.constant 0 : index
    %2 = vector.load %arg2[%c0_2, %c0_3] : memref<128x128xbf16, #tpu.memory_space<vmem>>, vector<128x128xbf16>
    %cst = arith.constant dense<0.000000e+00> : vector<16x128xf32>
    %3 = tpu.matmul %1, %2, %cst {dimension_numbers = #tpu.dot_dimension_numbers<[1], [0], [0], [1], [0, 0, 1, 1], [], []>} : vector<16x128xbf16>, vector<128x128xbf16>, vector<16x128xf32> -> vector<16x128xf32>
    %c0_4 = arith.constant 0 : index
    %c0_5 = arith.constant 0 : index
    %4 = vector.load %arg3[%c0_4, %c0_5] : memref<1x128xf32, #tpu.memory_space<vmem>>, vector<1x128xf32>
    %5 = vector.broadcast %4 : vector<1x128xf32> to vector<16x128xf32>
    %6 = arith.mulf %3, %5 : vector<16x128xf32>
    %c0_6 = arith.constant 0 : index
    %c0_7 = arith.constant 0 : index
    %7 = vector.load %arg4[%c0_6, %c0_7] : memref<1x128xf32, #tpu.memory_space<vmem>>, vector<1x128xf32>
    %8 = vector.broadcast %7 : vector<1x128xf32> to vector<16x128xf32>
    %9 = arith.addf %6, %8 : vector<16x128xf32>
    %cst_8 = arith.constant 0.000000e+00 : f32
    %10 = vector.broadcast %cst_8 : f32 to vector<16x128xf32>
    %11 = arith.maximumf %9, %10 : vector<16x128xf32>
    %c0_9 = arith.constant 0 : index
    %c0_10 = arith.constant 0 : index
    %12 = vector.load %arg5[%c0_9, %c0_10] : memref<16x1xf32, #tpu.memory_space<vmem>>, vector<16x1xf32>
    %13 = vector.broadcast %12 : vector<16x1xf32> to vector<16x128xf32>
    %14 = arith.mulf %11, %13 : vector<16x128xf32>
    %cst_11 = arith.constant dense<0.000000e+00> : vector<128xf32>
    %15 = vector.multi_reduction <add>, %14, %cst_11 [0] : vector<16x128xf32> to vector<128xf32>
    %16 = vector.shape_cast %15 : vector<128xf32> to vector<1x128xf32>
    %cst_12 = arith.constant 6.250000e-02 : f32
    %17 = vector.broadcast %cst_12 : f32 to vector<1x128xf32>
    %18 = arith.mulf %16, %17 : vector<1x128xf32>
    %19 = arith.truncf %18 : vector<1x128xf32> to vector<1x128xbf16>
    %c0_13 = arith.constant 0 : index
    %c0_14 = arith.constant 0 : index
    %20 = vector.load %arg6[%c0_13, %c0_14] : memref<128x128xbf16, #tpu.memory_space<vmem>>, vector<128x128xbf16>
    %cst_15 = arith.constant dense<0.000000e+00> : vector<1x128xf32>
    %21 = tpu.matmul %19, %20, %cst_15 {dimension_numbers = #tpu.dot_dimension_numbers<[1], [0], [0], [1], [0, 0, 1, 1], [], []>} : vector<1x128xbf16>, vector<128x128xbf16>, vector<1x128xf32> -> vector<1x128xf32>
    %cst_16 = arith.constant 0.000000e+00 : f32
    %22 = vector.broadcast %cst_16 : f32 to vector<1x128xf32>
    %23 = arith.subf %22, %21 : vector<1x128xf32>
    %24 = math.exp %23 : vector<1x128xf32>
    %cst_17 = arith.constant 1.000000e+00 : f32
    %25 = vector.broadcast %cst_17 : f32 to vector<1x128xf32>
    %26 = arith.addf %25, %24 : vector<1x128xf32>
    %cst_18 = arith.constant 1.000000e+00 : f32
    %27 = vector.broadcast %cst_18 : f32 to vector<1x128xf32>
    %28 = arith.divf %27, %26 : vector<1x128xf32>
    %29 = vector.broadcast %28 : vector<1x128xf32> to vector<16x128xf32>
    %30 = arith.mulf %14, %29 : vector<16x128xf32>
    %31 = arith.truncf %30 : vector<16x128xf32> to vector<16x128xbf16>
    %c0_19 = arith.constant 0 : index
    %c0_20 = arith.constant 0 : index
    %c0_21 = arith.constant 0 : index
    %32 = vector.load %arg7[%c0_19, %c0_20, %c0_21] : memref<1x16x128xbf16, #tpu.memory_space<vmem>>, vector<1x16x128xbf16>
    %33 = vector.shape_cast %32 : vector<1x16x128xbf16> to vector<16x128xbf16>
    %34 = vector.shape_cast %31 : vector<16x128xbf16> to vector<1x16x128xbf16>
    tpu.vector_store %arg7[%c0_19, %c0_20, %c0_21], %34 {strides = array<i32>} : memref<1x16x128xbf16, #tpu.memory_space<vmem>>, vector<1x16x128xbf16>,
    return
  }
  func.func @transform_0(%arg0: i32) -> (i32, i32, i32) {
    %c0_i32 = arith.constant 0 : i32
    %c0_i32_0 = arith.constant 0 : i32
    %c0_i32_1 = arith.constant 0 : i32
    return %arg0, %c0_i32, %c0_i32_0 : i32, i32, i32
  }
  func.func @transform_1(%arg0: i32) -> (i32, i32) {
    %c0_i32 = arith.constant 0 : i32
    %c0_i32_0 = arith.constant 0 : i32
    %c0_i32_1 = arith.constant 0 : i32
    return %c0_i32, %c0_i32_0 : i32, i32
  }
  func.func @transform_2(%arg0: i32) -> (i32, i32) {
    %c0_i32 = arith.constant 0 : i32
    %c0_i32_0 = arith.constant 0 : i32
    %c0_i32_1 = arith.constant 0 : i32
    return %c0_i32, %c0_i32_0 : i32, i32
  }
  func.func @transform_3(%arg0: i32) -> (i32, i32) {
    %c0_i32 = arith.constant 0 : i32
    %c0_i32_0 = arith.constant 0 : i32
    %c0_i32_1 = arith.constant 0 : i32
    return %c0_i32, %c0_i32_0 : i32, i32
  }
  func.func @transform_4(%arg0: i32) -> (i32, i32) {
    %c0_i32 = arith.constant 0 : i32
    %c0_i32_0 = arith.constant 0 : i32
    %c0_i32_1 = arith.constant 0 : i32
    return %c0_i32, %c0_i32_0 : i32, i32
  }
  func.func @transform_5(%arg0: i32) -> (i32, i32) {
    %c0_i32 = arith.constant 0 : i32
    %c0_i32_0 = arith.constant 0 : i32
    %c0_i32_1 = arith.constant 0 : i32
    return %c0_i32, %c0_i32_0 : i32, i32
  }
  func.func @transform_6(%arg0: i32) -> (i32, i32, i32) {
    %c0_i32 = arith.constant 0 : i32
    %c0_i32_0 = arith.constant 0 : i32
    %c0_i32_1 = arith.constant 0 : i32
    return %arg0, %c0_i32, %c0_i32_0 : i32, i32, i32
  }
}

module attributes {stable_mosaic.version = 11 : i64} {
  func.func @_conv_kernel(%arg0: i32, %arg1: memref<1x64x128xbf16, #tpu.memory_space<vmem>>, %arg2: memref<128x128xbf16, #tpu.memory_space<vmem>>, %arg3: memref<1x128xf32, #tpu.memory_space<vmem>>, %arg4: memref<1x128xf32, #tpu.memory_space<vmem>>, %arg5: memref<64x1xf32, #tpu.memory_space<vmem>>, %arg6: memref<128x128xbf16, #tpu.memory_space<vmem>>, %arg7: memref<1x64x128xbf16, #tpu.memory_space<vmem>>) attributes {dimension_semantics = [#tpu.dimension_semantics<parallel>], iteration_bounds = array<i64: 2>, scalar_prefetch = 0 : i64, scratch_operands = 0 : i64, tpu.core_type = #tpu.core_type<tc>, window_params = [{transform_indices = @transform_0, window_bounds = array<i64: 1, 64, 128>}, {pipeline_mode = #tpu.pipeline_mode<synchronous>, transform_indices = @transform_1, window_bounds = array<i64: 128, 128>}, {pipeline_mode = #tpu.pipeline_mode<synchronous>, transform_indices = @transform_2, window_bounds = array<i64: 1, 128>}, {pipeline_mode = #tpu.pipeline_mode<synchronous>, transform_indices = @transform_3, window_bounds = array<i64: 1, 128>}, {pipeline_mode = #tpu.pipeline_mode<synchronous>, transform_indices = @transform_4, window_bounds = array<i64: 64, 1>}, {pipeline_mode = #tpu.pipeline_mode<synchronous>, transform_indices = @transform_5, window_bounds = array<i64: 128, 128>}, {transform_indices = @transform_6, window_bounds = array<i64: 1, 64, 128>}]} {
    %c0 = arith.constant 0 : index
    %c0_0 = arith.constant 0 : index
    %c0_1 = arith.constant 0 : index
    %0 = vector.load %arg1[%c0, %c0_0, %c0_1] : memref<1x64x128xbf16, #tpu.memory_space<vmem>>, vector<1x64x128xbf16>
    %1 = vector.shape_cast %0 : vector<1x64x128xbf16> to vector<64x128xbf16>
    %c0_2 = arith.constant 0 : index
    %c0_3 = arith.constant 0 : index
    %2 = vector.load %arg2[%c0_2, %c0_3] : memref<128x128xbf16, #tpu.memory_space<vmem>>, vector<128x128xbf16>
    %cst = arith.constant dense<0.000000e+00> : vector<64x128xf32>
    %3 = tpu.matmul %1, %2, %cst {dimension_numbers = #tpu.dot_dimension_numbers<[1], [0], [0], [1], [0, 0, 1, 1], [], []>} : vector<64x128xbf16>, vector<128x128xbf16>, vector<64x128xf32> -> vector<64x128xf32>
    %c0_4 = arith.constant 0 : index
    %c0_5 = arith.constant 0 : index
    %4 = vector.load %arg3[%c0_4, %c0_5] : memref<1x128xf32, #tpu.memory_space<vmem>>, vector<1x128xf32>
    %5 = vector.broadcast %4 : vector<1x128xf32> to vector<64x128xf32>
    %6 = arith.mulf %3, %5 : vector<64x128xf32>
    %c0_6 = arith.constant 0 : index
    %c0_7 = arith.constant 0 : index
    %7 = vector.load %arg4[%c0_6, %c0_7] : memref<1x128xf32, #tpu.memory_space<vmem>>, vector<1x128xf32>
    %8 = vector.broadcast %7 : vector<1x128xf32> to vector<64x128xf32>
    %9 = arith.addf %6, %8 : vector<64x128xf32>
    %cst_8 = arith.constant 0.000000e+00 : f32
    %10 = vector.broadcast %cst_8 : f32 to vector<64x128xf32>
    %11 = arith.maximumf %9, %10 : vector<64x128xf32>
    %c0_9 = arith.constant 0 : index
    %c0_10 = arith.constant 0 : index
    %12 = vector.load %arg5[%c0_9, %c0_10] : memref<64x1xf32, #tpu.memory_space<vmem>>, vector<64x1xf32>
    %13 = vector.broadcast %12 : vector<64x1xf32> to vector<64x128xf32>
    %14 = arith.mulf %11, %13 : vector<64x128xf32>
    %cst_11 = arith.constant dense<0.000000e+00> : vector<128xf32>
    %15 = vector.multi_reduction <add>, %14, %cst_11 [0] : vector<64x128xf32> to vector<128xf32>
    %16 = vector.shape_cast %15 : vector<128xf32> to vector<1x128xf32>
    %cst_12 = arith.constant 1.562500e-02 : f32
    %17 = vector.broadcast %cst_12 : f32 to vector<1x128xf32>
    %18 = arith.mulf %16, %17 : vector<1x128xf32>
    %19 = arith.truncf %18 : vector<1x128xf32> to vector<1x128xbf16>
    %c0_13 = arith.constant 0 : index
    %c0_14 = arith.constant 0 : index
    %20 = vector.load %arg6[%c0_13, %c0_14] : memref<128x128xbf16, #tpu.memory_space<vmem>>, vector<128x128xbf16>
    %cst_15 = arith.constant dense<0.000000e+00> : vector<1x128xf32>
    %21 = tpu.matmul %19, %20, %cst_15 {dimension_numbers = #tpu.dot_dimension_numbers<[1], [0], [0], [1], [0, 0, 1, 1], [], []>} : vector<1x128xbf16>, vector<128x128xbf16>, vector<1x128xf32> -> vector<1x128xf32>
    %cst_16 = arith.constant 0.000000e+00 : f32
    %22 = vector.broadcast %cst_16 : f32 to vector<1x128xf32>
    %23 = arith.subf %22, %21 : vector<1x128xf32>
    %24 = math.exp %23 : vector<1x128xf32>
    %cst_17 = arith.constant 1.000000e+00 : f32
    %25 = vector.broadcast %cst_17 : f32 to vector<1x128xf32>
    %26 = arith.addf %25, %24 : vector<1x128xf32>
    %cst_18 = arith.constant 1.000000e+00 : f32
    %27 = vector.broadcast %cst_18 : f32 to vector<1x128xf32>
    %28 = arith.divf %27, %26 : vector<1x128xf32>
    %29 = vector.broadcast %28 : vector<1x128xf32> to vector<64x128xf32>
    %30 = arith.mulf %14, %29 : vector<64x128xf32>
    %31 = arith.truncf %30 : vector<64x128xf32> to vector<64x128xbf16>
    %c0_19 = arith.constant 0 : index
    %c0_20 = arith.constant 0 : index
    %c0_21 = arith.constant 0 : index
    %32 = vector.load %arg7[%c0_19, %c0_20, %c0_21] : memref<1x64x128xbf16, #tpu.memory_space<vmem>>, vector<1x64x128xbf16>
    %33 = vector.shape_cast %32 : vector<1x64x128xbf16> to vector<64x128xbf16>
    %34 = vector.shape_cast %31 : vector<64x128xbf16> to vector<1x64x128xbf16>
    tpu.vector_store %arg7[%c0_19, %c0_20, %c0_21], %34 {strides = array<i32>} : memref<1x64x128xbf16, #tpu.memory_space<vmem>>, vector<1x64x128xbf16>,
    return
  }
  func.func @transform_0(%arg0: i32) -> (i32, i32, i32) {
    %c0_i32 = arith.constant 0 : i32
    %c0_i32_0 = arith.constant 0 : i32
    %c0_i32_1 = arith.constant 0 : i32
    return %arg0, %c0_i32, %c0_i32_0 : i32, i32, i32
  }
  func.func @transform_1(%arg0: i32) -> (i32, i32) {
    %c0_i32 = arith.constant 0 : i32
    %c0_i32_0 = arith.constant 0 : i32
    %c0_i32_1 = arith.constant 0 : i32
    return %c0_i32, %c0_i32_0 : i32, i32
  }
  func.func @transform_2(%arg0: i32) -> (i32, i32) {
    %c0_i32 = arith.constant 0 : i32
    %c0_i32_0 = arith.constant 0 : i32
    %c0_i32_1 = arith.constant 0 : i32
    return %c0_i32, %c0_i32_0 : i32, i32
  }
  func.func @transform_3(%arg0: i32) -> (i32, i32) {
    %c0_i32 = arith.constant 0 : i32
    %c0_i32_0 = arith.constant 0 : i32
    %c0_i32_1 = arith.constant 0 : i32
    return %c0_i32, %c0_i32_0 : i32, i32
  }
  func.func @transform_4(%arg0: i32) -> (i32, i32) {
    %c0_i32 = arith.constant 0 : i32
    %c0_i32_0 = arith.constant 0 : i32
    %c0_i32_1 = arith.constant 0 : i32
    return %c0_i32, %c0_i32_0 : i32, i32
  }
  func.func @transform_5(%arg0: i32) -> (i32, i32) {
    %c0_i32 = arith.constant 0 : i32
    %c0_i32_0 = arith.constant 0 : i32
    %c0_i32_1 = arith.constant 0 : i32
    return %c0_i32, %c0_i32_0 : i32, i32
  }
  func.func @transform_6(%arg0: i32) -> (i32, i32, i32) {
    %c0_i32 = arith.constant 0 : i32
    %c0_i32_0 = arith.constant 0 : i32
    %c0_i32_1 = arith.constant 0 : i32
    return %arg0, %c0_i32, %c0_i32_0 : i32, i32, i32
  }
}

module attributes {stable_mosaic.version = 11 : i64} {
  func.func @_conv_kernel(%arg0: i32, %arg1: memref<1x256x128xbf16, #tpu.memory_space<vmem>>, %arg2: memref<128x128xbf16, #tpu.memory_space<vmem>>, %arg3: memref<1x128xf32, #tpu.memory_space<vmem>>, %arg4: memref<1x128xf32, #tpu.memory_space<vmem>>, %arg5: memref<256x1xf32, #tpu.memory_space<vmem>>, %arg6: memref<128x128xbf16, #tpu.memory_space<vmem>>, %arg7: memref<1x256x128xbf16, #tpu.memory_space<vmem>>) attributes {dimension_semantics = [#tpu.dimension_semantics<parallel>], iteration_bounds = array<i64: 2>, scalar_prefetch = 0 : i64, scratch_operands = 0 : i64, tpu.core_type = #tpu.core_type<tc>, window_params = [{transform_indices = @transform_0, window_bounds = array<i64: 1, 256, 128>}, {pipeline_mode = #tpu.pipeline_mode<synchronous>, transform_indices = @transform_1, window_bounds = array<i64: 128, 128>}, {pipeline_mode = #tpu.pipeline_mode<synchronous>, transform_indices = @transform_2, window_bounds = array<i64: 1, 128>}, {pipeline_mode = #tpu.pipeline_mode<synchronous>, transform_indices = @transform_3, window_bounds = array<i64: 1, 128>}, {pipeline_mode = #tpu.pipeline_mode<synchronous>, transform_indices = @transform_4, window_bounds = array<i64: 256, 1>}, {pipeline_mode = #tpu.pipeline_mode<synchronous>, transform_indices = @transform_5, window_bounds = array<i64: 128, 128>}, {transform_indices = @transform_6, window_bounds = array<i64: 1, 256, 128>}]} {
    %c0 = arith.constant 0 : index
    %c0_0 = arith.constant 0 : index
    %c0_1 = arith.constant 0 : index
    %0 = vector.load %arg1[%c0, %c0_0, %c0_1] : memref<1x256x128xbf16, #tpu.memory_space<vmem>>, vector<1x256x128xbf16>
    %1 = vector.shape_cast %0 : vector<1x256x128xbf16> to vector<256x128xbf16>
    %c0_2 = arith.constant 0 : index
    %c0_3 = arith.constant 0 : index
    %2 = vector.load %arg2[%c0_2, %c0_3] : memref<128x128xbf16, #tpu.memory_space<vmem>>, vector<128x128xbf16>
    %cst = arith.constant dense<0.000000e+00> : vector<256x128xf32>
    %3 = tpu.matmul %1, %2, %cst {dimension_numbers = #tpu.dot_dimension_numbers<[1], [0], [0], [1], [0, 0, 1, 1], [], []>} : vector<256x128xbf16>, vector<128x128xbf16>, vector<256x128xf32> -> vector<256x128xf32>
    %c0_4 = arith.constant 0 : index
    %c0_5 = arith.constant 0 : index
    %4 = vector.load %arg3[%c0_4, %c0_5] : memref<1x128xf32, #tpu.memory_space<vmem>>, vector<1x128xf32>
    %5 = vector.broadcast %4 : vector<1x128xf32> to vector<256x128xf32>
    %6 = arith.mulf %3, %5 : vector<256x128xf32>
    %c0_6 = arith.constant 0 : index
    %c0_7 = arith.constant 0 : index
    %7 = vector.load %arg4[%c0_6, %c0_7] : memref<1x128xf32, #tpu.memory_space<vmem>>, vector<1x128xf32>
    %8 = vector.broadcast %7 : vector<1x128xf32> to vector<256x128xf32>
    %9 = arith.addf %6, %8 : vector<256x128xf32>
    %c0_8 = arith.constant 0 : index
    %c0_9 = arith.constant 0 : index
    %10 = vector.load %arg5[%c0_8, %c0_9] : memref<256x1xf32, #tpu.memory_space<vmem>>, vector<256x1xf32>
    %11 = vector.broadcast %10 : vector<256x1xf32> to vector<256x128xf32>
    %12 = arith.mulf %9, %11 : vector<256x128xf32>
    %cst_10 = arith.constant dense<0.000000e+00> : vector<128xf32>
    %13 = vector.multi_reduction <add>, %12, %cst_10 [0] : vector<256x128xf32> to vector<128xf32>
    %14 = vector.shape_cast %13 : vector<128xf32> to vector<1x128xf32>
    %cst_11 = arith.constant 3.906250e-03 : f32
    %15 = vector.broadcast %cst_11 : f32 to vector<1x128xf32>
    %16 = arith.mulf %14, %15 : vector<1x128xf32>
    %17 = arith.truncf %16 : vector<1x128xf32> to vector<1x128xbf16>
    %c0_12 = arith.constant 0 : index
    %c0_13 = arith.constant 0 : index
    %18 = vector.load %arg6[%c0_12, %c0_13] : memref<128x128xbf16, #tpu.memory_space<vmem>>, vector<128x128xbf16>
    %cst_14 = arith.constant dense<0.000000e+00> : vector<1x128xf32>
    %19 = tpu.matmul %17, %18, %cst_14 {dimension_numbers = #tpu.dot_dimension_numbers<[1], [0], [0], [1], [0, 0, 1, 1], [], []>} : vector<1x128xbf16>, vector<128x128xbf16>, vector<1x128xf32> -> vector<1x128xf32>
    %cst_15 = arith.constant 0.000000e+00 : f32
    %20 = vector.broadcast %cst_15 : f32 to vector<1x128xf32>
    %21 = arith.subf %20, %19 : vector<1x128xf32>
    %22 = math.exp %21 : vector<1x128xf32>
    %cst_16 = arith.constant 1.000000e+00 : f32
    %23 = vector.broadcast %cst_16 : f32 to vector<1x128xf32>
    %24 = arith.addf %23, %22 : vector<1x128xf32>
    %cst_17 = arith.constant 1.000000e+00 : f32
    %25 = vector.broadcast %cst_17 : f32 to vector<1x128xf32>
    %26 = arith.divf %25, %24 : vector<1x128xf32>
    %27 = vector.broadcast %26 : vector<1x128xf32> to vector<256x128xf32>
    %28 = arith.mulf %12, %27 : vector<256x128xf32>
    %29 = arith.truncf %28 : vector<256x128xf32> to vector<256x128xbf16>
    %c0_18 = arith.constant 0 : index
    %c0_19 = arith.constant 0 : index
    %c0_20 = arith.constant 0 : index
    %30 = vector.load %arg7[%c0_18, %c0_19, %c0_20] : memref<1x256x128xbf16, #tpu.memory_space<vmem>>, vector<1x256x128xbf16>
    %31 = vector.shape_cast %30 : vector<1x256x128xbf16> to vector<256x128xbf16>
    %32 = vector.shape_cast %29 : vector<256x128xbf16> to vector<1x256x128xbf16>
    tpu.vector_store %arg7[%c0_18, %c0_19, %c0_20], %32 {strides = array<i32>} : memref<1x256x128xbf16, #tpu.memory_space<vmem>>, vector<1x256x128xbf16>,
    return
  }
  func.func @transform_0(%arg0: i32) -> (i32, i32, i32) {
    %c0_i32 = arith.constant 0 : i32
    %c0_i32_0 = arith.constant 0 : i32
    %c0_i32_1 = arith.constant 0 : i32
    return %arg0, %c0_i32, %c0_i32_0 : i32, i32, i32
  }
  func.func @transform_1(%arg0: i32) -> (i32, i32) {
    %c0_i32 = arith.constant 0 : i32
    %c0_i32_0 = arith.constant 0 : i32
    %c0_i32_1 = arith.constant 0 : i32
    return %c0_i32, %c0_i32_0 : i32, i32
  }
  func.func @transform_2(%arg0: i32) -> (i32, i32) {
    %c0_i32 = arith.constant 0 : i32
    %c0_i32_0 = arith.constant 0 : i32
    %c0_i32_1 = arith.constant 0 : i32
    return %c0_i32, %c0_i32_0 : i32, i32
  }
  func.func @transform_3(%arg0: i32) -> (i32, i32) {
    %c0_i32 = arith.constant 0 : i32
    %c0_i32_0 = arith.constant 0 : i32
    %c0_i32_1 = arith.constant 0 : i32
    return %c0_i32, %c0_i32_0 : i32, i32
  }
  func.func @transform_4(%arg0: i32) -> (i32, i32) {
    %c0_i32 = arith.constant 0 : i32
    %c0_i32_0 = arith.constant 0 : i32
    %c0_i32_1 = arith.constant 0 : i32
    return %c0_i32, %c0_i32_0 : i32, i32
  }
  func.func @transform_5(%arg0: i32) -> (i32, i32) {
    %c0_i32 = arith.constant 0 : i32
    %c0_i32_0 = arith.constant 0 : i32
    %c0_i32_1 = arith.constant 0 : i32
    return %c0_i32, %c0_i32_0 : i32, i32
  }
  func.func @transform_6(%arg0: i32) -> (i32, i32, i32) {
    %c0_i32 = arith.constant 0 : i32
    %c0_i32_0 = arith.constant 0 : i32
    %c0_i32_1 = arith.constant 0 : i32
    return %arg0, %c0_i32, %c0_i32_0 : i32, i32, i32
  }
}

</mosaic_0001>

<bundles_post_ra>
// kernel: _lambda_.14
= control target key start
LH: loop header
LB: loop body
LE: loop exit
PB: predicated region body
PF: predicated region fallthrough
CT: control target
= control target key end

     0   :  { %s4067_s21 = smov 0   ;;  %s5819_s0 = inlined_call_operand.vmem [shape: bf16[2,336,128], index: 0, kind: input, shape index: {}]   ;;  %s5820_s1 = inlined_call_operand.vmem [shape: bf16[1152,128], index: 1, kind: input, shape index: {}]   ;;  %s5821_s2 = inlined_call_operand.vmem [shape: f32[1,128], index: 2, kind: input, shape index: {}]   ;;  %s5822_s3 = inlined_call_operand.vmem [shape: f32[1,128], index: 3, kind: input, shape index: {}]   ;;  %s5823_s4 = inlined_call_operand.vmem [shape: f32[288,1], index: 4, kind: input, shape index: {}]   ;;  %s5824_s5 = inlined_call_operand.vmem [shape: bf16[128,128], index: 5, kind: input, shape index: {}]   ;;  %s5825_s6 = inlined_call_operand.vmem [shape: bf16[2,288,128], index: 6, kind: output, shape index: {}]  }
   0x1 LB: > { %s3285_s22 = sadd.s32 4294967295, %s4027_s21   ;;  %p3289_p0 = scmp.ge.s32.totalorder %s4027_s21, 1  ;;  %s4027_s21 = sphi %s4067_s21, %s16_s21  }
   0x2   : > { %p212_p1 = scmp.lt.s32.totalorder %s4027_s21, 3 }
   0x4   : > { %p213_p2 = pnand %p3289_p0, %p212_p1 }
   0x6   : > { %216 = sbr.rel (%p213_p2) target bundleno = 957 (0x3bd), region = 44 }
   0xd   : > { %v3893_v0 = vld [vmem:[%s5820_s1] sm:$0xff]   ;;  %v5826_v1 = vmov 0   ;;  %v3895_v3 = vld [vmem:[%s5820_s1 + $0x8] sm:$0xff]   ;;  %v3897_v5 = vld [vmem:[%s5820_s1 + $0x10] sm:$0xff]   ;;  %p242_p3 = scmp.lt.s32.totalorder %s3285_s22, 1  ;;  %vm584_vm0 = vcmask 1046528  }
   0xe   : > { %1598 = vmatprep.subr.bf16.mxu1 %v5826_v1  ;;  %1775 = vmatprep.subr.bf16.mxu0 %v5826_v1  ;;  %v3894_v2 = vld [vmem:[%s5820_s1 + $0x80] sm:$0xff]   ;;  %v3896_v4 = vld [vmem:[%s5820_s1 + $0x88] sm:$0xff]   ;;  %v3898_v6 = vld [vmem:[%s5820_s1 + $0x90] sm:$0xff]   ;;  %vm414_vm1 = vsmask.f32 7424  ;;  %vm775_vm2 = vcmask 1045504  }
   0xf   : > { %1599 = vmatpush1.bf16.msra.mxu1 %v3893_v0  ;;  %3891 = vset.pattern.permute.xlu0 %v5826_v1  ;;  %v3899_v7 = vld [vmem:[%s5820_s1 + $0x18] sm:$0xff]   ;;  %v3901_v9 = vld [vmem:[%s5820_s1 + $0x20] sm:$0xff]   ;;  %v3903_v11 = vld [vmem:[%s5820_s1 + $0x28] sm:$0xff]   ;;  %s5910_s22 = smov (!%p242_p3, %s3285_s22), 1  ;;  %vm663_vm3 = vsmask.f32 6400 }
  0x10   : > { %1776 = vmatpush1.bf16.msra.mxu0 %v3894_v2  ;;  %1600 = vmatprep.subr.bf16.mxu1 %v5826_v1  ;;  %v3900_v8 = vld [vmem:[%s5820_s1 + $0x98] sm:$0xff]   ;;  %v3902_v10 = vld [vmem:[%s5820_s1 + $0xa0] sm:$0xff]   ;;  %v3904_v12 = vld [vmem:[%s5820_s1 + $0xa8] sm:$0xff]   ;;  %s3878_s29 = smul.u32 168, %s5910_s22  ;;  %vm854_vm4 = vsmask.f32 5376 }
  0x11   : > { %1777 = vmatprep.subr.bf16.mxu0 %v5826_v1  ;;  %3892 = vset.pattern.permute.xlu1 %v5826_v1  ;;  %v3905_v13 = vld [vmem:[%s5820_s1 + $0x30] sm:$0xff]   ;;  %v3907_v15 = vld [vmem:[%s5820_s1 + $0x38] sm:$0xff]   ;;  %v3909_v17 = vld [vmem:[%s5820_s1 + $0x40] sm:$0xff]   ;;  %vm966_vm5 = vcmask 1044480   ;;  %vm4031_vm6 = vmmov 0  }
  0x12   : > { %v3906_v14 = vld [vmem:[%s5820_s1 + $0xb0] sm:$0xff]   ;;  %v3908_v16 = vld [vmem:[%s5820_s1 + $0xb8] sm:$0xff]   ;;  %s4151_s12 = scalar_lea.vmem %s5819_s0, %s3878_s29  ;;  %v3910_v18 = vld [vmem:[%s5820_s1 + $0xc0] sm:$0xff]   ;;  %s3879_s29 = smul.u32 144, %s5910_s22 }
  0x13   : > { %1601 = vmatpush1.bf16.msra.mxu1 %v3895_v3  ;;  %v253_v19 = vld [vmem:[%s4151_s12] sm:$0xf]  ;;  %v4163_v20 = vld [vmem:[%s4151_s12 + $0x4] sm:$0xf]  ;;  %v255_v21 = vld [vmem:[%s4151_s12 + $0x8] sm:$0xf] }
  0x14   : > { %1778 = vmatpush1.bf16.msra.mxu0 %v3896_v4  ;;  %1602 = vmatprep.subr.bf16.mxu1 %v5826_v1  ;;  %v3911_v22 = vld [vmem:[%s5820_s1 + $0x48] sm:$0xff]   ;;  %v4173_v24 = vcombine.low %v253_v19, %v4163_v20  ;;  %v257_v25 = vld [vmem:[%s4151_s12 + $0x10] sm:$0xf]  ;;  %v258_v28 = vld [vmem:[%s4151_s12 + $0x14] sm:$0xf] }
  0x15   : > { %1779 = vmatprep.subr.bf16.mxu0 %v5826_v1  ;;  %v4170_v23 = vld [vmem:[%s4151_s12 + $0xc] sm:$0xf]  ;;  %v291_v29 = vld [vmem:[%s4151_s12 + $0x8] sm:$0xe]  ;;  %v4187_v32 = vcombine.low %v257_v25, %v258_v28  ;;  %v3913_v38 = vld [vmem:[%s5820_s1 + $0x50] sm:$0xff]  }
  0x16   : > { %v3912_v26 = vld [vmem:[%s5820_s1 + $0xc8] sm:$0xff]   ;;  %v4180_v27 = vcombine.low %v255_v21, %v4170_v23  ;;  %v416_v30 = vshrl.u32 %v4173_v24, 16  ;;  %v418_v31 = vshll.u32 %v4173_v24, 16  ;;  %v4190_v33 = vcombine.low %v291_v29, %v4170_v23  ;;  %v3914_v40 = vld [vmem:[%s5820_s1 + $0xd0] sm:$0xff]   ;;  %v3915_v44 = vld [vmem:[%s5820_s1 + $0x58] sm:$0xff]  }
  0x17   : > { %1603 = vmatpush1.bf16.msra.mxu1 %v3897_v5  ;;  %v4195_v36 = vrot.slane %v4187_v32, 1  ;;  %v3916_v45 = vld [vmem:[%s5820_s1 + $0xd8] sm:$0xff]   ;;  %v3917_v46 = vld [vmem:[%s5820_s1 + $0x60] sm:$0xff]   ;;  %v3919_v48 = vld [vmem:[%s5820_s1 + $0x68] sm:$0xff]   ;;  %v431_v55 = vshll.u32 %v4187_v32, 16  ;;  %v435_v5 = vshrl.u32 %v4187_v32, 16 }
  0x18   : > { %1780 = vmatpush1.bf16.msra.mxu0 %v3898_v6  ;;  %1604 = vmatprep.subr.bf16.mxu1 %v5826_v1  ;;  %v423_v34 = vshll.u32 %v4180_v27, 16  ;;  %v420_v35 = vrot.slane %v418_v31, 1  ;;  %v651_v37 = vrot.slane %v4190_v33, 1  ;;  %v3918_v47 = vld [vmem:[%s5820_s1 + $0xe0] sm:$0xff]   ;;  %v3920_v49 = vld [vmem:[%s5820_s1 + $0xe8] sm:$0xff]   ;;  %v3921_v51 = vld [vmem:[%s5820_s1 + $0x70] sm:$0xff]  }
  0x19   : > { %1781 = vmatprep.subr.bf16.mxu0 %v5826_v1  ;;  %v290_v50 = vld [vmem:[%s4151_s12] sm:$0xe]  ;;  %v3922_v52 = vld [vmem:[%s5820_s1 + $0xf0] sm:$0xff]   ;;  %v427_v54 = vshrl.u32 %v4180_v27, 16  ;;  %v4246_v56 = vld [vmem:[%s4151_s12 + $0x18] sm:$0xff]   ;;  %v586_v59 = vrot.slane %v4180_v27, 1 }
  0x1a   : > { %v425_v39 = vrot.slane %v423_v34, 1  ;;  %v421_v41 = vor.u32 %v420_v35, %v416_v30  ;;  %v652_v42 = vsel %vm584_vm0, %v651_v37, %v4195_v36  ;;  %v3311_v53 = vcombine.low %v290_v50, %v4163_v20  ;;  %v3923_v57 = vld [vmem:[%s5820_s1 + $0x78] sm:$0xff]   ;;  %v3930_v0 = vld [vmem:[%s5820_s1 + $0x100] sm:$0xff]   ;;  %v4306_v21 = vld [vmem:[%s4151_s12 + $0x28] sm:$0xff]  }
  0x1b   : > { %1605 = vmatpush1.bf16.msra.mxu1 %v3899_v7  ;;  %1807 = vmatprep.mubr.bf16.mxu0 %v652_v42  ;;  %v3924_v58 = vld [vmem:[%s5820_s1 + $0xf8] sm:$0xff]   ;;  %v433_v62 = vrot.slane %v431_v55, 1  ;;  %v590_v63 = vrot.slane %v4246_v56, 1  ;;  %v4262_v2 = vld [vmem:[%s4151_s12 + $0x20] sm:$0xff]   ;;  %v4268_v6 = vshll.u32 %v4246_v56, 16  ;;  %v672_v20 = vrot.slane %v435_v5, 1 }
  0x1c   : > { %1782 = vmatpush1.bf16.msra.mxu0 %v3900_v8  ;;  %1606 = vmatprep.subr.bf16.mxu1 %v5826_v1  ;;  %v426_v43 = vsel %vm414_vm1, %v421_v41, %v425_v39  ;;  %v585_v60 = vrot.slane %v3311_v53, 1  ;;  %v429_v61 = vor.u32 %v427_v54, %v425_v39  ;;  %v4277_v8 = vld [vmem:[%s5820_s1 + $0x180] sm:$0xff]   ;;  %v3936_v28 = vld [vmem:[%s5820_s1 + $0x118] sm:$0xff]   ;;  %v594_v30 = vrot.slane %v4306_v21, 1  ;;  %v4338_v34 = vld [vmem:[%s4151_s12 + $0x30] sm:$0xff]  }
  0x1d   : > { %1783 = vmatprep.subr.bf16.mxu0 %v5826_v1  ;;  %1630 = vmatprep.mubr.bf16.mxu1 %v426_v43  ;;  %v591_v7 = vsel %vm584_vm0, %v4195_v36, %v590_v63  ;;  %v4335_v31 = vshrl.u32 %v4262_v2, 16  ;;  %v3938_v37 = vld [vmem:[%s5820_s1 + $0x120] sm:$0xff]   ;;  %v596_v42 = vrot.slane %v4338_v34, 1  ;;  %v3940_v43 = vld [vmem:[%s5820_s1 + $0x128] sm:$0xff]  }
  0x1e   : > { %v587_v3 = vsel %vm584_vm0, %v585_v60, %v586_v59  ;;  %v434_v4 = vsel %vm414_vm1, %v429_v61, %v433_v62  ;;  %v4355_v39 = vld [vmem:[%s5820_s1 + $0x1a0] sm:$0xff]   ;;  %v5828_v61 = vrot.slane %v4187_v32, 2 }
  0x1f   : > { %1607 = vmatpush1.bf16.msra.mxu1 %v3901_v9  ;;  %v3932_v9 = vld [vmem:[%s5820_s1 + $0x108] sm:$0xff]   ;;  %v4388_v50 = vsel %vm584_vm0, %v594_v30, %v596_v42 }
  0x20   : > { %1784 = vmatpush1.bf16.msra.mxu0 %v3902_v10  ;;  %1608 = vmatprep.subr.bf16.mxu1 %v5826_v1  ;;  %v437_v10 = vor.u32 %v435_v5, %v433_v62  ;;  %v668_v5 = vshll.u32 %v4190_v33, 16 }
  0x21   : > { %1785 = vmatprep.subr.bf16.mxu0 %v5826_v1 }
  0x23   : > { %1609 = vmatpush1.bf16.msra.mxu1 %v3903_v11  ;;  %v441_v11 = vrot.slane %v4268_v6, 1 }
  0x24   : > { %1786 = vmatpush1.bf16.msra.mxu0 %v3904_v12  ;;  %1610 = vmatprep.subr.bf16.mxu1 %v5826_v1  ;;  %v592_v12 = vrot.slane %v4262_v2, 1 }
  0x25   : > { %1787 = vmatprep.subr.bf16.mxu0 %v5826_v1  ;;  %v442_v19 = vsel %vm414_vm1, %v437_v10, %v441_v11 }
  0x27   : > { %1611 = vmatpush1.bf16.msra.mxu1 %v3905_v13  ;;  %v4290_v13 = vld [vmem:[%s5820_s1 + $0x188] sm:$0xff]  }
  0x28   : > { %1788 = vmatpush1.bf16.msra.mxu0 %v3906_v14  ;;  %1612 = vmatprep.subr.bf16.mxu1 %v5826_v1  ;;  %v673_v14 = vrot.slane %v431_v55, 2  ;;  %v296_v55 = vld [vmem:[%s4151_s12 + $0x8] sm:$0xc] }
  0x29   : > { %1789 = vmatprep.subr.bf16.mxu0 %v5826_v1  ;;  %v3316_v60 = vcombine.low %v296_v55, %v4170_v23 }
  0x2a   : > { %v4323_v29 = vor.u32 %v673_v14, %v672_v20  ;;  %v4442_v14 = vld [vmem:[%s5820_s1 + $0x1c0] sm:$0xff]  }
  0x2b   : > { %1613 = vmatpush1.bf16.msra.mxu1 %v3907_v15  ;;  %v3934_v15 = vld [vmem:[%s5820_s1 + $0x110] sm:$0xff]   ;;  %v776_v23 = vrot.slane %v3316_v60, 2  ;;  %5859 = vst [vmem:[#allocation4_spill] sm:$0xff] %v4442_v14 }
  0x2c   : > { %1790 = vmatpush1.bf16.msra.mxu0 %v3908_v16  ;;  %1614 = vmatprep.subr.bf16.mxu1 %v5826_v1  ;;  %v4297_v16 = vshrl.u32 %v4246_v56, 16 }
  0x2d   : > { %1791 = vmatprep.subr.bf16.mxu0 %v5826_v1 }
  0x2e   : > { %v445_v25 = vor.u32 %v4297_v16, %v441_v11  ;;  %v4434_v11 = vshrl.u32 %v4338_v34, 16 }
  0x2f   : > { %1615 = vmatpush1.bf16.msra.mxu1 %v3909_v17  ;;  %v4300_v17 = vshll.u32 %v4262_v2, 16 }
  0x30   : > { %1792 = vmatpush1.bf16.msra.mxu0 %v3910_v18  ;;  %1616 = vmatprep.subr.bf16.mxu1 %v5826_v1  ;;  %v589_v18 = vsel %vm584_vm0, %v586_v59, %v4195_v36  ;;  %v4342_v36 = vshll.u32 %v4306_v21, 16  ;;  %v3946_v59 = vld [vmem:[%s5820_s1 + $0x138] sm:$0xff]  }
  0x31   : > { %1793 = vmatprep.subr.bf16.mxu0 %v5826_v1 }
  0x32   : > { %v457_v41 = vrot.slane %v4342_v36, 1 }
  0x33   : > { %1617 = vmatpush1.bf16.msra.mxu1 %v3911_v22  ;;  %v593_v22 = vsel %vm584_vm0, %v590_v63, %v592_v12 }
  0x34   : > { %1794 = vmatpush1.bf16.msra.mxu0 %v3912_v26  ;;  %1618 = vmatprep.subr.bf16.mxu1 %v5826_v1  ;;  %v449_v26 = vrot.slane %v4300_v17, 1 }
  0x35   : > { %1795 = vmatprep.subr.bf16.mxu0 %v5826_v1 }
  0x36   : > { %v450_v35 = vsel %vm414_vm1, %v445_v25, %v449_v26  ;;  %v3952_v25 = vld [vmem:[%s5820_s1 + $0x148] sm:$0xff]  }
  0x37   : > { %1619 = vmatpush1.bf16.msra.mxu1 %v3913_v38  ;;  %v4348_v38 = vsel %vm584_vm0, %v592_v12, %v594_v30  ;;  %v3949_v12 = vld [vmem:[%s5820_s1 + $0x140] sm:$0xff]   ;;  %v4470_v30 = vld [vmem:[%s5820_s1 + $0x1c8] sm:$0xff]  }
  0x38   : > { %1796 = vmatpush1.bf16.msra.mxu0 %v3914_v40  ;;  %1620 = vmatprep.subr.bf16.mxu1 %v5826_v1  ;;  %v453_v40 = vor.u32 %v4335_v31, %v449_v26  ;;  %5860 = vst [vmem:[#allocation5_spill] sm:$0xff] %v4470_v30 }
  0x39   : > { %1797 = vmatprep.subr.bf16.mxu0 %v5826_v1 }
  0x3b   : > { %1621 = vmatpush1.bf16.msra.mxu1 %v3915_v44  ;;  %v4369_v44 = vld [vmem:[%s5820_s1 + $0x1a8] sm:$0xff]  }
  0x3c   : > { %1798 = vmatpush1.bf16.msra.mxu0 %v3916_v45  ;;  %1622 = vmatprep.subr.bf16.mxu1 %v5826_v1  ;;  %v4375_v45 = vshrl.u32 %v4306_v21, 16 }
  0x3d   : > { %1799 = vmatprep.subr.bf16.mxu0 %v5826_v1 }
  0x3e   : > { %v461_v54 = vor.u32 %v4375_v45, %v457_v41 }
  0x3f   : > { %1623 = vmatpush1.bf16.msra.mxu1 %v3917_v46  ;;  %v4378_v46 = vld [vmem:[%s4151_s12 + $0x38] sm:$0xff]  }
  0x40   : > { %1800 = vmatpush1.bf16.msra.mxu0 %v3918_v47  ;;  %1624 = vmatprep.subr.bf16.mxu1 %v5826_v1  ;;  %v458_v47 = vsel %vm414_vm1, %v453_v40, %v457_v41  ;;  %v4402_v53 = vshll.u32 %v4378_v46, 16  ;;  %v598_v63 = vrot.slane %v4378_v46, 1  ;;  %v4486_v41 = vld [vmem:[%s5820_s1 + $0x1d0] sm:$0xff]  }
  0x41   : > { %1801 = vmatprep.subr.bf16.mxu0 %v5826_v1  ;;  %5861 = vst [vmem:[#allocation6_spill] sm:$0xff] %v4486_v41 }
  0x42   : > { %v880_v62 = vrot.slane %v4402_v53, 3 }
  0x43   : > { %1625 = vmatpush1.bf16.msra.mxu1 %v3919_v48  ;;  %v4382_v48 = vshll.u32 %v4338_v34, 16 }
  0x44   : > { %1802 = vmatpush1.bf16.msra.mxu0 %v3920_v49  ;;  %1626 = vmatprep.subr.bf16.mxu1 %v5826_v1  ;;  %v3943_v49 = vld [vmem:[%s5820_s1 + $0x130] sm:$0xff]  }
  0x45   : > { %1803 = vmatprep.subr.bf16.mxu0 %v5826_v1 }
  0x47   : > { %1627 = vmatpush1.bf16.msra.mxu1 %v3921_v51  ;;  %v4392_v51 = vshrl.u32 %v4378_v46, 16 }
  0x48   : > { %1804 = vmatpush1.bf16.msra.mxu0 %v3922_v52  ;;  %1628 = vmatprep.subr.bf16.mxu1 %v5826_v1  ;;  %v4398_v52 = vld [vmem:[%s5820_s1 + $0x1b0] sm:$0xff]  }
  0x49   : > { %1805 = vmatprep.subr.bf16.mxu0 %v5826_v1  ;;  %5857 = vst [vmem:[#allocation2_spill] sm:$0xff] %v4398_v52 }
  0x4b   : > { %1629 = vmatpush1.bf16.msra.mxu1 %v3923_v57  ;;  %v879_v57 = vrot.slane %v4392_v51, 2 }
  0x4c   : > { %1806 = vmatpush1.bf16.msra.mxu0 %v3924_v58  ;;  %3692 = vmatprep.subr.bf16.mxu1 %v5826_v1  ;;  %v465_v58 = vrot.slane %v4382_v48, 1 }
  0x4d   : > { %1952 = vmatprep.subr.bf16.mxu0 %v5826_v1 }
  0x4e   : > { %1631 = vmatmul.mubr.bf16.vlgmr.msra.gmra.mrb[0].mxu1 %v4173_v24  ;;  %v4314_v24 = vld [vmem:[%s5820_s1 + $0x190] sm:$0xff]   ;;  %v466_v10 = vsel %vm414_vm1, %v461_v54, %v465_v58  ;;  %v469_v20 = vor.u32 %v4434_v11, %v465_v58 }
  0x4f   : > { %1808 = vmatmul.mubr.bf16.vlgmr.msra.gmra.mrb[0].mxu0 %v587_v3  ;;  %1638 = vmatprep.mubr.bf16.mxu1 %v434_v4  ;;  %v665_v3 = vshrl.u32 %v4190_v33, 16  ;;  %v4426_v4 = vor.u32 %v880_v62, %v879_v57  ;;  %v4447_v33 = vsel %vm775_vm2, %v776_v23, %v5828_v61  ;;  %v4520_v62 = vld [vmem:[%s4151_s12 + $0x50] sm:$0xff]  }
  0x50   : > { %1953 = vmatpush1.bf16.msra.mxu0 %v3930_v0  ;;  %1815 = vmatprep.mubr.bf16.mxu0 %v591_v7  ;;  %v4422_v0 = vld [vmem:[%s5820_s1 + $0x1b8] sm:$0xff]  }
  0x51   : > { %1954 = vmatprep.subr.bf16.mxu0 %v5826_v1  ;;  %3708 = vmatpush1.bf16.msra.mxu1 %v4277_v8  ;;  %5858 = vst [vmem:[#allocation3_spill] sm:$0xff] %v4422_v0 }
  0x52   : > { %3693 = vmatprep.subr.bf16.mxu1 %v5826_v1 }
  0x54   : > { %1955 = vmatpush1.bf16.msra.mxu0 %v3932_v9  ;;  %v667_v9 = vrot.slane %v665_v3, 1 }
  0x55   : > { %1956 = vmatprep.subr.bf16.mxu0 %v5826_v1  ;;  %3709 = vmatpush1.bf16.msra.mxu1 %v4290_v13 }
  0x56   : > { %1639 = vmatmul.mubr.bf16.gmra.mrb[4].mxu1 %v4180_v27  ;;  %3694 = vmatprep.subr.bf16.mxu1 %v5826_v1  ;;  %v4331_v27 = vld [vmem:[%s5820_s1 + $0x198] sm:$0xff]  }
  0x57   : > { %1816 = vmatmul.mubr.bf16.gmra.mrb[4].mxu0 %v589_v18  ;;  %1646 = vmatprep.mubr.bf16.mxu1 %v442_v19  ;;  %v599_v18 = vsel %vm584_vm0, %v596_v42, %v598_v63 }
  0x58   : > { %1823 = vmatprep.mubr.bf16.mxu0 %v593_v22  ;;  %1957 = vmatpush1.bf16.msra.mxu0 %v3934_v15  ;;  %v670_v15 = vrot.slane %v668_v5, 2  ;;  %v3967_v5 = vld [vmem:[%s5820_s1 + $0x168] sm:$0xff]  }
  0x59   : > { %1958 = vmatprep.subr.bf16.mxu0 %v5826_v1  ;;  %3710 = vmatpush1.bf16.msra.mxu1 %v4314_v24 }
  0x5a   : > { %3695 = vmatprep.subr.bf16.mxu1 %v5826_v1  ;;  %v671_v19 = vor.u32 %v670_v15, %v667_v9  ;;  %v692_v9 = vrot.slane %v4392_v51, 1  ;;  %v4544_v15 = vld [vmem:[%s5820_s1 + $0x1e8] sm:$0xff]  }
  0x5b   : > { %5864 = vst [vmem:[#allocation9_spill] sm:$0xff] %v4544_v15 }
  0x5c   : > { %1959 = vmatpush1.bf16.msra.mxu0 %v3936_v28  ;;  %v4462_v26 = vsel %vm663_vm3, %v671_v19, %v4323_v29 }
  0x5d   : > { %1960 = vmatprep.subr.bf16.mxu0 %v5826_v1  ;;  %3711 = vmatpush1.bf16.msra.mxu1 %v4331_v27 }
  0x5e   : > { %1647 = vmatmul.mubr.bf16.gmra.mrb[8].mxu1 %v4187_v32  ;;  %3696 = vmatprep.subr.bf16.mxu1 %v5826_v1 }
  0x5f   : > { %1824 = vmatmul.mubr.bf16.gmra.mrb[8].mxu0 %v591_v7  ;;  %1654 = vmatprep.mubr.bf16.mxu1 %v450_v35  ;;  %v4430_v7 = vld [vmem:[%s4151_s12 + $0x40] sm:$0xff]   ;;  %v4474_v35 = vld [vmem:[%s4151_s12 + $0x48] sm:$0xff]  }
  0x60   : > { %1831 = vmatprep.mubr.bf16.mxu0 %v4348_v38  ;;  %1961 = vmatpush1.bf16.msra.mxu0 %v3938_v37  ;;  %v600_v28 = vrot.slane %v4430_v7, 1  ;;  %v3955_v37 = vld [vmem:[%s5820_s1 + $0x150] sm:$0xff]   ;;  %v4481_v40 = vshll.u32 %v4430_v7, 16  ;;  %v602_v54 = vrot.slane %v4474_v35, 1  ;;  %v4510_v57 = vshrl.u32 %v4430_v7, 16 }
  0x61   : > { %1962 = vmatprep.subr.bf16.mxu0 %v5826_v1  ;;  %3712 = vmatpush1.bf16.msra.mxu1 %v4355_v39  ;;  %v4513_v58 = vshll.u32 %v4474_v35, 16 }
  0x62   : > { %3697 = vmatprep.subr.bf16.mxu1 %v5826_v1  ;;  %v601_v42 = vsel %vm584_vm0, %v598_v63, %v600_v28  ;;  %v603_v60 = vsel %vm584_vm0, %v600_v28, %v602_v54  ;;  %v4527_v63 = vld [vmem:[%s5820_s1 + $0x1e0] sm:$0xff]   ;;  %v4568_v28 = vld [vmem:[%s5820_s1 + $0x1f0] sm:$0xff]  }
  0x63   : > { %5863 = vst [vmem:[#allocation8_spill] sm:$0xff] %v4527_v63  ;;  %v489_v23 = vrot.slane %v4513_v58, 1  ;;  %5866 = vst [vmem:[#allocation11_spill] sm:$0xff] %v4568_v28 }
  0x64   : > { %1963 = vmatpush1.bf16.msra.mxu0 %v3940_v43 }
  0x65   : > { %1964 = vmatprep.subr.bf16.mxu0 %v5826_v1  ;;  %3713 = vmatpush1.bf16.msra.mxu1 %v4369_v44 }
  0x66   : > { %1655 = vmatmul.mubr.bf16.gmra.mrb[12].mxu1 %v4246_v56  ;;  %3698 = vmatprep.subr.bf16.mxu1 %v5826_v1 }
  0x67   : > { %1832 = vmatmul.mubr.bf16.gmra.mrb[12].mxu0 %v593_v22  ;;  %1662 = vmatprep.mubr.bf16.mxu1 %v458_v47  ;;  %v473_v22 = vrot.slane %v4402_v53, 1  ;;  %v481_v47 = vrot.slane %v4481_v40, 1 }
  0x68   : > { %1839 = vmatprep.mubr.bf16.mxu0 %v4388_v50  ;;  %1965 = vmatpush1.bf16.msra.mxu0 %v3943_v49  ;;  %v3958_v49 = vld [vmem:[%s5820_s1 + $0x158] sm:$0xff]  }
  0x69   : > { %1966 = vmatprep.subr.bf16.mxu0 %v5826_v1  ;;  %3714 = vmatpush1.bf16.msra.mxu1 %v4398_v52  ;;  %v477_v43 = vor.u32 %v4392_v51, %v473_v22  ;;  %v485_v3 = vor.u32 %v4510_v57, %v481_v47  ;;  %v4551_v51 = vshrl.u32 %v4474_v35, 16  ;;  %v3976_v52 = vld [vmem:[%s4151_s12 + $0x98] ss:$0 sps:$4 sm:$0x11]  }
  0x6a   : > { %3699 = vmatprep.subr.bf16.mxu1 %v5826_v1 }
  0x6b   : > { %v482_v55 = vsel %vm414_vm1, %v477_v43, %v481_v47  ;;  %v490_v19 = vsel %vm414_vm1, %v485_v3, %v489_v23  ;;  %v3977_v43 = vld [vmem:[%s5820_s1 + $0x178] sm:$0xff]   ;;  %v4595_v3 = vld [vmem:[%s4151_s12 + $0x60] sm:$0xff]  }
  0x6c   : > { %1967 = vmatpush1.bf16.msra.mxu0 %v3946_v59  ;;  %v3962_v59 = vld [vmem:[%s5820_s1 + $0x160] sm:$0xff]  }
  0x6d   : > { %1968 = vmatprep.subr.bf16.mxu0 %v5826_v1  ;;  %3715 = vmatpush1.bf16.msra.mxu1 %v4422_v0 }
  0x6e   : > { %1663 = vmatmul.mubr.bf16.gmra.mrb[16].mxu1 %v4262_v2  ;;  %3700 = vmatprep.subr.bf16.mxu1 %v5826_v1 }
  0x6f   : > { %1840 = vmatmul.mubr.bf16.gmra.mrb[16].mxu0 %v4348_v38  ;;  %1670 = vmatprep.mubr.bf16.mxu1 %v466_v10  ;;  %v474_v38 = vsel %vm414_vm1, %v469_v20, %v473_v22  ;;  %v693_v10 = vrot.slane %v4402_v53, 2  ;;  %v4554_v53 = vshll.u32 %v4520_v62, 16  ;;  %v3972_v20 = vld [vmem:[%s5820_s1 + $0x170] sm:$0xff]  }
  0x70   : > { %1847 = vmatprep.mubr.bf16.mxu0 %v599_v18  ;;  %1969 = vmatpush1.bf16.msra.mxu0 %v3949_v12  ;;  %v604_v12 = vrot.slane %v4520_v62, 1 }
  0x71   : > { %1970 = vmatprep.subr.bf16.mxu0 %v5826_v1  ;;  %3716 = vmatpush1.bf16.msra.mxu1 %v4442_v14 }
  0x72   : > { %3701 = vmatprep.subr.bf16.mxu1 %v5826_v1  ;;  %v605_v22 = vsel %vm584_vm0, %v602_v54, %v604_v12  ;;  %v4588_v54 = vshrl.u32 %v4520_v62, 16 }
  0x74   : > { %1971 = vmatpush1.bf16.msra.mxu0 %v3952_v25  ;;  %v4561_v25 = vld [vmem:[%s4151_s12 + $0x58] sm:$0xff]  }
  0x75   : > { %1972 = vmatprep.subr.bf16.mxu0 %v5826_v1  ;;  %3717 = vmatpush1.bf16.msra.mxu1 %v4470_v30  ;;  %v606_v47 = vrot.slane %v4561_v25, 1 }
  0x76   : > { %1671 = vmatmul.mubr.bf16.gmra.mrb[20].mxu1 %v4306_v21  ;;  %3702 = vmatprep.subr.bf16.mxu1 %v5826_v1 }
  0x77   : > { %1848 = vmatmul.mubr.bf16.gmra.mrb[20].mxu0 %v4388_v50  ;;  %1678 = vmatprep.mubr.bf16.mxu1 %v474_v38  ;;  %v4505_v50 = vld [vmem:[%s5820_s1 + $0x1d8] sm:$0xff]   ;;  %v497_v38 = vrot.slane %v4554_v53, 1 }
  0x78   : > { %1855 = vmatprep.mubr.bf16.mxu0 %v601_v42  ;;  %1973 = vmatpush1.bf16.msra.mxu0 %v3955_v37  ;;  %5862 = vst [vmem:[#allocation7_spill] sm:$0xff] %v4505_v50  ;;  %v493_v37 = vor.u32 %v4551_v51, %v489_v23 }
  0x79   : > { %1974 = vmatprep.subr.bf16.mxu0 %v5826_v1  ;;  %3718 = vmatpush1.bf16.msra.mxu1 %v4486_v41  ;;  %v501_v23 = vor.u32 %v4588_v54, %v497_v38 }
  0x7a   : > { %3703 = vmatprep.subr.bf16.mxu1 %v5826_v1 }
  0x7c   : > { %1975 = vmatpush1.bf16.msra.mxu0 %v3958_v49  ;;  %v498_v49 = vsel %vm414_vm1, %v493_v37, %v497_v38  ;;  %v4618_v37 = vld [vmem:[%s5820_s1 + $0x200] sm:$0xff]  }
  0x7d   : > { %1976 = vmatprep.subr.bf16.mxu0 %v5826_v1  ;;  %3719 = vmatpush1.bf16.msra.mxu1 %v4505_v50 }
  0x7e   : > { %1679 = vmatmul.mubr.bf16.gmra.mrb[24].mxu1 %v4338_v34  ;;  %3704 = vmatprep.subr.bf16.mxu1 %v5826_v1 }
  0x7f   : > { %1856 = vmatmul.mubr.bf16.gmra.mrb[24].mxu0 %v599_v18  ;;  %1686 = vmatprep.mubr.bf16.mxu1 %v482_v55  ;;  %v4547_v18 = vor.u32 %v693_v10, %v692_v9  ;;  %v4591_v55 = vshll.u32 %v4561_v25, 16  ;;  %v608_v9 = vrot.slane %v4595_v3, 1 }
  0x80   : > { %1863 = vmatprep.mubr.bf16.mxu0 %v603_v60  ;;  %1977 = vmatpush1.bf16.msra.mxu0 %v3962_v59  ;;  %v607_v59 = vsel %vm584_vm0, %v604_v12, %v606_v47  ;;  %v4605_v12 = vshrl.u32 %v4561_v25, 16 }
  0x81   : > { %1978 = vmatprep.subr.bf16.mxu0 %v5826_v1  ;;  %3720 = vmatpush1.bf16.msra.mxu1 %v4527_v63  ;;  %5865 = vst [vmem:[#allocation10_spill] sm:$0xff] %v4547_v18 }
  0x82   : > { %3705 = vmatprep.subr.bf16.mxu1 %v5826_v1 }
  0x84   : > { %1979 = vmatpush1.bf16.msra.mxu0 %v3967_v5  ;;  %v505_v5 = vrot.slane %v4591_v55, 1 }
  0x85   : > { %1980 = vmatprep.subr.bf16.mxu0 %v5826_v1  ;;  %3721 = vmatpush1.bf16.msra.mxu1 %v4544_v15 }
  0x86   : > { %1687 = vmatmul.mubr.bf16.gmra.mrb[28].mxu1 %v4378_v46  ;;  %3706 = vmatprep.subr.bf16.mxu1 %v5826_v1  ;;  %v506_v10 = vsel %vm414_vm1, %v501_v23, %v505_v5  ;;  %v509_v38 = vor.u32 %v4605_v12, %v505_v5 }
  0x87   : > { %1864 = vmatmul.mubr.bf16.gmra.mrb[28].mxu0 %v601_v42  ;;  %1694 = vmatprep.mubr.bf16.mxu1 %v490_v19  ;;  %v4583_v42 = vld [vmem:[%s5820_s1 + $0x1f8] sm:$0xff]   ;;  %v4608_v19 = vshll.u32 %v4595_v3, 16 }
  0x88   : > { %1871 = vmatprep.mubr.bf16.mxu0 %v605_v22  ;;  %1981 = vmatpush1.bf16.msra.mxu0 %v3972_v20  ;;  %5867 = vst [vmem:[#allocation12_spill] sm:$0xff] %v4583_v42  ;;  %v609_v20 = vsel %vm584_vm0, %v606_v47, %v608_v9 }
  0x89   : > { %1982 = vmatprep.subr.bf16.mxu0 %v5826_v1  ;;  %3722 = vmatpush1.bf16.msra.mxu1 %v4568_v28 }
  0x8a   : > { %3707 = vmatprep.subr.bf16.mxu1 %v5826_v1 }
  0x8c   : > { %1983 = vmatpush1.bf16.msra.mxu0 %v3977_v43  ;;  %v513_v43 = vrot.slane %v4608_v19, 1 }
  0x8d   : > { %3723 = vmatpush1.bf16.msra.mxu1 %v4583_v42  ;;  %2129 = vmatprep.subr.bf16.mxu0 %v5826_v1  ;;  %v4633_v1 = vld [vmem:[%s4151_s12 + $0x70] sm:$0xff]  }
  0x8e   : > { %1695 = vmatmul.mubr.bf16.gmra.mrb[32].mxu1 %v4430_v7  ;;  %3620 = vmatprep.subr.bf16.mxu1 %v4618_v37  ;;  %v514_v47 = vsel %vm414_vm1, %v509_v38, %v513_v43  ;;  %v612_v61 = vrot.slane %v4633_v1, 1  ;;  %v4656_v50 = vshrl.u32 %v4633_v1, 16 }
  0x8f   : > { %1872 = vmatmul.mubr.bf16.gmra.mrb[32].mxu0 %v603_v60  ;;  %1702 = vmatprep.mubr.bf16.mxu1 %v498_v49  ;;  %v4612_v60 = vld [vmem:[%s4151_s12 + $0x68] sm:$0xff]  }
  0x90   : > { %1879 = vmatprep.mubr.bf16.mxu0 %v607_v59  ;;  %5868 = vst [vmem:[#allocation13_spill] sm:$0xff] %v4612_v60  ;;  %v610_v49 = vrot.slane %v4612_v60, 1  ;;  %v4629_v23 = vshll.u32 %v4612_v60, 16  ;;  %v4641_v28 = vshrl.u32 %v4612_v60, 16  ;;  %5870 = vst [vmem:[#allocation15_spill] sm:$0xff] %v4656_v50 }
  0x92   : > { %v521_v38 = vrot.slane %v4629_v23, 1  ;;  %v613_v15 = vsel %vm584_vm0, %v610_v49, %v612_v61 }
  0x96   : > { %1703 = vmatmul.mubr.bf16.gmra.mrb[36].mxu1 %v4474_v35 }
  0x97   : > { %1880 = vmatmul.mubr.bf16.gmra.mrb[36].mxu0 %v605_v22  ;;  %1710 = vmatprep.mubr.bf16.mxu1 %v506_v10  ;;  %v4626_v22 = vshrl.u32 %v4595_v3, 16  ;;  %v611_v10 = vsel %vm584_vm0, %v608_v9, %v610_v49  ;;  %v4644_v9 = vshll.u32 %v4633_v1, 16 }
  0x98   : > { %1887 = vmatprep.mubr.bf16.mxu0 %v609_v20 }
  0x99   : > { %v517_v5 = vor.u32 %v4626_v22, %v513_v43  ;;  %5869 = vst [vmem:[#allocation14_spill] sm:$0xff] %v4644_v9  ;;  %v525_v43 = vor.u32 %v4641_v28, %v521_v38 }
  0x9b   : > { %v522_v42 = vsel %vm414_vm1, %v517_v5, %v521_v38 }
  0x9e   : > { %1711 = vmatmul.mubr.bf16.gmra.mrb[40].mxu1 %v4520_v62 }
  0x9f   : > { %1888 = vmatmul.mubr.bf16.gmra.mrb[40].mxu0 %v607_v59  ;;  %1718 = vmatprep.mubr.bf16.mxu1 %v514_v47  ;;  %v4648_v59 = vld [vmem:[%s4151_s12 + $0x78] sm:$0xff]   ;;  %v529_v47 = vrot.slane %v4644_v9, 1 }
  0xa0   : > { %1895 = vmatprep.mubr.bf16.mxu0 %v611_v10  ;;  %v614_v5 = vrot.slane %v4648_v59, 1  ;;  %v4659_v49 = vshll.u32 %v4648_v59, 16  ;;  %v4671_v18 = vshrl.u32 %v4648_v59, 16 }
  0xa1   : > { %v530_v63 = vsel %vm414_vm1, %v525_v43, %v529_v47 }
  0xa2   : > { %5871 = vst [vmem:[#allocation16_spill] sm:$0xff] %v4659_v49  ;;  %v615_v41 = vsel %vm584_vm0, %v612_v61, %v614_v5  ;;  %v537_v38 = vrot.slane %v4659_v49, 1  ;;  %5872 = vst [vmem:[#allocation17_spill] sm:$0xff] %v4671_v18 }
  0xa6   : > { %1719 = vmatmul.mubr.bf16.gmra.mrb[44].mxu1 %v4561_v25 }
  0xa7   : > { %1896 = vmatmul.mubr.bf16.gmra.mrb[44].mxu0 %v609_v20  ;;  %1726 = vmatprep.mubr.bf16.mxu1 %v522_v42  ;;  %v4663_v20 = vld [vmem:[%s4151_s12 + $0x80] sm:$0xff]   ;;  %v533_v42 = vor.u32 %v4656_v50, %v529_v47 }
  0xa8   : > { %1903 = vmatprep.mubr.bf16.mxu0 %v613_v15  ;;  %v616_v43 = vrot.slane %v4663_v20, 1  ;;  %v4674_v61 = vshll.u32 %v4663_v20, 16  ;;  %v4686_v0 = vshrl.u32 %v4663_v20, 16 }
  0xa9   : > { %v538_v30 = vsel %vm414_vm1, %v533_v42, %v537_v38 }
  0xaa   : > { %5873 = vst [vmem:[#allocation18_spill] sm:$0xff] %v4674_v61  ;;  %v617_v14 = vsel %vm584_vm0, %v614_v5, %v616_v43  ;;  %v545_v47 = vrot.slane %v4674_v61, 1  ;;  %5874 = vst [vmem:[#allocation19_spill] sm:$0xff] %v4686_v0  ;;  %v3975_v61 = vld [vmem:[%s4151_s12 + $0x90] ss:$0 sps:$4 sm:$0x11]  }
  0xae   : > { %1727 = vmatmul.mubr.bf16.gmra.mrb[48].mxu1 %v4595_v3 }
  0xaf   : > { %1904 = vmatmul.mubr.bf16.gmra.mrb[48].mxu0 %v611_v10  ;;  %1734 = vmatprep.mubr.bf16.mxu1 %v530_v63  ;;  %v4678_v10 = vld [vmem:[%s4151_s12 + $0x88] sm:$0xff]   ;;  %v541_v63 = vor.u32 %v4671_v18, %v537_v38  ;;  %v549_v38 = vor.u32 %v4686_v0, %v545_v47 }
  0xb0   : > { %1911 = vmatprep.mubr.bf16.mxu0 %v615_v41  ;;  %v618_v42 = vrot.slane %v4678_v10, 1  ;;  %v4689_v5 = vshll.u32 %v4678_v10, 16  ;;  %v4702_v9 = vshrl.u32 %v4678_v10, 16 }
  0xb1   : > { %v546_v49 = vsel %vm414_vm1, %v541_v63, %v545_v47  ;;  %v655_v47 = vrot.slane %v3976_v52, 1 }
  0xb2   : > { %5875 = vst [vmem:[#allocation20_spill] sm:$0xff] %v4689_v5  ;;  %v553_v63 = vrot.slane %v4689_v5, 1  ;;  %v884_v5 = vrot.slane %v4481_v40, 3 }
  0xb6   : > { %1735 = vmatmul.mubr.bf16.gmra.mrb[52].mxu1 %v4612_v60  ;;  %v554_v60 = vsel %vm414_vm1, %v549_v38, %v553_v63  ;;  %v883_v38 = vrot.slane %v4510_v57, 2 }
  0xb7   : > { %1912 = vmatmul.mubr.bf16.gmra.mrb[52].mxu0 %v613_v15  ;;  %1742 = vmatprep.mubr.bf16.mxu1 %v538_v30  ;;  %v619_v15 = vsel %vm584_vm0, %v616_v43, %v618_v42  ;;  %v4693_v30 = vld [vmem:[%s4151_s12 + $0x90] sm:$0xff]   ;;  %v559_v43 = vshll.u32 %v3975_v61, 16 }
  0xb8   : > { %1919 = vmatprep.mubr.bf16.mxu0 %v617_v14  ;;  %5876 = vst [vmem:[#allocation21_spill] sm:$0xff] %v4693_v30  ;;  %v653_v18 = vrot.slane %v4693_v30, 1 }
  0xba   : > { %v654_v50 = vsel %vm584_vm0, %v618_v42, %v653_v18  ;;  %v656_v0 = vsel %vm584_vm0, %v653_v18, %v655_v47  ;;  %v787_v18 = vrot.slane %v4378_v46, 2  ;;  %v3982_v47 = vld [vmem:[%s5820_s1 + $0x208] sm:$0xff]  }
  0xbe   : > { %1743 = vmatmul.mubr.bf16.gmra.mrb[56].mxu1 %v4633_v1 }
  0xbf   : > { %1920 = vmatmul.mubr.bf16.gmra.mrb[56].mxu0 %v615_v41  ;;  %1750 = vmatprep.mubr.bf16.mxu1 %v546_v49  ;;  %v557_v41 = vor.u32 %v4702_v9, %v553_v63  ;;  %v561_v49 = vrot.slane %v559_v43, 1  ;;  %v887_v63 = vrot.slane %v4551_v51, 2  ;;  %v888_v43 = vrot.slane %v4513_v58, 3 }
  0xc0   : > { %1927 = vmatprep.mubr.bf16.mxu0 %v619_v15 }
  0xc1   : > { %v562_v30 = vsel %vm414_vm1, %v557_v41, %v561_v49  ;;  %v677_v41 = vrot.slane %v4268_v6, 2  ;;  %v891_v49 = vrot.slane %v4588_v54, 2 }
  0xc6   : > { %1751 = vmatmul.mubr.bf16.gmra.mrb[60].mxu1 %v4648_v59 }
  0xc7   : > { %1928 = vmatmul.mubr.bf16.gmra.mrb[60].mxu0 %v617_v14  ;;  %1758 = vmatprep.mubr.bf16.mxu1 %v554_v60  ;;  %v620_v14 = vrot.slane %v3975_v61, 1  ;;  %v885_v60 = vor.u32 %v884_v5, %v883_v38  ;;  %v889_v61 = vor.u32 %v888_v43, %v887_v63  ;;  %v791_v38 = vrot.slane %v4474_v35, 2 }
  0xc8   : > { %1935 = vmatprep.mubr.bf16.mxu0 %v654_v50  ;;  %v680_v35 = vrot.slane %v4335_v31, 1  ;;  %v896_v43 = vrot.slane %v4591_v55, 3 }
  0xc9   : > { %v621_v50 = vsel %vm584_vm0, %v618_v42, %v620_v14  ;;  %v886_v52 = vsel %vm854_vm4, %v4426_v4, %v885_v60  ;;  %v4723_v42 = vrot.slane %v4246_v56, 2 }
  0xce   : > { %1759 = vmatmul.mubr.bf16.gmra.mrb[64].mxu1 %v4663_v20 }
  0xcf   : > { %1936 = vmatmul.mubr.bf16.gmra.mrb[64].mxu0 %v619_v15  ;;  %1766 = vmatprep.mubr.bf16.mxu1 %v562_v30  ;;  %v676_v15 = vrot.slane %v4297_v16, 1  ;;  %v890_v30 = vsel %vm854_vm4, %v885_v60, %v889_v61 }
  0xd0   : > { %1943 = vmatprep.mubr.bf16.mxu0 %v656_v0  ;;  %v789_v0 = vrot.slane %v4430_v7, 2  ;;  %v892_v7 = vrot.slane %v4554_v53, 3 }
  0xd1   : > { %v678_v14 = vor.u32 %v677_v41, %v676_v15  ;;  %v3986_v41 = vld [vmem:[%s5820_s1 + $0x220] sm:$0xff]  }
  0xd2   : > { %v4728_v5 = vsel %vm775_vm2, %v787_v18, %v789_v0  ;;  %v893_v60 = vor.u32 %v892_v7, %v891_v49  ;;  %v685_v7 = vrot.slane %v4342_v36, 2 }
  0xd3   : > { %v679_v63 = vsel %vm663_vm3, %v4323_v29, %v678_v14  ;;  %v793_v29 = vrot.slane %v4520_v62, 2  ;;  %v684_v62 = vrot.slane %v4375_v45, 1 }
  0xd5   : > { %v4781_v49 = vsel %vm775_vm2, %v791_v38, %v793_v29 }
  0xd6   : > { %1767 = vmatmul.mubr.bf16.gmra.mrb[68].mxu1 %v4678_v10 }
  0xd7   : > { %1944 = vmatmul.mubr.bf16.gmra.mrb[68].mxu0 %v621_v50  ;;  %2201 = vmatprep.mubr.bf16.mxu1 %v886_v52  ;;  %v5878_v50 = vmov 0   ;;  %v3983_v52 = vld [vmem:[%s5820_s1 + $0x210] sm:$0xff]  }
  0xd8   : > { %1984 = vmatprep.mubr.bf16.mxu0 %v4447_v33  ;;  %v5877_v33 = vrot.slane %v4187_v32, 2  ;;  %v781_v32 = vrot.slane %v4262_v2, 2  ;;  %v894_v2 = vsel %vm854_vm4, %v889_v61, %v893_v60 }
  0xda   : > { %v780_v56 = vsel %vm775_vm2, %v5877_v33, %v4723_v42  ;;  %v4765_v15 = vsel %vm775_vm2, %v4723_v42, %v781_v32 }
  0xde   : > { %2202 = vmatmul.mubr.bf16.vlgmr.msra.gmra.mrb[72].mxu1 %v4728_v5 }
  0xdf   : > { %1985 = vmatmul.mubr.bf16.vlgmr.msra.gmra.mrb[0].mxu0 %v4462_v26  ;;  %2209 = vmatprep.mubr.bf16.mxu1 %v890_v30  ;;  %v4753_v26 = vsel %vm775_vm2, %v789_v0, %v791_v38  ;;  %v783_v30 = vrot.slane %v4306_v21, 2  ;;  %v899_v21 = vrot.slane %v4626_v22, 2  ;;  %v3987_v38 = vld [vmem:[%s5820_s1 + $0x228] sm:$0xff]  }
  0xe0   : > { %2130 = vmatpush1.bf16.msra.mxu0 %v4277_v8  ;;  %1992 = vmatprep.mubr.bf16.mxu0 %v780_v56  ;;  %v681_v8 = vrot.slane %v4300_v17, 2  ;;  %v900_v56 = vrot.slane %v4608_v19, 3 }
  0xe1   : > { %2131 = vmatprep.subr.bf16.mxu0 %v5878_v50  ;;  %3621 = vmatpush3.bf16.msra.mxu1 %v4618_v37  ;;  %v895_v37 = vrot.slane %v4605_v12, 2 }
  0xe2   : > { %3622 = vmatprep.subr.bf16.mxu1 %v3982_v47  ;;  %v682_v0 = vor.u32 %v681_v8, %v680_v35 }
  0xe3   : > { %v897_v61 = vor.u32 %v896_v43, %v895_v37  ;;  %v3991_v43 = vld [vmem:[%s5820_s1 + $0x238] sm:$0xff]  }
  0xe4   : > { %2132 = vmatpush1.bf16.msra.mxu0 %v4290_v13  ;;  %v3984_v13 = vld [vmem:[%s5820_s1 + $0x218] sm:$0xff]  }
  0xe5   : > { %2133 = vmatprep.subr.bf16.mxu0 %v5878_v50  ;;  %3623 = vmatpush3.bf16.msra.mxu1 %v3982_v47  ;;  %v898_v33 = vsel %vm854_vm4, %v893_v60, %v897_v61  ;;  %v4791_v47 = vsel %vm775_vm2, %v781_v32, %v783_v30  ;;  %v901_v60 = vor.u32 %v900_v56, %v899_v21  ;;  %v785_v32 = vrot.slane %v4338_v34, 2  ;;  %v5883_v56 = vld [vmem:[#allocation13_spill] sm:$0xff] }
  0xe6   : > { %2210 = vmatmul.mubr.bf16.gmra.mrb[76].mxu1 %v4753_v26  ;;  %3624 = vmatprep.subr.bf16.mxu1 %v3983_v52  ;;  %v903_v34 = vrot.slane %v4641_v28, 2 }
  0xe7   : > { %1993 = vmatmul.mubr.bf16.gmra.mrb[4].mxu0 %v679_v63  ;;  %2217 = vmatprep.mubr.bf16.mxu1 %v894_v2  ;;  %v902_v63 = vsel %vm854_vm4, %v897_v61, %v901_v60  ;;  %v904_v2 = vrot.slane %v4629_v23, 3  ;;  %v4817_v37 = vsel %vm775_vm2, %v783_v30, %v785_v32  ;;  %v4839_v21 = vsel %vm775_vm2, %v785_v32, %v787_v18  ;;  %v5885_v32 = vld [vmem:[#allocation10_spill] sm:$0xff] }
  0xe8   : > { %2000 = vmatprep.mubr.bf16.mxu0 %v4765_v15  ;;  %2134 = vmatpush1.bf16.msra.mxu0 %v4314_v24  ;;  %v683_v24 = vsel %vm663_vm3, %v678_v14, %v682_v0  ;;  %v795_v14 = vrot.slane %v4561_v25, 2  ;;  %v688_v25 = vrot.slane %v4434_v11, 1  ;;  %v696_v18 = vrot.slane %v4510_v57, 1 }
  0xe9   : > { %2135 = vmatprep.subr.bf16.mxu0 %v5878_v50  ;;  %3625 = vmatpush3.bf16.msra.mxu1 %v3983_v52  ;;  %v3990_v52 = vld [vmem:[%s5820_s1 + $0x230] sm:$0xff]  }
  0xea   : > { %3626 = vmatprep.subr.bf16.mxu1 %v3984_v13  ;;  %v4808_v8 = vsel %vm775_vm2, %v793_v29, %v795_v14  ;;  %v905_v29 = vor.u32 %v904_v2, %v903_v34  ;;  %v5888_v2 = vld [vmem:[#allocation5_spill] sm:$0xff] }
  0xec   : > { %2136 = vmatpush1.bf16.msra.mxu0 %v4331_v27  ;;  %v686_v27 = vor.u32 %v685_v7, %v684_v62  ;;  %v5880_v62 = vld [vmem:[#allocation15_spill] sm:$0xff] }
  0xed   : > { %2137 = vmatprep.subr.bf16.mxu0 %v5878_v50  ;;  %3627 = vmatpush3.bf16.msra.mxu1 %v3984_v13  ;;  %v797_v13 = vrot.slane %v4595_v3, 2  ;;  %v907_v7 = vrot.slane %v5880_v62, 2  ;;  %v5881_v3 = vld [vmem:[#allocation14_spill] sm:$0xff] }
  0xee   : > { %2218 = vmatmul.mubr.bf16.gmra.mrb[80].mxu1 %v4781_v49  ;;  %3628 = vmatprep.subr.bf16.mxu1 %v3986_v41  ;;  %v687_v35 = vsel %vm663_vm3, %v682_v0, %v686_v27  ;;  %v5879_v0 = vld [vmem:[#allocation2_spill] sm:$0xff] }
  0xef   : > { %2001 = vmatmul.mubr.bf16.gmra.mrb[8].mxu0 %v683_v24  ;;  %2225 = vmatprep.mubr.bf16.mxu1 %v898_v33  ;;  %v4829_v61 = vsel %vm775_vm2, %v795_v14, %v797_v13  ;;  %v908_v24 = vrot.slane %v5881_v3, 3  ;;  %v5882_v33 = vld [vmem:[#allocation3_spill] sm:$0xff]  ;;  %v5884_v14 = vld [vmem:[#allocation4_spill] sm:$0xff] }
  0xf0   : > { %2008 = vmatprep.mubr.bf16.mxu0 %v4791_v47  ;;  %2138 = vmatpush1.bf16.msra.mxu0 %v4355_v39  ;;  %v689_v39 = vrot.slane %v4382_v48, 2 }
  0xf1   : > { %2139 = vmatprep.subr.bf16.mxu0 %v5878_v50  ;;  %3629 = vmatpush3.bf16.msra.mxu1 %v3986_v41  ;;  %v906_v41 = vsel %vm854_vm4, %v901_v60, %v905_v29  ;;  %v697_v60 = vrot.slane %v4481_v40, 2  ;;  %v801_v40 = vrot.slane %v4633_v1, 2  ;;  %v5890_v1 = vld [vmem:[#allocation19_spill] sm:$0xff] }
  0xf2   : > { %3630 = vmatprep.subr.bf16.mxu1 %v3987_v38 }
  0xf3   : > { %v698_v57 = vor.u32 %v697_v60, %v696_v18  ;;  %v2606_v18 = vld [vmem:[%s5823_s4 + $0x8] sm:$0xff] }
  0xf4   : > { %2140 = vmatpush1.bf16.msra.mxu0 %v4369_v44  ;;  %v690_v44 = vor.u32 %v689_v39, %v688_v25  ;;  %v5886_v25 = vld [vmem:[#allocation17_spill] sm:$0xff]  ;;  %v5887_v39 = vld [vmem:[#allocation16_spill] sm:$0xff] }
  0xf5   : > { %2141 = vmatprep.subr.bf16.mxu0 %v5878_v50  ;;  %3631 = vmatpush3.bf16.msra.mxu1 %v3987_v38  ;;  %v799_v38 = vrot.slane %v5883_v56, 2  ;;  %v912_v34 = vrot.slane %v5887_v39, 3  ;;  %v803_v56 = vrot.slane %v4648_v59, 2 }
  0xf6   : > { %2226 = vmatmul.mubr.bf16.gmra.mrb[84].mxu1 %v4808_v8  ;;  %3632 = vmatprep.subr.bf16.mxu1 %v3990_v52  ;;  %v691_v30 = vsel %vm663_vm3, %v686_v27, %v690_v44  ;;  %v909_v27 = vor.u32 %v908_v24, %v907_v7  ;;  %v915_v7 = vrot.slane %v5890_v1, 2 }
  0xf7   : > { %2009 = vmatmul.mubr.bf16.gmra.mrb[12].mxu0 %v687_v35  ;;  %2233 = vmatprep.mubr.bf16.mxu1 %v902_v63  ;;  %v4848_v46 = vsel %vm775_vm2, %v797_v13, %v799_v38  ;;  %v911_v63 = vrot.slane %v5886_v25, 2  ;;  %v5889_v13 = vld [vmem:[#allocation6_spill] sm:$0xff]  ;;  %v4891_v60 = vsel %vm775_vm2, %v801_v40, %v803_v56 }
  0xf8   : > { %2016 = vmatprep.mubr.bf16.mxu0 %v4817_v37  ;;  %2142 = vmatpush1.bf16.msra.mxu0 %v5879_v0  ;;  %v910_v35 = vsel %vm854_vm4, %v905_v29, %v909_v27  ;;  %v4867_v29 = vsel %vm775_vm2, %v799_v38, %v801_v40  ;;  %v700_v0 = vrot.slane %v4551_v51, 1  ;;  %v2605_v51 = vld [vmem:[%s5823_s4] sm:$0xff]  ;;  %v2610_v40 = vld [vmem:[%s5823_s4 + $0x28] sm:$0xff] }
  0xf9   : > { %2143 = vmatprep.subr.bf16.mxu0 %v5878_v50  ;;  %3633 = vmatpush3.bf16.msra.mxu1 %v3990_v52  ;;  %v695_v52 = vsel %vm663_vm3, %v690_v44, %v5885_v32  ;;  %v699_v44 = vsel %vm663_vm3, %v5885_v32, %v698_v57  ;;  %v704_v32 = vrot.slane %v4588_v54, 1 }
  0xfa   : > { %3634 = vmatprep.subr.bf16.mxu1 %v3991_v43  ;;  %2643 = vperm.xlu0 %3891, %v2605_v51   ;;  %v2612_v51 = vld [vmem:[%s5823_s4 + $0x38] sm:$0xff] }
  0xfc   : > { %2144 = vmatpush1.bf16.msra.mxu0 %v5882_v33  ;;  %v5892_v33 = vld [vmem:[#allocation7_spill] sm:$0xff] }
  0xfd   : > { %2145 = vmatprep.subr.bf16.mxu0 %v5878_v50  ;;  %3635 = vmatpush3.bf16.msra.mxu1 %v3991_v43  ;;  %v913_v43 = vor.u32 %v912_v34, %v911_v63  ;;  %v919_v34 = vrot.slane %v4702_v9, 2 }
  0xfe   : > { %2234 = vmatmul.mubr.bf16.gmra.mrb[88].mxu1 %v4829_v61  ;;  %2648 = vperm.xlu0 %3891, %v2606_v18  }
  0xff   : > { %2017 = vmatmul.mubr.bf16.gmra.mrb[16].mxu0 %v691_v30  ;;  %2241 = vmatprep.mubr.bf16.mxu1 %v906_v41  ;;  %v914_v30 = vsel %vm854_vm4, %v909_v27, %v913_v43  ;;  %v701_v41 = vrot.slane %v4513_v58, 2  ;;  %v2607_v58 = vld [vmem:[%s5823_s4 + $0x10] sm:$0xff] }
 0x100   : > { %2024 = vmatprep.mubr.bf16.mxu0 %v4839_v21  ;;  %2146 = vmatpush1.bf16.msra.mxu0 %v5884_v14  ;;  %v5893_v14 = vld [vmem:[#allocation8_spill] sm:$0xff] }
 0x101   : > { %2147 = vmatprep.subr.bf16.mxu0 %v5878_v50  ;;  %v702_v38 = vor.u32 %v701_v41, %v700_v0  ;;  %2653 = vperm.xlu1 %3892, %v2607_v58   ;;  %v5896_v0 = vld [vmem:[#allocation21_spill] sm:$0xff] }
 0x102   : > { %v740_v41 = vshll.u32 %v5896_v0, 16 }
 0x104   : > { %2148 = vmatpush1.bf16.msra.mxu0 %v5888_v2  ;;  %v5894_v2 = vld [vmem:[#allocation20_spill] sm:$0xff]  ;;  %v924_v18 = vrot.slane %v740_v41, 3 }
 0x105   : > { %2149 = vmatprep.subr.bf16.mxu0 %v5878_v50 }
 0x106   : > { %2242 = vmatmul.mubr.bf16.gmra.mrb[92].mxu1 %v4848_v46 }
 0x107   : > { %2025 = vmatmul.mubr.bf16.gmra.mrb[20].mxu0 %v695_v52  ;;  %2249 = vmatprep.mubr.bf16.mxu1 %v910_v35  ;;  %v705_v52 = vrot.slane %v4554_v53, 2  ;;  %v703_v35 = vsel %vm663_vm3, %v698_v57, %v702_v38  ;;  %v2609_v53 = vld [vmem:[%s5823_s4 + $0x20] sm:$0xff]  ;;  %v805_v57 = vrot.slane %v4663_v20, 2  ;;  %v2611_v20 = vld [vmem:[%s5823_s4 + $0x30] sm:$0xff] }
 0x108   : > { %2032 = vmatprep.mubr.bf16.mxu0 %v4728_v5  ;;  %2150 = vmatpush1.bf16.msra.mxu0 %v5889_v13  ;;  %v5891_v5 = vld [vmem:[#allocation18_spill] sm:$0xff]  ;;  %v920_v13 = vrot.slane %v5894_v2, 3 }
 0x109   : > { %2151 = vmatprep.subr.bf16.mxu0 %v5878_v50  ;;  %v916_v24 = vrot.slane %v5891_v5, 3  ;;  %v706_v54 = vor.u32 %v705_v52, %v704_v32  ;;  %2663 = vperm.xlu0 %3891, %v2609_v53   ;;  %v713_v53 = vrot.slane %v4608_v19, 2  ;;  %v2617_v19 = vld [vmem:[%s5823_s4 + $0x60] sm:$0xff] }
 0x10b   : > { %v917_v27 = vor.u32 %v916_v24, %v915_v7  ;;  %v5897_v7 = vld [vmem:[#allocation11_spill] sm:$0xff]  ;;  %v707_v24 = vsel %vm663_vm3, %v702_v38, %v706_v54  ;;  %v4935_v38 = vld [vmem:[%s4151_s12 + $0x98] sm:$0xff]  }
 0x10c   : > { %2152 = vmatpush1.bf16.msra.mxu0 %v5892_v33  ;;  %v708_v33 = vrot.slane %v4605_v12, 1  ;;  %v2613_v12 = vld [vmem:[%s5823_s4 + $0x40] sm:$0xff] }
 0x10d   : > { %2153 = vmatprep.subr.bf16.mxu0 %v5878_v50  ;;  %v918_v63 = vsel %vm854_vm4, %v913_v43, %v917_v27  ;;  %v921_v43 = vor.u32 %v920_v13, %v919_v34  ;;  %2673 = vperm.xlu0 %3891, %v2611_v20   ;;  %v2615_v13 = vld [vmem:[%s5823_s4 + $0x50] sm:$0xff] }
 0x10e   : > { %2250 = vmatmul.mubr.bf16.gmra.mrb[96].mxu1 %v4867_v29 }
 0x10f   : > { %2033 = vmatmul.mubr.bf16.gmra.mrb[24].mxu0 %v699_v44  ;;  %2257 = vmatprep.mubr.bf16.mxu1 %v914_v30  ;;  %v5895_v44 = vld [vmem:[#allocation9_spill] sm:$0xff]  ;;  %v737_v30 = vshrl.u32 %v5896_v0, 16  ;;  %v922_v58 = vsel %vm854_vm4, %v917_v27, %v921_v43  ;;  %v2614_v27 = vld [vmem:[%s5823_s4 + $0x48] sm:$0xff] }
 0x110   : > { %2040 = vmatprep.mubr.bf16.mxu0 %v4753_v26  ;;  %2154 = vmatpush1.bf16.msra.mxu0 %v5893_v14  ;;  %v2608_v26 = vld [vmem:[%s5823_s4 + $0x18] sm:$0xff] }
 0x111   : > { %2155 = vmatprep.subr.bf16.mxu0 %v5878_v50  ;;  %2658 = vperm.xlu1 %3892, %v2608_v26   ;;  %v923_v14 = vrot.slane %v737_v30, 2  ;;  %v928_v26 = vshrl.u32 %v4935_v38, 16 }
 0x112   : > { %2683 = vperm.xlu0 %3891, %v2613_v12  }
 0x113   : > { %v925_v52 = vor.u32 %v924_v18, %v923_v14 }
 0x114   : > { %2156 = vmatpush1.bf16.msra.mxu0 %v5895_v44 }
 0x115   : > { %2157 = vmatprep.subr.bf16.mxu0 %v5878_v50  ;;  %2668 = vperm.xlu1 %3892, %v2610_v40  }
 0x116   : > { %2258 = vmatmul.mubr.bf16.gmra.mrb[100].mxu1 %v4891_v60  ;;  %2693 = vperm.xlu0 %3891, %v2615_v13   ;;  %v2620_v13 = vld [vmem:[%s5823_s4 + $0x78] sm:$0xff] }
 0x117   : > { %2041 = vmatmul.mubr.bf16.gmra.mrb[28].mxu0 %v703_v35  ;;  %2265 = vmatprep.mubr.bf16.mxu1 %v918_v63  ;;  %v931_v35 = vshll.u32 %v4935_v38, 16 }
 0x118   : > { %2048 = vmatprep.mubr.bf16.mxu0 %v4781_v49  ;;  %2158 = vmatpush1.bf16.msra.mxu0 %v5897_v7  ;;  %v4922_v49 = vsel %vm775_vm2, %v803_v56, %v805_v57  ;;  %v5898_v56 = vld [vmem:[#allocation12_spill] sm:$0xff]  ;;  %v2616_v7 = vld [vmem:[%s5823_s4 + $0x58] sm:$0xff] }
 0x119   : > { %2159 = vmatprep.subr.bf16.mxu0 %v5878_v50  ;;  %v709_v50 = vrot.slane %v4591_v55, 2  ;;  %2678 = vperm.xlu1 %3892, %v2612_v51   ;;  %v807_v55 = vrot.slane %v4678_v10, 2  ;;  %v933_v51 = vrot.slane %v931_v35, 3  ;;  %v717_v35 = vrot.slane %v4629_v23, 2 }
 0x11a   : > { %2703 = vperm.xlu0 %3891, %v2617_v19   ;;  %v2623_v19 = vld [vmem:[%s5823_s4 + $0x90] sm:$0xff] }
 0x11b   : > { %v710_v32 = vor.u32 %v709_v50, %v708_v33  ;;  %v4955_v44 = vsel %vm775_vm2, %v805_v57, %v807_v55  ;;  %v930_v33 = vrot.slane %v928_v26, 2 }
 0x11c   : > { %2160 = vmatpush1.bf16.msra.mxu0 %v5898_v56 }
 0x11d   : > { %2688 = vperm.xlu1 %3892, %v2614_v27   ;;  %v711_v20 = vsel %vm663_vm3, %v706_v54, %v710_v32  ;;  %v2618_v54 = vld [vmem:[%s5823_s4 + $0x68] sm:$0xff]  ;;  %v934_v50 = vor.u32 %v933_v51, %v930_v33  ;;  %v2619_v27 = vld [vmem:[%s5823_s4 + $0x70] sm:$0xff] }
 0x11e   : > { %2266 = vmatmul.mubr.bf16.gmra.mrb[104].mxu1 %v4922_v49  ;;  %2713 = vperm.xlu0 %3891, %v2619_v27   ;;  %v302_v33 = vld [vmem:[%s4151_s12 + $0x10] sm:$0x8] }
 0x11f   : > { %2049 = vmatmul.mubr.bf16.gmra.mrb[32].mxu0 %v707_v24  ;;  %2273 = vmatprep.mubr.bf16.mxu1 %v922_v58  ;;  %v926_v24 = vsel %vm854_vm4, %v921_v43, %v925_v52  ;;  %v4967_v58 = vld [vmem:[%s4151_s12 + $0xa0] ss:$0 sps:$4 sm:$0x77]  }
 0x120   : > { %2056 = vmatprep.mubr.bf16.mxu0 %v4808_v8  ;;  %v712_v8 = vrot.slane %v4626_v22, 1  ;;  %v4974_v22 = vrot.slane %v5896_v0, 2  ;;  %v937_v14 = vshrl.u32 %v4967_v58, 16  ;;  %v940_v18 = vshll.u32 %v4967_v58, 16 }
 0x121   : > { %v4949_v63 = vpop.f32.mrb[0].mxu1  ;;  %2698 = vperm.xlu1 %3892, %v2616_v7  }
 0x122   : > { %v1634_v34 = vpop.f32.mrb[1].mxu1  ;;  %v714_v43 = vor.u32 %v713_v53, %v712_v8  ;;  %v4989_v26 = vsel %vm775_vm2, %v807_v55, %v4974_v22  ;;  %v935_v53 = vsel %vm854_vm4, %v925_v52, %v934_v50  ;;  %v939_v7 = vrot.slane %v937_v14, 2 }
 0x123   : > { %v4959_v40 = vpop.f32.mrb[2].mxu1  ;;  %v844_v55 = vrot.slane %v4935_v38, 2 }
 0x124   : > { %v1637_v57 = vpop.f32.mrb[3].mxu1  ;;  %v715_v8 = vsel %vm663_vm3, %v710_v32, %v714_v43  ;;  %v2622_v32 = vld [vmem:[%s5823_s4 + $0x88] sm:$0xff] }
 0x125   : > { %2708 = vperm.xlu1 %3892, %v2618_v54   ;;  %v845_v14 = vsel %vm775_vm2, %v4974_v22, %v844_v55 }
 0x126   : > { %2274 = vmatmul.mubr.bf16.gmra.mrb[108].mxu1 %v4955_v44 }
 0x127   : > { %2057 = vmatmul.mubr.bf16.gmra.mrb[36].mxu0 %v711_v20  ;;  %2281 = vmatprep.mubr.bf16.mxu1 %v926_v24  ;;  %v942_v20 = vrot.slane %v940_v18, 3  ;;  %v3989_v18 = vld [vmem:[%s4151_s12 + $0xa0] ss:$0 sps:$4 sm:$0x33]  }
 0x128   : > { %2064 = vmatprep.mubr.bf16.mxu0 %v4829_v61  ;;  %v716_v61 = vrot.slane %v4641_v28, 1  ;;  %v2621_v28 = vld [vmem:[%s5823_s4 + $0x80] sm:$0xff] }
 0x129   : > { %v4982_v56 = vpop.f32.mrb[4].mxu1  ;;  %2718 = vperm.xlu1 %3892, %v2620_v13   ;;  %v943_v52 = vor.u32 %v942_v20, %v939_v7  ;;  %2723 = vperm.xlu0 %3891, %v2621_v28   ;;  %v5028_v13 = vld [vmem:[%s4151_s12 + $0x14] sm:$0xf]  ;;  %v4008_v20 = vld [vmem:[%s4151_s12 + $0x18] sm:$0xff]  }
 0x12a   : > { %v1642_v12 = vpop.f32.mrb[5].mxu1  ;;  %v718_v23 = vor.u32 %v717_v35, %v716_v61  ;;  %v720_v61 = vrot.slane %v5880_v62, 1  ;;  %v721_v35 = vrot.slane %v5881_v3, 2  ;;  %v2626_v62 = vld [vmem:[%s5823_s4 + $0xa8] sm:$0xff] }
 0x12b   : > { %v4993_v34 = vpop.f32.mrb[6].mxu1  ;;  %v944_v27 = vsel %vm854_vm4, %v934_v50, %v943_v52  ;;  %v846_v50 = vrot.slane %v3989_v18, 2  ;;  %v2627_v52 = vld [vmem:[%s5823_s4 + $0xb0] sm:$0xff]  ;;  %v725_v18 = vrot.slane %v5887_v39, 2  ;;  %v4010_v39 = vld [vmem:[%s4151_s12 + $0x28] sm:$0xff]  }
 0x12c   : > { %v1645_v24 = vpop.f32.mrb[7].mxu1  ;;  %v719_v54 = vsel %vm663_vm3, %v714_v43, %v718_v23  ;;  %v3321_v43 = vcombine.low %v302_v33, %v5028_v13  ;;  %v722_v3 = vor.u32 %v721_v35, %v720_v61  ;;  %v972_v35 = vrot.slane %v4010_v39, 3 }
 0x12d   : > { %2728 = vperm.xlu1 %3892, %v2622_v32   ;;  %2733 = vperm.xlu0 %3891, %v2623_v19   ;;  %v968_v24 = vrot.slane %v4008_v20, 3  ;;  %v847_v33 = vsel %vm775_vm2, %v844_v55, %v846_v50  ;;  %v2629_v55 = vld [vmem:[%s5823_s4 + $0xc0] sm:$0xff]  ;;  %v732_v39 = vrot.slane %v4702_v9, 1  ;;  %v4014_v9 = vld [vmem:[%s4151_s12 + $0x48] sm:$0xff]  }
 0x12e   : > { %2282 = vmatmul.mubr.bf16.gmra.mrb[112].mxu1 %v4989_v26  ;;  %v967_v7 = vrot.slane %v3321_v43, 3  ;;  %v723_v19 = vsel %vm663_vm3, %v718_v23, %v722_v3  ;;  %v2630_v23 = vld [vmem:[%s5823_s4 + $0xc8] sm:$0xff] }
 0x12f   : > { %2065 = vmatmul.mubr.bf16.gmra.mrb[40].mxu0 %v715_v8  ;;  %2289 = vmatprep.mubr.bf16.mxu1 %v935_v53  ;;  %v2625_v53 = vld [vmem:[%s5823_s4 + $0xa0] sm:$0xff] }
 0x130   : > { %2072 = vmatprep.mubr.bf16.mxu0 %v4848_v46  ;;  %v2624_v46 = vld [vmem:[%s5823_s4 + $0x98] sm:$0xff] }
 0x131   : > { %v5010_v51 = vpop.f32.mrb[8].mxu1  ;;  %2738 = vperm.xlu1 %3892, %v2624_v46   ;;  %2743 = vperm.xlu0 %3891, %v2625_v53   ;;  %v2631_v53 = vld [vmem:[%s5823_s4 + $0xd0] sm:$0xff] }
 0x132   : > { %v1650_v57 = vpop.f32.mrb[9].mxu1 }
 0x133   : > { %v5019_v12 = vpop.f32.mrb[10].mxu1 }
 0x134   : > { %v1653_v8 = vpop.f32.mrb[11].mxu1 }
 0x135   : > { %2748 = vperm.xlu1 %3892, %v2626_v62   ;;  %2753 = vperm.xlu0 %3891, %v2627_v52   ;;  %v729_v52 = vrot.slane %v5891_v5, 2  ;;  %v4012_v5 = vld [vmem:[%s4151_s12 + $0x38] sm:$0xff]  }
 0x136   : > { %2290 = vmatmul.mubr.bf16.gmra.mrb[116].mxu1 %v845_v14  ;;  %v724_v14 = vrot.slane %v5886_v25, 1 }
 0x137   : > { %2073 = vmatmul.mubr.bf16.gmra.mrb[44].mxu0 %v719_v54  ;;  %2297 = vmatprep.mubr.bf16.mxu1 %v944_v27  ;;  %v969_v54 = vsel %vm966_vm5, %v967_v7, %v968_v24  ;;  %v4009_v27 = vld [vmem:[%s4151_s12 + $0x20] sm:$0xff]  }
 0x138   : > { %2080 = vmatprep.mubr.bf16.mxu0 %v4867_v29  ;;  %v2628_v29 = vld [vmem:[%s5823_s4 + $0xb8] sm:$0xff]  ;;  %v970_v61 = vrot.slane %v4009_v27, 3  ;;  %v726_v25 = vor.u32 %v725_v18, %v724_v14 }
 0x139   : > { %v5039_v28 = vpop.f32.mrb[12].mxu1  ;;  %2758 = vperm.xlu1 %3892, %v2628_v29   ;;  %2763 = vperm.xlu0 %3891, %v2629_v55   ;;  %v4011_v29 = vld [vmem:[%s4151_s12 + $0x30] sm:$0xff]  }
 0x13a   : > { %v1658_v32 = vpop.f32.mrb[13].mxu1  ;;  %v971_v50 = vsel %vm966_vm5, %v968_v24, %v970_v61  ;;  %v727_v7 = vsel %vm663_vm3, %v722_v3, %v726_v25  ;;  %v973_v20 = vsel %vm966_vm5, %v970_v61, %v972_v35  ;;  %v2633_v24 = vld [vmem:[%s5823_s4 + $0xe0] sm:$0xff]  ;;  %v2634_v3 = vld [vmem:[%s5823_s4 + $0xe8] sm:$0xff] }
 0x13b   : > { %v5045_v57 = vpop.f32.mrb[14].mxu1  ;;  %v728_v32 = vrot.slane %v5890_v1, 1 }
 0x13c   : > { %v1661_v46 = vpop.f32.mrb[15].mxu1 }
 0x13d   : > { %2768 = vperm.xlu1 %3892, %v2630_v23   ;;  %2773 = vperm.xlu0 %3891, %v2631_v53   ;;  %v730_v1 = vor.u32 %v729_v52, %v728_v32  ;;  %v2635_v46 = vld [vmem:[%s5823_s4 + $0xf0] sm:$0xff] }
 0x13e   : > { %2298 = vmatmul.mubr.bf16.gmra.mrb[120].mxu1 %v847_v33 }
 0x13f   : > { %2081 = vmatmul.mubr.bf16.gmra.mrb[48].mxu0 %v723_v19  ;;  %3636 = vmatprep.mubr.bf16.mxu1 %v969_v54  ;;  %v974_v19 = vrot.slane %v4011_v29, 3  ;;  %v976_v54 = vrot.slane %v4012_v5, 3  ;;  %v731_v61 = vsel %vm663_vm3, %v726_v25, %v730_v1 }
 0x140   : > { %2088 = vmatprep.mubr.bf16.mxu0 %v4891_v60  ;;  %v2632_v60 = vld [vmem:[%s5823_s4 + $0xd8] sm:$0xff] }
 0x141   : > { %v5063_v43 = vpop.f32.mrb[16].mxu1  ;;  %2778 = vperm.xlu1 %3892, %v2632_v60   ;;  %2783 = vperm.xlu0 %3891, %v2633_v24   ;;  %v975_v55 = vsel %vm966_vm5, %v972_v35, %v974_v19  ;;  %v977_v23 = vsel %vm966_vm5, %v974_v19, %v976_v54  ;;  %v2637_v35 = vld [vmem:[%s5823_s4 + $0x100] sm:$0xff]  ;;  %v742_v24 = vrot.slane %v740_v41, 2 }
 0x142   : > { %v1666_v8 = vpop.f32.mrb[17].mxu1 }
 0x143   : > { %v5069_v62 = vpop.f32.mrb[18].mxu1  ;;  %v733_v8 = vrot.slane %v5894_v2, 2 }
 0x144   : > { %v1669_v33 = vpop.f32.mrb[19].mxu1 }
 0x145   : > { %2788 = vperm.xlu1 %3892, %v2634_v3   ;;  %2793 = vperm.xlu0 %3891, %v2635_v46   ;;  %v734_v60 = vor.u32 %v733_v8, %v732_v39  ;;  %v739_v33 = vrot.slane %v737_v30, 1  ;;  %v3993_v3 = vld [vmem:[%s4151_s12 + $0x98] ss:$0 sps:$4 sm:$0x33]   ;;  %v4015_v30 = vld [vmem:[%s4151_s12 + $0x50] sm:$0xff]  }
 0x146   : > { %3637 = vmatmul.mubr.bf16.vlgmr.msra.gmra.mrb[124].mxu1 %v971_v50  ;;  %v4013_v50 = vld [vmem:[%s4151_s12 + $0x40] sm:$0xff]   ;;  %v982_v46 = vrot.slane %v4015_v30, 3  ;;  %v811_v41 = vrot.slane %v3993_v3, 2  ;;  %v4018_v30 = vld [vmem:[%s4151_s12 + $0x68] sm:$0xff]  }
 0x147   : > { %2089 = vmatmul.mubr.bf16.gmra.mrb[52].mxu0 %v727_v7  ;;  %3640 = vmatprep.mubr.bf16.mxu1 %v973_v20  ;;  %v978_v25 = vrot.slane %v4013_v50, 3  ;;  %v980_v7 = vrot.slane %v4014_v9, 3  ;;  %v297_v20 = vld [vmem:[%s4151_s12 + $0x10] sm:$0xc] }
 0x148   : > { %2096 = vmatprep.mubr.bf16.mxu0 %v4922_v49  ;;  %v2636_v49 = vld [vmem:[%s5823_s4 + $0xf8] sm:$0xff]  ;;  %v812_v9 = vsel %vm775_vm2, %v4974_v22, %v811_v41  ;;  %v4017_v22 = vld [vmem:[%s4151_s12 + $0x60] sm:$0xff]  }
 0x149   : > { %v5087_v14 = vpop.f32.mrb[20].mxu1  ;;  %2798 = vperm.xlu1 %3892, %v2636_v49   ;;  %2803 = vperm.xlu0 %3891, %v2637_v35   ;;  %v979_v52 = vsel %vm966_vm5, %v976_v54, %v978_v25  ;;  %v981_v19 = vsel %vm966_vm5, %v978_v25, %v980_v7  ;;  %v743_v54 = vor.u32 %v742_v24, %v739_v33 }
 0x14a   : > { %v1674_v18 = vpop.f32.mrb[21].mxu1  ;;  %v983_v50 = vsel %vm966_vm5, %v980_v7, %v982_v46  ;;  %v864_v7 = vrot.slane %v4268_v6, 3 }
 0x14b   : > { %v5093_v27 = vpop.f32.mrb[22].mxu1  ;;  %v5122_v18 = vcombine.low %v297_v20, %v5028_v13  ;;  %v744_v35 = vsel %vm663_vm3, %v734_v60, %v743_v54 }
 0x14c   : > { %v1677_v53 = vpop.f32.mrb[23].mxu1 }
 0x14d   : > { %v859_v39 = vshll.u32 %v5122_v18, 16  ;;  %v2638_v53 = vld [vmem:[%s5823_s4 + $0x108] sm:$0xff] }
 0x14e   : > { %3641 = vmatmul.mubr.bf16.gmra.mrb[128].mxu1 %v975_v55  ;;  %v4016_v55 = vld [vmem:[%s4151_s12 + $0x58] sm:$0xff]   ;;  %2808 = vperm.xlu1 %3892, %v2638_v53  }
 0x14f   : > { %2097 = vmatmul.mubr.bf16.gmra.mrb[56].mxu0 %v731_v61  ;;  %3644 = vmatprep.mubr.bf16.mxu1 %v977_v23  ;;  %v984_v49 = vrot.slane %v4016_v55, 3  ;;  %v746_v61 = vshrl.u32 %v3993_v3, 16  ;;  %v856_v23 = vshrl.u32 %v5122_v18, 16 }
 0x150   : > { %2104 = vmatprep.mubr.bf16.mxu0 %v4955_v44  ;;  %v735_v44 = vsel %vm663_vm3, %v730_v1, %v734_v60  ;;  %v749_v1 = vshll.u32 %v3993_v3, 16  ;;  %v863_v60 = vrot.slane %v4297_v16, 2  ;;  %v986_v3 = vrot.slane %v4017_v22, 3 }
 0x151   : > { %v5108_v2 = vpop.f32.mrb[24].mxu1  ;;  %v985_v20 = vsel %vm966_vm5, %v982_v46, %v984_v49  ;;  %v858_v24 = vrot.slane %v856_v23, 2  ;;  %v988_v46 = vrot.slane %v4018_v30, 3  ;;  %v996_v22 = vrot.slane %v4678_v10, 3 }
 0x152   : > { %v1682_v32 = vpop.f32.mrb[25].mxu1  ;;  %v865_v55 = vor.u32 %v864_v7, %v863_v60  ;;  %v4020_v7 = vld [vmem:[%s4151_s12 + $0x80] sm:$0xff]   ;;  %v998_v10 = vrot.slane %v5896_v0, 3 }
 0x153   : > { %v5116_v29 = vpop.f32.mrb[26].mxu1  ;;  %v748_v32 = vrot.slane %v746_v61, 1  ;;  %v987_v61 = vsel %vm966_vm5, %v984_v49, %v986_v3  ;;  %v842_v49 = vrot.slane %v5122_v18, 2  ;;  %v871_v18 = vrot.slane %v4375_v45, 2 }
 0x154   : > { %v1685_v5 = vpop.f32.mrb[27].mxu1 }
 0x156   : > { %3645 = vmatmul.mubr.bf16.gmra.mrb[132].mxu1 %v979_v52  ;;  %v751_v52 = vrot.slane %v749_v1, 2 }
 0x157   : > { %2105 = vmatmul.mubr.bf16.gmra.mrb[60].mxu0 %v735_v44  ;;  %3648 = vmatprep.mubr.bf16.mxu1 %v981_v19  ;;  %v861_v44 = vrot.slane %v859_v39, 3  ;;  %v2640_v19 = vld [vmem:[%s5823_s4 + $0x118] sm:$0xff]  ;;  %v989_v39 = vsel %vm966_vm5, %v986_v3, %v988_v46 }
 0x158   : > { %2112 = vmatprep.mubr.bf16.mxu0 %v4989_v26  ;;  %v2639_v26 = vld [vmem:[%s5823_s4 + $0x110] sm:$0xff]  ;;  %v752_v5 = vor.u32 %v751_v52, %v748_v32  ;;  %2818 = vperm.xlu1 %3892, %v2640_v19   ;;  %v994_v19 = vrot.slane %v4020_v7, 3 }
 0x159   : > { %v5129_v8 = vpop.f32.mrb[28].mxu1  ;;  %2813 = vperm.xlu0 %3891, %v2639_v26   ;;  %v862_v41 = vor.u32 %v861_v44, %v858_v24  ;;  %v867_v26 = vrot.slane %v4335_v31, 2 }
 0x15a   : > { %v1690_v13 = vpop.f32.mrb[29].mxu1  ;;  %v753_v23 = vsel %vm663_vm3, %v743_v54, %v752_v5  ;;  %v992_v54 = vrot.slane %v4648_v59, 3  ;;  %v872_v59 = vrot.slane %v4342_v36, 3  ;;  %v997_v45 = vsel %vm966_vm5, %v994_v19, %v996_v22 }
 0x15b   : > { %v5139_v25 = vpop.f32.mrb[30].mxu1  ;;  %v866_v53 = vsel %vm854_vm4, %v862_v41, %v865_v55 }
 0x15c   : > { %v1693_v33 = vpop.f32.mrb[31].mxu1  ;;  %v873_v3 = vor.u32 %v872_v59, %v871_v18  ;;  %v995_v30 = vsel %vm966_vm5, %v992_v54, %v994_v19 }
 0x15e   : > { %3649 = vmatmul.mubr.bf16.gmra.mrb[136].mxu1 %v983_v50  ;;  %v4019_v50 = vld [vmem:[%s4151_s12 + $0x70] sm:$0xff]   ;;  %s5792_s12 = scalar_lea.vmem %s5825_s6, %s3879_s29 }
 0x15f   : > { %2113 = vmatmul.mubr.bf16.gmra.mrb[64].mxu0 %v744_v35  ;;  %3652 = vmatprep.mubr.bf16.mxu1 %v985_v20  ;;  %v868_v35 = vrot.slane %v4300_v17, 3  ;;  %v843_v17 = vsel %vm775_vm2, %v842_v49, %v4723_v42 }
 0x160   : > { %2120 = vmatprep.mubr.bf16.mxu0 %v812_v9  ;;  %v990_v9 = vrot.slane %v4019_v50, 3 }
 0x161   : > { %v5151_v16 = vpop.f32.mrb[32].mxu1  ;;  %v869_v20 = vor.u32 %v868_v35, %v867_v26 }
 0x162   : > { %v1698_v6 = vpop.f32.mrb[33].mxu1  ;;  %v991_v33 = vsel %vm966_vm5, %v988_v46, %v990_v9  ;;  %v993_v24 = vsel %vm966_vm5, %v990_v9, %v992_v54 }
 0x163   : > { %v5154_v1 = vpop.f32.mrb[34].mxu1  ;;  %v870_v60 = vsel %vm854_vm4, %v865_v55, %v869_v20  ;;  %v874_v36 = vsel %vm854_vm4, %v869_v20, %v873_v3  ;;  %v875_v55 = vrot.slane %v4434_v11, 2  ;;  %v876_v6 = vrot.slane %v4382_v48, 3 }
 0x164   : > { %v1701_v13 = vpop.f32.mrb[35].mxu1 }
 0x166   : > { %3653 = vmatmul.mubr.bf16.gmra.mrb[140].mxu1 %v987_v61  ;;  %v1000_v61 = vrot.slane %v4935_v38, 3 }
 0x167   : > { %2121 = vmatmul.mubr.bf16.gmra.mrb[68].mxu0 %v753_v23  ;;  %3656 = vmatprep.mubr.bf16.mxu1 %v989_v39  ;;  %v877_v23 = vor.u32 %v876_v6, %v875_v55 }
 0x168   : > { %2161 = vmatprep.mubr.bf16.mxu0 %v866_v53  ;;  %v999_v53 = vsel %vm966_vm5, %v996_v22, %v998_v10  ;;  %v1001_v11 = vsel %vm966_vm5, %v998_v10, %v1000_v61 }
 0x169   : > { %v5164_v32 = vpop.f32.mrb[36].mxu1  ;;  %v878_v35 = vsel %vm854_vm4, %v873_v3, %v877_v23  ;;  %v882_v54 = vsel %vm854_vm4, %v877_v23, %v4426_v4 }
 0x16a   : > { %v1706_v52 = vpop.f32.mrb[37].mxu1 }
 0x16b   : > { %v5167_v31 = vpop.f32.mrb[38].mxu1 }
 0x16c   : > { %v1709_v44 = vpop.f32.mrb[39].mxu1 }
 0x16e   : > { %3657 = vmatmul.mubr.bf16.gmra.mrb[144].mxu1 %v991_v33 }
 0x16f   : > { %2162 = vmatmul.mubr.bf16.vlgmr.msra.gmra.mrb[0].mxu0 %v843_v17  ;;  %3660 = vmatprep.mubr.bf16.mxu1 %v993_v24 }
 0x170   : > { %2169 = vmatprep.mubr.bf16.mxu0 %v870_v60 }
 0x171   : > { %v5177_v5 = vpop.f32.mrb[40].mxu1 }
 0x172   : > { %v1714_v42 = vpop.f32.mrb[41].mxu1 }
 0x173   : > { %v5180_v46 = vpop.f32.mrb[42].mxu1 }
 0x174   : > { %v1717_v41 = vpop.f32.mrb[43].mxu1 }
 0x176   : > { %3661 = vmatmul.mubr.bf16.gmra.mrb[148].mxu1 %v995_v30 }
 0x177   : > { %2170 = vmatmul.mubr.bf16.gmra.mrb[4].mxu0 %v4765_v15  ;;  %3664 = vmatprep.mubr.bf16.mxu1 %v997_v45  ;;  %v1002_v15 = vrot.slane %v4967_v58, 3 }
 0x178   : > { %2177 = vmatprep.mubr.bf16.mxu0 %v874_v36 }
 0x179   : > { %v5189_v39 = vpop.f32.mrb[44].mxu1  ;;  %v1003_v50 = vsel %vm966_vm5, %v1000_v61, %v1002_v15 }
 0x17a   : > { %v1722_v13 = vpop.f32.mrb[45].mxu1 }
 0x17b   : > { %v5192_v26 = vpop.f32.mrb[46].mxu1 }
 0x17c   : > { %v1725_v48 = vpop.f32.mrb[47].mxu1 }
 0x17e   : > { %3665 = vmatmul.mubr.bf16.gmra.mrb[152].mxu1 %v999_v53 }
 0x17f   : > { %2178 = vmatmul.mubr.bf16.gmra.mrb[8].mxu0 %v4791_v47  ;;  %3668 = vmatprep.mubr.bf16.mxu1 %v1001_v11 }
 0x180   : > { %2185 = vmatprep.mubr.bf16.mxu0 %v878_v35 }
 0x181   : > { %v5198_v0 = vpop.f32.mrb[48].mxu1 }
 0x182   : > { %v1730_v38 = vpop.f32.mrb[49].mxu1 }
 0x183   : > { %v5201_v9 = vpop.f32.mrb[50].mxu1 }
 0x184   : > { %v1733_v49 = vpop.f32.mrb[51].mxu1 }
 0x186   : > { %3669 = vmatmul.mubr.bf16.gmra.mrb[156].mxu1 %v1003_v50 }
 0x187   : > { %2186 = vmatmul.mubr.bf16.gmra.mrb[12].mxu0 %v4817_v37 }
 0x188   : > { %2193 = vmatprep.mubr.bf16.mxu0 %v882_v54 }
 0x189   : > { %v5206_v47 = vpop.f32.mrb[52].mxu1 }
 0x18a   : > { %v1738_v20 = vpop.f32.mrb[53].mxu1 }
 0x18b   : > { %v5208_v58 = vpop.f32.mrb[54].mxu1 }
 0x18c   : > { %v1741_v52 = vpop.f32.mrb[55].mxu1 }
 0x18f   : > { %2194 = vmatmul.mubr.bf16.gmra.mrb[16].mxu0 %v4839_v21 }
 0x191   : > { %v5211_v33 = vpop.f32.mrb[56].mxu1 }
 0x192   : > { %v1746_v17 = vpop.f32.mrb[57].mxu1 }
 0x193   : > { %v5213_v24 = vpop.f32.mrb[58].mxu1 }
 0x194   : > { %v1749_v44 = vpop.f32.mrb[59].mxu1 }
 0x199   : > { %v5215_v60 = vpop.f32.mrb[60].mxu1 }
 0x19a   : > { %v1754_v4 = vpop.f32.mrb[61].mxu1 }
 0x19b   : > { %v5217_v18 = vpop.f32.mrb[62].mxu1 }
 0x19c   : > { %v1757_v37 = vpop.f32.mrb[63].mxu1 }
 0x1a1   : > { %v5219_v59 = vpop.f32.mrb[64].mxu1 }
 0x1a2   : > { %v1762_v7 = vpop.f32.mrb[65].mxu1 }
 0x1a3   : > { %v5221_v19 = vpop.f32.mrb[66].mxu1 }
 0x1a4   : > { %v1765_v22 = vpop.f32.mrb[67].mxu1 }
 0x1a9   : > { %v5223_v3 = vpop.f32.mrb[68].mxu1 }
 0x1aa   : > { %v1770_v21 = vpop.f32.mrb[69].mxu1 }
 0x1ab   : > { %v5225_v42 = vpop.f32.mrb[70].mxu1 }
 0x1ac   : > { %v1773_v30 = vpop.f32.mrb[71].mxu1 }
 0x1b1   : > { %v2203_v45 = vpop.f32.mrb[72].mxu1 }
 0x1b2   : > { %v2205_v41 = vpop.f32.mrb[73].mxu1 }
 0x1b3   : > { %v2206_v36 = vpop.f32.mrb[74].mxu1 }
 0x1b4   : > { %v2208_v55 = vpop.f32.mrb[75].mxu1 }
 0x1b9   : > { %v2211_v6 = vpop.f32.mrb[76].mxu1 }
 0x1ba   : > { %v2213_v10 = vpop.f32.mrb[77].mxu1 }
 0x1bb   : > { %v2214_v61 = vpop.f32.mrb[78].mxu1 }
 0x1bc   : > { %v2216_v23 = vpop.f32.mrb[79].mxu1 }
 0x1c1   : > { %v2219_v13 = vpop.f32.mrb[80].mxu1 }
 0x1c2   : > { %v2221_v53 = vpop.f32.mrb[81].mxu1 }
 0x1c3   : > { %v2222_v11 = vpop.f32.mrb[82].mxu1 }
 0x1c4   : > { %v2224_v48 = vpop.f32.mrb[83].mxu1 }
 0x1c9   : > { %v2227_v35 = vpop.f32.mrb[84].mxu1 }
 0x1ca   : > { %v2229_v15 = vpop.f32.mrb[85].mxu1 }
 0x1cb   : > { %v2230_v38 = vpop.f32.mrb[86].mxu1 }
 0x1cc   : > { %v2232_v50 = vpop.f32.mrb[87].mxu1 }
 0x1d1   : > { %v2235_v49 = vpop.f32.mrb[88].mxu1 }
 0x1d2   : > { %v2237_v54 = vpop.f32.mrb[89].mxu1 }
 0x1d3   : > { %v2238_v20 = vpop.f32.mrb[90].mxu1 }
 0x1d4   : > { %v2240_v52 = vpop.f32.mrb[91].mxu1 }
 0x1d9   : > { %v5227_v17 = vpop.f32.mrb[92].mxu1 }
 0x1da   : > { %v2026_v44 = vpop.f32.mrb[20].mxu0  ;;  %v2245_v4 = vpop.f32.mrb[93].mxu1 }
 0x1db   : > { %v3734_v37 = vadd.f32 %v2026_v44, %v5087_v14  ;;  %v2028_v7 = vpop.f32.mrb[21].mxu0  ;;  %v5230_v22 = vpop.f32.mrb[94].mxu1 }
 0x1dc   : > { %v2029_v21 = vpop.f32.mrb[22].mxu0  ;;  %v2248_v30 = vpop.f32.mrb[95].mxu1 }
 0x1dd   : > { %v3736_v41 = vadd.f32 %v2029_v21, %v5093_v27  ;;  %v5233_v55 = vadd.f32 %v3734_v37, %v2203_v45  ;;  %v2031_v10 = vpop.f32.mrb[23].mxu0 }
 0x1df   : > { %v5235_v23 = vadd.f32 %v3736_v41, %v2206_v36 }
 0x1e1   : > { %v5237_v53 = vpop.f32.mrb[96].mxu1 }
 0x1e2   : > { %v2034_v48 = vpop.f32.mrb[24].mxu0  ;;  %v2253_v15 = vpop.f32.mrb[97].mxu1 }
 0x1e3   : > { %v3738_v50 = vadd.f32 %v2034_v48, %v5108_v2  ;;  %v2036_v54 = vpop.f32.mrb[25].mxu0  ;;  %v5240_v14 = vpop.f32.mrb[98].mxu1 }
 0x1e4   : > { %v2037_v52 = vpop.f32.mrb[26].mxu0  ;;  %v2256_v44 = vpop.f32.mrb[99].mxu1 }
 0x1e5   : > { %v3740_v4 = vadd.f32 %v2037_v52, %v5116_v29  ;;  %v5243_v7 = vadd.f32 %v3738_v50, %v2211_v6  ;;  %v2039_v27 = vpop.f32.mrb[27].mxu0 }
 0x1e7   : > { %v5245_v45 = vadd.f32 %v3740_v4, %v2214_v61 }
 0x1e9   : > { %v5247_v36 = vpop.f32.mrb[100].mxu1 }
 0x1ea   : > { %v2042_v37 = vpop.f32.mrb[28].mxu0  ;;  %v2261_v21 = vpop.f32.mrb[101].mxu1 }
 0x1eb   : > { %v3742_v30 = vadd.f32 %v2042_v37, %v5129_v8  ;;  %v2044_v41 = vpop.f32.mrb[29].mxu0  ;;  %v5250_v2 = vpop.f32.mrb[102].mxu1 }
 0x1ec   : > { %v2045_v10 = vpop.f32.mrb[30].mxu0  ;;  %v2264_v48 = vpop.f32.mrb[103].mxu1 }
 0x1ed   : > { %v3744_v15 = vadd.f32 %v2045_v10, %v5139_v25  ;;  %v5253_v54 = vadd.f32 %v3742_v30, %v2219_v13  ;;  %v2047_v29 = vpop.f32.mrb[31].mxu0 }
 0x1ef   : > { %v5255_v6 = vadd.f32 %v3744_v15, %v2222_v11 }
 0x1f1   : > { %v5257_v61 = vpop.f32.mrb[104].mxu1 }
 0x1f2   : > { %v2050_v50 = vpop.f32.mrb[32].mxu0  ;;  %v2269_v52 = vpop.f32.mrb[105].mxu1 }
 0x1f3   : > { %v3746_v44 = vadd.f32 %v2050_v50, %v5151_v16  ;;  %v2052_v4 = vpop.f32.mrb[33].mxu0  ;;  %v5260_v8 = vpop.f32.mrb[106].mxu1 }
 0x1f4   : > { %v2053_v27 = vpop.f32.mrb[34].mxu0  ;;  %v2272_v37 = vpop.f32.mrb[107].mxu1 }
 0x1f5   : > { %v3748_v21 = vadd.f32 %v2053_v27, %v5154_v1  ;;  %v5263_v41 = vadd.f32 %v3746_v44, %v2227_v35  ;;  %v2055_v25 = vpop.f32.mrb[35].mxu0 }
 0x1f7   : > { %v5265_v13 = vadd.f32 %v3748_v21, %v2230_v38 }
 0x1f9   : > { %v5267_v11 = vpop.f32.mrb[108].mxu1 }
 0x1fa   : > { %v2058_v30 = vpop.f32.mrb[36].mxu0  ;;  %v2277_v10 = vpop.f32.mrb[109].mxu1 }
 0x1fb   : > { %v3750_v48 = vadd.f32 %v2058_v30, %v5164_v32  ;;  %v2060_v15 = vpop.f32.mrb[37].mxu0  ;;  %v5270_v16 = vpop.f32.mrb[110].mxu1 }
 0x1fc   : > { %v2061_v29 = vpop.f32.mrb[38].mxu0  ;;  %v2280_v50 = vpop.f32.mrb[111].mxu1 }
 0x1fd   : > { %v3752_v52 = vadd.f32 %v2061_v29, %v5167_v31  ;;  %v5273_v4 = vadd.f32 %v3750_v48, %v2235_v49  ;;  %v2063_v1 = vpop.f32.mrb[39].mxu0 }
 0x1ff   : > { %v5275_v35 = vadd.f32 %v3752_v52, %v2238_v20 }
 0x201   : > { %v5277_v38 = vpop.f32.mrb[112].mxu1 }
 0x202   : > { %v2066_v44 = vpop.f32.mrb[40].mxu0  ;;  %v2285_v27 = vpop.f32.mrb[113].mxu1 }
 0x203   : > { %v3754_v37 = vadd.f32 %v2066_v44, %v5177_v5  ;;  %v2068_v21 = vpop.f32.mrb[41].mxu0  ;;  %v5280_v32 = vpop.f32.mrb[114].mxu1 }
 0x204   : > { %v2069_v25 = vpop.f32.mrb[42].mxu0  ;;  %v2288_v30 = vpop.f32.mrb[115].mxu1 }
 0x205   : > { %v5283_v10 = vadd.f32 %v3754_v37, %v5227_v17  ;;  %v3756_v31 = vadd.f32 %v2069_v25, %v5180_v46  ;;  %v2071_v49 = vpop.f32.mrb[43].mxu0  ;;  %v4030_v37 = vmov 0.0  }
 0x206   : > { %3672 = vmatprep.subr.bf16.mxu1 %v4030_v37  ;;  %3688 = vmatprep.mubr.msk.bf16.mxu1 %vm4031_vm6, %v4030_v37 }
 0x207   : > { %v5287_v20 = vadd.f32 %v3756_v31, %v5230_v22  ;;  %v3995_v22 = vld [vmem:[%s5824_s5] sm:$0xff]  }
 0x208   : > { %3673 = vmatpush3.bf16.msra.mxu1 %v3995_v22 }
 0x209   : > { %v5289_v48 = vpop.f32.mrb[116].mxu1  ;;  %3674 = vmatprep.subr.bf16.mxu1 %v4030_v37 }
 0x20a   : > { %v2074_v15 = vpop.f32.mrb[44].mxu0  ;;  %v2293_v29 = vpop.f32.mrb[117].mxu1 }
 0x20b   : > { %v3758_v5 = vadd.f32 %v2074_v15, %v5189_v39  ;;  %v2076_v50 = vpop.f32.mrb[45].mxu0  ;;  %v5292_v52 = vpop.f32.mrb[118].mxu1 }
 0x20c   : > { %v2077_v1 = vpop.f32.mrb[46].mxu0  ;;  %v2296_v44 = vpop.f32.mrb[119].mxu1 }
 0x20d   : > { %v3760_v17 = vadd.f32 %v2077_v1, %v5192_v26  ;;  %v2079_v27 = vpop.f32.mrb[47].mxu0  ;;  %v5296_v46 = vadd.f32 %v3758_v5, %v5237_v53  ;;  %v3996_v26 = vld [vmem:[%s5824_s5 + $0x8] sm:$0xff]  }
 0x20e   : > { %3675 = vmatpush3.bf16.msra.mxu1 %v3996_v26 }
 0x20f   : > { %v5302_v39 = vadd.f32 %v3760_v17, %v5240_v14  ;;  %v3997_v14 = vld [vmem:[%s5824_s5 + $0x10] sm:$0xff]   ;;  %3676 = vmatprep.subr.bf16.mxu1 %v4030_v37 }
 0x211   : > { %v5307_v21 = vpop.f32.mrb[120].mxu1 }
 0x212   : > { %v2082_v53 = vpop.f32.mrb[48].mxu0  ;;  %v2301_v25 = vpop.f32.mrb[121].mxu1  ;;  %3677 = vmatpush3.bf16.msra.mxu1 %v3997_v14 }
 0x213   : > { %v3762_v30 = vadd.f32 %v2082_v53, %v5198_v0  ;;  %v2084_v31 = vpop.f32.mrb[49].mxu0  ;;  %v5310_v49 = vpop.f32.mrb[122].mxu1  ;;  %v3998_v0 = vld [vmem:[%s5824_s5 + $0x18] sm:$0xff]   ;;  %3678 = vmatprep.subr.bf16.mxu1 %v4030_v37 }
 0x214   : > { %v2085_v15 = vpop.f32.mrb[50].mxu0  ;;  %v2304_v29 = vpop.f32.mrb[123].mxu1 }
 0x215   : > { %v3764_v5 = vadd.f32 %v2085_v15, %v5201_v9  ;;  %v2087_v50 = vpop.f32.mrb[51].mxu0  ;;  %v5317_v1 = vadd.f32 %v3762_v30, %v5247_v36  ;;  %v3999_v36 = vld [vmem:[%s5824_s5 + $0x20] sm:$0xff]   ;;  %v4000_v15 = vld [vmem:[%s5824_s5 + $0x28] sm:$0xff]  }
 0x216   : > { %3679 = vmatpush3.bf16.msra.mxu1 %v3998_v0 }
 0x217   : > { %v5320_v44 = vadd.f32 %v3764_v5, %v5250_v2  ;;  %3680 = vmatprep.subr.bf16.mxu1 %v4030_v37 }
 0x219   : > { %v5325_v17 = vpop.f32.mrb[124].mxu1 }
 0x21a   : > { %v2090_v27 = vpop.f32.mrb[52].mxu0  ;;  %v5327_v22 = vpop.f32.mrb[125].mxu1  ;;  %3681 = vmatpush3.bf16.msra.mxu1 %v3999_v36 }
 0x21b   : > { %v3766_v9 = vadd.f32 %v2090_v27, %v5206_v47  ;;  %v2092_v26 = vpop.f32.mrb[53].mxu0  ;;  %v5330_v53 = vpop.f32.mrb[126].mxu1  ;;  %3682 = vmatprep.subr.bf16.mxu1 %v4030_v37 }
 0x21c   : > { %v2093_v2 = vpop.f32.mrb[54].mxu0  ;;  %v5335_v25 = vpop.f32.mrb[127].mxu1 }
 0x21d   : > { %v3768_v30 = vadd.f32 %v2093_v2, %v5208_v58  ;;  %v2095_v31 = vpop.f32.mrb[55].mxu0  ;;  %v5339_v14 = vadd.f32 %v3766_v9, %v5257_v61  ;;  %v4001_v61 = vld [vmem:[%s5824_s5 + $0x30] sm:$0xff]  }
 0x21e   : > { %3683 = vmatpush3.bf16.msra.mxu1 %v4000_v15 }
 0x21f   : > { %v5342_v47 = vadd.f32 %v3768_v30, %v5260_v8  ;;  %3684 = vmatprep.subr.bf16.mxu1 %v4030_v37  ;;  %v4002_v30 = vld [vmem:[%s5824_s5 + $0x38] sm:$0xff]  }
 0x221   : > { %v5347_v29 = vpop.f32.mrb[128].mxu1 }
 0x222   : > { %v2098_v5 = vpop.f32.mrb[56].mxu0  ;;  %v5349_v50 = vpop.f32.mrb[129].mxu1  ;;  %3685 = vmatpush3.bf16.msra.mxu1 %v4001_v61 }
 0x223   : > { %v3770_v58 = vadd.f32 %v2098_v5, %v5211_v33  ;;  %v2100_v0 = vpop.f32.mrb[57].mxu0  ;;  %v5352_v27 = vpop.f32.mrb[130].mxu1  ;;  %3686 = vmatprep.subr.bf16.mxu1 %v4030_v37 }
 0x224   : > { %v2101_v8 = vpop.f32.mrb[58].mxu0  ;;  %v5357_v9 = vpop.f32.mrb[131].mxu1 }
 0x225   : > { %v3772_v26 = vadd.f32 %v2101_v8, %v5213_v24  ;;  %v2103_v36 = vpop.f32.mrb[59].mxu0  ;;  %v5361_v2 = vadd.f32 %v3770_v58, %v5267_v11 }
 0x226   : > { %3687 = vmatpush3.bf16.msra.mxu1 %v4002_v30 }
 0x227   : > { %v5364_v33 = vadd.f32 %v3772_v26, %v5270_v16 }
 0x229   : > { %v3646_v31 = vpop.f32.mrb[132].mxu1 }
 0x22a   : > { %v2106_v15 = vpop.f32.mrb[60].mxu0  ;;  %v5370_v5 = vadd.f32 %v5233_v55, %v3646_v31  ;;  %v5372_v0 = vpop.f32.mrb[133].mxu1 }
 0x22b   : > { %v3774_v24 = vadd.f32 %v2106_v15, %v5215_v60  ;;  %v2108_v11 = vpop.f32.mrb[61].mxu0  ;;  %v3647_v58 = vpop.f32.mrb[134].mxu1 }
 0x22c   : > { %v2109_v16 = vpop.f32.mrb[62].mxu0  ;;  %v5376_v61 = vadd.f32 %v5235_v23, %v3647_v58  ;;  %v5378_v8 = vpop.f32.mrb[135].mxu1 }
 0x22d   : > { %5900 = vst [vmem:[#allocation15_spill] sm:$0xff] %v5378_v8  ;;  %v3776_v37 = vadd.f32 %v2109_v16, %v5217_v18  ;;  %v2111_v26 = vpop.f32.mrb[63].mxu0  ;;  %v5382_v36 = vadd.f32 %v3774_v24, %v5277_v38  ;;  %v5387_v31 = vpop.permute.xlu0 %2643 }
 0x22e   : > { %5899 = vst [vmem:[#allocation2_spill] sm:$0xff] %v5376_v61  ;;  %v5389_v60 = vpop.permute.xlu1 %2653 }
 0x22f   : > { %v5385_v55 = vadd.f32 %v3776_v37, %v5280_v32 }
 0x231   : > { %v3650_v30 = vpop.f32.mrb[136].mxu1 }
 0x232   : > { %v2114_v15 = vpop.f32.mrb[64].mxu0  ;;  %v5392_v23 = vadd.f32 %v5253_v54, %v3650_v30  ;;  %v2388_v11 = vpop.f32.mrb[137].mxu1 }
 0x233   : > { %v3778_v58 = vadd.f32 %v2114_v15, %v5219_v59  ;;  %v2116_v18 = vpop.f32.mrb[65].mxu0  ;;  %v5396_v16 = vadd.f32 %v5243_v7, %v2388_v11  ;;  %v3651_v38 = vpop.f32.mrb[138].mxu1 }
 0x234   : > { %v2117_v24 = vpop.f32.mrb[66].mxu0  ;;  %v5399_v32 = vadd.f32 %v5255_v6, %v3651_v38  ;;  %v2391_v37 = vpop.f32.mrb[139].mxu1 }
 0x235   : > { %v3780_v26 = vadd.f32 %v2117_v24, %v5221_v19  ;;  %v2119_v8 = vpop.f32.mrb[67].mxu0  ;;  %v5403_v61 = vadd.f32 %v5245_v45, %v2391_v37  ;;  %v5406_v54 = vadd.f32 %v3778_v58, %v5289_v48  ;;  %v5411_v7 = vpop.permute.xlu0 %2648 }
 0x236   : > { %v5413_v30 = vpop.permute.xlu1 %2658 }
 0x237   : > { %v5409_v59 = vadd.f32 %v3780_v26, %v5292_v52 }
 0x239   : > { %v3654_v15 = vpop.f32.mrb[140].mxu1 }
 0x23a   : > { %v2122_v6 = vpop.f32.mrb[68].mxu0  ;;  %v5416_v11 = vadd.f32 %v5273_v4, %v3654_v15  ;;  %v2404_v19 = vpop.f32.mrb[141].mxu1 }
 0x23b   : > { %v3782_v8 = vadd.f32 %v2122_v6, %v5223_v3  ;;  %v2124_v45 = vpop.f32.mrb[69].mxu0  ;;  %v5420_v18 = vadd.f32 %v5263_v41, %v2404_v19  ;;  %v3655_v48 = vpop.f32.mrb[142].mxu1 }
 0x23c   : > { %v2125_v58 = vpop.f32.mrb[70].mxu0  ;;  %v5423_v52 = vadd.f32 %v5275_v35, %v3655_v48  ;;  %v2407_v38 = vpop.f32.mrb[143].mxu1 }
 0x23d   : > { %v3784_v24 = vadd.f32 %v2125_v58, %v5225_v42  ;;  %v2127_v37 = vpop.f32.mrb[71].mxu0  ;;  %v5427_v26 = vadd.f32 %v5265_v13, %v2407_v38  ;;  %v5430_v4 = vadd.f32 %v3782_v8, %v5307_v21  ;;  %v5435_v41 = vpop.permute.xlu0 %2663 }
 0x23e   : > { %v5437_v15 = vpop.permute.xlu1 %2668 }
 0x23f   : > { %v5433_v3 = vadd.f32 %v3784_v24, %v5310_v49 }
 0x241   : > { %v3658_v6 = vpop.f32.mrb[144].mxu1 }
 0x242   : > { %v2163_v35 = vpop.f32.mrb[0].mxu0  ;;  %v5440_v19 = vadd.f32 %v5296_v46, %v3658_v6  ;;  %v2420_v42 = vpop.f32.mrb[145].mxu1 }
 0x243   : > { %v3724_v45 = vadd.f32 %v2163_v35, %v4949_v63  ;;  %v2165_v13 = vpop.f32.mrb[1].mxu0  ;;  %v5444_v48 = vadd.f32 %v5283_v10, %v2420_v42  ;;  %v3659_v21 = vpop.f32.mrb[146].mxu1 }
 0x244   : > { %v2166_v8 = vpop.f32.mrb[2].mxu0  ;;  %v5447_v49 = vadd.f32 %v5302_v39, %v3659_v21  ;;  %v2423_v58 = vpop.f32.mrb[147].mxu1  ;;  %v5462_v39 = vld [vmem:[%s5821_s2] ss:$0 sm:$0xff] }
 0x245   : > { %v2341_v38 = vadd.f32 %v3724_v45, %v5327_v22  ;;  %v3725_v24 = vadd.f32 %v2166_v8, %v4959_v40  ;;  %v2168_v37 = vpop.f32.mrb[3].mxu0  ;;  %v5452_v46 = vadd.f32 %v5287_v20, %v2423_v58  ;;  %v5455_v6 = vpop.permute.xlu0 %2673 }
 0x246   : > { %v5457_v10 = vpop.permute.xlu1 %2678  ;;  %v5476_v37 = vld [vmem:[%s5822_s3] ss:$0 sm:$0xff] }
 0x247   : > { %v2344_v63 = vadd.f32 %v3725_v24, %v5335_v25  ;;  %v2490_v45 = vmul.f32 %v5462_v39, %v2341_v38 }
 0x249   : > { %v3662_v35 = vpop.f32.mrb[148].mxu1  ;;  %v2491_v22 = vmul.f32 %v5462_v39, %v2344_v63 }
 0x24a   : > { %v2171_v42 = vpop.f32.mrb[4].mxu0  ;;  %v5466_v40 = vadd.f32 %v5339_v14, %v3662_v35  ;;  %v2436_v20 = vpop.f32.mrb[149].mxu1 }
 0x24b   : > { %v3726_v25 = vadd.f32 %v2171_v42, %v4982_v56  ;;  %v2173_v13 = vpop.f32.mrb[5].mxu0  ;;  %v3663_v21 = vpop.f32.mrb[150].mxu1  ;;  %v5471_v8 = vadd.f32 %v5317_v1, %v2436_v20  ;;  %v2534_v38 = vadd.f32 %v5476_v37, %v2491_v22  ;;  %v2533_v1 = vadd.f32 %v5476_v37, %v2490_v45 }
 0x24c   : > { %5901 = vst [vmem:[#allocation14_spill] sm:$0xff] %v5466_v40  ;;  %v2174_v58 = vpop.f32.mrb[6].mxu0  ;;  %v2439_v24 = vpop.f32.mrb[151].mxu1  ;;  %v5482_v56 = vadd.f32 %v5342_v47, %v3663_v21 }
 0x24d   : > { %v2349_v14 = vadd.f32 %v3726_v25, %v5325_v17  ;;  %v3727_v63 = vadd.f32 %v2174_v58, %v4993_v34  ;;  %v2176_v35 = vpop.f32.mrb[7].mxu0  ;;  %v5488_v13 = vadd.f32 %v5320_v44, %v2439_v24  ;;  %v5490_v40 = vpop.permute.xlu0 %2683  ;;  %v2570_v47 = vmax.f32 %v2534_v38, 0.0 }
 0x24e   : > { %5902 = vst [vmem:[#allocation3_spill] sm:$0xff] %v5482_v56  ;;  %v5492_v17 = vpop.permute.xlu1 %2688 }
 0x24f   : > { %v2492_v42 = vmul.f32 %v5462_v39, %v2349_v14  ;;  %v2352_v20 = vadd.f32 %v3727_v63, %v5330_v53  ;;  %5903 = vst [vmem:[#allocation13_spill] sm:$0xff] %v5488_v13  ;;  %v2569_v14 = vmax.f32 %v2533_v1, 0.0 }
 0x251   : > { %v2535_v34 = vadd.f32 %v5476_v37, %v2492_v42  ;;  %v2493_v22 = vmul.f32 %v5462_v39, %v2352_v20  ;;  %v3666_v25 = vpop.f32.mrb[152].mxu1 }
 0x252   : > { %v2179_v21 = vpop.f32.mrb[8].mxu0  ;;  %v5497_v45 = vadd.f32 %v5382_v36, %v3666_v25  ;;  %v2452_v58 = vpop.f32.mrb[153].mxu1  ;;  %v5506_v36 = vmul.f32 %v5411_v7, %v2570_v47 }
 0x253   : > { %v3728_v53 = vadd.f32 %v2179_v21, %v5010_v51  ;;  %v2181_v44 = vpop.f32.mrb[9].mxu0  ;;  %v3667_v24 = vpop.f32.mrb[154].mxu1  ;;  %v2571_v63 = vmax.f32 %v2535_v34, 0.0  ;;  %v2536_v35 = vadd.f32 %v5476_v37, %v2493_v22  ;;  %v5502_v56 = vadd.f32 %v5361_v2, %v2452_v58 }
 0x254   : > { %v2182_v42 = vpop.f32.mrb[10].mxu0  ;;  %v2455_v20 = vpop.f32.mrb[155].mxu1  ;;  %v5510_v51 = vmul.f32 %v5387_v31, %v2569_v14 }
 0x255   : > { %v2357_v38 = vadd.f32 %v3728_v53, %v5349_v50  ;;  %v2184_v13 = vpop.f32.mrb[11].mxu0  ;;  %v3729_v1 = vadd.f32 %v2182_v42, %v5019_v12  ;;  %v5513_v25 = vpop.permute.xlu0 %2693  ;;  %v5516_v2 = vmul.f32 %v5389_v60, %v2571_v63  ;;  %v2572_v22 = vmax.f32 %v2536_v35, 0.0 }
 0x256   : > { %v5520_v50 = vadd.f32 %v5385_v55, %v3667_v24  ;;  %v5522_v7 = vpop.permute.xlu1 %2698  ;;  %v5526_v31 = vadd.f32 %v5364_v33, %v2455_v20  ;;  %v2857_v47 = vadd.f32 %v5506_v36, %v5510_v51 }
 0x257   : > { %v2494_v34 = vmul.f32 %v5462_v39, %v2357_v38  ;;  %v2360_v21 = vadd.f32 %v3729_v1, %v5357_v9  ;;  %v5535_v33 = vmul.f32 %v5413_v30, %v2572_v22 }
 0x258   : > { %v2858_v63 = vadd.f32 %v2857_v47, %v5516_v2 }
 0x259   : > { %v2537_v12 = vadd.f32 %v5476_v37, %v2494_v34  ;;  %v3670_v13 = vpop.f32.mrb[156].mxu1  ;;  %v2495_v60 = vmul.f32 %v5462_v39, %v2360_v21 }
 0x25a   : > { %v2187_v58 = vpop.f32.mrb[12].mxu0  ;;  %v2468_v14 = vpop.f32.mrb[157].mxu1  ;;  %v2477_v55 = vadd.f32 %v5430_v4, %v3670_v13 }
 0x25b   : > { %v2573_v53 = vmax.f32 %v2537_v12, 0.0  ;;  %v3730_v9 = vadd.f32 %v2187_v58, %v5039_v28  ;;  %v2189_v44 = vpop.f32.mrb[13].mxu0  ;;  %v3671_v24 = vpop.f32.mrb[158].mxu1  ;;  %v2538_v35 = vadd.f32 %v5476_v37, %v2495_v60  ;;  %v5539_v42 = vadd.f32 %v5406_v54, %v2468_v14 }
 0x25c   : > { %v2190_v20 = vpop.f32.mrb[14].mxu0  ;;  %v2471_v38 = vpop.f32.mrb[159].mxu1  ;;  %v2524_v28 = vmul.f32 %v5462_v39, %v2477_v55  ;;  %v2480_v58 = vadd.f32 %v5433_v3, %v3671_v24 }
 0x25d   : > { %v2365_v1 = vadd.f32 %v3730_v9, %v5347_v29  ;;  %v2192_v34 = vpop.f32.mrb[15].mxu0  ;;  %v5543_v4 = vpop.permute.xlu0 %2703  ;;  %v5546_v21 = vmul.f32 %v5435_v41, %v2573_v53  ;;  %v3731_v30 = vadd.f32 %v2190_v20, %v5045_v57  ;;  %v2574_v22 = vmax.f32 %v2538_v35, 0.0 }
 0x25e   : > { %v5551_v54 = vadd.f32 %v5476_v37, %v2524_v28  ;;  %v5553_v13 = vpop.permute.xlu1 %2708  ;;  %v2859_v29 = vadd.f32 %v2858_v63, %v5535_v33  ;;  %v2472_v14 = vadd.f32 %v5409_v59, %v2471_v38  ;;  %v2525_v44 = vmul.f32 %v5462_v39, %v2480_v58  ;;  %v5904_v34 = vld [vmem:[#allocation2_spill] sm:$0xff] }
 0x25f   : > { %v2496_v12 = vmul.f32 %v5462_v39, %v2365_v1  ;;  %v2368_v47 = vadd.f32 %v3731_v30, %v5352_v27  ;;  %v5563_v9 = vmul.f32 %v5437_v15, %v2574_v22  ;;  %v2500_v35 = vmul.f32 %v5462_v39, %v5370_v5 }
 0x260   : > { %v2860_v41 = vadd.f32 %v2859_v29, %v5546_v21  ;;  %v2523_v20 = vmul.f32 %v5462_v39, %v2472_v14  ;;  %v5577_v15 = vadd.f32 %v5476_v37, %v2525_v44  ;;  %v2501_v5 = vmul.f32 %v5462_v39, %v5904_v34 }
 0x261   : > { %v2539_v60 = vadd.f32 %v5476_v37, %v2496_v12  ;;  %v2497_v57 = vmul.f32 %v5462_v39, %v2368_v47  ;;  %v5569_v3 = vpop.permute.xlu0 %2713  ;;  %v5905_v47 = vld [vmem:[#allocation15_spill] sm:$0xff]  ;;  %v2543_v58 = vadd.f32 %v5476_v37, %v2500_v35  ;;  %v2503_v44 = vmul.f32 %v5462_v39, %v5403_v61 }
 0x262   : > { %v2195_v53 = vpop.f32.mrb[16].mxu0  ;;  %v2719_v30 = vpop.permute.xlu1 %2718  ;;  %v5584_v12 = vadd.f32 %v5476_v37, %v2523_v20  ;;  %v2861_v29 = vadd.f32 %v2860_v41, %v5563_v9  ;;  %v2544_v41 = vadd.f32 %v5476_v37, %v2501_v5  ;;  %v2505_v61 = vmul.f32 %v5462_v39, %v5399_v32 }
 0x263   : > { %v2575_v55 = vmax.f32 %v2539_v60, 0.0  ;;  %v3732_v63 = vadd.f32 %v2195_v53, %v5063_v43  ;;  %v2197_v27 = vpop.f32.mrb[17].mxu0  ;;  %v2540_v24 = vadd.f32 %v5476_v37, %v2497_v57  ;;  %v2579_v35 = vmax.f32 %v2543_v58, 0.0 }
 0x264   : > { %v2198_v59 = vpop.f32.mrb[18].mxu0 }
 0x265   : > { %v5574_v38 = vmul.f32 %v5455_v6, %v2575_v55  ;;  %v2373_v1 = vadd.f32 %v3732_v63, %v5372_v0  ;;  %v3733_v43 = vadd.f32 %v2198_v59, %v5069_v62  ;;  %v2200_v28 = vpop.f32.mrb[19].mxu0  ;;  %v2576_v22 = vmax.f32 %v2540_v24, 0.0  ;;  %v2724_v55 = vpop.permute.xlu0 %2723 }
 0x266   : > { %v2502_v62 = vmul.f32 %v5462_v39, %v5396_v16  ;;  %v2504_v16 = vmul.f32 %v5462_v39, %v5392_v23  ;;  %v2729_v24 = vpop.permute.xlu1 %2728  ;;  %v2546_v28 = vadd.f32 %v5476_v37, %v2503_v44  ;;  %v5617_v23 = vmul.f32 %v5513_v25, %v2579_v35 }
 0x267   : > { %v2498_v6 = vmul.f32 %v5462_v39, %v2373_v1  ;;  %v2376_v60 = vadd.f32 %v3733_v43, %v5905_v47  ;;  %v2862_v0 = vadd.f32 %v2861_v29, %v5574_v38  ;;  %v5594_v57 = vmul.f32 %v5457_v10, %v2576_v22 }
 0x268   : > { %v2545_v10 = vadd.f32 %v5476_v37, %v2502_v62  ;;  %v2580_v43 = vmax.f32 %v2544_v41, 0.0  ;;  %v2547_v29 = vadd.f32 %v5476_v37, %v2504_v16  ;;  %v2582_v58 = vmax.f32 %v2546_v28, 0.0 }
 0x269   : > { %v2541_v14 = vadd.f32 %v5476_v37, %v2498_v6  ;;  %v2499_v53 = vmul.f32 %v5462_v39, %v2376_v60  ;;  %v2863_v20 = vadd.f32 %v2862_v0, %v5594_v57  ;;  %v2734_v22 = vpop.permute.xlu0 %2733  ;;  %v2506_v6 = vmul.f32 %v5462_v39, %v5420_v18 }
 0x26a   : > { %v5624_v32 = vmul.f32 %v5522_v7, %v2580_v43  ;;  %v2739_v60 = vpop.permute.xlu1 %2738  ;;  %v2507_v25 = vmul.f32 %v5462_v39, %v5427_v26  ;;  %v2508_v0 = vmul.f32 %v5462_v39, %v5416_v11  ;;  %v2509_v41 = vmul.f32 %v5462_v39, %v5423_v52 }
 0x26b   : > { %v2577_v63 = vmax.f32 %v2541_v14, 0.0  ;;  %v2542_v27 = vadd.f32 %v5476_v37, %v2499_v53  ;;  %v2583_v14 = vmax.f32 %v2547_v29, 0.0  ;;  %v2549_v53 = vadd.f32 %v5476_v37, %v2506_v6 }
 0x26c   : > { %v2551_v35 = vadd.f32 %v5476_v37, %v2508_v0  ;;  %v2514_v0 = vmul.f32 %v5462_v39, %v5471_v8 }
 0x26d   : > { %v5607_v59 = vmul.f32 %v5490_v40, %v2577_v63  ;;  %v2578_v1 = vmax.f32 %v2542_v27, 0.0  ;;  %v2581_v40 = vmax.f32 %v2545_v10, 0.0  ;;  %v2744_v44 = vpop.permute.xlu0 %2743  ;;  %v5640_v63 = vmul.f32 %v5553_v13, %v2582_v58 }
 0x26e   : > { %v2550_v27 = vadd.f32 %v5476_v37, %v2507_v25  ;;  %v5646_v16 = vmul.f32 %v5569_v3, %v2583_v14  ;;  %v2585_v10 = vmax.f32 %v2549_v53, 0.0  ;;  %v2552_v13 = vadd.f32 %v5476_v37, %v2509_v41  ;;  %v5906_v41 = vld [vmem:[#allocation13_spill] sm:$0xff] }
 0x26f   : > { %v2864_v34 = vadd.f32 %v2863_v20, %v5607_v59  ;;  %v5614_v5 = vmul.f32 %v5492_v17, %v2578_v1  ;;  %v2548_v17 = vadd.f32 %v5476_v37, %v2505_v61  ;;  %v5633_v18 = vmul.f32 %v5543_v4, %v2581_v40  ;;  %v2749_v4 = vpop.permute.xlu1 %2748 }
 0x270   : > { %v2510_v20 = vmul.f32 %v5462_v39, %v5444_v48  ;;  %v2586_v43 = vmax.f32 %v2550_v27, 0.0  ;;  %v2511_v61 = vmul.f32 %v5462_v39, %v5452_v46  ;;  %v5657_v3 = vmul.f32 %v2724_v55, %v2585_v10  ;;  %v5907_v27 = vld [vmem:[#allocation14_spill] sm:$0xff] }
 0x271   : > { %v2865_v47 = vadd.f32 %v2864_v34, %v5614_v5  ;;  %v2584_v26 = vmax.f32 %v2548_v17, 0.0  ;;  %v2587_v34 = vmax.f32 %v2551_v35, 0.0  ;;  %v2754_v29 = vpop.permute.xlu0 %2753  ;;  %v2512_v40 = vmul.f32 %v5462_v39, %v5440_v19 }
 0x272   : > { %v2553_v48 = vadd.f32 %v5476_v37, %v2510_v20  ;;  %v5663_v58 = vmul.f32 %v2729_v24, %v2586_v43  ;;  %v2513_v46 = vmul.f32 %v5462_v39, %v5447_v49  ;;  %v2554_v17 = vadd.f32 %v5476_v37, %v2511_v61 }
 0x273   : > { %v2866_v62 = vadd.f32 %v2865_v47, %v5617_v23  ;;  %v5652_v1 = vmul.f32 %v2719_v30, %v2584_v26  ;;  %v2588_v47 = vmax.f32 %v2552_v13, 0.0  ;;  %v2759_v30 = vpop.permute.xlu1 %2758  ;;  %v5669_v55 = vmul.f32 %v2734_v22, %v2587_v34 }
 0x274   : > { %v2589_v19 = vmax.f32 %v2553_v48, 0.0  ;;  %v2556_v49 = vadd.f32 %v5476_v37, %v2513_v46  ;;  %v2515_v26 = vmul.f32 %v5462_v39, %v5906_v41  ;;  %v2557_v8 = vadd.f32 %v5476_v37, %v2514_v0 }
 0x275   : > { %v2867_v7 = vadd.f32 %v2866_v62, %v5624_v32  ;;  %v2555_v62 = vadd.f32 %v5476_v37, %v2512_v40  ;;  %v5675_v53 = vmul.f32 %v2739_v60, %v2588_v47  ;;  %v2764_v24 = vpop.permute.xlu0 %2763  ;;  %v2518_v47 = vmul.f32 %v5462_v39, %v5502_v56 }
 0x276   : > { %v5683_v20 = vmul.f32 %v2744_v44, %v2589_v19  ;;  %v2592_v61 = vmax.f32 %v2556_v49, 0.0  ;;  %v2593_v44 = vmax.f32 %v2557_v8, 0.0  ;;  %v2519_v19 = vmul.f32 %v5462_v39, %v5526_v31 }
 0x277   : > { %v2868_v11 = vadd.f32 %v2867_v7, %v5633_v18  ;;  %v2590_v7 = vmax.f32 %v2554_v17, 0.0  ;;  %v2769_v35 = vpop.permute.xlu1 %2768  ;;  %v2591_v10 = vmax.f32 %v2555_v62, 0.0  ;;  %v2561_v56 = vadd.f32 %v5476_v37, %v2518_v47 }
 0x278   : > { %v2562_v31 = vadd.f32 %v5476_v37, %v2519_v19  ;;  %v2522_v8 = vmul.f32 %v5462_v39, %v5539_v42 }
 0x279   : > { %v2869_v52 = vadd.f32 %v2868_v11, %v5640_v63  ;;  %v2516_v11 = vmul.f32 %v5462_v39, %v5907_v27  ;;  %v5689_v43 = vmul.f32 %v2749_v4, %v2590_v7  ;;  %v2774_v40 = vpop.permute.xlu0 %2773  ;;  %v2520_v7 = vmul.f32 %v5462_v39, %v5497_v45 }
 0x27b   : > { %v2870_v28 = vadd.f32 %v2869_v52, %v5646_v16  ;;  %v5908_v52 = vld [vmem:[#allocation3_spill] sm:$0xff]  ;;  %v2559_v48 = vadd.f32 %v5476_v37, %v2516_v11  ;;  %v2779_v17 = vpop.permute.xlu1 %2778  ;;  %v2563_v45 = vadd.f32 %v5476_v37, %v2520_v7  ;;  %v2603_v7 = vmax.f32 %v5551_v54, 0.0 }
 0x27c   : > { %v2517_v13 = vmul.f32 %v5462_v39, %v5908_v52  ;;  %v2598_v52 = vmax.f32 %v2562_v31, 0.0 }
 0x27d   : > { %v2871_v6 = vadd.f32 %v2870_v28, %v5652_v1  ;;  %v2558_v28 = vadd.f32 %v5476_v37, %v2515_v26  ;;  %v2784_v26 = vpop.permute.xlu0 %2783 }
 0x27e   : > { %v2560_v4 = vadd.f32 %v5476_v37, %v2517_v13 }
 0x27f   : > { %v2872_v25 = vadd.f32 %v2871_v6, %v5657_v3  ;;  %v5694_v6 = vmul.f32 %v2754_v29, %v2591_v10  ;;  %v2594_v62 = vmax.f32 %v2558_v28, 0.0  ;;  %v5705_v29 = vmul.f32 %v2764_v24, %v2593_v44  ;;  %v2789_v11 = vpop.permute.xlu1 %2788 }
 0x280   : > { %v2596_v41 = vmax.f32 %v2560_v4, 0.0  ;;  %v2597_v10 = vmax.f32 %v2561_v56, 0.0  ;;  %v2599_v28 = vmax.f32 %v2563_v45, 0.0  ;;  %v5731_v47 = vmul.f32 %v2789_v11, %v2598_v52 }
 0x281   : > { %v2873_v14 = vadd.f32 %v2872_v25, %v5663_v58  ;;  %v5700_v25 = vmul.f32 %v2759_v30, %v2592_v61  ;;  %v5711_v30 = vmul.f32 %v2769_v35, %v2594_v62  ;;  %v2794_v61 = vpop.permute.xlu0 %2793 }
 0x282   : > { %v5723_v35 = vmul.f32 %v2779_v17, %v2596_v41 }
 0x283   : > { %v2874_v22 = vadd.f32 %v2873_v14, %v5669_v55  ;;  %v2595_v14 = vmax.f32 %v2559_v48, 0.0  ;;  %v2799_v44 = vpop.permute.xlu1 %2798 }
 0x285   : > { %v2875_v60 = vadd.f32 %v2874_v22, %v5675_v53  ;;  %v2521_v22 = vmul.f32 %v5462_v39, %v5520_v50  ;;  %v5717_v24 = vmul.f32 %v2774_v40, %v2595_v14  ;;  %v2565_v40 = vadd.f32 %v5476_v37, %v2522_v8  ;;  %v2804_v62 = vpop.permute.xlu0 %2803 }
 0x287   : > { %v2876_v34 = vadd.f32 %v2875_v60, %v5683_v20  ;;  %v2564_v50 = vadd.f32 %v5476_v37, %v2521_v22  ;;  %v2601_v17 = vmax.f32 %v2565_v40, 0.0  ;;  %v2809_v14 = vpop.permute.xlu1 %2808 }
 0x289   : > { %v2877_v46 = vadd.f32 %v2876_v34, %v5689_v43  ;;  %v5727_v34 = vmul.f32 %v2784_v26, %v2597_v10  ;;  %v2600_v39 = vmax.f32 %v2564_v50, 0.0  ;;  %v5742_v56 = vmul.f32 %v2804_v62, %v2601_v17  ;;  %v2814_v31 = vpop.permute.xlu0 %2813 }
 0x28a   : > { %v2604_v26 = vmax.f32 %v5577_v15, 0.0 }
 0x28b   : > { %v2878_v0 = vadd.f32 %v2877_v46, %v5694_v6  ;;  %v5734_v46 = vmul.f32 %v2794_v61, %v2599_v28  ;;  %v5737_v19 = vmul.f32 %v2799_v44, %v2600_v39  ;;  %v2819_v11 = vpop.permute.xlu1 %2818 }
 0x28c   : > { %v5752_v45 = vmul.f32 %v2819_v11, %v2604_v26 }
 0x28d   : > { %v2879_v49 = vadd.f32 %v2878_v0, %v5700_v25  ;;  %v2602_v0 = vmax.f32 %v5584_v12, 0.0 }
 0x28f   : > { %v2880_v27 = vadd.f32 %v2879_v49, %v5705_v29  ;;  %v5745_v41 = vmul.f32 %v2809_v14, %v2602_v0  ;;  %v3010_v0 = vlaneseq }
 0x291   : > { %v2881_v60 = vadd.f32 %v2880_v27, %v5711_v30  ;;  %v5749_v27 = vmul.f32 %v2814_v31, %v2603_v7 }
 0x293   : > { %v2882_v13 = vadd.f32 %v2881_v60, %v5717_v24 }
 0x295   : > { %v2883_v48 = vadd.f32 %v2882_v13, %v5723_v35 }
 0x297   : > { %v2884_v42 = vadd.f32 %v2883_v48, %v5727_v34 }
 0x299   : > { %v2885_v4 = vadd.f32 %v2884_v42, %v5731_v47 }
 0x29b   : > { %v2886_v37 = vadd.f32 %v2885_v4, %v5734_v46 }
 0x29d   : > { %v2887_v49 = vadd.f32 %v2886_v37, %v5737_v19  ;;  %v3011_v37 = vshrl.u32 %v3010_v0, 7 }
 0x29f   : > { %v2888_v22 = vadd.f32 %v2887_v49, %v5742_v56  ;;  %v3012_v14 = vsub.s32 0, %v3011_v37 }
 0x2a1   : > { %v2889_v12 = vadd.f32 %v2888_v22, %v5745_v41 }
 0x2a3   : > { %v2890_v54 = vadd.f32 %v2889_v12, %v5749_v27 }
 0x2a5   : > { %v2891_v10 = vadd.f32 %v2890_v54, %v5752_v45 }
 0x2a7   : > { %v2892_v8 = vrot.slane %v2891_v10, 4 }
 0x2a9   : > { %v2893_v60 = vadd.f32 %v2892_v8, %v2891_v10 }
 0x2ab   : > { %v2894_v52 = vrot.slane %v2893_v60, 2 }
 0x2ad   : > { %v2895_v50 = vadd.f32 %v2894_v52, %v2893_v60 }
 0x2af   : > { %v2896_v13 = vrot.slane %v2895_v50, 1 }
 0x2b1   : > { %v2897_v15 = vadd.f32 %v2896_v13, %v2895_v50 }
 0x2b3   : > { %v2898_v61 = vmul.f32 0.00390625, %v2897_v15 }
 0x2b5   : > { %v2899_v28 = vpack.c.bf16 %v2898_v61, %v2898_v61 }
 0x2b7   : > { %3689 = vmatmul.mubr.bf16.vlgmr.msra.gmra.mrb[160].mxu1 %v2899_v28 }
 0x38a   : > { %v2998_v40 = vpop.f32.mrb[160].mxu1 }
 0x38b   : > { %v3004_v48 = vsub.f32 0.0, %v2998_v40  ;;  %v3690_v44 = vpop.f32.mrb[161].mxu1 }
 0x38c   : > { %v3001_v39 = vpop.f32.mrb[162].mxu1 }
 0x38d   : > { %v3005_v42 = vmul.f32 1.442695, %v3004_v48  ;;  %v3691_v17 = vpop.f32.mrb[163].mxu1 }
 0x38f   : > { %4003 = vpow2.f32 %v3005_v42 }
 0x399   : > { %v4004_v4 = vpop.eup %4003 }
 0x39a   : > { %v3007_v62 = vadd.f32 1.0, %v4004_v4 }
 0x39c   : > { %4005 = vrcp.f32 %v3007_v62 }
 0x3a6   : > { %v4006_v7 = vpop.eup %4005 }
 0x3a7   : > { %v3013_v49 = vrot.slane %v4006_v7, %v3012_v14 }
 0x3a9   : > { %v3014_v26 = vmul.f32 %v3013_v49, %v5510_v51  ;;  %v3015_v22 = vmul.f32 %v3013_v49, %v5506_v36  ;;  %v3016_v31 = vmul.f32 %v3013_v49, %v5516_v2  ;;  %v3017_v12 = vmul.f32 %v3013_v49, %v5535_v33 }
 0x3aa   : > { %v3018_v11 = vmul.f32 %v3013_v49, %v5546_v21  ;;  %v3019_v54 = vmul.f32 %v3013_v49, %v5563_v9  ;;  %v3020_v10 = vmul.f32 %v3013_v49, %v5574_v38  ;;  %v3021_v8 = vmul.f32 %v3013_v49, %v5594_v57 }
 0x3ab   : > { %v3022_v60 = vmul.f32 %v3013_v49, %v5607_v59  ;;  %v3023_v52 = vmul.f32 %v3013_v49, %v5614_v5  ;;  %v3024_v51 = vmul.f32 %v3013_v49, %v5617_v23  ;;  %v3025_v36 = vmul.f32 %v3013_v49, %v5624_v32 }
 0x3ac   : > { %v3026_v2 = vmul.f32 %v3013_v49, %v5633_v18  ;;  %v3027_v33 = vmul.f32 %v3013_v49, %v5640_v63  ;;  %v3028_v21 = vmul.f32 %v3013_v49, %v5646_v16  ;;  %v3029_v9 = vmul.f32 %v3013_v49, %v5652_v1 }
 0x3ad   : > { %v3030_v38 = vmul.f32 %v3013_v49, %v5657_v3  ;;  %v3031_v57 = vmul.f32 %v3013_v49, %v5663_v58  ;;  %v3032_v59 = vmul.f32 %v3013_v49, %v5669_v55  ;;  %v3033_v5 = vmul.f32 %v3013_v49, %v5675_v53 }
 0x3ae   : > { %v3034_v23 = vmul.f32 %v3013_v49, %v5683_v20  ;;  %v3035_v32 = vmul.f32 %v3013_v49, %v5689_v43  ;;  %v3036_v18 = vmul.f32 %v3013_v49, %v5694_v6  ;;  %v3037_v63 = vmul.f32 %v3013_v49, %v5700_v25 }
 0x3af   : > { %v3038_v16 = vmul.f32 %v3013_v49, %v5705_v29  ;;  %v3039_v1 = vmul.f32 %v3013_v49, %v5711_v30  ;;  %v3040_v3 = vmul.f32 %v3013_v49, %v5717_v24  ;;  %v3041_v58 = vmul.f32 %v3013_v49, %v5723_v35 }
 0x3b0   : > { %v3042_v55 = vmul.f32 %v3013_v49, %v5727_v34  ;;  %v3043_v53 = vmul.f32 %v3013_v49, %v5731_v47  ;;  %v3044_v20 = vmul.f32 %v3013_v49, %v5734_v46  ;;  %v3045_v43 = vmul.f32 %v3013_v49, %v5737_v19 }
 0x3b1   : > { %v3046_v6 = vmul.f32 %v3013_v49, %v5742_v56  ;;  %v3047_v25 = vmul.f32 %v3013_v49, %v5745_v41  ;;  %v3048_v29 = vmul.f32 %v3013_v49, %v5749_v27  ;;  %v3049_v30 = vmul.f32 %v3013_v49, %v5752_v45 }
 0x3b2   : > { %v3481_v24 = vpack.c.bf16 %v3015_v22, %v3014_v26  ;;  %v3486_v35 = vpack.c.bf16 %v3017_v12, %v3016_v31  ;;  %v3491_v34 = vpack.c.bf16 %v3019_v54, %v3018_v11  ;;  %v3496_v47 = vpack.c.bf16 %v3021_v8, %v3020_v10 }
 0x3b3   : > { %v3501_v46 = vpack.c.bf16 %v3023_v52, %v3022_v60  ;;  %v3506_v19 = vpack.c.bf16 %v3025_v36, %v3024_v51  ;;  %v3511_v50 = vpack.c.bf16 %v3027_v33, %v3026_v2  ;;  %v3516_v13 = vpack.c.bf16 %v3029_v9, %v3028_v21 }
 0x3b4   : > { %3482 = vst [vmem:[%s5792_s12] sm:$0xff] %v3481_v24   ;;  %3568 = vst [vmem:[%s5792_s12 + $0x8] sm:$0xff] %v3486_v35   ;;  %v3521_v56 = vpack.c.bf16 %v3031_v57, %v3030_v38  ;;  %v3526_v41 = vpack.c.bf16 %v3033_v5, %v3032_v59  ;;  %v3531_v27 = vpack.c.bf16 %v3035_v32, %v3034_v23 }
 0x3b5   : > { %3569 = vst [vmem:[%s5792_s12 + $0x10] sm:$0xff] %v3491_v34   ;;  %3570 = vst [vmem:[%s5792_s12 + $0x18] sm:$0xff] %v3496_v47   ;;  %v3536_v45 = vpack.c.bf16 %v3037_v63, %v3036_v18  ;;  %v3541_v15 = vpack.c.bf16 %v3039_v1, %v3038_v16  ;;  %v3546_v61 = vpack.c.bf16 %v3041_v58, %v3040_v3 }
 0x3b6   : > { %3571 = vst [vmem:[%s5792_s12 + $0x20] sm:$0xff] %v3501_v46   ;;  %3572 = vst [vmem:[%s5792_s12 + $0x28] sm:$0xff] %v3506_v19   ;;  %v3551_v28 = vpack.c.bf16 %v3043_v53, %v3042_v55  ;;  %v3556_v40 = vpack.c.bf16 %v3045_v43, %v3044_v20  ;;  %v3561_v48 = vpack.c.bf16 %v3047_v25, %v3046_v6 }
 0x3b7   : > { %3573 = vst [vmem:[%s5792_s12 + $0x30] sm:$0xff] %v3511_v50   ;;  %3574 = vst [vmem:[%s5792_s12 + $0x38] sm:$0xff] %v3516_v13   ;;  %v3566_v44 = vpack.c.bf16 %v3049_v30, %v3048_v29 }
 0x3b8   : > { %3575 = vst [vmem:[%s5792_s12 + $0x40] sm:$0xff] %v3521_v56   ;;  %3576 = vst [vmem:[%s5792_s12 + $0x48] sm:$0xff] %v3526_v41  }
 0x3b9   : > { %3577 = vst [vmem:[%s5792_s12 + $0x50] sm:$0xff] %v3531_v27   ;;  %3578 = vst [vmem:[%s5792_s12 + $0x58] sm:$0xff] %v3536_v45  }
 0x3ba   : > { %3579 = vst [vmem:[%s5792_s12 + $0x60] sm:$0xff] %v3541_v15   ;;  %3580 = vst [vmem:[%s5792_s12 + $0x68] sm:$0xff] %v3546_v61  }
 0x3bb   : > { %3581 = vst [vmem:[%s5792_s12 + $0x70] sm:$0xff] %v3551_v28   ;;  %3582 = vst [vmem:[%s5792_s12 + $0x78] sm:$0xff] %v3556_v40  }
 0x3bc   : > { %3583 = vst [vmem:[%s5792_s12 + $0x80] sm:$0xff] %v3561_v48   ;;  %3584 = vst [vmem:[%s5792_s12 + $0x88] sm:$0xff] %v3566_v44  }
 0x3bd PF: > { %s16_s21 = sadd.s32 1, %s4027_s21  }
 0x3be   : > { %p13_p4 = scmp.ge.s32.totalorder %s16_s21, 4  }
 0x3c0   :  { %15 = sbr.rel (!%p13_p4) target bundleno = 1 (0x1), region = 74 }

// kernel: _lambda_.15
= control target key start
LH: loop header
LB: loop body
LE: loop exit
PB: predicated region body
PF: predicated region fallthrough
CT: control target
= control target key end

     0   :  { %s3665_s21 = smov 0   ;;  %s4748_s0 = inlined_call_operand.vmem [shape: bf16[2,96,512], index: 0, kind: input, shape index: {}]   ;;  %s4749_s1 = inlined_call_operand.vmem [shape: bf16[2048,128], index: 1, kind: input, shape index: {}]   ;;  %s4750_s2 = inlined_call_operand.vmem [shape: f32[1,128], index: 2, kind: input, shape index: {}]   ;;  %s4751_s3 = inlined_call_operand.vmem [shape: f32[1,128], index: 3, kind: input, shape index: {}]   ;;  %s4752_s4 = inlined_call_operand.vmem [shape: f32[72,1], index: 4, kind: input, shape index: {}]   ;;  %s4753_s5 = inlined_call_operand.vmem [shape: bf16[128,128], index: 5, kind: input, shape index: {}]   ;;  %s4754_s6 = inlined_call_operand.vmem [shape: bf16[2,72,128], index: 6, kind: output, shape index: {}]  }
   0x1 LB: > { %s2779_s22 = sadd.s32 4294967295, %s3625_s21   ;;  %p2783_p0 = scmp.ge.s32.totalorder %s3625_s21, 1  ;;  %s3625_s21 = sphi %s3665_s21, %s16_s21  }
   0x2   : > { %p212_p1 = scmp.lt.s32.totalorder %s3625_s21, 3 }
   0x4   : > { %p213_p2 = pnand %p2783_p0, %p212_p1 }
   0x5   : > { %v3427_v0 = vld [vmem:[%s4749_s1 + $0x40] sm:$0xff] (!%p213_p2)   ;;  %v3431_v4 = vld [vmem:[%s4749_s1 + $0x48] sm:$0xff] (!%p213_p2)   ;;  %v3435_v8 = vld [vmem:[%s4749_s1 + $0x50] sm:$0xff] (!%p213_p2)   ;;  %p242_p3 = scmp.lt.s32.totalorder (!%p213_p2), %s2779_s22, 1  ;;  %vm383_vm0 = vsmask.f32 (!%p213_p2), 7424 }
   0x6   : > { %216 = sbr.rel (%p213_p2) target bundleno = 685 (0x2ad), region = 44  ;;  %v3428_v1 = vld [vmem:[%s4749_s1 + $0xc0] sm:$0xff] (!%p213_p2)   ;;  %3015 = vmatprep.subr.bf16.mxu0 (!%p213_p2), %v3427_v0  ;;  %v3432_v5 = vld [vmem:[%s4749_s1 + $0xc8] sm:$0xff] (!%p213_p2)   ;;  %v3436_v9 = vld [vmem:[%s4749_s1 + $0xd0] sm:$0xff] (!%p213_p2)   ;;  %vm778_vm1 = vcmask (!%p213_p2), 1046528   ;;  %vm3629_vm2 = vmmov (!%p213_p2), 0  }
   0x7   : > { %v3429_v2 = vld [vmem:[%s4749_s1] sm:$0xff] (!%p213_p2)   ;;  %3061 = vmatprep.subr.bf16.mxu1 (!%p213_p2), %v3428_v1  ;;  %v3433_v6 = vld [vmem:[%s4749_s1 + $0x8] sm:$0xff] (!%p213_p2)   ;;  %v3437_v10 = vld [vmem:[%s4749_s1 + $0x10] sm:$0xff] (!%p213_p2)  }
   0x8   : > { %v3430_v3 = vld [vmem:[%s4749_s1 + $0x80] sm:$0xff] (!%p213_p2)   ;;  %3016 = vmatpush3.bf16.msra.mxu0 (!%p213_p2), %v3429_v2  ;;  %v3434_v7 = vld [vmem:[%s4749_s1 + $0x88] sm:$0xff] (!%p213_p2)   ;;  %v3438_v11 = vld [vmem:[%s4749_s1 + $0x90] sm:$0xff] (!%p213_p2)  }
   0x9   : > { %3062 = vmatpush3.bf16.msra.mxu1 (!%p213_p2), %v3430_v3  ;;  %3017 = vmatprep.subr.bf16.mxu0 (!%p213_p2), %v3431_v4  ;;  %v3439_v12 = vld [vmem:[%s4749_s1 + $0x58] sm:$0xff] (!%p213_p2)   ;;  %v3443_v16 = vld [vmem:[%s4749_s1 + $0x60] sm:$0xff] (!%p213_p2)   ;;  %v3447_v20 = vld [vmem:[%s4749_s1 + $0x68] sm:$0xff] (!%p213_p2)  }
   0xa   : > { %3063 = vmatprep.subr.bf16.mxu1 (!%p213_p2), %v3432_v5  ;;  %v3440_v13 = vld [vmem:[%s4749_s1 + $0xd8] sm:$0xff] (!%p213_p2)   ;;  %v3444_v17 = vld [vmem:[%s4749_s1 + $0xe0] sm:$0xff] (!%p213_p2)   ;;  %v3448_v21 = vld [vmem:[%s4749_s1 + $0xe8] sm:$0xff] (!%p213_p2)  }
   0xb   : > { %v3441_v14 = vld [vmem:[%s4749_s1 + $0x18] sm:$0xff] (!%p213_p2)   ;;  %v3445_v18 = vld [vmem:[%s4749_s1 + $0x20] sm:$0xff] (!%p213_p2)   ;;  %v3449_v22 = vld [vmem:[%s4749_s1 + $0x28] sm:$0xff] (!%p213_p2)  }
   0xc   : > { %3018 = vmatpush3.bf16.msra.mxu0 (!%p213_p2), %v3433_v6  ;;  %v3442_v15 = vld [vmem:[%s4749_s1 + $0x98] sm:$0xff] (!%p213_p2)   ;;  %v3446_v19 = vld [vmem:[%s4749_s1 + $0xa0] sm:$0xff] (!%p213_p2)   ;;  %v3450_v23 = vld [vmem:[%s4749_s1 + $0xa8] sm:$0xff] (!%p213_p2)  }
   0xd   : > { %3064 = vmatpush3.bf16.msra.mxu1 %v3434_v7  ;;  %3019 = vmatprep.subr.bf16.mxu0 %v3435_v8  ;;  %s4757_s22 = smov (!%p242_p3, %s2779_s22), 1  ;;  %v3451_v24 = vld [vmem:[%s4749_s1 + $0x70] sm:$0xff]   ;;  %v3455_v28 = vld [vmem:[%s4749_s1 + $0x78] sm:$0xff]   ;;  %v3465_v40 = vld [vmem:[%s4749_s1 + $0x140] sm:$0xff]  }
   0xe   : > { %3065 = vmatprep.subr.bf16.mxu1 %v3436_v9  ;;  %v3452_v25 = vld [vmem:[%s4749_s1 + $0xf0] sm:$0xff]   ;;  %s3412_s7 = smul.u32 192, %s4757_s22  ;;  %v3456_v29 = vld [vmem:[%s4749_s1 + $0xf8] sm:$0xff]   ;;  %v3466_v41 = vld [vmem:[%s4749_s1 + $0x100] sm:$0xff]  }
   0xf   : > { %v3453_v26 = vld [vmem:[%s4749_s1 + $0x30] sm:$0xff]   ;;  %v3457_v30 = vld [vmem:[%s4749_s1 + $0x38] sm:$0xff]   ;;  %v3467_v46 = vld [vmem:[%s4749_s1 + $0x1c0] sm:$0xff]   ;;  %s3413_s20 = smul.u32 36, %s4757_s22 }
  0x10   : > { %3020 = vmatpush3.bf16.msra.mxu0 %v3437_v10  ;;  %v3454_v27 = vld [vmem:[%s4749_s1 + $0xb0] sm:$0xff]   ;;  %s3773_s18 = scalar_lea.vmem %s4748_s0, %s3412_s7  ;;  %v3458_v31 = vld [vmem:[%s4749_s1 + $0xb8] sm:$0xff]   ;;  %v3468_v49 = vld [vmem:[%s4749_s1 + $0x180] sm:$0xff]  }
  0x11   : > { %3066 = vmatpush3.bf16.msra.mxu1 %v3438_v11  ;;  %3021 = vmatprep.subr.bf16.mxu0 %v3439_v12  ;;  %v253_v32 = vld [vmem:[%s3773_s18] sm:$0xff]  ;;  %v3783_v33 = vld [vmem:[%s3773_s18 + $0x10] sm:$0xff]  ;;  %v254_v35 = vld [vmem:[%s3773_s18 + $0x8] sm:$0xff]  ;;  %s251_s25 = scalar_lea.vmem %s4754_s6, %s3413_s20 }
  0x12   : > { %3067 = vmatprep.subr.bf16.mxu1 %v3440_v13  ;;  %v3786_v34 = vcombine.high %v253_v32, %v3783_v33  ;;  %v3790_v36 = vld [vmem:[%s3773_s18 + $0x18] sm:$0xff]  ;;  %v3793_v37 = vcombine.low %v253_v32, %v3783_v33  ;;  %v3809_v42 = vld [vmem:[%s3773_s18 + $0x20] sm:$0xff]  ;;  %v3820_v47 = vld [vmem:[%s3773_s18 + $0x28] sm:$0xff] }
  0x13   : > { %v3796_v38 = vcombine.high %v254_v35, %v3790_v36  ;;  %v3799_v39 = vcombine.low %v254_v35, %v3790_v36  ;;  %v3469_v51 = vld [vmem:[%s4749_s1 + $0x148] sm:$0xff]   ;;  %v3838_v55 = vld [vmem:[%s3773_s18 + $0x30] sm:$0xff]  ;;  %v3847_v58 = vld [vmem:[%s3773_s18 + $0x38] sm:$0xff] }
  0x14   : > { %3022 = vmatpush3.bf16.msra.mxu0 %v3441_v14  ;;  %1891 = vmatprep.mubr.bf16.mxu0 %v3786_v34  ;;  %v399_v43 = vshll.u32 %v3786_v34, 16  ;;  %v385_v44 = vshrl.u32 %v3793_v37, 16  ;;  %v387_v45 = vshll.u32 %v3793_v37, 16  ;;  %v3470_v54 = vld [vmem:[%s4749_s1 + $0x108] sm:$0xff]   ;;  %v3844_v57 = vcombine.high %v3809_v42, %v3838_v55  ;;  %v3477_v3 = vld [vmem:[%s4749_s1 + $0x150] sm:$0xff]   ;;  %v3892_v10 = vld [vmem:[%s3773_s18 + $0x40] sm:$0xff] }
  0x15   : > { %3068 = vmatpush3.bf16.msra.mxu1 %v3442_v15  ;;  %3023 = vmatprep.subr.bf16.mxu0 %v3443_v16  ;;  %v411_v48 = vshll.u32 %v3799_v39, 16  ;;  %v423_v50 = vshll.u32 %v3796_v38, 16  ;;  %v409_v53 = vshrl.u32 %v3799_v39, 16  ;;  %v3851_v59 = vcombine.low %v3809_v42, %v3838_v55  ;;  %v3473_v61 = vld [vmem:[%s4749_s1 + $0x1c8] sm:$0xff]   ;;  %v3478_v4 = vld [vmem:[%s4749_s1 + $0x110] sm:$0xff]   ;;  %v3492_v32 = vld [vmem:[%s4749_s1 + $0x120] sm:$0xff]  }
  0x16   : > { %3069 = vmatprep.subr.bf16.mxu1 %v3444_v17  ;;  %1963 = vmatprep.mubr.bf16.mxu1 %v3796_v38  ;;  %v3831_v52 = vrot.slane %v387_v45, 1  ;;  %v3855_v60 = vcombine.high %v3820_v47, %v3847_v58  ;;  %v3862_v62 = vcombine.low %v3820_v47, %v3847_v58  ;;  %v397_v63 = vshrl.u32 %v3786_v34, 16  ;;  %v3476_v1 = vld [vmem:[%s4749_s1 + $0x188] sm:$0xff]   ;;  %v3479_v6 = vld [vmem:[%s4749_s1 + $0x1d0] sm:$0xff]   ;;  %v3910_v17 = vld [vmem:[%s3773_s18 + $0x58] sm:$0xff] }
  0x17   : > { %v3840_v56 = vrot.slane %v411_v48, 1  ;;  %v392_v0 = vshll.u32 %v3851_v59, 16  ;;  %v3880_v5 = vrot.slane %v399_v43, 1  ;;  %v421_v7 = vshrl.u32 %v3796_v38, 16  ;;  %v3480_v9 = vld [vmem:[%s4749_s1 + $0x190] sm:$0xff]   ;;  %v3907_v16 = vld [vmem:[%s3773_s18 + $0x48] sm:$0xff] }
  0x18   : > { %3024 = vmatpush3.bf16.msra.mxu0 %v3445_v18  ;;  %v416_v2 = vshll.u32 %v3862_v62, 16  ;;  %v3895_v11 = vld [vmem:[%s3773_s18 + $0x50] sm:$0xff]  ;;  %v404_v12 = vshll.u32 %v3844_v57, 16  ;;  %v3898_v13 = vrot.slane %v423_v50, 1  ;;  %v428_v18 = vshll.u32 %v3855_v60, 16  ;;  %v3968_v48 = vld [vmem:[%s3773_s18 + $0x68] sm:$0xff] }
  0x19   : > { %3070 = vmatpush3.bf16.msra.mxu1 %v3446_v19  ;;  %3025 = vmatprep.subr.bf16.mxu0 %v3447_v20  ;;  %v3886_v8 = vrot.slane %v392_v0, 1  ;;  %v3904_v15 = vcombine.high %v3892_v10, %v3895_v11  ;;  %v3915_v19 = vcombine.high %v3907_v16, %v3910_v17  ;;  %v3485_v20 = vld [vmem:[%s4749_s1 + $0x158] sm:$0xff]  }
  0x1a   : > { %3071 = vmatprep.subr.bf16.mxu1 %v3448_v21  ;;  %v3900_v14 = vrot.slane %v416_v2, 1  ;;  %v3922_v21 = vcombine.low %v3892_v10, %v3895_v11 }
  0x1b   : > { %v460_v35 = vshll.u32 %v3915_v19, 16 }
  0x1c   : > { %3026 = vmatpush3.bf16.msra.mxu0 %v3449_v22  ;;  %v3926_v22 = vcombine.low %v3907_v16, %v3910_v17  ;;  %v436_v45 = vshll.u32 %v3922_v21, 16 }
  0x1d   : > { %3072 = vmatpush3.bf16.msra.mxu1 %v3450_v23  ;;  %3027 = vmatprep.subr.bf16.mxu0 %v3451_v24  ;;  %v440_v23 = vshrl.u32 %v3844_v57, 16  ;;  %v3488_v24 = vld [vmem:[%s4749_s1 + $0x118] sm:$0xff]   ;;  %v3973_v50 = vrot.slane %v460_v35, 1  ;;  %v402_v35 = vor.u32 %v3880_v5, %v397_v63  ;;  %v3509_v5 = vld [vmem:[%s4749_s1 + $0x1f0] sm:$0xff]  }
  0x1e   : > { %3073 = vmatprep.subr.bf16.mxu1 %v3452_v25  ;;  %v3933_v25 = vrot.slane %v404_v12, 1  ;;  %v4005_v12 = vrot.slane %v436_v45, 1 }
  0x20   : > { %3028 = vmatpush3.bf16.msra.mxu0 %v3453_v26  ;;  %v3489_v26 = vld [vmem:[%s4749_s1 + $0x1d8] sm:$0xff]   ;;  %v407_v38 = vsel %vm383_vm0, %v402_v35, %v3933_v25 }
  0x21   : > { %3074 = vmatpush3.bf16.msra.mxu1 %v3454_v27  ;;  %3029 = vmatprep.subr.bf16.mxu0 %v3455_v28  ;;  %v444_v27 = vshll.u32 %v3904_v15, 16  ;;  %v3490_v28 = vld [vmem:[%s4749_s1 + $0x198] sm:$0xff]  }
  0x22   : > { %3075 = vmatprep.subr.bf16.mxu1 %v3456_v29  ;;  %v3943_v29 = vrot.slane %v428_v18, 1  ;;  %v3501_v18 = vld [vmem:[%s4749_s1 + $0x1e8] sm:$0xff]  }
  0x23   : > { %v3961_v43 = vrot.slane %v444_v27, 1  ;;  %v3503_v27 = vld [vmem:[%s4749_s1 + $0x170] sm:$0xff]  }
  0x24   : > { %3030 = vmatpush3.bf16.msra.mxu0 %v3457_v30  ;;  %v3491_v30 = vld [vmem:[%s4749_s1 + $0x160] sm:$0xff]  }
  0x25   : > { %3076 = vmatpush3.bf16.msra.mxu1 %v3458_v31  ;;  %3107 = vmatprep.subr.bf16.mxu0 %v3465_v40  ;;  %v456_v31 = vshrl.u32 %v3855_v60, 16  ;;  %v3493_v40 = vld [vmem:[%s4749_s1 + $0x1e0] sm:$0xff]  }
  0x26   : > { %3153 = vmatprep.subr.bf16.mxu1 %v3467_v46  ;;  %v3965_v46 = vld [vmem:[%s3773_s18 + $0x70] sm:$0xff] }
  0x27   : > { %1892 = vmatmul.mubr.bf16.vlgmr.msra.gmra.mrb[0].mxu0 %v3793_v37  ;;  %v3516_v37 = vld [vmem:[%s4749_s1 + $0x200] sm:$0xff]  }
  0x28   : > { %1964 = vmatmul.mubr.bf16.vlgmr.msra.gmra.mrb[0].mxu1 %v3799_v39  ;;  %3108 = vmatpush3.bf16.msra.mxu0 %v3466_v41  ;;  %v3959_v41 = vld [vmem:[%s3773_s18 + $0x60] sm:$0xff]  ;;  %v442_v39 = vor.u32 %v440_v23, %v3933_v25 }
  0x29   : > { %3154 = vmatpush3.bf16.msra.mxu1 %v3468_v49  ;;  %3109 = vmatprep.subr.bf16.mxu0 %v3469_v51  ;;  %v3971_v49 = vld [vmem:[%s3773_s18 + $0x78] sm:$0xff]  ;;  %v432_v51 = vshrl.u32 %v3851_v59, 16  ;;  %v3990_v2 = vcombine.low %v3959_v41, %v3965_v46 }
  0x2a   : > { %1899 = vmatprep.mubr.bf16.mxu0 %v3844_v57  ;;  %1971 = vmatprep.mubr.bf16.mxu1 %v3855_v60  ;;  %v3983_v0 = vcombine.high %v3968_v48, %v3971_v49  ;;  %v4110_v57 = vcombine.high %v3838_v55, %v3892_v10  ;;  %v3519_v60 = vld [vmem:[%s4749_s1 + $0x248] sm:$0xff]  }
  0x2b   : > { %3155 = vmatprep.subr.bf16.mxu1 %v3473_v61  ;;  %v3979_v61 = vcombine.high %v3959_v41, %v3965_v46 }
  0x2c   : > { %3110 = vmatpush3.bf16.msra.mxu0 %v3470_v54  ;;  %v452_v54 = vshll.u32 %v3926_v22, 16  ;;  %v492_v45 = vshll.u32 %v3983_v0, 16 }
  0x2d   : > { %3156 = vmatpush3.bf16.msra.mxu1 %v3476_v1  ;;  %3111 = vmatprep.subr.bf16.mxu0 %v3477_v3  ;;  %v3496_v1 = vld [vmem:[%s4749_s1 + $0x1a0] sm:$0xff]   ;;  %v3994_v3 = vcombine.low %v3968_v48, %v3971_v49 }
  0x2e   : > { %3157 = vmatprep.subr.bf16.mxu1 %v3479_v6  ;;  %v448_v6 = vshrl.u32 %v3862_v62, 16 }
  0x2f   : > { %1900 = vmatmul.mubr.bf16.gmra.mrb[4].mxu0 %v3851_v59  ;;  %v484_v35 = vshll.u32 %v3994_v3, 16  ;;  %v4157_v59 = vcombine.high %v3847_v58, %v3907_v16 }
  0x30   : > { %1972 = vmatmul.mubr.bf16.gmra.mrb[4].mxu1 %v3862_v62  ;;  %3112 = vmatpush3.bf16.msra.mxu0 %v3478_v4  ;;  %v3499_v4 = vld [vmem:[%s4749_s1 + $0x168] sm:$0xff]   ;;  %v3524_v62 = vld [vmem:[%s4749_s1 + $0x210] sm:$0xff]  }
  0x31   : > { %3158 = vmatpush3.bf16.msra.mxu1 %v3480_v9  ;;  %1907 = vmatprep.mubr.bf16.mxu0 %v3904_v15  ;;  %v3500_v9 = vld [vmem:[%s4749_s1 + $0x128] sm:$0xff]  }
  0x32   : > { %1979 = vmatprep.mubr.bf16.mxu1 %v3915_v19  ;;  %3113 = vmatprep.subr.bf16.mxu0 %v3485_v20  ;;  %v4010_v20 = vrot.slane %v452_v54, 1 }
  0x33   : > { %3159 = vmatprep.subr.bf16.mxu1 %v3489_v26  ;;  %v476_v26 = vshll.u32 %v3979_v61, 16 }
  0x34   : > { %3114 = vmatpush3.bf16.msra.mxu0 %v3488_v24  ;;  %v3502_v24 = vld [vmem:[%s4749_s1 + $0x1a8] sm:$0xff]  }
  0x35   : > { %3160 = vmatpush3.bf16.msra.mxu1 %v3490_v28  ;;  %3115 = vmatprep.subr.bf16.mxu0 %v3491_v30  ;;  %v472_v28 = vshrl.u32 %v3904_v15, 16  ;;  %v4023_v30 = vld [vmem:[%s3773_s18 + $0x80] sm:$0xff] }
  0x36   : > { %3161 = vmatprep.subr.bf16.mxu1 %v3493_v40  ;;  %v2803_v54 = vcombine.high %v4023_v30, %v4023_v30  ;;  %v2802_v34 = vcombine.low %v4023_v30, %v4023_v30  ;;  %v3511_v40 = vld [vmem:[%s4749_s1 + $0x178] sm:$0xff]  }
  0x37   : > { %1908 = vmatmul.mubr.bf16.gmra.mrb[8].mxu0 %v3922_v21 }
  0x38   : > { %1980 = vmatmul.mubr.bf16.gmra.mrb[8].mxu1 %v3926_v22  ;;  %3116 = vmatpush3.bf16.msra.mxu0 %v3492_v32  ;;  %v4026_v32 = vld [vmem:[%s3773_s18 + $0x88] sm:$0xff] }
  0x39   : > { %1915 = vmatprep.mubr.bf16.mxu0 %v3979_v61  ;;  %1987 = vmatprep.mubr.bf16.mxu1 %v3983_v0  ;;  %v2804_v63 = vcombine.low %v4026_v32, %v4026_v32 }
  0x3a   : > { %3162 = vmatpush3.bf16.msra.mxu1 %v3496_v1  ;;  %3117 = vmatprep.subr.bf16.mxu0 %v3499_v4  ;;  %v2805_v1 = vcombine.high %v4026_v32, %v4026_v32  ;;  %v3506_v4 = vld [vmem:[%s4749_s1 + $0x130] sm:$0xff]  }
  0x3b   : > { %3163 = vmatprep.subr.bf16.mxu1 %v3501_v18  ;;  %v426_v18 = vor.u32 %v3898_v13, %v421_v7  ;;  %v4062_v7 = vrot.slane %v492_v45, 1  ;;  %v3512_v13 = vld [vmem:[%s4749_s1 + $0x138] sm:$0xff]  }
  0x3c   : > { %3118 = vmatpush3.bf16.msra.mxu0 %v3500_v9  ;;  %v4040_v9 = vrot.slane %v476_v26, 1  ;;  %v3510_v26 = vld [vmem:[%s4749_s1 + $0x1b0] sm:$0xff]   ;;  %v3514_v45 = vld [vmem:[%s4749_s1 + $0x1b8] sm:$0xff]  }
  0x3d   : > { %3119 = vmatprep.subr.bf16.mxu0 %v3503_v27  ;;  %v468_v27 = vshll.u32 %v3990_v2, 16 }
  0x3e   : > { %3164 = vmatpush3.bf16.msra.mxu1 %v3502_v24  ;;  %v464_v24 = vshrl.u32 %v3922_v21, 16  ;;  %v3531_v21 = vld [vmem:[%s4749_s1 + $0x260] sm:$0xff]  }
  0x3f   : > { %1916 = vmatmul.mubr.bf16.gmra.mrb[12].mxu0 %v3990_v2  ;;  %3165 = vmatprep.subr.bf16.mxu1 %v3509_v5  ;;  %v4083_v5 = vrot.slane %v468_v27, 1  ;;  %v3518_v27 = vld [vmem:[%s4749_s1 + $0x280] sm:$0xff]  }
  0x40   : > { %1988 = vmatmul.mubr.bf16.gmra.mrb[12].mxu1 %v3994_v3  ;;  %1923 = vmatprep.mubr.bf16.mxu0 %v2803_v54  ;;  %v480_v54 = vshrl.u32 %v3926_v22, 16 }
  0x41   : > { %1995 = vmatprep.mubr.bf16.mxu1 %v2805_v1  ;;  %3120 = vmatpush3.bf16.msra.mxu0 %v3506_v4  ;;  %v3513_v1 = vld [vmem:[%s4749_s1 + $0x1f8] sm:$0xff]   ;;  %v431_v4 = vsel %vm383_vm0, %v426_v18, %v3943_v29  ;;  %v504_v18 = vshrl.u32 %v3979_v61, 16 }
  0x42   : > { %3166 = vmatpush3.bf16.msra.mxu1 %v3510_v26  ;;  %3121 = vmatprep.subr.bf16.mxu0 %v3511_v40  ;;  %v3515_v40 = vld [vmem:[%s4749_s1 + $0x240] sm:$0xff]   ;;  %v520_v26 = vshrl.u32 %v3983_v0, 16  ;;  %v3541_v0 = vld [vmem:[%s4749_s1 + $0x2e8] sm:$0xff]  }
  0x43   : > { %3167 = vmatprep.subr.bf16.mxu1 %v3513_v1 }
  0x44   : > { %v522_v61 = vor.u32 %v520_v26, %v4062_v7  ;;  %v4279_v26 = vcombine.low %v3847_v58, %v3907_v16 }
  0x45   : > { %3122 = vmatpush3.bf16.msra.mxu0 %v3512_v13  ;;  %v447_v13 = vsel %vm383_vm0, %v442_v39, %v3961_v43  ;;  %v3522_v39 = vld [vmem:[%s4749_s1 + $0x288] sm:$0xff]  }
  0x46   : > { %3168 = vmatpush3.bf16.msra.mxu1 %v3514_v45  ;;  %3199 = vmatprep.subr.bf16.mxu0 %v3515_v40  ;;  %v612_v45 = vshll.u32 %v4110_v57, 16  ;;  %v450_v40 = vor.u32 %v448_v6, %v3900_v14 }
  0x47   : > { %1924 = vmatmul.mubr.bf16.gmra.mrb[16].mxu0 %v2802_v34  ;;  %v390_v34 = vor.u32 %v3831_v52, %v385_v44  ;;  %v4095_v44 = vrot.slane %v484_v35, 1  ;;  %v4099_v52 = vcombine.high %v3783_v33, %v3809_v42  ;;  %v3521_v35 = vld [vmem:[%s4749_s1 + $0x2c8] sm:$0xff]  }
  0x48   : > { %1996 = vmatmul.mubr.bf16.gmra.mrb[16].mxu1 %v2804_v63  ;;  %2035 = vmatprep.mubr.bf16.mxu0 %v407_v38  ;;  %v414_v63 = vor.u32 %v3840_v56, %v409_v53  ;;  %v3517_v53 = vld [vmem:[%s4749_s1 + $0x2c0] sm:$0xff]   ;;  %v458_v56 = vor.u32 %v456_v31, %v3943_v29  ;;  %v496_v38 = vshrl.u32 %v3990_v2, 16  ;;  %v512_v29 = vshrl.u32 %v3994_v3, 16  ;;  %v3520_v31 = vld [vmem:[%s4749_s1 + $0x208] sm:$0xff]   ;;  %v3543_v3 = vld [vmem:[%s4749_s1 + $0x270] sm:$0xff]  }
  0x49   : > { %2107 = vmatprep.mubr.bf16.mxu1 %v431_v4  ;;  %v395_v23 = vsel %vm383_vm0, %v390_v34, %v3886_v8  ;;  %3245 = vmatprep.subr.bf16.mxu1 %v3517_v53  ;;  %v607_v1 = vshll.u32 %v4099_v52, 16  ;;  %v4138_v34 = vcombine.high %v3790_v36, %v3820_v47  ;;  %v605_v53 = vshrl.u32 %v4099_v52, 16 }
  0x4a   : > { %v419_v25 = vsel %vm383_vm0, %v414_v63, %v3900_v14  ;;  %v463_v4 = vsel %vm383_vm0, %v458_v56, %v3973_v50  ;;  %v434_v63 = vor.u32 %v432_v51, %v3886_v8  ;;  %v474_v8 = vor.u32 %v472_v28, %v3961_v43 }
  0x4b   : > { %v4153_v56 = vrot.slane %v607_v1, 1  ;;  %v4755_v14 = vshrl.u32 %v3915_v19, 16  ;;  %v4168_v6 = vrot.slane %v612_v45, 1  ;;  %v455_v43 = vsel %vm383_vm0, %v450_v40, %v4010_v20  ;;  %v3526_v19 = vld [vmem:[%s4749_s1 + $0x290] sm:$0xff]   ;;  %v3530_v45 = vld [vmem:[%s4749_s1 + $0x298] sm:$0xff]  }
  0x4c   : > { %v439_v15 = vsel %vm383_vm0, %v434_v63, %v4005_v12  ;;  %v4186_v28 = vcombine.low %v3838_v55, %v3892_v10  ;;  %v466_v10 = vor.u32 %v464_v24, %v4005_v12  ;;  %v482_v1 = vor.u32 %v480_v54, %v4010_v20  ;;  %v3532_v12 = vld [vmem:[%s4749_s1 + $0x220] sm:$0xff]  }
  0x4d   : > { %v490_v51 = vor.u32 %v4755_v14, %v3973_v50  ;;  %v629_v50 = vshrl.u32 %v4138_v34, 16  ;;  %v4222_v24 = vcombine.low %v3790_v36, %v3820_v47  ;;  %v272_v14 = vld [vmem:[%s3773_s18 + $0x98] sm:$0x11] }
  0x4e   : > { %v600_v22 = vshll.u32 %v4186_v28, 16  ;;  %v471_v54 = vsel %vm383_vm0, %v466_v10, %v4083_v5  ;;  %v487_v40 = vsel %vm383_vm0, %v482_v1, %v4095_v44 }
  0x4f   : > { %2036 = vmatmul.mubr.bf16.vlgmr.msra.gmra.mrb[20].mxu0 %v395_v23  ;;  %v3525_v23 = vld [vmem:[%s4749_s1 + $0x2d0] sm:$0xff]  }
  0x50   : > { %2108 = vmatmul.mubr.bf16.vlgmr.msra.gmra.mrb[20].mxu1 %v419_v25  ;;  %3200 = vmatpush3.bf16.msra.mxu0 %v3516_v37  ;;  %v3523_v37 = vld [vmem:[%s4749_s1 + $0x250] sm:$0xff]   ;;  %v631_v25 = vshll.u32 %v4138_v34, 16  ;;  %v3555_v34 = vld [vmem:[%s4749_s1 + $0x340] sm:$0xff]  }
  0x51   : > { %3246 = vmatpush3.bf16.msra.mxu1 %v3518_v27  ;;  %3201 = vmatprep.subr.bf16.mxu0 %v3519_v60  ;;  %v2810_v27 = vcombine.low %v3783_v33, %v3809_v42  ;;  %v3527_v33 = vld [vmem:[%s4749_s1 + $0x258] sm:$0xff]   ;;  %v636_v42 = vshll.u32 %v4157_v59, 16  ;;  %v479_v60 = vsel %vm383_vm0, %v474_v8, %v4040_v9 }
  0x52   : > { %2043 = vmatprep.mubr.bf16.mxu0 %v447_v13  ;;  %2115 = vmatprep.mubr.bf16.mxu1 %v463_v4  ;;  %v3528_v13 = vld [vmem:[%s4749_s1 + $0x218] sm:$0xff]   ;;  %v4199_v55 = vrot.slane %v631_v25, 1  ;;  %v4244_v25 = vcombine.low %v4026_v32, %v272_v14 }
  0x53   : > { %3247 = vmatprep.subr.bf16.mxu1 %v3521_v35  ;;  %v3529_v4 = vld [vmem:[%s4749_s1 + $0x2d8] sm:$0xff]   ;;  %v593_v35 = vshrl.u32 %v2810_v27, 16  ;;  %v595_v63 = vshll.u32 %v2810_v27, 16  ;;  %v617_v27 = vshrl.u32 %v4222_v24, 16 }
  0x54   : > { %3202 = vmatpush3.bf16.msra.mxu0 %v3520_v31  ;;  %v495_v31 = vsel %vm383_vm0, %v490_v51, %v4062_v7  ;;  %v2809_v51 = vcombine.high %v4026_v32, %v272_v14  ;;  %v3542_v7 = vld [vmem:[%s4749_s1 + $0x2a8] sm:$0xff]   ;;  %v3548_v14 = vld [vmem:[%s4749_s1 + $0x238] sm:$0xff]  }
  0x55   : > { %3248 = vmatpush3.bf16.msra.mxu1 %v3522_v39  ;;  %3203 = vmatprep.subr.bf16.mxu0 %v3523_v37  ;;  %v597_v20 = vrot.slane %v595_v63, 1  ;;  %v3533_v39 = vld [vmem:[%s4749_s1 + $0x2e0] sm:$0xff]   ;;  %v271_v37 = vld [vmem:[%s3773_s18 + $0x90] sm:$0x11] }
  0x56   : > { %3249 = vmatprep.subr.bf16.mxu1 %v3525_v23  ;;  %v2807_v8 = vcombine.high %v4023_v30, %v271_v37  ;;  %v4237_v36 = vcombine.low %v4023_v30, %v271_v37  ;;  %v3536_v23 = vld [vmem:[%s4749_s1 + $0x2a0] sm:$0xff]   ;;  %v3544_v63 = vld [vmem:[%s4749_s1 + $0x230] sm:$0xff]   ;;  %v3547_v37 = vld [vmem:[%s4749_s1 + $0x278] sm:$0xff]  }
  0x57   : > { %2044 = vmatmul.mubr.bf16.gmra.mrb[24].mxu0 %v439_v15  ;;  %v598_v47 = vor.u32 %v597_v20, %v593_v35  ;;  %v506_v15 = vor.u32 %v504_v18, %v4040_v9  ;;  %v524_v9 = vshll.u32 %v2809_v51, 16  ;;  %v498_v18 = vor.u32 %v496_v38, %v4083_v5  ;;  %v3545_v20 = vld [vmem:[%s4749_s1 + $0x2f0] sm:$0xff]  }
  0x58   : > { %2116 = vmatmul.mubr.bf16.gmra.mrb[24].mxu1 %v455_v43  ;;  %3204 = vmatpush3.bf16.msra.mxu0 %v3524_v62  ;;  %v4232_v62 = vrot.slane %v600_v22, 1  ;;  %v508_v43 = vshll.u32 %v2807_v8, 16  ;;  %v534_v22 = vshrl.u32 %v4244_v25, 16 }
  0x59   : > { %3250 = vmatpush3.bf16.msra.mxu1 %v3526_v19  ;;  %2051 = vmatprep.mubr.bf16.mxu0 %v479_v60  ;;  %v500_v19 = vshll.u32 %v4237_v36, 16  ;;  %v3540_v60 = vld [vmem:[%s4749_s1 + $0x228] sm:$0xff]   ;;  %v526_v2 = vrot.slane %v524_v9, 1 }
  0x5a   : > { %2123 = vmatprep.mubr.bf16.mxu1 %v495_v31  ;;  %3205 = vmatprep.subr.bf16.mxu0 %v3527_v33  ;;  %v3539_v33 = vld [vmem:[%s4749_s1 + $0x268] sm:$0xff]   ;;  %v4259_v31 = vsel %vm383_vm0, %v598_v47, %v4232_v62  ;;  %v510_v10 = vrot.slane %v508_v43, 1  ;;  %v3549_v47 = vld [vmem:[%s4749_s1 + $0x2f8] sm:$0xff]  }
  0x5b   : > { %3251 = vmatprep.subr.bf16.mxu1 %v3529_v4  ;;  %v502_v1 = vrot.slane %v500_v19, 1  ;;  %v514_v4 = vor.u32 %v512_v29, %v4095_v44  ;;  %v531_v44 = vshrl.u32 %v2807_v8, 16  ;;  %v527_v29 = vsel %vm383_vm0, %v522_v61, %v526_v2  ;;  %v3550_v43 = vld [vmem:[%s4749_s1 + $0x2b8] sm:$0xff]  }
  0x5c   : > { %3206 = vmatpush3.bf16.msra.mxu0 %v3528_v13  ;;  %v516_v13 = vshll.u32 %v4244_v25, 16  ;;  %v511_v38 = vsel %vm383_vm0, %v506_v15, %v510_v10  ;;  %v638_v25 = vrot.slane %v636_v42, 1  ;;  %v4347_v61 = vcombine.low %v3910_v17, %v3968_v48 }
  0x5d   : > { %3252 = vmatpush3.bf16.msra.mxu1 %v3530_v45  ;;  %3207 = vmatprep.subr.bf16.mxu0 %v3531_v21  ;;  %v503_v35 = vsel %vm383_vm0, %v498_v18, %v502_v1  ;;  %v537_v45 = vshrl.u32 %v2809_v51, 16  ;;  %v533_v16 = vor.u32 %v531_v44, %v510_v10  ;;  %v528_v21 = vshrl.u32 %v4237_v36, 16 }
  0x5e   : > { %3253 = vmatprep.subr.bf16.mxu1 %v3533_v39  ;;  %v518_v5 = vrot.slane %v516_v13, 1  ;;  %v624_v39 = vshll.u32 %v4279_v26, 16  ;;  %v4309_v36 = vcombine.high %v3895_v11, %v3959_v41  ;;  %v610_v51 = vor.u32 %v4153_v56, %v605_v53 }
  0x5f   : > { %2052 = vmatmul.mubr.bf16.gmra.mrb[28].mxu0 %v471_v54  ;;  %v619_v54 = vshll.u32 %v4222_v24, 16  ;;  %v530_v19 = vor.u32 %v528_v21, %v502_v1  ;;  %v4331_v53 = vcombine.high %v3910_v17, %v3968_v48  ;;  %v648_v56 = vshrl.u32 %v4110_v57, 16 }
  0x60   : > { %2124 = vmatmul.mubr.bf16.gmra.mrb[28].mxu1 %v487_v40  ;;  %3208 = vmatpush3.bf16.msra.mxu0 %v3532_v12  ;;  %v519_v58 = vsel %vm383_vm0, %v514_v4, %v518_v5  ;;  %v539_v12 = vor.u32 %v537_v45, %v526_v2  ;;  %v3546_v40 = vld [vmem:[%s4749_s1 + $0x2b0] sm:$0xff]   ;;  %v626_v24 = vrot.slane %v624_v39, 1  ;;  %v615_v42 = vsel %vm383_vm0, %v610_v51, %v4168_v6  ;;  %v3556_v4 = vld [vmem:[%s4749_s1 + $0x300] sm:$0xff]  }
  0x61   : > { %3254 = vmatpush3.bf16.msra.mxu1 %v3536_v23  ;;  %3209 = vmatprep.subr.bf16.mxu0 %v3539_v33  ;;  %v621_v8 = vrot.slane %v619_v54, 1  ;;  %v634_v23 = vor.u32 %v4199_v55, %v629_v50  ;;  %v536_v33 = vor.u32 %v534_v22, %v518_v5  ;;  %v4336_v50 = vcombine.low %v3895_v11, %v3959_v41  ;;  %v3559_v5 = vld [vmem:[%s4749_s1 + $0x348] sm:$0xff]   ;;  %v3567_v39 = vld [vmem:[%s4749_s1 + $0x350] sm:$0xff]  }
  0x62   : > { %3255 = vmatprep.subr.bf16.mxu1 %v3541_v0  ;;  %2059 = vmatprep.mubr.bf16.mxu0 %v511_v38  ;;  %v640_v11 = vshrl.u32 %v4186_v28, 16  ;;  %v664_v41 = vshrl.u32 %v4157_v59, 16  ;;  %v668_v9 = vshll.u32 %v4331_v53, 16  ;;  %v650_v17 = vor.u32 %v648_v56, %v4168_v6  ;;  %v3558_v0 = vld [vmem:[%s4749_s1 + $0x380] sm:$0xff]   ;;  %v3568_v51 = vld [vmem:[%s4749_s1 + $0x310] sm:$0xff]   ;;  %v3577_v56 = vld [vmem:[%s4749_s1 + $0x3d8] sm:$0xff]  }
  0x63   : > { %2131 = vmatprep.mubr.bf16.mxu1 %v527_v29  ;;  %v622_v15 = vor.u32 %v621_v8, %v617_v27  ;;  %v639_v55 = vsel %vm383_vm0, %v634_v23, %v638_v25  ;;  %v3557_v27 = vld [vmem:[%s4749_s1 + $0x3c0] sm:$0xff]   ;;  %v644_v13 = vshll.u32 %v4336_v50, 16  ;;  %v656_v10 = vshrl.u32 %v4279_v26, 16  ;;  %v3570_v23 = vld [vmem:[%s4749_s1 + $0x390] sm:$0xff]  }
  0x64   : > { %3210 = vmatpush3.bf16.msra.mxu0 %v3540_v60  ;;  %v652_v60 = vshll.u32 %v4309_v36, 16  ;;  %v642_v18 = vor.u32 %v640_v11, %v4232_v62  ;;  %v660_v1 = vshll.u32 %v4347_v61, 16  ;;  %v4365_v62 = vcombine.high %v3965_v46, %v4023_v30  ;;  %v3578_v11 = vld [vmem:[%s4749_s1 + $0x398] sm:$0xff]  }
  0x65   : > { %3256 = vmatpush3.bf16.msra.mxu1 %v3542_v7  ;;  %3211 = vmatprep.subr.bf16.mxu0 %v3543_v3  ;;  %v627_v52 = vsel %vm383_vm0, %v622_v15, %v626_v24  ;;  %v646_v7 = vrot.slane %v644_v13, 1  ;;  %v4369_v6 = vcombine.high %v3971_v49, %v4026_v32  ;;  %v4373_v2 = vcombine.low %v3965_v46, %v4023_v30  ;;  %v3563_v46 = vld [vmem:[%s4749_s1 + $0x3c8] sm:$0xff]   ;;  %v4444_v13 = vld [vmem:[%s3773_s18 + $0x94] ss:$16 sps:$4 sm:$0x1f]  }
  0x66   : > { %3257 = vmatprep.subr.bf16.mxu1 %v3545_v20  ;;  %v654_v48 = vrot.slane %v652_v60, 1  ;;  %v666_v38 = vor.u32 %v664_v41, %v638_v25  ;;  %v670_v3 = vrot.slane %v668_v9, 1  ;;  %v658_v44 = vor.u32 %v656_v10, %v626_v24  ;;  %v3576_v60 = vld [vmem:[%s4749_s1 + $0x318] sm:$0xff]   ;;  %v3579_v9 = vld [vmem:[%s4749_s1 + $0x360] sm:$0xff]  }
  0x67   : > { %2060 = vmatmul.mubr.bf16.gmra.mrb[32].mxu0 %v503_v35  ;;  %v662_v29 = vrot.slane %v660_v1, 1  ;;  %v647_v35 = vsel %vm383_vm0, %v642_v18, %v646_v7  ;;  %v4381_v45 = vcombine.low %v3971_v49, %v4026_v32  ;;  %v684_v21 = vshll.u32 %v4365_v62, 16  ;;  %v3581_v18 = vld [vmem:[%s4749_s1 + $0x3e0] sm:$0xff]  }
  0x68   : > { %2132 = vmatmul.mubr.bf16.gmra.mrb[32].mxu1 %v519_v58  ;;  %2067 = vmatprep.mubr.bf16.mxu0 %v533_v16  ;;  %v3560_v58 = vld [vmem:[%s4749_s1 + $0x308] sm:$0xff]   ;;  %v680_v16 = vshrl.u32 %v4309_v36, 16  ;;  %v696_v22 = vshrl.u32 %v4331_v53, 16  ;;  %v700_v49 = vshll.u32 %v4369_v6, 16  ;;  %v671_v32 = vsel %vm383_vm0, %v666_v38, %v670_v3 }
  0x69   : > { %2139 = vmatprep.mubr.bf16.mxu1 %v539_v12  ;;  %3212 = vmatpush3.bf16.msra.mxu0 %v3544_v63  ;;  %v655_v63 = vsel %vm383_vm0, %v650_v17, %v654_v48  ;;  %v663_v30 = vsel %vm383_vm0, %v658_v44, %v662_v29  ;;  %v3566_v12 = vld [vmem:[%s4749_s1 + $0x388] sm:$0xff]   ;;  %v672_v20 = vshrl.u32 %v4336_v50, 16  ;;  %v676_v54 = vshll.u32 %v4373_v2, 16  ;;  %v3586_v44 = vld [vmem:[%s4749_s1 + $0x3a0] sm:$0xff]  }
  0x6a   : > { %3258 = vmatpush3.bf16.msra.mxu1 %v3546_v40  ;;  %3213 = vmatprep.subr.bf16.mxu0 %v3547_v37  ;;  %v688_v40 = vshrl.u32 %v4347_v61, 16  ;;  %v692_v37 = vshll.u32 %v4381_v45, 16  ;;  %v686_v8 = vrot.slane %v684_v21, 1  ;;  %v682_v25 = vor.u32 %v680_v16, %v654_v48  ;;  %v4447_v17 = vld [vmem:[%s3773_s18 + $0x9c] ss:$16 sps:$4 sm:$0x1f]  }
  0x6b   : > { %3259 = vmatprep.subr.bf16.mxu1 %v3549_v47  ;;  %v4410_v24 = vrot.slane %v676_v54, 1  ;;  %v698_v15 = vor.u32 %v696_v22, %v670_v3  ;;  %v728_v41 = vshrl.u32 %v4369_v6, 16  ;;  %v704_v48 = vshrl.u32 %v4373_v2, 16  ;;  %v4459_v38 = vld [vmem:[%s3773_s18 + $0x98] ss:$16 sps:$4 sm:$0x1f]  }
  0x6c   : > { %v690_v47 = vor.u32 %v688_v40, %v662_v29  ;;  %v716_v1 = vshll.u32 %v4444_v13, 16  ;;  %v3590_v22 = vld [vmem:[%s4749_s1 + $0x328] sm:$0xff]   ;;  %v739_v40 = vshrl.u32 %v4444_v13, 16 }
  0x6d   : > { %3214 = vmatpush3.bf16.msra.mxu0 %v3548_v14  ;;  %v674_v14 = vor.u32 %v672_v20, %v646_v7  ;;  %v706_v20 = vor.u32 %v704_v48, %v4410_v24 }
  0x6e   : > { %3260 = vmatpush3.bf16.msra.mxu1 %v3550_v43  ;;  %3291 = vmatprep.subr.bf16.mxu0 %v3555_v34  ;;  %v702_v43 = vrot.slane %v700_v49, 1  ;;  %v718_v3 = vrot.slane %v716_v1, 1  ;;  %v3591_v49 = vld [vmem:[%s4749_s1 + $0x3e8] sm:$0xff]  }
  0x6f   : > { %2068 = vmatmul.mubr.bf16.gmra.mrb[36].mxu0 %v530_v19  ;;  %3337 = vmatprep.subr.bf16.mxu1 %v3557_v27  ;;  %v694_v19 = vrot.slane %v692_v37, 1  ;;  %v3595_v37 = vld [vmem:[%s4749_s1 + $0x3f0] sm:$0xff]  }
  0x70   : > { %2140 = vmatmul.mubr.bf16.gmra.mrb[36].mxu1 %v536_v33  ;;  %2179 = vmatprep.mubr.bf16.mxu0 %v615_v42  ;;  %v679_v33 = vsel %vm383_vm0, %v674_v14, %v4410_v24  ;;  %v712_v42 = vshrl.u32 %v4365_v62, 16  ;;  %v703_v27 = vsel %vm383_vm0, %v698_v15, %v702_v43  ;;  %v730_v7 = vor.u32 %v728_v41, %v702_v43  ;;  %v3599_v43 = vld [vmem:[%s4749_s1 + $0x3f8] sm:$0xff]   ;;  %v3618_v41 = vld [vmem:[%s3773_s18 + $0x28] sm:$0xff] }
  0x71   : > { %2251 = vmatprep.mubr.bf16.mxu1 %v639_v55  ;;  %v695_v34 = vsel %vm383_vm0, %v690_v47, %v694_v19  ;;  %v687_v55 = vsel %vm383_vm0, %v682_v25, %v686_v8  ;;  %v741_v47 = vor.u32 %v739_v40, %v718_v3  ;;  %v3597_v25 = vld [vmem:[%s4749_s1 + $0x378] sm:$0xff]   ;;  %v801_v40 = vrot.slane %v4365_v62, 1  ;;  %v2484_v62 = vld [vmem:[%s4752_s4 + $0x40] sm:$0xff] }
  0x72   : > { %v714_v10 = vor.u32 %v712_v42, %v686_v8  ;;  %v3594_v8 = vld [vmem:[%s4749_s1 + $0x330] sm:$0xff]   ;;  %v783_v42 = vrot.slane %v4110_v57, 1  ;;  %v786_v57 = vrot.slane %v4279_v26, 1 }
  0x77   : > { %2180 = vmatmul.mubr.bf16.vlgmr.msra.gmra.mrb[40].mxu0 %v4259_v31  ;;  %v3569_v31 = vld [vmem:[%s4749_s1 + $0x3d0] sm:$0xff]  }
  0x78   : > { %2252 = vmatmul.mubr.bf16.vlgmr.msra.gmra.mrb[40].mxu1 %v627_v52  ;;  %3292 = vmatpush3.bf16.msra.mxu0 %v3556_v4  ;;  %v3573_v52 = vld [vmem:[%s4749_s1 + $0x358] sm:$0xff]   ;;  %v4452_v4 = vld [vmem:[%s3773_s18 + $0x90] ss:$16 sps:$4 sm:$0x1f]  }
  0x79   : > { %3338 = vmatpush3.bf16.msra.mxu1 %v3558_v0  ;;  %3293 = vmatprep.subr.bf16.mxu0 %v3559_v5  ;;  %v3580_v0 = vld [vmem:[%s4749_s1 + $0x320] sm:$0xff]   ;;  %v732_v5 = vshll.u32 %v4447_v17, 16  ;;  %v708_v29 = vshll.u32 %v4452_v4, 16  ;;  %v736_v15 = vshrl.u32 %v4452_v4, 16 }
  0x7a   : > { %2187 = vmatprep.mubr.bf16.mxu0 %v655_v63  ;;  %2259 = vmatprep.mubr.bf16.mxu1 %v671_v32 }
  0x7b   : > { %3339 = vmatprep.subr.bf16.mxu1 %v3563_v46  ;;  %v734_v63 = vrot.slane %v732_v5, 1  ;;  %v724_v46 = vshll.u32 %v4459_v38, 16  ;;  %v710_v21 = vrot.slane %v708_v29, 1  ;;  %v803_v29 = vrot.slane %v4381_v45, 1 }
  0x7c   : > { %3294 = vmatpush3.bf16.msra.mxu0 %v3560_v58  ;;  %v3589_v58 = vld [vmem:[%s4749_s1 + $0x368] sm:$0xff]  }
  0x7d   : > { %3340 = vmatpush3.bf16.msra.mxu1 %v3566_v12  ;;  %3295 = vmatprep.subr.bf16.mxu0 %v3567_v39  ;;  %v735_v16 = vsel %vm383_vm0, %v730_v7, %v734_v63  ;;  %v726_v32 = vrot.slane %v724_v46, 1  ;;  %v3592_v12 = vld [vmem:[%s4749_s1 + $0x3a8] sm:$0xff]   ;;  %v745_v39 = vshrl.u32 %v4447_v17, 16  ;;  %v711_v14 = vsel %vm383_vm0, %v706_v20, %v710_v21  ;;  %v2480_v20 = vld [vmem:[%s4752_s4 + $0x20] sm:$0xff] }
  0x7e   : > { %3341 = vmatprep.subr.bf16.mxu1 %v3569_v31  ;;  %v3593_v31 = vld [vmem:[%s4749_s1 + $0x370] sm:$0xff]   ;;  %v738_v48 = vor.u32 %v736_v15, %v710_v21  ;;  %v2479_v21 = vld [vmem:[%s4752_s4 + $0x18] sm:$0xff] }
  0x7f   : > { %2188 = vmatmul.mubr.bf16.gmra.mrb[44].mxu0 %v647_v35  ;;  %v720_v35 = vshrl.u32 %v4381_v45, 16 }
  0x80   : > { %2260 = vmatmul.mubr.bf16.gmra.mrb[44].mxu1 %v663_v30  ;;  %3296 = vmatpush3.bf16.msra.mxu0 %v3568_v51  ;;  %v719_v30 = vsel %vm383_vm0, %v714_v10, %v718_v3  ;;  %v747_v51 = vor.u32 %v745_v39, %v734_v63  ;;  %v797_v63 = vrot.slane %v4331_v53, 1  ;;  %v3627_v53 = vmov 0  }
  0x81   : > { %3342 = vmatpush3.bf16.msra.mxu1 %v3570_v23  ;;  %2195 = vmatprep.mubr.bf16.mxu0 %v687_v55  ;;  %v722_v54 = vor.u32 %v720_v35, %v694_v19  ;;  %v3596_v23 = vld [vmem:[%s4749_s1 + $0x3b0] sm:$0xff]   ;;  %v742_v19 = vshrl.u32 %v4459_v38, 16  ;;  %v780_v55 = vrot.slane %v4186_v28, 1  ;;  %v795_v28 = vrot.slane %v4347_v61, 1 }
  0x82   : > { %2267 = vmatprep.mubr.bf16.mxu1 %v703_v27  ;;  %3297 = vmatprep.subr.bf16.mxu0 %v3573_v52  ;;  %v278_v52 = vld [vmem:[%s3773_s18 + $0x18] sm:$0xee]  ;;  %v791_v27 = vrot.slane %v4336_v50, 1  ;;  %v793_v61 = vrot.slane %v4309_v36, 1  ;;  %v805_v39 = vrot.slane %v4369_v6, 1  ;;  %v809_v6 = vrot.slane %v4444_v13, 1 }
  0x83   : > { %3343 = vmatprep.subr.bf16.mxu1 %v3577_v56  ;;  %v727_v24 = vsel %vm383_vm0, %v722_v54, %v726_v32  ;;  %v2832_v7 = vcombine.low %v278_v52, %v3618_v41  ;;  %v796_v3 = vsel %vm778_vm1, %v786_v57, %v795_v28  ;;  %v804_v45 = vsel %vm778_vm1, %v795_v28, %v803_v29  ;;  %v2481_v54 = vld [vmem:[%s4752_s4 + $0x28] sm:$0xff] }
  0x84   : > { %3298 = vmatpush3.bf16.msra.mxu0 %v3576_v60  ;;  %v3598_v60 = vld [vmem:[%s4749_s1 + $0x338] sm:$0xff]   ;;  %v792_v1 = vsel %vm778_vm1, %v780_v55, %v791_v27  ;;  %3425 = vset.pattern.permute.xlu0 %v3627_v53 }
  0x85   : > { %3344 = vmatpush3.bf16.msra.mxu1 %v3578_v11  ;;  %3299 = vmatprep.subr.bf16.mxu0 %v3579_v9  ;;  %v3600_v11 = vld [vmem:[%s4749_s1 + $0x3b8] sm:$0xff]   ;;  %v2833_v9 = vcombine.high %v278_v52, %v3618_v41  ;;  %v785_v36 = vrot.slane %v2832_v7, 1 }
  0x86   : > { %3345 = vmatprep.subr.bf16.mxu1 %v3581_v18  ;;  %v789_v18 = vrot.slane %v4157_v59, 1  ;;  %3426 = vset.pattern.permute.xlu1 %v3627_v53 }
  0x87   : > { %2196 = vmatmul.mubr.bf16.gmra.mrb[48].mxu0 %v679_v33  ;;  %v277_v33 = vld [vmem:[%s3773_s18 + $0x10] sm:$0xee]  ;;  %v788_v5 = vrot.slane %v2833_v9, 1 }
  0x88   : > { %2268 = vmatmul.mubr.bf16.gmra.mrb[48].mxu1 %v695_v34  ;;  %3300 = vmatpush3.bf16.msra.mxu0 %v3580_v0  ;;  %v3617_v34 = vld [vmem:[%s3773_s18 + $0x20] sm:$0xff]  ;;  %v744_v0 = vor.u32 %v742_v19, %v726_v32  ;;  %v794_v32 = vsel %vm778_vm1, %v783_v42, %v793_v61 }
  0x89   : > { %2203 = vmatprep.mubr.bf16.mxu0 %v719_v30  ;;  %2275 = vmatprep.mubr.bf16.mxu1 %v735_v16  ;;  %v2831_v56 = vcombine.high %v277_v33, %v3617_v34  ;;  %v2830_v50 = vcombine.low %v277_v33, %v3617_v34  ;;  %v790_v26 = vsel %vm778_vm1, %v788_v5, %v789_v18  ;;  %v2476_v30 = vld [vmem:[%s4752_s4] sm:$0xff]  ;;  %v2477_v16 = vld [vmem:[%s4752_s4 + $0x8] sm:$0xff] }
  0x8a   : > { %3346 = vmatpush3.bf16.msra.mxu1 %v3586_v44  ;;  %3301 = vmatprep.subr.bf16.mxu0 %v3589_v58  ;;  %v799_v44 = vrot.slane %v4373_v2, 1  ;;  %v2478_v58 = vld [vmem:[%s4752_s4 + $0x10] sm:$0xff] }
  0x8b   : > { %3347 = vmatprep.subr.bf16.mxu1 %v3591_v49  ;;  %v782_v10 = vrot.slane %v2831_v56, 1  ;;  %v779_v35 = vrot.slane %v2830_v50, 1  ;;  %2487 = vperm.xlu0 %3425, %v2476_v30   ;;  %v787_v49 = vsel %vm778_vm1, %v785_v36, %v786_v57 }
  0x8c   : > { %3302 = vmatpush3.bf16.msra.mxu0 %v3590_v22  ;;  %v800_v46 = vsel %vm778_vm1, %v791_v27, %v799_v44  ;;  %2497 = vperm.xlu1 %3426, %v2478_v58  }
  0x8d   : > { %3303 = vmatprep.subr.bf16.mxu0 %v3593_v31  ;;  %v784_v59 = vsel %vm778_vm1, %v782_v10, %v783_v42  ;;  %v781_v22 = vsel %vm778_vm1, %v779_v35, %v780_v55  ;;  %v2482_v31 = vld [vmem:[%s4752_s4 + $0x30] sm:$0xff] }
  0x8e   : > { %3348 = vmatpush3.bf16.msra.mxu1 %v3592_v12  ;;  %v798_v12 = vsel %vm778_vm1, %v789_v18, %v797_v63 }
  0x8f   : > { %3349 = vmatprep.subr.bf16.mxu1 %v3595_v37  ;;  %2204 = vmatmul.mubr.bf16.gmra.mrb[52].mxu0 %v711_v14  ;;  %v2483_v37 = vld [vmem:[%s4752_s4 + $0x38] sm:$0xff]  ;;  %v806_v14 = vsel %vm778_vm1, %v797_v63, %v805_v39 }
  0x90   : > { %2276 = vmatmul.mubr.bf16.gmra.mrb[52].mxu1 %v727_v24  ;;  %2211 = vmatprep.mubr.bf16.mxu0 %v741_v47  ;;  %v813_v24 = vrot.slane %v4447_v17, 1  ;;  %v810_v47 = vsel %vm778_vm1, %v801_v40, %v809_v6 }
  0x91   : > { %2283 = vmatprep.mubr.bf16.mxu1 %v747_v51  ;;  %3304 = vmatpush3.bf16.msra.mxu0 %v3594_v8  ;;  %v802_v8 = vsel %vm778_vm1, %v793_v61, %v801_v40 }
  0x92   : > { %3350 = vmatpush3.bf16.msra.mxu1 %v3596_v23  ;;  %3305 = vmatprep.subr.bf16.mxu0 %v3597_v25  ;;  %v814_v51 = vsel %vm778_vm1, %v805_v39, %v813_v24  ;;  %v807_v23 = vrot.slane %v4452_v4, 1  ;;  %v811_v25 = vrot.slane %v4459_v38, 1  ;;  %v3605_v39 = vld [vmem:[%s4753_s5] sm:$0xff]  }
  0x93   : > { %3351 = vmatprep.subr.bf16.mxu1 %v3599_v43  ;;  %2492 = vperm.xlu0 %3425, %v2477_v16  }
  0x94   : > { %2502 = vperm.xlu1 %3426, %v2479_v21   ;;  %v808_v15 = vsel %vm778_vm1, %v799_v44, %v807_v23  ;;  %v812_v13 = vsel %vm778_vm1, %v803_v29, %v811_v25 }
  0x95   : > { %3306 = vmatpush3.bf16.msra.mxu0 %v3598_v60 }
  0x96   : > { %3352 = vmatpush3.bf16.msra.mxu1 %v3600_v11 }
  0x97   : > { %2212 = vmatmul.mubr.bf16.gmra.mrb[56].mxu0 %v738_v48  ;;  %2507 = vperm.xlu0 %3425, %v2480_v20  }
  0x98   : > { %2284 = vmatmul.mubr.bf16.gmra.mrb[56].mxu1 %v744_v0  ;;  %2323 = vmatprep.mubr.bf16.mxu0 %v784_v59 }
  0x99   : > { %2395 = vmatprep.mubr.bf16.mxu1 %v790_v26  ;;  %2512 = vperm.xlu1 %3426, %v2481_v54  }
  0x9b   : > { %2517 = vperm.xlu0 %3425, %v2482_v31  }
  0x9d   : > { %2522 = vperm.xlu1 %3426, %v2483_v37  }
  0x9f   : > { %2324 = vmatmul.mubr.bf16.vlgmr.msra.gmra.mrb[60].mxu0 %v781_v22  ;;  %2527 = vperm.xlu0 %3425, %v2484_v62  }
  0xa0   : > { %2396 = vmatmul.mubr.bf16.vlgmr.msra.gmra.mrb[60].mxu1 %v787_v49  ;;  %2331 = vmatprep.mubr.bf16.mxu0 %v794_v32 }
  0xa1   : > { %2403 = vmatprep.mubr.bf16.mxu1 %v798_v12 }
  0xa7   : > { %2332 = vmatmul.mubr.bf16.gmra.mrb[64].mxu0 %v792_v1 }
  0xa8   : > { %2404 = vmatmul.mubr.bf16.gmra.mrb[64].mxu1 %v796_v3  ;;  %2339 = vmatprep.mubr.bf16.mxu0 %v802_v8  ;;  %v3628_v8 = vmov 0.0  }
  0xa9   : > { %2411 = vmatprep.mubr.bf16.mxu1 %v806_v14  ;;  %3392 = vmatprep.subr.bf16.mxu0 %v3628_v8 }
  0xaa   : > { %3393 = vmatpush3.bf16.msra.mxu0 %v3605_v39 }
  0xab   : > { %3394 = vmatprep.subr.bf16.mxu0 %v3628_v8 }
  0xaf   : > { %2340 = vmatmul.mubr.bf16.gmra.mrb[68].mxu0 %v800_v46 }
  0xb0   : > { %2412 = vmatmul.mubr.bf16.gmra.mrb[68].mxu1 %v804_v45  ;;  %2347 = vmatprep.mubr.bf16.mxu0 %v810_v47  ;;  %v3606_v47 = vld [vmem:[%s4753_s5 + $0x8] sm:$0xff]  }
  0xb1   : > { %2419 = vmatprep.mubr.bf16.mxu1 %v814_v51  ;;  %3395 = vmatpush3.bf16.msra.mxu0 %v3606_v47 }
  0xb2   : > { %3396 = vmatprep.subr.bf16.mxu0 %v3628_v8 }
  0xb7   : > { %2348 = vmatmul.mubr.bf16.gmra.mrb[72].mxu0 %v808_v15 }
  0xb8   : > { %2420 = vmatmul.mubr.bf16.gmra.mrb[72].mxu1 %v812_v13  ;;  %2355 = vmatprep.mubr.bf16.mxu0 %v809_v6 }
  0xb9   : > { %2427 = vmatprep.mubr.bf16.mxu1 %v813_v24 }
  0xbf   : > { %2356 = vmatmul.mubr.bf16.gmra.mrb[76].mxu0 %v807_v23 }
  0xc0   : > { %2428 = vmatmul.mubr.bf16.gmra.mrb[76].mxu1 %v811_v25  ;;  %3408 = vmatprep.mubr.msk.bf16.mxu0 %vm3629_vm2, %v3628_v8 }
  0xfa   : > { %v3031_v17 = vpop.f32.mrb[0].mxu0 }
  0xfb   : > { %v3077_v43 = vpop.f32.mrb[0].mxu1  ;;  %v3032_v19 = vpop.f32.mrb[1].mxu0 }
  0xfc   : > { %v3033_v33 = vadd.f32 %v3032_v19, %v3031_v17  ;;  %v3078_v52 = vpop.f32.mrb[1].mxu1  ;;  %v3034_v4 = vpop.f32.mrb[2].mxu0 }
  0xfd   : > { %v3079_v34 = vadd.f32 %v3078_v52, %v3077_v43  ;;  %v3080_v38 = vpop.f32.mrb[2].mxu1  ;;  %v3035_v56 = vpop.f32.mrb[3].mxu0 }
  0xfe   : > { %v3036_v2 = vadd.f32 %v3035_v56, %v3034_v4  ;;  %v3081_v42 = vpop.f32.mrb[3].mxu1 }
  0xff   : > { %v4579_v55 = vadd.f32 %v3079_v34, %v3033_v33  ;;  %v3082_v27 = vadd.f32 %v3081_v42, %v3080_v38  ;;  %v3607_v33 = vld [vmem:[%s4753_s5 + $0x10] sm:$0xff]   ;;  %v3608_v38 = vld [vmem:[%s4753_s5 + $0x18] sm:$0xff]  }
 0x100   : > { %3397 = vmatpush3.bf16.msra.mxu0 %v3607_v33 }
 0x101   : > { %v4581_v60 = vadd.f32 %v3082_v27, %v3036_v2  ;;  %3398 = vmatprep.subr.bf16.mxu0 %v3628_v8 }
 0x102   : > { %v3037_v11 = vpop.f32.mrb[4].mxu0 }
 0x103   : > { %v3083_v41 = vpop.f32.mrb[4].mxu1  ;;  %v3038_v9 = vpop.f32.mrb[5].mxu0 }
 0x104   : > { %v3084_v18 = vpop.f32.mrb[5].mxu1  ;;  %v3039_v57 = vadd.f32 %v3038_v9, %v3037_v11  ;;  %v3040_v48 = vpop.f32.mrb[6].mxu0  ;;  %3399 = vmatpush3.bf16.msra.mxu0 %v3608_v38 }
 0x105   : > { %v3085_v28 = vadd.f32 %v3084_v18, %v3083_v41  ;;  %v3086_v50 = vpop.f32.mrb[6].mxu1  ;;  %v3041_v10 = vpop.f32.mrb[7].mxu0  ;;  %3400 = vmatprep.subr.bf16.mxu0 %v3628_v8 }
 0x106   : > { %v3087_v1 = vpop.f32.mrb[7].mxu1  ;;  %v3042_v7 = vadd.f32 %v3041_v10, %v3040_v48 }
 0x107   : > { %v4583_v0 = vadd.f32 %v3085_v28, %v3039_v57  ;;  %v3088_v5 = vadd.f32 %v3087_v1, %v3086_v50  ;;  %v3609_v57 = vld [vmem:[%s4753_s5 + $0x20] sm:$0xff]  }
 0x108   : > { %3401 = vmatpush3.bf16.msra.mxu0 %v3609_v57 }
 0x109   : > { %v4585_v3 = vadd.f32 %v3088_v5, %v3042_v7  ;;  %3402 = vmatprep.subr.bf16.mxu0 %v3628_v8 }
 0x10a   : > { %v3043_v44 = vpop.f32.mrb[8].mxu0 }
 0x10b   : > { %v3089_v59 = vpop.f32.mrb[8].mxu1  ;;  %v3044_v26 = vpop.f32.mrb[9].mxu0 }
 0x10c   : > { %v3090_v61 = vpop.f32.mrb[9].mxu1  ;;  %v3045_v29 = vadd.f32 %v3044_v26, %v3043_v44  ;;  %v3046_v63 = vpop.f32.mrb[10].mxu0  ;;  %v3610_v44 = vld [vmem:[%s4753_s5 + $0x28] sm:$0xff]  }
 0x10d   : > { %v3091_v35 = vadd.f32 %v3090_v61, %v3089_v59  ;;  %v3092_v46 = vpop.f32.mrb[10].mxu1  ;;  %v3047_v30 = vpop.f32.mrb[11].mxu0  ;;  %3403 = vmatpush3.bf16.msra.mxu0 %v3610_v44  ;;  %v3611_v61 = vld [vmem:[%s4753_s5 + $0x30] sm:$0xff]  }
 0x10e   : > { %v3093_v58 = vpop.f32.mrb[11].mxu1  ;;  %v3048_v45 = vadd.f32 %v3047_v30, %v3046_v63  ;;  %3404 = vmatprep.subr.bf16.mxu0 %v3628_v8 }
 0x10f   : > { %v4587_v36 = vadd.f32 %v3091_v35, %v3045_v29  ;;  %v3094_v53 = vadd.f32 %v3093_v58, %v3092_v46 }
 0x111   : > { %v4589_v16 = vadd.f32 %v3094_v53, %v3048_v45  ;;  %3405 = vmatpush3.bf16.msra.mxu0 %v3611_v61 }
 0x112   : > { %v3049_v21 = vpop.f32.mrb[12].mxu0  ;;  %3406 = vmatprep.subr.bf16.mxu0 %v3628_v8 }
 0x113   : > { %v3095_v22 = vpop.f32.mrb[12].mxu1  ;;  %v3050_v49 = vpop.f32.mrb[13].mxu0 }
 0x114   : > { %v3096_v32 = vpop.f32.mrb[13].mxu1  ;;  %v3051_v12 = vadd.f32 %v3050_v49, %v3049_v21  ;;  %v3052_v54 = vpop.f32.mrb[14].mxu0  ;;  %v3612_v49 = vld [vmem:[%s4753_s5 + $0x38] sm:$0xff]  }
 0x115   : > { %v3097_v20 = vadd.f32 %v3096_v32, %v3095_v22  ;;  %v3098_v40 = vpop.f32.mrb[14].mxu1  ;;  %v3053_v31 = vpop.f32.mrb[15].mxu0  ;;  %3407 = vmatpush3.bf16.msra.mxu0 %v3612_v49 }
 0x116   : > { %v3099_v37 = vpop.f32.mrb[15].mxu1  ;;  %v3054_v62 = vadd.f32 %v3053_v31, %v3052_v54 }
 0x117   : > { %v4595_v14 = vadd.f32 %v3097_v20, %v3051_v12  ;;  %v3100_v6 = vadd.f32 %v3099_v37, %v3098_v40 }
 0x119   : > { %v4598_v24 = vadd.f32 %v3100_v6, %v3054_v62 }
 0x11a   : > { %v3055_v51 = vpop.f32.mrb[16].mxu0 }
 0x11b   : > { %v3101_v23 = vpop.f32.mrb[16].mxu1  ;;  %v3056_v25 = vpop.f32.mrb[17].mxu0 }
 0x11c   : > { %v3102_v15 = vpop.f32.mrb[17].mxu1  ;;  %v3057_v13 = vadd.f32 %v3056_v25, %v3055_v51  ;;  %v3058_v43 = vpop.f32.mrb[18].mxu0 }
 0x11d   : > { %v3103_v17 = vadd.f32 %v3102_v15, %v3101_v23  ;;  %v3104_v19 = vpop.f32.mrb[18].mxu1  ;;  %v3059_v52 = vpop.f32.mrb[19].mxu0 }
 0x11e   : > { %v3105_v4 = vpop.f32.mrb[19].mxu1 }
 0x11f   : > { %v4607_v34 = vadd.f32 %v3103_v17, %v3057_v13 }
 0x122   : > { %v3123_v56 = vpop.f32.mrb[20].mxu0 }
 0x123   : > { %v3169_v2 = vpop.f32.mrb[20].mxu1  ;;  %v3124_v42 = vpop.f32.mrb[21].mxu0 }
 0x124   : > { %v3170_v27 = vpop.f32.mrb[21].mxu1  ;;  %v3125_v11 = vadd.f32 %v3124_v42, %v3123_v56  ;;  %v3126_v9 = vpop.f32.mrb[22].mxu0 }
 0x125   : > { %v3171_v41 = vadd.f32 %v3170_v27, %v3169_v2  ;;  %v3172_v18 = vpop.f32.mrb[22].mxu1  ;;  %v3127_v28 = vpop.f32.mrb[23].mxu0 }
 0x126   : > { %v3173_v48 = vpop.f32.mrb[23].mxu1  ;;  %v2038_v50 = vadd.f32 %v3125_v11, %v4579_v55  ;;  %v3128_v10 = vadd.f32 %v3127_v28, %v3126_v9 }
 0x127   : > { %v3174_v1 = vadd.f32 %v3173_v48, %v3172_v18 }
 0x128   : > { %v4619_v7 = vadd.f32 %v3171_v41, %v2038_v50  ;;  %v2041_v5 = vadd.f32 %v3128_v10, %v4581_v60 }
 0x12a   : > { %v4626_v59 = vadd.f32 %v3174_v1, %v2041_v5  ;;  %v3129_v26 = vpop.f32.mrb[24].mxu0 }
 0x12b   : > { %v3175_v55 = vpop.f32.mrb[24].mxu1  ;;  %v3130_v29 = vpop.f32.mrb[25].mxu0 }
 0x12c   : > { %v3176_v35 = vpop.f32.mrb[25].mxu1  ;;  %v3131_v60 = vadd.f32 %v3130_v29, %v3129_v26  ;;  %v3132_v46 = vpop.f32.mrb[26].mxu0 }
 0x12d   : > { %v3177_v63 = vadd.f32 %v3176_v35, %v3175_v55  ;;  %v3178_v30 = vpop.f32.mrb[26].mxu1  ;;  %v3133_v58 = vpop.f32.mrb[27].mxu0 }
 0x12e   : > { %v3179_v45 = vpop.f32.mrb[27].mxu1  ;;  %v2046_v53 = vadd.f32 %v3131_v60, %v4583_v0  ;;  %v3134_v21 = vadd.f32 %v3133_v58, %v3132_v46 }
 0x12f   : > { %v3180_v22 = vadd.f32 %v3179_v45, %v3178_v30 }
 0x130   : > { %v4637_v32 = vadd.f32 %v3177_v63, %v2046_v53  ;;  %v2049_v12 = vadd.f32 %v3134_v21, %v4585_v3 }
 0x132   : > { %v4640_v20 = vadd.f32 %v3180_v22, %v2049_v12  ;;  %v3135_v54 = vpop.f32.mrb[28].mxu0 }
 0x133   : > { %v3181_v40 = vpop.f32.mrb[28].mxu1  ;;  %v3136_v39 = vpop.f32.mrb[29].mxu0 }
 0x134   : > { %v3182_v0 = vpop.f32.mrb[29].mxu1  ;;  %v3137_v31 = vadd.f32 %v3136_v39, %v3135_v54  ;;  %v3138_v62 = vpop.f32.mrb[30].mxu0 }
 0x135   : > { %v3183_v37 = vadd.f32 %v3182_v0, %v3181_v40  ;;  %v3184_v6 = vpop.f32.mrb[30].mxu1  ;;  %v3139_v47 = vpop.f32.mrb[31].mxu0 }
 0x136   : > { %v3185_v51 = vpop.f32.mrb[31].mxu1  ;;  %v2054_v23 = vadd.f32 %v3137_v31, %v4587_v36  ;;  %v3140_v8 = vadd.f32 %v3139_v47, %v3138_v62 }
 0x137   : > { %v3186_v25 = vadd.f32 %v3185_v51, %v3184_v6 }
 0x138   : > { %v4643_v15 = vadd.f32 %v3183_v37, %v2054_v23  ;;  %v2057_v3 = vadd.f32 %v3140_v8, %v4589_v16 }
 0x13a   : > { %v4646_v13 = vadd.f32 %v3186_v25, %v2057_v3  ;;  %v3141_v17 = vpop.f32.mrb[32].mxu0 }
 0x13b   : > { %v3187_v43 = vpop.f32.mrb[32].mxu1  ;;  %v3142_v19 = vpop.f32.mrb[33].mxu0 }
 0x13c   : > { %v3188_v33 = vpop.f32.mrb[33].mxu1  ;;  %v3143_v52 = vadd.f32 %v3142_v19, %v3141_v17  ;;  %v3144_v38 = vpop.f32.mrb[34].mxu0 }
 0x13d   : > { %v3189_v4 = vadd.f32 %v3188_v33, %v3187_v43  ;;  %v3190_v56 = vpop.f32.mrb[34].mxu1  ;;  %v3145_v2 = vpop.f32.mrb[35].mxu0 }
 0x13e   : > { %v3191_v42 = vpop.f32.mrb[35].mxu1  ;;  %v2062_v36 = vadd.f32 %v3143_v52, %v4595_v14  ;;  %v3146_v27 = vadd.f32 %v3145_v2, %v3144_v38 }
 0x13f   : > { %v3192_v11 = vadd.f32 %v3191_v42, %v3190_v56 }
 0x140   : > { %v4649_v41 = vadd.f32 %v3189_v4, %v2062_v36  ;;  %v2065_v16 = vadd.f32 %v3146_v27, %v4598_v24 }
 0x142   : > { %v4652_v9 = vadd.f32 %v3192_v11, %v2065_v16  ;;  %v3147_v18 = vpop.f32.mrb[36].mxu0 }
 0x143   : > { %v3193_v57 = vpop.f32.mrb[36].mxu1  ;;  %v3148_v28 = vpop.f32.mrb[37].mxu0 }
 0x144   : > { %v3194_v48 = vpop.f32.mrb[37].mxu1  ;;  %v3149_v50 = vadd.f32 %v3148_v28, %v3147_v18  ;;  %v3150_v1 = vpop.f32.mrb[38].mxu0 }
 0x145   : > { %v3195_v10 = vadd.f32 %v3194_v48, %v3193_v57  ;;  %v3196_v5 = vpop.f32.mrb[38].mxu1  ;;  %v3151_v44 = vpop.f32.mrb[39].mxu0 }
 0x146   : > { %v3197_v26 = vpop.f32.mrb[39].mxu1  ;;  %v2070_v14 = vadd.f32 %v3149_v50, %v4607_v34 }
 0x148   : > { %v4655_v55 = vadd.f32 %v3195_v10, %v2070_v14 }
 0x14a   : > { %v3215_v61 = vpop.f32.mrb[40].mxu0 }
 0x14b   : > { %v3261_v29 = vpop.f32.mrb[40].mxu1  ;;  %v3216_v35 = vpop.f32.mrb[41].mxu0 }
 0x14c   : > { %v3262_v24 = vpop.f32.mrb[41].mxu1  ;;  %v3217_v60 = vadd.f32 %v3216_v35, %v3215_v61  ;;  %v3218_v46 = vpop.f32.mrb[42].mxu0 }
 0x14d   : > { %v3263_v63 = vadd.f32 %v3262_v24, %v3261_v29  ;;  %v3264_v30 = vpop.f32.mrb[42].mxu1  ;;  %v3219_v58 = vpop.f32.mrb[43].mxu0 }
 0x14e   : > { %v3265_v45 = vpop.f32.mrb[43].mxu1  ;;  %v2182_v53 = vadd.f32 %v3217_v60, %v4619_v7  ;;  %v3220_v21 = vadd.f32 %v3219_v58, %v3218_v46 }
 0x14f   : > { %v3266_v22 = vadd.f32 %v3265_v45, %v3264_v30 }
 0x150   : > { %v4658_v49 = vadd.f32 %v3263_v63, %v2182_v53  ;;  %v2185_v34 = vadd.f32 %v3220_v21, %v4626_v59 }
 0x152   : > { %v4661_v12 = vadd.f32 %v3266_v22, %v2185_v34  ;;  %v3221_v54 = vpop.f32.mrb[44].mxu0 }
 0x153   : > { %v3267_v40 = vpop.f32.mrb[44].mxu1  ;;  %v3222_v39 = vpop.f32.mrb[45].mxu0 }
 0x154   : > { %v3268_v0 = vpop.f32.mrb[45].mxu1  ;;  %v3223_v31 = vadd.f32 %v3222_v39, %v3221_v54  ;;  %v3224_v62 = vpop.f32.mrb[46].mxu0 }
 0x155   : > { %v3269_v37 = vadd.f32 %v3268_v0, %v3267_v40  ;;  %v3270_v6 = vpop.f32.mrb[46].mxu1  ;;  %v3225_v47 = vpop.f32.mrb[47].mxu0 }
 0x156   : > { %v3271_v51 = vpop.f32.mrb[47].mxu1  ;;  %v2190_v7 = vadd.f32 %v3223_v31, %v4637_v32  ;;  %v3226_v23 = vadd.f32 %v3225_v47, %v3224_v62 }
 0x157   : > { %v3272_v8 = vadd.f32 %v3271_v51, %v3270_v6 }
 0x158   : > { %v4664_v25 = vadd.f32 %v3269_v37, %v2190_v7  ;;  %v2193_v59 = vadd.f32 %v3226_v23, %v4640_v20 }
 0x15a   : > { %v4667_v3 = vadd.f32 %v3272_v8, %v2193_v59  ;;  %v3227_v17 = vpop.f32.mrb[48].mxu0 }
 0x15b   : > { %v3273_v43 = vpop.f32.mrb[48].mxu1  ;;  %v3228_v19 = vpop.f32.mrb[49].mxu0 }
 0x15c   : > { %v3274_v33 = vpop.f32.mrb[49].mxu1  ;;  %v3229_v52 = vadd.f32 %v3228_v19, %v3227_v17  ;;  %v3230_v38 = vpop.f32.mrb[50].mxu0 }
 0x15d   : > { %v3275_v4 = vadd.f32 %v3274_v33, %v3273_v43  ;;  %v3276_v56 = vpop.f32.mrb[50].mxu1  ;;  %v3231_v2 = vpop.f32.mrb[51].mxu0 }
 0x15e   : > { %v3277_v42 = vpop.f32.mrb[51].mxu1  ;;  %v2198_v32 = vadd.f32 %v3229_v52, %v4643_v15  ;;  %v3232_v36 = vadd.f32 %v3231_v2, %v3230_v38  ;;  %v4689_v52 = vld [vmem:[%s4750_s2] ss:$0 sm:$0xff] }
 0x15f   : > { %v3278_v27 = vadd.f32 %v3277_v42, %v3276_v56 }
 0x160   : > { %v4670_v11 = vadd.f32 %v3275_v4, %v2198_v32  ;;  %v2201_v20 = vadd.f32 %v3232_v36, %v4646_v13 }
 0x162   : > { %v4673_v16 = vadd.f32 %v3278_v27, %v2201_v20  ;;  %v3233_v18 = vpop.f32.mrb[52].mxu0 }
 0x163   : > { %v3279_v57 = vpop.f32.mrb[52].mxu1  ;;  %v3234_v28 = vpop.f32.mrb[53].mxu0 }
 0x164   : > { %v3280_v48 = vpop.f32.mrb[53].mxu1  ;;  %v3235_v50 = vadd.f32 %v3234_v28, %v3233_v18  ;;  %v3236_v1 = vpop.f32.mrb[54].mxu0  ;;  %v4697_v28 = vld [vmem:[%s4751_s3] ss:$0 sm:$0xff] }
 0x165   : > { %v3281_v10 = vadd.f32 %v3280_v48, %v3279_v57  ;;  %v3282_v5 = vpop.f32.mrb[54].mxu1  ;;  %v3237_v44 = vpop.f32.mrb[55].mxu0 }
 0x166   : > { %v3283_v26 = vpop.f32.mrb[55].mxu1  ;;  %v2206_v15 = vadd.f32 %v3235_v50, %v4649_v41  ;;  %v3238_v14 = vadd.f32 %v3237_v44, %v3236_v1  ;;  %v2488_v57 = vpop.permute.xlu0 %2487 }
 0x167   : > { %v3284_v61 = vadd.f32 %v3283_v26, %v3282_v5 }
 0x168   : > { %v4676_v29 = vadd.f32 %v3281_v10, %v2206_v15  ;;  %v2209_v13 = vadd.f32 %v3238_v14, %v4652_v9  ;;  %v2498_v10 = vpop.permute.xlu1 %2497 }
 0x16a   : > { %v4679_v35 = vadd.f32 %v3284_v61, %v2209_v13  ;;  %v3239_v24 = vpop.f32.mrb[56].mxu0 }
 0x16b   : > { %v3285_v60 = vpop.f32.mrb[56].mxu1  ;;  %v3240_v63 = vpop.f32.mrb[57].mxu0 }
 0x16c   : > { %v3286_v46 = vpop.f32.mrb[57].mxu1  ;;  %v3241_v30 = vadd.f32 %v3240_v63, %v3239_v24  ;;  %v3242_v45 = vpop.f32.mrb[58].mxu0 }
 0x16d   : > { %v3287_v58 = vadd.f32 %v3286_v46, %v3285_v60  ;;  %v3288_v53 = vpop.f32.mrb[58].mxu1  ;;  %v3243_v21 = vpop.f32.mrb[59].mxu0 }
 0x16e   : > { %v3289_v22 = vpop.f32.mrb[59].mxu1  ;;  %v2214_v41 = vadd.f32 %v3241_v30, %v4655_v55  ;;  %v2493_v45 = vpop.permute.xlu0 %2492 }
 0x170   : > { %v4682_v34 = vadd.f32 %v3287_v58, %v2214_v41 }
 0x172   : > { %v3307_v54 = vpop.f32.mrb[60].mxu0 }
 0x173   : > { %v3353_v40 = vpop.f32.mrb[60].mxu1  ;;  %v3308_v39 = vpop.f32.mrb[61].mxu0 }
 0x174   : > { %v3354_v9 = vpop.f32.mrb[61].mxu1  ;;  %v3309_v0 = vadd.f32 %v3308_v39, %v3307_v54  ;;  %v3310_v37 = vpop.f32.mrb[62].mxu0 }
 0x175   : > { %v3355_v31 = vadd.f32 %v3354_v9, %v3353_v40  ;;  %v3356_v62 = vpop.f32.mrb[62].mxu1  ;;  %v3311_v6 = vpop.f32.mrb[63].mxu0 }
 0x176   : > { %v3357_v47 = vpop.f32.mrb[63].mxu1  ;;  %v2326_v51 = vadd.f32 %v3309_v0, %v4658_v49  ;;  %v3312_v7 = vadd.f32 %v3311_v6, %v3310_v37 }
 0x177   : > { %v3358_v23 = vadd.f32 %v3357_v47, %v3356_v62 }
 0x178   : > { %v2398_v8 = vadd.f32 %v3355_v31, %v2326_v51  ;;  %v2329_v59 = vadd.f32 %v3312_v7, %v4661_v12  ;;  %v2503_v31 = vpop.permute.xlu1 %2502 }
 0x17a   : > { %v2401_v55 = vadd.f32 %v3358_v23, %v2329_v59  ;;  %v3313_v17 = vpop.f32.mrb[64].mxu0  ;;  %v2442_v20 = vmul.f32 %v4689_v52, %v2398_v8 }
 0x17b   : > { %v3359_v43 = vpop.f32.mrb[64].mxu1  ;;  %v3314_v19 = vpop.f32.mrb[65].mxu0 }
 0x17c   : > { %v3360_v33 = vpop.f32.mrb[65].mxu1  ;;  %v3315_v4 = vadd.f32 %v3314_v19, %v3313_v17  ;;  %v3316_v56 = vpop.f32.mrb[66].mxu0  ;;  %v2443_v49 = vmul.f32 %v4689_v52, %v2401_v55  ;;  %v2458_v26 = vadd.f32 %v4697_v28, %v2442_v20 }
 0x17d   : > { %v3361_v38 = vadd.f32 %v3360_v33, %v3359_v43  ;;  %v3362_v2 = vpop.f32.mrb[66].mxu1  ;;  %v3317_v42 = vpop.f32.mrb[67].mxu0 }
 0x17e   : > { %v3363_v32 = vpop.f32.mrb[67].mxu1  ;;  %v2334_v12 = vadd.f32 %v3315_v4, %v4664_v25  ;;  %v3318_v36 = vadd.f32 %v3317_v42, %v3316_v56  ;;  %v2459_v50 = vadd.f32 %v4697_v28, %v2443_v49  ;;  %v2467_v41 = vmax.f32 %v2458_v26, 0.0 }
 0x17f   : > { %v3364_v27 = vadd.f32 %v3363_v32, %v3362_v2 }
 0x180   : > { %v2406_v18 = vadd.f32 %v3361_v38, %v2334_v12  ;;  %v2337_v48 = vadd.f32 %v3318_v36, %v4667_v3  ;;  %v2468_v46 = vmax.f32 %v2459_v50, 0.0  ;;  %v4711_v51 = vmul.f32 %v2488_v57, %v2467_v41 }
 0x182   : > { %v2444_v1 = vmul.f32 %v4689_v52, %v2406_v18  ;;  %v2409_v5 = vadd.f32 %v3364_v27, %v2337_v48  ;;  %v3319_v25 = vpop.f32.mrb[68].mxu0  ;;  %v4708_v0 = vmul.f32 %v2493_v45, %v2468_v46  ;;  %v2508_v27 = vpop.permute.xlu0 %2507 }
 0x183   : > { %v3365_v44 = vpop.f32.mrb[68].mxu1  ;;  %v3320_v15 = vpop.f32.mrb[69].mxu0 }
 0x184   : > { %v3366_v14 = vpop.f32.mrb[69].mxu1  ;;  %v2445_v61 = vmul.f32 %v4689_v52, %v2409_v5  ;;  %v3321_v13 = vadd.f32 %v3320_v15, %v3319_v25  ;;  %v3322_v60 = vpop.f32.mrb[70].mxu0  ;;  %v2460_v3 = vadd.f32 %v4697_v28, %v2444_v1  ;;  %v2539_v33 = vadd.f32 %v4708_v0, %v4711_v51 }
 0x185   : > { %v3367_v24 = vadd.f32 %v3366_v14, %v3365_v44  ;;  %v3368_v63 = vpop.f32.mrb[70].mxu1  ;;  %v3323_v30 = vpop.f32.mrb[71].mxu0 }
 0x186   : > { %v3369_v58 = vpop.f32.mrb[71].mxu1  ;;  %v2342_v53 = vadd.f32 %v3321_v13, %v4670_v11  ;;  %v3324_v21 = vadd.f32 %v3323_v30, %v3322_v60  ;;  %v2469_v54 = vmax.f32 %v2460_v3, 0.0  ;;  %v2461_v40 = vadd.f32 %v4697_v28, %v2445_v61  ;;  %v2513_v48 = vpop.permute.xlu1 %2512 }
 0x187   : > { %v3370_v22 = vadd.f32 %v3369_v58, %v3368_v63 }
 0x188   : > { %v2414_v39 = vadd.f32 %v3367_v24, %v2342_v53  ;;  %v2345_v9 = vadd.f32 %v3324_v21, %v4673_v16  ;;  %v4713_v11 = vmul.f32 %v2498_v10, %v2469_v54  ;;  %v2470_v7 = vmax.f32 %v2461_v40, 0.0  ;;  %v2518_v53 = vpop.permute.xlu0 %2517 }
 0x18a   : > { %v2446_v37 = vmul.f32 %v4689_v52, %v2414_v39  ;;  %v2417_v62 = vadd.f32 %v3370_v22, %v2345_v9  ;;  %v3325_v6 = vpop.f32.mrb[72].mxu0  ;;  %v2540_v32 = vadd.f32 %v2539_v33, %v4713_v11  ;;  %v4721_v12 = vmul.f32 %v2503_v31, %v2470_v7  ;;  %v2523_v39 = vpop.permute.xlu1 %2522 }
 0x18b   : > { %v3371_v47 = vpop.f32.mrb[72].mxu1  ;;  %v3326_v23 = vpop.f32.mrb[73].mxu0 }
 0x18c   : > { %v3372_v8 = vpop.f32.mrb[73].mxu1  ;;  %v2447_v59 = vmul.f32 %v4689_v52, %v2417_v62  ;;  %v2462_v55 = vadd.f32 %v4697_v28, %v2446_v37  ;;  %v3327_v16 = vadd.f32 %v3326_v23, %v3325_v6  ;;  %v3328_v43 = vpop.f32.mrb[74].mxu0  ;;  %v2541_v25 = vadd.f32 %v2540_v32, %v4721_v12 }
 0x18d   : > { %v3373_v17 = vadd.f32 %v3372_v8, %v3371_v47  ;;  %v3374_v19 = vpop.f32.mrb[74].mxu1  ;;  %v3329_v4 = vpop.f32.mrb[75].mxu0 }
 0x18e   : > { %v3375_v38 = vpop.f32.mrb[75].mxu1  ;;  %v2471_v56 = vmax.f32 %v2462_v55, 0.0  ;;  %v2350_v2 = vadd.f32 %v3327_v16, %v4676_v29  ;;  %v3330_v49 = vadd.f32 %v3329_v4, %v3328_v43  ;;  %v2463_v36 = vadd.f32 %v4697_v28, %v2447_v59  ;;  %v2528_v6 = vpop.permute.xlu0 %2527 }
 0x18f   : > { %v3376_v42 = vadd.f32 %v3375_v38, %v3374_v19 }
 0x190   : > { %v2422_v20 = vadd.f32 %v3373_v17, %v2350_v2  ;;  %v2353_v18 = vadd.f32 %v3330_v49, %v4679_v35  ;;  %v4725_v57 = vmul.f32 %v2508_v27, %v2471_v56  ;;  %v2472_v1 = vmax.f32 %v2463_v36, 0.0 }
 0x192   : > { %v2448_v50 = vmul.f32 %v4689_v52, %v2422_v20  ;;  %v2425_v10 = vadd.f32 %v3376_v42, %v2353_v18  ;;  %v3331_v29 = vpop.f32.mrb[76].mxu0  ;;  %v2542_v60 = vadd.f32 %v2541_v25, %v4725_v57  ;;  %v2535_v30 = vmul.f32 %v2513_v48, %v2472_v1 }
 0x193   : > { %v3377_v5 = vpop.f32.mrb[76].mxu1  ;;  %v3332_v44 = vpop.f32.mrb[77].mxu0  ;;  %v2665_v42 = vlaneseq }
 0x194   : > { %v3378_v26 = vpop.f32.mrb[77].mxu1  ;;  %v2464_v15 = vadd.f32 %v4697_v28, %v2448_v50  ;;  %v2449_v14 = vmul.f32 %v4689_v52, %v2425_v10  ;;  %v3333_v61 = vadd.f32 %v3332_v44, %v3331_v29  ;;  %v3334_v35 = vpop.f32.mrb[78].mxu0  ;;  %v2543_v54 = vadd.f32 %v2542_v60, %v2535_v30 }
 0x195   : > { %v3379_v13 = vadd.f32 %v3378_v26, %v3377_v5  ;;  %v3380_v24 = vpop.f32.mrb[78].mxu1  ;;  %v3335_v63 = vpop.f32.mrb[79].mxu0  ;;  %v2666_v32 = vshrl.u32 %v2665_v42, 7 }
 0x196   : > { %v3381_v3 = vpop.f32.mrb[79].mxu1  ;;  %v2473_v46 = vmax.f32 %v2464_v15, 0.0  ;;  %v2465_v58 = vadd.f32 %v4697_v28, %v2449_v14  ;;  %v2358_v45 = vadd.f32 %v3333_v61, %v4682_v34 }
 0x197   : > { %v2667_v36 = vsub.s32 0, %v2666_v32 }
 0x198   : > { %v2474_v21 = vmax.f32 %v2465_v58, 0.0  ;;  %v2536_v22 = vmul.f32 %v2518_v53, %v2473_v46  ;;  %v2430_v41 = vadd.f32 %v3379_v13, %v2358_v45 }
 0x19a   : > { %v2450_v40 = vmul.f32 %v4689_v52, %v2430_v41  ;;  %v2537_v9 = vmul.f32 %v2523_v39, %v2474_v21  ;;  %v2544_v31 = vadd.f32 %v2543_v54, %v2536_v22 }
 0x19c   : > { %v2466_v37 = vadd.f32 %v4697_v28, %v2450_v40  ;;  %v2545_v47 = vadd.f32 %v2544_v31, %v2537_v9 }
 0x19e   : > { %v2475_v62 = vmax.f32 %v2466_v37, 0.0 }
 0x1a0   : > { %v2538_v7 = vmul.f32 %v2528_v6, %v2475_v62 }
 0x1a2   : > { %v2546_v23 = vadd.f32 %v2545_v47, %v2538_v7 }
 0x1a4   : > { %v2547_v8 = vrot.slane %v2546_v23, 4 }
 0x1a6   : > { %v2548_v59 = vadd.f32 %v2547_v8, %v2546_v23 }
 0x1a8   : > { %v2549_v34 = vrot.slane %v2548_v59, 2 }
 0x1aa   : > { %v2550_v55 = vadd.f32 %v2549_v34, %v2548_v59 }
 0x1ac   : > { %v2551_v16 = vrot.slane %v2550_v55, 1 }
 0x1ae   : > { %v2552_v17 = vadd.f32 %v2551_v16, %v2550_v55 }
 0x1b0   : > { %v2553_v43 = vmul.f32 0.015625, %v2552_v17 }
 0x1b2   : > { %v2554_v19 = vpack.c.bf16 %v2553_v43, %v2553_v43 }
 0x1b4   : > { %3409 = vmatmul.mubr.bf16.vlgmr.msra.gmra.mrb[80].mxu0 %v2554_v19 }
 0x287   : > { %v2653_v52 = vpop.f32.mrb[80].mxu0 }
 0x288   : > { %v2659_v33 = vsub.f32 0.0, %v2653_v52  ;;  %v3410_v4 = vpop.f32.mrb[81].mxu0 }
 0x289   : > { %v2656_v38 = vpop.f32.mrb[82].mxu0 }
 0x28a   : > { %v2660_v28 = vmul.f32 1.442695, %v2659_v33  ;;  %v3411_v56 = vpop.f32.mrb[83].mxu0 }
 0x28c   : > { %3613 = vpow2.f32 %v2660_v28 }
 0x296   : > { %v3614_v2 = vpop.eup %3613 }
 0x297   : > { %v2662_v49 = vadd.f32 1.0, %v3614_v2 }
 0x299   : > { %3615 = vrcp.f32 %v2662_v49 }
 0x2a3   : > { %v3616_v27 = vpop.eup %3615 }
 0x2a4   : > { %v2668_v20 = vrot.slane %v3616_v27, %v2667_v36 }
 0x2a6   : > { %v2669_v18 = vmul.f32 %v2668_v20, %v4711_v51  ;;  %v2670_v48 = vmul.f32 %v2668_v20, %v4708_v0  ;;  %v2671_v50 = vmul.f32 %v2668_v20, %v4713_v11  ;;  %v2672_v10 = vmul.f32 %v2668_v20, %v4721_v12 }
 0x2a7   : > { %v2673_v1 = vmul.f32 %v2668_v20, %v4725_v57  ;;  %v2674_v29 = vmul.f32 %v2668_v20, %v2535_v30  ;;  %v2675_v5 = vmul.f32 %v2668_v20, %v2536_v22  ;;  %v2676_v25 = vmul.f32 %v2668_v20, %v2537_v9 }
 0x2a8   : > { %v2677_v44 = vmul.f32 %v2668_v20, %v2538_v7  ;;  %v2995_v26 = vpack.c.bf16 %v2670_v48, %v2669_v18  ;;  %v3000_v15 = vpack.c.bf16 %v2672_v10, %v2671_v50 }
 0x2a9   : > { %v3005_v14 = vpack.c.bf16 %v2674_v29, %v2673_v1  ;;  %v3010_v51 = vpack.c.bf16 %v2676_v25, %v2675_v5 }
 0x2aa   : > { %v2991_v61 = vpack.c.bf16 %v2677_v44, %v2677_v44  ;;  %2996 = vst [vmem:[%s251_s25] sm:$0xff] %v2995_v26   ;;  %3012 = vst [vmem:[%s251_s25 + $0x8] sm:$0xff] %v3000_v15  }
 0x2ab   : > { %3013 = vst [vmem:[%s251_s25 + $0x10] sm:$0xff] %v3005_v14   ;;  %3014 = vst [vmem:[%s251_s25 + $0x18] sm:$0xff] %v3010_v51  }
 0x2ac   : > { %2723 = vst [vmem:[%s251_s25 + $0x20] sm:$0xf] %v2991_v61 }
 0x2ad PF: > { %s16_s21 = sadd.s32 1, %s3625_s21  }
 0x2ae   : > { %p13_p4 = scmp.ge.s32.totalorder %s16_s21, 4  }
 0x2b0   :  { %15 = sbr.rel (!%p13_p4) target bundleno = 1 (0x1), region = 74 }

// kernel: _lambda_.16
= control target key start
LH: loop header
LB: loop body
LE: loop exit
PB: predicated region body
PF: predicated region fallthrough
CT: control target
= control target key end

     0   :  { %s2468_s21 = smov 0   ;;  %s3086_s0 = inlined_call_operand.vmem [shape: bf16[2,112,128], index: 0, kind: input, shape index: {}]   ;;  %s3087_s1 = inlined_call_operand.vmem [shape: bf16[1152,128], index: 1, kind: input, shape index: {}]   ;;  %s3088_s2 = inlined_call_operand.vmem [shape: f32[1,128], index: 2, kind: input, shape index: {}]   ;;  %s3089_s3 = inlined_call_operand.vmem [shape: f32[1,128], index: 3, kind: input, shape index: {}]   ;;  %s3090_s4 = inlined_call_operand.vmem [shape: f32[80,1], index: 4, kind: input, shape index: {}]   ;;  %s3091_s5 = inlined_call_operand.vmem [shape: bf16[128,128], index: 5, kind: input, shape index: {}]   ;;  %s3092_s6 = inlined_call_operand.vmem [shape: bf16[2,80,128], index: 6, kind: output, shape index: {}]  }
   0x1 LB: > { %s1881_s22 = sadd.s32 4294967295, %s2428_s21   ;;  %p1885_p0 = scmp.ge.s32.totalorder %s2428_s21, 1  ;;  %s2428_s21 = sphi %s2468_s21, %s16_s21  }
   0x2   : > { %p212_p1 = scmp.lt.s32.totalorder %s2428_s21, 3 }
   0x4   : > { %p213_p2 = pnand %p1885_p0, %p212_p1 }
   0x5   : > { %v2318_v0 = vld [vmem:[%s3087_s1 + $0x40] sm:$0xff] (!%p213_p2)   ;;  %v2322_v4 = vld [vmem:[%s3087_s1 + $0x48] sm:$0xff] (!%p213_p2)   ;;  %v2326_v8 = vld [vmem:[%s3087_s1 + $0x50] sm:$0xff] (!%p213_p2)   ;;  %p242_p3 = scmp.lt.s32.totalorder (!%p213_p2), %s1881_s22, 1  ;;  %v2430_v29 = vmov (!%p213_p2), 0   ;;  %vm361_vm0 = vcmask (!%p213_p2), 1046528  }
   0x6   : > { %216 = sbr.rel (%p213_p2) target bundleno = 642 (0x282), region = 44  ;;  %v2319_v1 = vld [vmem:[%s3087_s1 + $0xc0] sm:$0xff] (!%p213_p2)   ;;  %2041 = vmatprep.subr.bf16.mxu0 (!%p213_p2), %v2318_v0  ;;  %v2323_v5 = vld [vmem:[%s3087_s1 + $0xc8] sm:$0xff] (!%p213_p2)   ;;  %v2327_v9 = vld [vmem:[%s3087_s1 + $0xd0] sm:$0xff] (!%p213_p2)   ;;  %2316 = vset.pattern.permute.xlu0 (!%p213_p2), %v2430_v29  ;;  %vm308_vm1 = vsmask.f32 (!%p213_p2), 7424 }
   0x7   : > { %v2320_v2 = vld [vmem:[%s3087_s1] sm:$0xff] (!%p213_p2)   ;;  %2087 = vmatprep.subr.bf16.mxu1 (!%p213_p2), %v2319_v1  ;;  %v2324_v6 = vld [vmem:[%s3087_s1 + $0x8] sm:$0xff] (!%p213_p2)   ;;  %v2328_v10 = vld [vmem:[%s3087_s1 + $0x10] sm:$0xff] (!%p213_p2)   ;;  %2317 = vset.pattern.permute.xlu1 (!%p213_p2), %v2430_v29  ;;  %vm471_vm2 = vcmask (!%p213_p2), 1045504   ;;  %vm409_vm3 = vsmask.f32 (!%p213_p2), 6400 }
   0x8   : > { %v2321_v3 = vld [vmem:[%s3087_s1 + $0x80] sm:$0xff] (!%p213_p2)   ;;  %2042 = vmatpush3.bf16.msra.mxu0 (!%p213_p2), %v2320_v2  ;;  %v2325_v7 = vld [vmem:[%s3087_s1 + $0x88] sm:$0xff] (!%p213_p2)   ;;  %v2329_v11 = vld [vmem:[%s3087_s1 + $0x90] sm:$0xff] (!%p213_p2)   ;;  %vm516_vm4 = vsmask.f32 (!%p213_p2), 5376  ;;  %vm563_vm5 = vcmask (!%p213_p2), 1044480  }
   0x9   : > { %2088 = vmatpush3.bf16.msra.mxu1 (!%p213_p2), %v2321_v3  ;;  %2043 = vmatprep.subr.bf16.mxu0 (!%p213_p2), %v2322_v4  ;;  %v2330_v12 = vld [vmem:[%s3087_s1 + $0x58] sm:$0xff] (!%p213_p2)   ;;  %v2334_v16 = vld [vmem:[%s3087_s1 + $0x60] sm:$0xff] (!%p213_p2)   ;;  %v2338_v20 = vld [vmem:[%s3087_s1 + $0x68] sm:$0xff] (!%p213_p2)   ;;  %vm2432_vm6 = vmmov (!%p213_p2), 0  }
   0xa   : > { %2089 = vmatprep.subr.bf16.mxu1 (!%p213_p2), %v2323_v5  ;;  %v2331_v13 = vld [vmem:[%s3087_s1 + $0xd8] sm:$0xff] (!%p213_p2)   ;;  %v2335_v17 = vld [vmem:[%s3087_s1 + $0xe0] sm:$0xff] (!%p213_p2)   ;;  %v2339_v21 = vld [vmem:[%s3087_s1 + $0xe8] sm:$0xff] (!%p213_p2)  }
   0xb   : > { %v2332_v14 = vld [vmem:[%s3087_s1 + $0x18] sm:$0xff] (!%p213_p2)   ;;  %v2336_v18 = vld [vmem:[%s3087_s1 + $0x20] sm:$0xff] (!%p213_p2)   ;;  %v2340_v22 = vld [vmem:[%s3087_s1 + $0x28] sm:$0xff] (!%p213_p2)  }
   0xc   : > { %2044 = vmatpush3.bf16.msra.mxu0 (!%p213_p2), %v2324_v6  ;;  %v2333_v15 = vld [vmem:[%s3087_s1 + $0x98] sm:$0xff] (!%p213_p2)   ;;  %v2337_v19 = vld [vmem:[%s3087_s1 + $0xa0] sm:$0xff] (!%p213_p2)   ;;  %v2341_v23 = vld [vmem:[%s3087_s1 + $0xa8] sm:$0xff] (!%p213_p2)  }
   0xd   : > { %2090 = vmatpush3.bf16.msra.mxu1 %v2325_v7  ;;  %2045 = vmatprep.subr.bf16.mxu0 %v2326_v8  ;;  %s3094_s22 = smov (!%p242_p3, %s1881_s22), 1  ;;  %v2342_v24 = vld [vmem:[%s3087_s1 + $0x70] sm:$0xff]   ;;  %v2346_v28 = vld [vmem:[%s3087_s1 + $0x78] sm:$0xff]   ;;  %v2356_v52 = vld [vmem:[%s3087_s1 + $0x140] sm:$0xff]  }
   0xe   : > { %2091 = vmatprep.subr.bf16.mxu1 %v2327_v9  ;;  %v2343_v25 = vld [vmem:[%s3087_s1 + $0xf0] sm:$0xff]   ;;  %s2303_s7 = smul.u32 56, %s3094_s22  ;;  %v2347_v30 = vld [vmem:[%s3087_s1 + $0xf8] sm:$0xff]   ;;  %v2357_v59 = vld [vmem:[%s3087_s1 + $0x100] sm:$0xff]  }
   0xf   : > { %v2344_v26 = vld [vmem:[%s3087_s1 + $0x30] sm:$0xff]   ;;  %v2348_v31 = vld [vmem:[%s3087_s1 + $0x38] sm:$0xff]   ;;  %v2358_v3 = vld [vmem:[%s3087_s1 + $0x148] sm:$0xff]  }
  0x10   : > { %2046 = vmatpush3.bf16.msra.mxu0 %v2328_v10  ;;  %v2345_v27 = vld [vmem:[%s3087_s1 + $0xb0] sm:$0xff]   ;;  %s2576_s18 = scalar_lea.vmem %s3086_s0, %s2303_s7  ;;  %v2349_v32 = vld [vmem:[%s3087_s1 + $0xb8] sm:$0xff]   ;;  %v2359_v7 = vld [vmem:[%s3087_s1 + $0x108] sm:$0xff]  }
  0x11   : > { %2092 = vmatpush3.bf16.msra.mxu1 %v2329_v11  ;;  %2047 = vmatprep.subr.bf16.mxu0 %v2330_v12  ;;  %v253_v33 = vld [vmem:[%s2576_s18] sm:$0xf]  ;;  %v254_v34 = vld [vmem:[%s2576_s18 + $0x4] sm:$0xf]  ;;  %v2587_v35 = vld [vmem:[%s2576_s18 + $0x8] sm:$0xf] }
  0x12   : > { %2093 = vmatprep.subr.bf16.mxu1 %v2331_v13  ;;  %v2590_v36 = vld [vmem:[%s2576_s18 + $0xc] sm:$0xf]  ;;  %v1888_v37 = vcombine.low %v253_v33, %v254_v34  ;;  %v257_v38 = vld [vmem:[%s2576_s18 + $0x10] sm:$0xf]  ;;  %v258_v40 = vld [vmem:[%s2576_s18 + $0x14] sm:$0xf] }
  0x13   : > { %v2595_v39 = vcombine.low %v2587_v35, %v2590_v36  ;;  %v265_v41 = vld [vmem:[%s2576_s18 + $0x4] sm:$0xe]  ;;  %v2600_v42 = vcombine.low %v2590_v36, %v257_v38  ;;  %v264_v43 = vld [vmem:[%s2576_s18] sm:$0xe]  ;;  %v2603_v46 = vcombine.low %v257_v38, %v258_v40  ;;  %v259_v63 = vld [vmem:[%s2576_s18 + $0x18] sm:$0xf] }
  0x14   : > { %2048 = vmatpush3.bf16.msra.mxu0 %v2332_v14  ;;  %v310_v44 = vshrl.u32 %v1888_v37, 16  ;;  %v312_v45 = vshll.u32 %v1888_v37, 16  ;;  %v2606_v47 = vcombine.low %v265_v41, %v2587_v35  ;;  %v1894_v50 = vcombine.low %v264_v43, %v254_v34  ;;  %v260_v0 = vld [vmem:[%s2576_s18 + $0x1c] sm:$0xf]  ;;  %v2363_v9 = vld [vmem:[%s3087_s1 + $0x1c0] sm:$0xff]   ;;  %v2362_v11 = vld [vmem:[%s3087_s1 + $0x150] sm:$0xff]  }
  0x15   : > { %2094 = vmatpush3.bf16.msra.mxu1 %v2333_v15  ;;  %2049 = vmatprep.subr.bf16.mxu0 %v2334_v16  ;;  %v317_v48 = vshll.u32 %v2595_v39, 16  ;;  %v391_v49 = vrot.slane %v2600_v42, 1  ;;  %v363_v51 = vrot.slane %v2595_v39, 1  ;;  %v321_v60 = vshrl.u32 %v2595_v39, 16  ;;  %v2365_v13 = vld [vmem:[%s3087_s1 + $0x180] sm:$0xff]   ;;  %v2366_v16 = vld [vmem:[%s3087_s1 + $0x1c8] sm:$0xff]  }
  0x16   : > { %2095 = vmatprep.subr.bf16.mxu1 %v2335_v17  ;;  %v314_v53 = vrot.slane %v312_v45, 1  ;;  %v390_v54 = vrot.slane %v2606_v47, 1  ;;  %v362_v56 = vrot.slane %v1894_v50, 1  ;;  %v325_v62 = vshll.u32 %v2603_v46, 16  ;;  %v2373_v34 = vld [vmem:[%s3087_s1 + $0x190] sm:$0xff]   ;;  %v2371_v38 = vld [vmem:[%s3087_s1 + $0x118] sm:$0xff]  }
  0x17   : > { %v319_v55 = vrot.slane %v317_v48, 1  ;;  %v365_v1 = vrot.slane %v2603_v46, 1  ;;  %v2629_v5 = vcombine.low %v259_v63, %v260_v0  ;;  %v2631_v6 = vcombine.low %v258_v40, %v259_v63  ;;  %v2703_v45 = vld [vmem:[%s2576_s18 + $0x28] sm:$0xf]  ;;  %v2375_v48 = vld [vmem:[%s3087_s1 + $0x120] sm:$0xff]  }
  0x18   : > { %2050 = vmatpush3.bf16.msra.mxu0 %v2336_v18  ;;  %v315_v57 = vor.u32 %v314_v53, %v310_v44  ;;  %v392_v58 = vsel %vm361_vm0, %v390_v54, %v391_v49  ;;  %v364_v61 = vsel %vm361_vm0, %v362_v56, %v363_v51  ;;  %v327_v8 = vrot.slane %v325_v62, 1  ;;  %v2376_v44 = vld [vmem:[%s3087_s1 + $0x1d8] sm:$0xff]   ;;  %v2381_v56 = vld [vmem:[%s3087_s1 + $0x128] sm:$0xff]  }
  0x19   : > { %2096 = vmatpush3.bf16.msra.mxu1 %v2337_v19  ;;  %2051 = vmatprep.subr.bf16.mxu0 %v2338_v20  ;;  %v323_v4 = vor.u32 %v321_v60, %v319_v55  ;;  %v393_v10 = vrot.slane %v2631_v6, 1  ;;  %v329_v14 = vshrl.u32 %v2603_v46, 16  ;;  %v333_v17 = vshll.u32 %v2629_v5, 16  ;;  %v2364_v19 = vld [vmem:[%s3087_s1 + $0x110] sm:$0xff]  }
  0x1a   : > { %2097 = vmatprep.subr.bf16.mxu1 %v2339_v21  ;;  %1261 = vmatprep.mubr.bf16.mxu1 %v392_v58  ;;  %v320_v2 = vsel %vm308_vm1, %v315_v57, %v319_v55  ;;  %v366_v18 = vsel %vm361_vm0, %v363_v51, %v365_v1  ;;  %v261_v21 = vld [vmem:[%s2576_s18 + $0x20] sm:$0xf]  ;;  %v2379_v51 = vld [vmem:[%s3087_s1 + $0x198] sm:$0xff]   ;;  %v2380_v55 = vld [vmem:[%s3087_s1 + $0x168] sm:$0xff]   ;;  %v411_v57 = vshrl.u32 %v2606_v47, 16  ;;  %v414_v60 = vshll.u32 %v2606_v47, 16 }
  0x1b   : > { %1188 = vmatprep.mubr.bf16.mxu0 %v320_v2  ;;  %v328_v12 = vsel %vm308_vm1, %v323_v4, %v327_v8  ;;  %v394_v15 = vsel %vm361_vm0, %v391_v49, %v393_v10  ;;  %v331_v20 = vor.u32 %v329_v14, %v327_v8  ;;  %v2385_v47 = vld [vmem:[%s3087_s1 + $0x1e8] sm:$0xff]  }
  0x1c   : > { %2052 = vmatpush3.bf16.msra.mxu0 %v2340_v22  ;;  %v262_v22 = vld [vmem:[%s2576_s18 + $0x24] sm:$0xf]  ;;  %v2734_v63 = vrot.slane %v411_v57, 1  ;;  %v2387_v4 = vld [vmem:[%s2576_s18 + $0x2c] ss:$0 sps:$4 sm:$0x11]  }
  0x1d   : > { %2098 = vmatpush3.bf16.msra.mxu1 %v2341_v23  ;;  %2053 = vmatprep.subr.bf16.mxu0 %v2342_v24  ;;  %v335_v23 = vrot.slane %v333_v17, 1  ;;  %v2665_v24 = vcombine.low %v261_v21, %v262_v22  ;;  %v2709_v49 = vcombine.low %v262_v22, %v2703_v45  ;;  %v422_v22 = vshll.u32 %v2600_v42, 16 }
  0x1e   : > { %2099 = vmatprep.subr.bf16.mxu1 %v2343_v25  ;;  %v2667_v25 = vcombine.low %v260_v0, %v261_v21  ;;  %v2384_v0 = vld [vmem:[%s3087_s1 + $0x170] sm:$0xff]  }
  0x1f   : > { %v369_v50 = vrot.slane %v2665_v24, 1  ;;  %v397_v54 = vrot.slane %v2709_v49, 1  ;;  %v2392_v21 = vld [vmem:[%s3087_s1 + $0x1b0] sm:$0xff]  }
  0x20   : > { %2054 = vmatpush3.bf16.msra.mxu0 %v2344_v26  ;;  %v2369_v26 = vld [vmem:[%s3087_s1 + $0x158] sm:$0xff]   ;;  %v395_v29 = vrot.slane %v2667_v25, 1 }
  0x21   : > { %2100 = vmatpush3.bf16.msra.mxu1 %v2345_v27  ;;  %2055 = vmatprep.subr.bf16.mxu0 %v2346_v28  ;;  %v2370_v27 = vld [vmem:[%s3087_s1 + $0x188] sm:$0xff]   ;;  %v336_v28 = vsel %vm308_vm1, %v331_v20, %v335_v23 }
  0x22   : > { %2101 = vmatprep.subr.bf16.mxu1 %v2347_v30  ;;  %v367_v30 = vrot.slane %v2629_v5, 1  ;;  %v396_v33 = vsel %vm361_vm0, %v393_v10, %v395_v29  ;;  %v398_v58 = vsel %vm361_vm0, %v395_v29, %v397_v54  ;;  %v2389_v10 = vld [vmem:[%s3087_s1 + $0x1a8] sm:$0xff]   ;;  %v424_v29 = vrot.slane %v422_v22, 2 }
  0x24   : > { %2056 = vmatpush3.bf16.msra.mxu0 %v2348_v31  ;;  %v2372_v31 = vld [vmem:[%s3087_s1 + $0x1d0] sm:$0xff]   ;;  %v368_v43 = vsel %vm361_vm0, %v365_v1, %v367_v30  ;;  %v2739_v1 = vrot.slane %v414_v60, 2  ;;  %v370_v2 = vsel %vm361_vm0, %v367_v30, %v369_v50  ;;  %v269_v30 = vld [vmem:[%s2576_s18 + $0x4] sm:$0xc]  ;;  %v530_v60 = vrot.slane %v333_v17, 3 }
  0x25   : > { %2102 = vmatpush3.bf16.msra.mxu1 %v2349_v32  ;;  %2133 = vmatprep.subr.bf16.mxu0 %v2356_v52  ;;  %v337_v32 = vshrl.u32 %v2629_v5, 16  ;;  %v345_v52 = vshrl.u32 %v2665_v24, 16 }
  0x26   : > { %2179 = vmatprep.subr.bf16.mxu1 %v2363_v9 }
  0x27   : > { %1189 = vmatmul.mubr.bf16.vlgmr.msra.gmra.mrb[0].mxu0 %v1888_v37  ;;  %v341_v37 = vshll.u32 %v2665_v24, 16  ;;  %v339_v40 = vor.u32 %v337_v32, %v335_v23  ;;  %v2393_v23 = vld [vmem:[%s3087_s1 + $0x138] sm:$0xff]  }
  0x28   : > { %1262 = vmatmul.mubr.bf16.vlgmr.msra.gmra.mrb[0].mxu1 %v364_v61  ;;  %2134 = vmatpush3.bf16.msra.mxu0 %v2357_v59  ;;  %v2382_v59 = vld [vmem:[%s3087_s1 + $0x1e0] sm:$0xff]  }
  0x29   : > { %2135 = vmatprep.subr.bf16.mxu0 %v2358_v3  ;;  %1196 = vmatprep.mubr.bf16.mxu0 %v328_v12  ;;  %v343_v41 = vrot.slane %v341_v37, 1  ;;  %v2383_v61 = vld [vmem:[%s3087_s1 + $0x1a0] sm:$0xff]   ;;  %v2386_v3 = vld [vmem:[%s2576_s18 + $0x28] ss:$0 sps:$4 sm:$0x11]  }
  0x2a   : > { %1269 = vmatprep.mubr.bf16.mxu1 %v394_v15  ;;  %2180 = vmatpush3.bf16.msra.mxu1 %v2365_v13  ;;  %v349_v9 = vshll.u32 %v2386_v3, 16  ;;  %v371_v12 = vrot.slane %v2386_v3, 1  ;;  %v2390_v15 = vld [vmem:[%s3087_s1 + $0x1f0] sm:$0xff]  }
  0x2b   : > { %2181 = vmatprep.subr.bf16.mxu1 %v2366_v16  ;;  %v344_v53 = vsel %vm308_vm1, %v339_v40, %v343_v41  ;;  %v347_v8 = vor.u32 %v345_v52, %v343_v41  ;;  %v2431_v40 = vmov 0.0  }
  0x2c   : > { %2136 = vmatpush3.bf16.msra.mxu0 %v2359_v7  ;;  %v2388_v7 = vld [vmem:[%s3087_s1 + $0x130] sm:$0xff]   ;;  %v351_v13 = vrot.slane %v349_v9, 1  ;;  %v534_v9 = vrot.slane %v341_v37, 3  ;;  %v477_v37 = vrot.slane %v2667_v25, 2 }
  0x2d   : > { %2137 = vmatprep.subr.bf16.mxu0 %v2362_v11  ;;  %v399_v11 = vrot.slane %v2387_v4, 1 }
  0x2e   : > { %2182 = vmatpush3.bf16.msra.mxu1 %v2370_v27  ;;  %v352_v20 = vsel %vm308_vm1, %v347_v8, %v351_v13  ;;  %v372_v27 = vsel %vm361_vm0, %v369_v50, %v371_v12  ;;  %v533_v8 = vrot.slane %v345_v52, 2  ;;  %v500_v13 = vrot.slane %v2629_v5, 2 }
  0x2f   : > { %1197 = vmatmul.mubr.bf16.gmra.mrb[4].mxu0 %v2595_v39  ;;  %v2374_v39 = vld [vmem:[%s3087_s1 + $0x160] sm:$0xff]   ;;  %2183 = vmatprep.subr.bf16.mxu1 %v2372_v31  ;;  %v400_v16 = vsel %vm361_vm0, %v397_v54, %v399_v11  ;;  %v1902_v31 = vcombine.low %v269_v30, %v2587_v35  ;;  %v526_v35 = vrot.slane %v325_v62, 3  ;;  %v431_v62 = vshll.u32 %v2631_v6, 16 }
  0x30   : > { %1270 = vmatmul.mubr.bf16.gmra.mrb[4].mxu1 %v366_v18  ;;  %2138 = vmatpush3.bf16.msra.mxu0 %v2364_v19  ;;  %v2391_v18 = vld [vmem:[%s3087_s1 + $0x178] sm:$0xff]   ;;  %v419_v19 = vshrl.u32 %v2600_v42, 16  ;;  %v440_v11 = vshll.u32 %v2667_v25, 16  ;;  %v535_v52 = vor.u32 %v534_v9, %v533_v8  ;;  %v479_v30 = vrot.slane %v2709_v49, 2 }
  0x31   : > { %1204 = vmatprep.mubr.bf16.mxu0 %v336_v28  ;;  %1277 = vmatprep.mubr.bf16.mxu1 %v396_v33  ;;  %v2394_v28 = vld [vmem:[%s3087_s1 + $0x1f8] sm:$0xff]   ;;  %v473_v33 = vrot.slane %v2600_v42, 2  ;;  %v472_v42 = vrot.slane %v1902_v31, 2  ;;  %v433_v3 = vrot.slane %v431_v62, 2  ;;  %v274_v31 = vld [vmem:[%s2576_s18 + $0x8] sm:$0x8] }
  0x32   : > { %2139 = vmatprep.subr.bf16.mxu0 %v2369_v26  ;;  %2184 = vmatpush3.bf16.msra.mxu1 %v2373_v34  ;;  %v421_v26 = vrot.slane %v419_v19, 1  ;;  %v2396_v34 = vld [vmem:[%s3087_s1 + $0x1b8] sm:$0xff]   ;;  %v1565_v19 = vld [vmem:[%s3090_s4] sm:$0xff]  ;;  %v442_v22 = vrot.slane %v440_v11, 2 }
  0x33   : > { %2185 = vmatprep.subr.bf16.mxu1 %v2376_v44  ;;  %1577 = vperm.xlu0 %2316, %v1565_v19   ;;  %v2402_v62 = vld [vmem:[%s3087_s1 + $0x220] sm:$0xff]   ;;  %v1572_v11 = vld [vmem:[%s3090_s4 + $0x38] sm:$0xff] }
  0x34   : > { %2140 = vmatpush3.bf16.msra.mxu0 %v2371_v38  ;;  %v270_v38 = vld [vmem:[%s2576_s18 + $0x8] sm:$0xc]  ;;  %v425_v44 = vor.u32 %v424_v29, %v421_v26 }
  0x35   : > { %2141 = vmatprep.subr.bf16.mxu0 %v2374_v39  ;;  %v525_v39 = vrot.slane %v329_v14, 2  ;;  %v1903_v41 = vcombine.low %v270_v38, %v2590_v36 }
  0x36   : > { %2186 = vmatpush3.bf16.msra.mxu1 %v2379_v51  ;;  %v498_v51 = vrot.slane %v2603_v46, 2 }
  0x37   : > { %1205 = vmatmul.mubr.bf16.gmra.mrb[8].mxu0 %v2603_v46  ;;  %2187 = vmatprep.subr.bf16.mxu1 %v2382_v59  ;;  %v518_v14 = vshrl.u32 %v1903_v41, 16  ;;  %v527_v50 = vor.u32 %v526_v35, %v525_v39  ;;  %v497_v54 = vrot.slane %v1903_v41, 2  ;;  %v529_v59 = vrot.slane %v337_v32, 2  ;;  %v2401_v35 = vld [vmem:[%s3087_s1 + $0x218] sm:$0xff]  }
  0x38   : > { %1278 = vmatmul.mubr.bf16.gmra.mrb[8].mxu1 %v368_v43  ;;  %2142 = vmatpush3.bf16.msra.mxu0 %v2375_v48  ;;  %v417_v43 = vor.u32 %v2739_v1, %v2734_v63  ;;  %v521_v48 = vshll.u32 %v1903_v41, 16  ;;  %v2398_v1 = vld [vmem:[%s3087_s1 + $0x200] sm:$0xff]   ;;  %v501_v26 = vsel %vm471_vm2, %v498_v51, %v500_v13 }
  0x39   : > { %1212 = vmatprep.mubr.bf16.mxu0 %v344_v53  ;;  %1285 = vmatprep.mubr.bf16.mxu1 %v398_v58  ;;  %v474_v53 = vsel %vm471_vm2, %v472_v42, %v473_v33  ;;  %v475_v58 = vrot.slane %v2631_v6, 2 }
  0x3a   : > { %2143 = vmatprep.subr.bf16.mxu0 %v2380_v55  ;;  %2188 = vmatpush3.bf16.msra.mxu1 %v2383_v61  ;;  %v428_v55 = vshrl.u32 %v2631_v6, 16  ;;  %v523_v57 = vrot.slane %v521_v48, 3  ;;  %v271_v61 = vld [vmem:[%s2576_s18 + $0x2c] sm:$0xf]  ;;  %v426_v63 = vsel %vm409_vm3, %v417_v43, %v425_v44  ;;  %v531_v6 = vor.u32 %v530_v60, %v529_v59 }
  0x3b   : > { %2189 = vmatprep.subr.bf16.mxu1 %v2385_v47  ;;  %v476_v32 = vsel %vm471_vm2, %v473_v33, %v475_v58  ;;  %v478_v29 = vsel %vm471_vm2, %v475_v58, %v477_v37  ;;  %v1567_v33 = vld [vmem:[%s3090_s4 + $0x10] sm:$0xff]  ;;  %v1907_v43 = vcombine.low %v274_v31, %v2590_v36  ;;  %v1566_v48 = vld [vmem:[%s3090_s4 + $0x8] sm:$0xff]  ;;  %v1568_v36 = vld [vmem:[%s3090_s4 + $0x18] sm:$0xff] }
  0x3c   : > { %2144 = vmatpush3.bf16.msra.mxu0 %v2381_v56  ;;  %v520_v56 = vrot.slane %v518_v14, 2  ;;  %v430_v47 = vrot.slane %v428_v55, 1  ;;  %v532_v17 = vsel %vm516_vm4, %v527_v50, %v531_v6  ;;  %1587 = vperm.xlu1 %2317, %v1567_v33   ;;  %v567_v14 = vrot.slane %v2629_v5, 3  ;;  %v1569_v55 = vld [vmem:[%s3090_s4 + $0x20] sm:$0xff] }
  0x3d   : > { %2145 = vmatprep.subr.bf16.mxu0 %v2384_v0  ;;  %1582 = vperm.xlu0 %2316, %v1566_v48   ;;  %v2410_v31 = vld [vmem:[%s3091_s5] sm:$0xff]  }
  0x3e   : > { %2190 = vmatpush3.bf16.msra.mxu1 %v2389_v10  ;;  %v524_v0 = vor.u32 %v523_v57, %v520_v56  ;;  %v437_v10 = vshrl.u32 %v2667_v25, 16  ;;  %v434_v12 = vor.u32 %v433_v3, %v430_v47  ;;  %v449_v25 = vshll.u32 %v2709_v49, 16  ;;  %v2404_v57 = vld [vmem:[%s2576_s18 + $0x2c] ss:$0 sps:$4 sm:$0x33]   ;;  %v1571_v3 = vld [vmem:[%s3090_s4 + $0x30] sm:$0xff] }
  0x3f   : > { %1213 = vmatmul.mubr.bf16.gmra.mrb[12].mxu0 %v2629_v5  ;;  %2191 = vmatprep.subr.bf16.mxu1 %v2390_v15  ;;  %v446_v15 = vshrl.u32 %v2709_v49, 16  ;;  %v1570_v47 = vld [vmem:[%s3090_s4 + $0x28] sm:$0xff]  ;;  %v458_v8 = vshll.u32 %v2404_v57, 16  ;;  %v481_v9 = vrot.slane %v2404_v57, 2  ;;  %v2408_v49 = vld [vmem:[%s3087_s1 + $0x238] sm:$0xff]  }
  0x40   : > { %1286 = vmatmul.mubr.bf16.gmra.mrb[12].mxu1 %v370_v2  ;;  %2146 = vmatpush3.bf16.msra.mxu0 %v2388_v7  ;;  %v499_v2 = vsel %vm471_vm2, %v497_v54, %v498_v51  ;;  %v528_v4 = vsel %vm516_vm4, %v524_v0, %v527_v50  ;;  %v2811_v7 = vcombine.low %v2703_v45, %v271_v61  ;;  %v2399_v45 = vld [vmem:[%s3087_s1 + $0x208] sm:$0xff]   ;;  %v451_v42 = vrot.slane %v449_v25, 2 }
  0x41   : > { %1293 = vmatprep.mubr.bf16.mxu1 %v400_v16  ;;  %1220 = vmatprep.mubr.bf16.mxu0 %v352_v20  ;;  %v2400_v20 = vld [vmem:[%s3087_s1 + $0x210] sm:$0xff]   ;;  %v448_v38 = vrot.slane %v446_v15, 1  ;;  %v569_v54 = vrot.slane %v2665_v24, 3  ;;  %v460_v15 = vrot.slane %v458_v8, 2 }
  0x42   : > { %2147 = vmatprep.subr.bf16.mxu0 %v2391_v18  ;;  %2192 = vmatpush3.bf16.msra.mxu1 %v2392_v21  ;;  %v538_v16 = vshrl.u32 %v2811_v7, 16  ;;  %v541_v18 = vshll.u32 %v2811_v7, 16  ;;  %v439_v21 = vrot.slane %v437_v10, 1 }
  0x43   : > { %2193 = vmatprep.subr.bf16.mxu1 %v2394_v28  ;;  %v2840_v28 = vld [vmem:[%s2576_s18 + $0x30] ss:$0 sps:$4 sm:$0x77]   ;;  %v2879_v58 = vsel %vm563_vm5, %v567_v14, %v569_v54  ;;  %1592 = vperm.xlu1 %2317, %v1568_v36  }
  0x44   : > { %2148 = vmatpush3.bf16.msra.mxu0 %v2393_v23  ;;  %v435_v23 = vsel %vm409_vm3, %v425_v44, %v434_v12  ;;  %v540_v39 = vrot.slane %v538_v16, 2  ;;  %v543_v41 = vrot.slane %v541_v18, 3  ;;  %v565_v44 = vrot.slane %v2603_v46, 3  ;;  %1597 = vperm.xlu0 %2316, %v1569_v55   ;;  %v2407_v16 = vld [vmem:[%s2576_s18 + $0x30] ss:$0 sps:$4 sm:$0x33]  }
  0x45   : > { %2247 = vmatprep.subr.bf16.mxu0 %v2431_v40  ;;  %v443_v50 = vor.u32 %v442_v22, %v439_v21  ;;  %v547_v51 = vshrl.u32 %v2840_v28, 16  ;;  %v564_v46 = vrot.slane %v1907_v43, 3  ;;  %v482_v18 = vsel %vm471_vm2, %v479_v30, %v481_v9  ;;  %v2416_v36 = vld [vmem:[%s3091_s5 + $0x30] sm:$0xff]   ;;  %s2304_s18 = smul.u32 40, %s3094_s22 }
  0x46   : > { %2194 = vmatpush3.bf16.msra.mxu1 %v2396_v34  ;;  %v536_v34 = vsel %vm516_vm4, %v531_v6, %v535_v52  ;;  %v2867_v5 = vsel %vm563_vm5, %v565_v44, %v567_v14  ;;  %v544_v56 = vor.u32 %v543_v41, %v540_v39  ;;  %v452_v6 = vor.u32 %v451_v42, %v448_v38 }
  0x47   : > { %1221 = vmatmul.mubr.bf16.gmra.mrb[16].mxu0 %v2665_v24  ;;  %2283 = vmatprep.subr.bf16.mxu1 %v2431_v40  ;;  %v566_v59 = vsel %vm563_vm5, %v564_v46, %v565_v44  ;;  %v444_v60 = vsel %vm409_vm3, %v434_v12, %v443_v50  ;;  %v506_v22 = vrot.slane %v2407_v16, 2  ;;  %s251_s17 = scalar_lea.vmem %s3092_s6, %s2304_s18 }
  0x48   : > { %1294 = vmatmul.mubr.bf16.gmra.mrb[16].mxu1 %v372_v27  ;;  %1334 = vmatprep.mubr.bf16.mxu0 %v474_v53  ;;  %v502_v27 = vrot.slane %v2665_v24, 2  ;;  %v550_v53 = vshll.u32 %v2840_v28, 16  ;;  %v545_v0 = vsel %vm516_vm4, %v535_v52, %v544_v56  ;;  %v453_v12 = vsel %vm409_vm3, %v443_v50, %v452_v6  ;;  %v2411_v24 = vld [vmem:[%s3091_s5 + $0x8] sm:$0xff]  }
  0x49   : > { %1407 = vmatprep.mubr.bf16.mxu1 %v528_v4  ;;  %v504_v4 = vrot.slane %v2811_v7, 2  ;;  %1602 = vperm.xlu1 %2317, %v1570_v47   ;;  %v2415_v50 = vld [vmem:[%s3091_s5 + $0x28] sm:$0xff]  }
  0x4a   : > { %v503_v61 = vsel %vm471_vm2, %v500_v13, %v502_v27  ;;  %1607 = vperm.xlu0 %2316, %v1571_v3  }
  0x4b   : > { %v505_v13 = vsel %vm471_vm2, %v502_v27, %v504_v4 }
  0x4d   : > { %1612 = vperm.xlu1 %2317, %v1572_v11  }
  0x4f   : > { %1335 = vmatmul.mubr.bf16.vlgmr.msra.gmra.mrb[20].mxu0 %v426_v63  ;;  %v480_v63 = vsel %vm471_vm2, %v477_v37, %v479_v30  ;;  %v2405_v37 = vld [vmem:[%s3087_s1 + $0x230] sm:$0xff]  }
  0x50   : > { %1408 = vmatmul.mubr.bf16.vlgmr.msra.gmra.mrb[20].mxu1 %v499_v2  ;;  %2248 = vmatpush3.bf16.msra.mxu0 %v2398_v1  ;;  %v549_v1 = vrot.slane %v547_v51, 2  ;;  %v552_v2 = vrot.slane %v550_v53, 3 }
  0x51   : > { %1342 = vmatprep.mubr.bf16.mxu0 %v476_v32  ;;  %2249 = vmatprep.subr.bf16.mxu0 %v2431_v40  ;;  %v2403_v32 = vld [vmem:[%s3087_s1 + $0x228] sm:$0xff]  }
  0x52   : > { %1415 = vmatprep.mubr.bf16.mxu1 %v532_v17  ;;  %v455_v17 = vshrl.u32 %v2404_v57, 16  ;;  %v553_v10 = vor.u32 %v552_v2, %v549_v1  ;;  %2284 = vmatpush3.bf16.msra.mxu1 %v2410_v31 }
  0x53   : > { %2285 = vmatprep.subr.bf16.mxu1 %v2431_v40 }
  0x54   : > { %2250 = vmatpush3.bf16.msra.mxu0 %v2399_v45  ;;  %v1573_v45 = vld [vmem:[%s3090_s4 + $0x40] sm:$0xff]  ;;  %v457_v52 = vrot.slane %v455_v17, 1  ;;  %v554_v19 = vsel %vm516_vm4, %v544_v56, %v553_v10 }
  0x55   : > { %2251 = vmatprep.subr.bf16.mxu0 %v2431_v40  ;;  %1617 = vperm.xlu0 %2316, %v1573_v45  }
  0x56   : > { %v461_v21 = vor.u32 %v460_v15, %v457_v52  ;;  %2286 = vmatpush3.bf16.msra.mxu1 %v2411_v24 }
  0x57   : > { %1343 = vmatmul.mubr.bf16.gmra.mrb[24].mxu0 %v435_v23  ;;  %v507_v23 = vsel %vm471_vm2, %v504_v4, %v506_v22  ;;  %2287 = vmatprep.subr.bf16.mxu1 %v2431_v40 }
  0x58   : > { %1416 = vmatmul.mubr.bf16.gmra.mrb[24].mxu1 %v501_v26  ;;  %2252 = vmatpush3.bf16.msra.mxu0 %v2400_v20  ;;  %v1574_v20 = vld [vmem:[%s3090_s4 + $0x48] sm:$0xff]  ;;  %v462_v25 = vsel %vm409_vm3, %v452_v6, %v461_v21  ;;  %v571_v26 = vrot.slane %v2811_v7, 3  ;;  %v2412_v7 = vld [vmem:[%s3091_s5 + $0x10] sm:$0xff]  }
  0x59   : > { %1350 = vmatprep.mubr.bf16.mxu0 %v478_v29  ;;  %2253 = vmatprep.subr.bf16.mxu0 %v2431_v40  ;;  %v573_v29 = vrot.slane %v2840_v28, 3  ;;  %v2413_v28 = vld [vmem:[%s3091_s5 + $0x18] sm:$0xff]  }
  0x5a   : > { %1423 = vmatprep.mubr.bf16.mxu1 %v536_v34  ;;  %1622 = vperm.xlu1 %2317, %v1574_v20   ;;  %v572_v27 = vsel %vm563_vm5, %v569_v54, %v571_v26  ;;  %v2414_v34 = vld [vmem:[%s3091_s5 + $0x20] sm:$0xff]  }
  0x5b   : > { %v574_v30 = vsel %vm563_vm5, %v571_v26, %v573_v29  ;;  %2288 = vmatpush3.bf16.msra.mxu1 %v2412_v7 }
  0x5c   : > { %2254 = vmatpush3.bf16.msra.mxu0 %v2401_v35  ;;  %2289 = vmatprep.subr.bf16.mxu1 %v2431_v40 }
  0x5d   : > { %2255 = vmatprep.subr.bf16.mxu0 %v2431_v40 }
  0x5f   : > { %1351 = vmatmul.mubr.bf16.gmra.mrb[28].mxu0 %v444_v60  ;;  %2290 = vmatpush3.bf16.msra.mxu1 %v2413_v28 }
  0x60   : > { %1424 = vmatmul.mubr.bf16.gmra.mrb[28].mxu1 %v503_v61  ;;  %2256 = vmatpush3.bf16.msra.mxu0 %v2402_v62 }
  0x61   : > { %1358 = vmatprep.mubr.bf16.mxu0 %v480_v63  ;;  %1431 = vmatprep.mubr.bf16.mxu1 %v545_v0 }
  0x62   : > { %2257 = vmatprep.subr.bf16.mxu0 %v2431_v40  ;;  %2291 = vmatprep.subr.bf16.mxu1 %v2431_v40 }
  0x63   : > { %2292 = vmatpush3.bf16.msra.mxu1 %v2414_v34 }
  0x64   : > { %2258 = vmatpush3.bf16.msra.mxu0 %v2403_v32  ;;  %2293 = vmatprep.subr.bf16.mxu1 %v2431_v40 }
  0x65   : > { %2259 = vmatprep.subr.bf16.mxu0 %v2431_v40 }
  0x67   : > { %1359 = vmatmul.mubr.bf16.gmra.mrb[32].mxu0 %v453_v12  ;;  %2294 = vmatpush3.bf16.msra.mxu1 %v2415_v50 }
  0x68   : > { %1432 = vmatmul.mubr.bf16.gmra.mrb[32].mxu1 %v505_v13  ;;  %1366 = vmatprep.mubr.bf16.mxu0 %v482_v18 }
  0x69   : > { %2260 = vmatpush3.bf16.msra.mxu0 %v2405_v37  ;;  %1439 = vmatprep.mubr.bf16.mxu1 %v554_v19 }
  0x6a   : > { %2261 = vmatprep.subr.bf16.mxu0 %v2431_v40  ;;  %2295 = vmatprep.subr.bf16.mxu1 %v2431_v40 }
  0x6b   : > { %2296 = vmatpush3.bf16.msra.mxu1 %v2416_v36 }
  0x6c   : > { %2297 = vmatprep.subr.bf16.mxu1 %v2431_v40 }
  0x6d   : > { %2262 = vmatpush3.bf16.msra.mxu0 %v2408_v49 }
  0x6f   : > { %1367 = vmatmul.mubr.bf16.gmra.mrb[36].mxu0 %v462_v25 }
  0x70   : > { %1440 = vmatmul.mubr.bf16.gmra.mrb[36].mxu1 %v507_v23  ;;  %2263 = vmatprep.mubr.msk.bf16.mxu0 %vm2432_vm6, %v2431_v40 }
  0x71   : > { %2299 = vmatprep.mubr.msk.bf16.mxu1 %vm2432_vm6, %v2431_v40 }
  0x77   : > { %2264 = vmatmul.mubr.bf16.vlgmr.msra.gmra.mrb[40].mxu0 %v566_v59 }
  0x78   : > { %2267 = vmatprep.mubr.msk.bf16.mxu0 %vm2432_vm6, %v2431_v40 }
  0x7f   : > { %2268 = vmatmul.mubr.bf16.gmra.mrb[44].mxu0 %v2867_v5 }
  0x80   : > { %2271 = vmatprep.mubr.msk.bf16.mxu0 %vm2432_vm6, %v2431_v40 }
  0x87   : > { %2272 = vmatmul.mubr.bf16.gmra.mrb[48].mxu0 %v2879_v58  ;;  %v2417_v58 = vld [vmem:[%s3091_s5 + $0x38] sm:$0xff]  }
  0x88   : > { %2275 = vmatprep.mubr.msk.bf16.mxu0 %vm2432_vm6, %v2431_v40  ;;  %2298 = vmatpush3.bf16.msra.mxu1 %v2417_v58 }
  0x8f   : > { %2276 = vmatmul.mubr.bf16.gmra.mrb[52].mxu0 %v572_v27 }
  0x90   : > { %2279 = vmatprep.mubr.msk.bf16.mxu0 %vm2432_vm6, %v2431_v40 }
  0x97   : > { %2280 = vmatmul.mubr.bf16.gmra.mrb[56].mxu0 %v574_v30 }
  0xfa   : > { %v2057_v39 = vpop.f32.mrb[0].mxu0 }
  0xfb   : > { %v2103_v33 = vpop.f32.mrb[0].mxu1  ;;  %v2058_v42 = vpop.f32.mrb[1].mxu0 }
  0xfc   : > { %v2104_v38 = vpop.f32.mrb[1].mxu1  ;;  %v2059_v44 = vadd.f32 %v2058_v42, %v2057_v39  ;;  %v2060_v14 = vpop.f32.mrb[2].mxu0 }
  0xfd   : > { %v2105_v41 = vadd.f32 %v2104_v38, %v2103_v33  ;;  %v2106_v35 = vpop.f32.mrb[2].mxu1  ;;  %v2061_v51 = vpop.f32.mrb[3].mxu0 }
  0xfe   : > { %v2107_v43 = vpop.f32.mrb[3].mxu1  ;;  %v2062_v54 = vadd.f32 %v2061_v51, %v2060_v14 }
  0xff   : > { %v2108_v48 = vadd.f32 %v2107_v43, %v2106_v35  ;;  %v2967_v53 = vadd.f32 %v2105_v41, %v2059_v44 }
 0x101   : > { %v2973_v46 = vadd.f32 %v2108_v48, %v2062_v54 }
 0x102   : > { %v2063_v62 = vpop.f32.mrb[4].mxu0 }
 0x103   : > { %v2109_v5 = vpop.f32.mrb[4].mxu1  ;;  %v2064_v59 = vpop.f32.mrb[5].mxu0 }
 0x104   : > { %v2110_v55 = vpop.f32.mrb[5].mxu1  ;;  %v2065_v61 = vadd.f32 %v2064_v59, %v2063_v62  ;;  %v2066_v63 = vpop.f32.mrb[6].mxu0 }
 0x105   : > { %v2111_v56 = vadd.f32 %v2110_v55, %v2109_v5  ;;  %v2112_v57 = vpop.f32.mrb[6].mxu1  ;;  %v2067_v1 = vpop.f32.mrb[7].mxu0 }
 0x106   : > { %v2113_v60 = vpop.f32.mrb[7].mxu1  ;;  %v2068_v47 = vadd.f32 %v2067_v1, %v2066_v63 }
 0x107   : > { %v2114_v0 = vadd.f32 %v2113_v60, %v2112_v57  ;;  %v2979_v2 = vadd.f32 %v2111_v56, %v2065_v61 }
 0x109   : > { %v2981_v3 = vadd.f32 %v2114_v0, %v2068_v47 }
 0x10a   : > { %v2069_v32 = vpop.f32.mrb[8].mxu0 }
 0x10b   : > { %v2115_v6 = vpop.f32.mrb[8].mxu1  ;;  %v2070_v9 = vpop.f32.mrb[9].mxu0 }
 0x10c   : > { %v2116_v4 = vpop.f32.mrb[9].mxu1  ;;  %v2071_v11 = vadd.f32 %v2070_v9, %v2069_v32  ;;  %v2072_v45 = vpop.f32.mrb[10].mxu0 }
 0x10d   : > { %v2117_v17 = vadd.f32 %v2116_v4, %v2115_v6  ;;  %v2118_v8 = vpop.f32.mrb[10].mxu1  ;;  %v2073_v12 = vpop.f32.mrb[11].mxu0 }
 0x10e   : > { %v2119_v10 = vpop.f32.mrb[11].mxu1  ;;  %v2074_v37 = vadd.f32 %v2073_v12, %v2072_v45 }
 0x10f   : > { %v2120_v40 = vadd.f32 %v2119_v10, %v2118_v8  ;;  %v2983_v13 = vadd.f32 %v2117_v17, %v2071_v11 }
 0x111   : > { %v2985_v52 = vadd.f32 %v2120_v40, %v2074_v37 }
 0x112   : > { %v2075_v18 = vpop.f32.mrb[12].mxu0 }
 0x113   : > { %v2121_v15 = vpop.f32.mrb[12].mxu1  ;;  %v2076_v21 = vpop.f32.mrb[13].mxu0 }
 0x114   : > { %v2122_v16 = vpop.f32.mrb[13].mxu1  ;;  %v2077_v49 = vadd.f32 %v2076_v21, %v2075_v18  ;;  %v2078_v25 = vpop.f32.mrb[14].mxu0 }
 0x115   : > { %v2123_v19 = vadd.f32 %v2122_v16, %v2121_v15  ;;  %v2124_v20 = vpop.f32.mrb[14].mxu1  ;;  %v2079_v26 = vpop.f32.mrb[15].mxu0 }
 0x116   : > { %v2125_v22 = vpop.f32.mrb[15].mxu1  ;;  %v2080_v29 = vadd.f32 %v2079_v26, %v2078_v25 }
 0x117   : > { %v2126_v23 = vadd.f32 %v2125_v22, %v2124_v20  ;;  %v2987_v27 = vadd.f32 %v2123_v19, %v2077_v49 }
 0x119   : > { %v2989_v30 = vadd.f32 %v2126_v23, %v2080_v29 }
 0x11a   : > { %v2081_v7 = vpop.f32.mrb[16].mxu0 }
 0x11b   : > { %v2127_v31 = vpop.f32.mrb[16].mxu1  ;;  %v2082_v34 = vpop.f32.mrb[17].mxu0 }
 0x11c   : > { %v2128_v24 = vpop.f32.mrb[17].mxu1  ;;  %v2083_v39 = vadd.f32 %v2082_v34, %v2081_v7  ;;  %v2084_v41 = vpop.f32.mrb[18].mxu0 }
 0x11d   : > { %v2129_v28 = vadd.f32 %v2128_v24, %v2127_v31  ;;  %v2130_v33 = vpop.f32.mrb[18].mxu1  ;;  %v2085_v42 = vpop.f32.mrb[19].mxu0 }
 0x11e   : > { %v2131_v38 = vpop.f32.mrb[19].mxu1  ;;  %v2086_v44 = vadd.f32 %v2085_v42, %v2084_v41 }
 0x11f   : > { %v2132_v35 = vadd.f32 %v2131_v38, %v2130_v33  ;;  %v2991_v43 = vadd.f32 %v2129_v28, %v2083_v39 }
 0x121   : > { %v2993_v14 = vadd.f32 %v2132_v35, %v2086_v44 }
 0x122   : > { %v2149_v48 = vpop.f32.mrb[20].mxu0 }
 0x123   : > { %v2195_v50 = vpop.f32.mrb[20].mxu1  ;;  %v2150_v51 = vpop.f32.mrb[21].mxu0 }
 0x124   : > { %v2196_v54 = vpop.f32.mrb[21].mxu1  ;;  %v2151_v36 = vadd.f32 %v2150_v51, %v2149_v48  ;;  %v2152_v5 = vpop.f32.mrb[22].mxu0 }
 0x125   : > { %v2197_v55 = vadd.f32 %v2196_v54, %v2195_v50  ;;  %v2198_v62 = vpop.f32.mrb[22].mxu1  ;;  %v2153_v56 = vpop.f32.mrb[23].mxu0 }
 0x126   : > { %v2199_v57 = vpop.f32.mrb[23].mxu1  ;;  %v1337_v58 = vadd.f32 %v2151_v36, %v2967_v53  ;;  %v2154_v59 = vadd.f32 %v2153_v56, %v2152_v5 }
 0x127   : > { %v2200_v60 = vadd.f32 %v2199_v57, %v2198_v62 }
 0x128   : > { %v1340_v61 = vadd.f32 %v2154_v59, %v2973_v46  ;;  %v2997_v63 = vadd.f32 %v2197_v55, %v1337_v58 }
 0x12a   : > { %v2155_v0 = vpop.f32.mrb[24].mxu0  ;;  %v2999_v47 = vadd.f32 %v2200_v60, %v1340_v61 }
 0x12b   : > { %v2201_v1 = vpop.f32.mrb[24].mxu1  ;;  %v2156_v6 = vpop.f32.mrb[25].mxu0 }
 0x12c   : > { %v2202_v4 = vpop.f32.mrb[25].mxu1  ;;  %v2157_v32 = vadd.f32 %v2156_v6, %v2155_v0  ;;  %v2158_v17 = vpop.f32.mrb[26].mxu0 }
 0x12d   : > { %v2203_v8 = vadd.f32 %v2202_v4, %v2201_v1  ;;  %v2204_v9 = vpop.f32.mrb[26].mxu1  ;;  %v2159_v10 = vpop.f32.mrb[27].mxu0 }
 0x12e   : > { %v2205_v11 = vpop.f32.mrb[27].mxu1  ;;  %v1345_v53 = vadd.f32 %v2157_v32, %v2979_v2  ;;  %v2160_v45 = vadd.f32 %v2159_v10, %v2158_v17 }
 0x12f   : > { %v2206_v40 = vadd.f32 %v2205_v11, %v2204_v9 }
 0x130   : > { %v1348_v46 = vadd.f32 %v2160_v45, %v2981_v3  ;;  %v1418_v12 = vadd.f32 %v2203_v8, %v1345_v53 }
 0x132   : > { %v2161_v37 = vpop.f32.mrb[28].mxu0  ;;  %v3003_v16 = vadd.f32 %v2206_v40, %v1348_v46  ;;  %v3033_v40 = vld [vmem:[%s3089_s3] ss:$0 sm:$0xff] }
 0x133   : > { %v2207_v15 = vpop.f32.mrb[28].mxu1  ;;  %v2162_v18 = vpop.f32.mrb[29].mxu0 }
 0x134   : > { %v2208_v19 = vpop.f32.mrb[29].mxu1  ;;  %v2163_v20 = vadd.f32 %v2162_v18, %v2161_v37  ;;  %v2164_v21 = vpop.f32.mrb[30].mxu0 }
 0x135   : > { %v2209_v22 = vadd.f32 %v2208_v19, %v2207_v15  ;;  %v2210_v49 = vpop.f32.mrb[30].mxu1  ;;  %v2165_v25 = vpop.f32.mrb[31].mxu0 }
 0x136   : > { %v2211_v23 = vpop.f32.mrb[31].mxu1  ;;  %v1353_v26 = vadd.f32 %v2163_v20, %v2983_v13  ;;  %v2166_v2 = vadd.f32 %v2165_v25, %v2164_v21  ;;  %v1578_v37 = vpop.permute.xlu0 %1577 }
 0x137   : > { %v2212_v29 = vadd.f32 %v2211_v23, %v2210_v49 }
 0x138   : > { %v1356_v31 = vadd.f32 %v2166_v2, %v2985_v52  ;;  %v1426_v3 = vadd.f32 %v2209_v22, %v1353_v26 }
 0x13a   : > { %v2167_v24 = vpop.f32.mrb[32].mxu0  ;;  %v3007_v28 = vadd.f32 %v2212_v29, %v1356_v31  ;;  %v1583_v26 = vpop.permute.xlu0 %1582 }
 0x13b   : > { %v2213_v7 = vpop.f32.mrb[32].mxu1  ;;  %v2168_v33 = vpop.f32.mrb[33].mxu0 }
 0x13c   : > { %v2214_v34 = vpop.f32.mrb[33].mxu1  ;;  %v2169_v38 = vadd.f32 %v2168_v33, %v2167_v24  ;;  %v2170_v39 = vpop.f32.mrb[34].mxu0 }
 0x13d   : > { %v2215_v41 = vadd.f32 %v2214_v34, %v2213_v7  ;;  %v2216_v35 = vpop.f32.mrb[34].mxu1  ;;  %v2171_v42 = vpop.f32.mrb[35].mxu0 }
 0x13e   : > { %v2217_v44 = vpop.f32.mrb[35].mxu1  ;;  %v1361_v48 = vadd.f32 %v2169_v38, %v2987_v27  ;;  %v2172_v13 = vadd.f32 %v2171_v42, %v2170_v39  ;;  %v1588_v7 = vpop.permute.xlu1 %1587 }
 0x13f   : > { %v2218_v50 = vadd.f32 %v2217_v44, %v2216_v35 }
 0x140   : > { %v1364_v51 = vadd.f32 %v2172_v13, %v2989_v30  ;;  %v3011_v52 = vadd.f32 %v2215_v41, %v1361_v48 }
 0x142   : > { %v2173_v54 = vpop.f32.mrb[36].mxu0  ;;  %v3013_v5 = vadd.f32 %v2218_v50, %v1364_v51  ;;  %v1593_v51 = vpop.permute.xlu1 %1592 }
 0x143   : > { %v2219_v36 = vpop.f32.mrb[36].mxu1  ;;  %v2174_v55 = vpop.f32.mrb[37].mxu0 }
 0x144   : > { %v2220_v62 = vpop.f32.mrb[37].mxu1  ;;  %v2175_v56 = vadd.f32 %v2174_v55, %v2173_v54  ;;  %v2176_v57 = vpop.f32.mrb[38].mxu0 }
 0x145   : > { %v2221_v58 = vadd.f32 %v2220_v62, %v2219_v36  ;;  %v2222_v59 = vpop.f32.mrb[38].mxu1  ;;  %v2177_v60 = vpop.f32.mrb[39].mxu0 }
 0x146   : > { %v2223_v61 = vpop.f32.mrb[39].mxu1  ;;  %v1369_v27 = vadd.f32 %v2175_v56, %v2991_v43  ;;  %v2178_v0 = vadd.f32 %v2177_v60, %v2176_v57  ;;  %v3026_v43 = vld [vmem:[%s3088_s2] ss:$0 sm:$0xff]  ;;  %v1598_v56 = vpop.permute.xlu0 %1597 }
 0x147   : > { %v2224_v1 = vadd.f32 %v2223_v61, %v2222_v59 }
 0x148   : > { %v1372_v30 = vadd.f32 %v2178_v0, %v2993_v14  ;;  %v3017_v6 = vadd.f32 %v2221_v58, %v1369_v27 }
 0x14a   : > { %v1482_v4 = vpop.f32.mrb[40].mxu0  ;;  %v3019_v32 = vadd.f32 %v2224_v1, %v1372_v30 }
 0x14b   : > { %v1483_v17 = vadd.f32 %v1482_v4, %v2997_v63  ;;  %v2265_v8 = vpop.f32.mrb[41].mxu0  ;;  %v1603_v4 = vpop.permute.xlu1 %1602 }
 0x14c   : > { %v1485_v9 = vpop.f32.mrb[42].mxu0 }
 0x14d   : > { %v1486_v10 = vadd.f32 %v1485_v9, %v2999_v47  ;;  %v2266_v11 = vpop.f32.mrb[43].mxu0  ;;  %v1528_v14 = vmul.f32 %v3026_v43, %v1483_v17 }
 0x14f   : > { %v1529_v53 = vmul.f32 %v3026_v43, %v1486_v10  ;;  %v1545_v21 = vadd.f32 %v3033_v40, %v1528_v14  ;;  %v1608_v10 = vpop.permute.xlu0 %1607 }
 0x151   : > { %v1546_v18 = vadd.f32 %v3033_v40, %v1529_v53  ;;  %v1555_v23 = vmax.f32 %v1545_v21, 0.0 }
 0x152   : > { %v1490_v45 = vpop.f32.mrb[44].mxu0 }
 0x153   : > { %v1491_v63 = vadd.f32 %v1490_v45, %v1418_v12  ;;  %v2269_v46 = vpop.f32.mrb[45].mxu0  ;;  %v1556_v25 = vmax.f32 %v1546_v18, 0.0  ;;  %v3046_v41 = vmul.f32 %v1578_v37, %v1555_v23  ;;  %v1613_v18 = vpop.permute.xlu1 %1612 }
 0x154   : > { %v1493_v47 = vpop.f32.mrb[46].mxu0  ;;  %v1618_v23 = vpop.permute.xlu0 %1617 }
 0x155   : > { %v1530_v15 = vmul.f32 %v3026_v43, %v1491_v63  ;;  %v1494_v19 = vadd.f32 %v1493_v47, %v3003_v16  ;;  %v2270_v20 = vpop.f32.mrb[47].mxu0  ;;  %v3042_v34 = vmul.f32 %v1583_v26, %v1556_v25 }
 0x157   : > { %v1531_v22 = vmul.f32 %v3026_v43, %v1494_v19  ;;  %v1547_v49 = vadd.f32 %v3033_v40, %v1530_v15 }
 0x159   : > { %v1557_v2 = vmax.f32 %v1547_v49, 0.0  ;;  %v1548_v29 = vadd.f32 %v3033_v40, %v1531_v22 }
 0x15a   : > { %v1498_v12 = vpop.f32.mrb[48].mxu0 }
 0x15b   : > { %v1499_v31 = vadd.f32 %v1498_v12, %v1426_v3  ;;  %v2273_v24 = vpop.f32.mrb[49].mxu0  ;;  %v3048_v35 = vmul.f32 %v1588_v7, %v1557_v2  ;;  %v1558_v42 = vmax.f32 %v1548_v29, 0.0  ;;  %v1635_v3 = vadd.f32 %v3042_v34, %v3046_v41  ;;  %v1623_v2 = vpop.permute.xlu1 %1622 }
 0x15c   : > { %v1501_v33 = vpop.f32.mrb[50].mxu0 }
 0x15d   : > { %v1532_v16 = vmul.f32 %v3026_v43, %v1499_v31  ;;  %v1502_v38 = vadd.f32 %v1501_v33, %v3007_v28  ;;  %v2274_v39 = vpop.f32.mrb[51].mxu0  ;;  %v1636_v28 = vadd.f32 %v1635_v3, %v3048_v35  ;;  %v3056_v36 = vmul.f32 %v1593_v51, %v1558_v42 }
 0x15f   : > { %v1549_v44 = vadd.f32 %v3033_v40, %v1532_v16  ;;  %v1533_v48 = vmul.f32 %v3026_v43, %v1502_v38  ;;  %v1637_v0 = vadd.f32 %v1636_v28, %v3056_v36  ;;  %v1762_v28 = vlaneseq }
 0x161   : > { %v1559_v13 = vmax.f32 %v1549_v44, 0.0  ;;  %v1550_v50 = vadd.f32 %v3033_v40, %v1533_v48 }
 0x162   : > { %v1506_v54 = vpop.f32.mrb[52].mxu0 }
 0x163   : > { %v1507_v55 = vadd.f32 %v1506_v54, %v3011_v52  ;;  %v2277_v62 = vpop.f32.mrb[53].mxu0  ;;  %v1560_v58 = vmax.f32 %v1550_v50, 0.0  ;;  %v3059_v59 = vmul.f32 %v1598_v56, %v1559_v13 }
 0x164   : > { %v1509_v57 = vpop.f32.mrb[54].mxu0 }
 0x165   : > { %v1534_v60 = vmul.f32 %v3026_v43, %v1507_v55  ;;  %v1510_v61 = vadd.f32 %v1509_v57, %v3013_v5  ;;  %v2278_v27 = vpop.f32.mrb[55].mxu0  ;;  %v1630_v17 = vmul.f32 %v1603_v4, %v1560_v58  ;;  %v1638_v52 = vadd.f32 %v1637_v0, %v3059_v59 }
 0x166   : > { %v1763_v55 = vshrl.u32 %v1762_v28, 7 }
 0x167   : > { %v1551_v1 = vadd.f32 %v3033_v40, %v1534_v60  ;;  %v1535_v30 = vmul.f32 %v3026_v43, %v1510_v61  ;;  %v1639_v46 = vadd.f32 %v1638_v52, %v1630_v17 }
 0x168   : > { %v1764_v62 = vsub.s32 0, %v1763_v55 }
 0x169   : > { %v1561_v8 = vmax.f32 %v1551_v1, 0.0  ;;  %v1552_v9 = vadd.f32 %v3033_v40, %v1535_v30 }
 0x16a   : > { %v1514_v11 = vpop.f32.mrb[56].mxu0 }
 0x16b   : > { %v1631_v53 = vmul.f32 %v1608_v10, %v1561_v8  ;;  %v1562_v14 = vmax.f32 %v1552_v9, 0.0  ;;  %v1515_v5 = vadd.f32 %v1514_v11, %v3017_v6  ;;  %v2281_v45 = vpop.f32.mrb[57].mxu0 }
 0x16c   : > { %v1517_v63 = vpop.f32.mrb[58].mxu0 }
 0x16d   : > { %v1536_v37 = vmul.f32 %v3026_v43, %v1515_v5  ;;  %v1518_v47 = vadd.f32 %v1517_v63, %v3019_v32  ;;  %v2282_v15 = vpop.f32.mrb[59].mxu0  ;;  %v1640_v19 = vadd.f32 %v1639_v46, %v1631_v53  ;;  %v1632_v20 = vmul.f32 %v1613_v18, %v1562_v14 }
 0x16f   : > { %v1553_v21 = vadd.f32 %v3033_v40, %v1536_v37  ;;  %v1537_v22 = vmul.f32 %v3026_v43, %v1518_v47  ;;  %v1641_v6 = vadd.f32 %v1640_v19, %v1632_v20 }
 0x171   : > { %v1563_v49 = vmax.f32 %v1553_v21, 0.0  ;;  %v1554_v25 = vadd.f32 %v3033_v40, %v1537_v22 }
 0x173   : > { %v1633_v26 = vmul.f32 %v1618_v23, %v1563_v49  ;;  %v1564_v12 = vmax.f32 %v1554_v25, 0.0 }
 0x175   : > { %v1642_v29 = vadd.f32 %v1641_v6, %v1633_v26  ;;  %v1634_v31 = vmul.f32 %v1623_v2, %v1564_v12 }
 0x177   : > { %v1643_v24 = vadd.f32 %v1642_v29, %v1634_v31 }
 0x179   : > { %v1644_v32 = vrot.slane %v1643_v24, 4 }
 0x17b   : > { %v1645_v7 = vadd.f32 %v1644_v32, %v1643_v24 }
 0x17d   : > { %v1646_v33 = vrot.slane %v1645_v7, 2 }
 0x17f   : > { %v1647_v16 = vadd.f32 %v1646_v33, %v1645_v7 }
 0x181   : > { %v1648_v38 = vrot.slane %v1647_v16, 1 }
 0x183   : > { %v1649_v39 = vadd.f32 %v1648_v38, %v1647_v16 }
 0x185   : > { %v1650_v42 = vmul.f32 0.015625, %v1649_v39 }
 0x187   : > { %v1651_v44 = vpack.c.bf16 %v1650_v42, %v1650_v42 }
 0x189   : > { %2300 = vmatmul.mubr.bf16.vlgmr.msra.gmra.mrb[40].mxu1 %v1651_v44 }
 0x25c   : > { %v1750_v43 = vpop.f32.mrb[40].mxu1 }
 0x25d   : > { %v1756_v40 = vsub.f32 0.0, %v1750_v43  ;;  %v2301_v48 = vpop.f32.mrb[41].mxu1 }
 0x25e   : > { %v1753_v3 = vpop.f32.mrb[42].mxu1 }
 0x25f   : > { %v1757_v13 = vmul.f32 1.442695, %v1756_v40  ;;  %v2302_v50 = vpop.f32.mrb[43].mxu1 }
 0x261   : > { %2418 = vpow2.f32 %v1757_v13 }
 0x26b   : > { %v2419_v51 = vpop.eup %2418 }
 0x26c   : > { %v1759_v54 = vadd.f32 1.0, %v2419_v51 }
 0x26e   : > { %2420 = vrcp.f32 %v1759_v54 }
 0x278   : > { %v2421_v56 = vpop.eup %2420 }
 0x279   : > { %v1765_v57 = vrot.slane %v2421_v56, %v1764_v62 }
 0x27b   : > { %v1766_v58 = vmul.f32 %v1765_v57, %v3046_v41  ;;  %v1767_v60 = vmul.f32 %v1765_v57, %v3042_v34  ;;  %v1768_v61 = vmul.f32 %v1765_v57, %v3048_v35  ;;  %v1769_v27 = vmul.f32 %v1765_v57, %v3056_v36 }
 0x27c   : > { %v1770_v0 = vmul.f32 %v1765_v57, %v3059_v59  ;;  %v1771_v1 = vmul.f32 %v1765_v57, %v1630_v17  ;;  %v1772_v30 = vmul.f32 %v1765_v57, %v1631_v53  ;;  %v1773_v4 = vmul.f32 %v1765_v57, %v1632_v20 }
 0x27d   : > { %v1774_v52 = vmul.f32 %v1765_v57, %v1633_v26  ;;  %v1775_v8 = vmul.f32 %v1765_v57, %v1634_v31  ;;  %v2015_v9 = vpack.c.bf16 %v1767_v60, %v1766_v58  ;;  %v2020_v10 = vpack.c.bf16 %v1769_v27, %v1768_v61 }
 0x27e   : > { %v2025_v41 = vpack.c.bf16 %v1771_v1, %v1770_v0  ;;  %v2030_v11 = vpack.c.bf16 %v1773_v4, %v1772_v30 }
 0x27f   : > { %2016 = vst [vmem:[%s251_s17] sm:$0xff] %v2015_v9   ;;  %2037 = vst [vmem:[%s251_s17 + $0x8] sm:$0xff] %v2020_v10   ;;  %v2035_v34 = vpack.c.bf16 %v1775_v8, %v1774_v52 }
 0x280   : > { %2038 = vst [vmem:[%s251_s17 + $0x10] sm:$0xff] %v2025_v41   ;;  %2039 = vst [vmem:[%s251_s17 + $0x18] sm:$0xff] %v2030_v11  }
 0x281   : > { %2040 = vst [vmem:[%s251_s17 + $0x20] sm:$0xff] %v2035_v34  }
 0x282 PF: > { %s16_s21 = sadd.s32 1, %s2428_s21  }
 0x283   : > { %p13_p4 = scmp.ge.s32.totalorder %s16_s21, 4  }
 0x285   :  { %15 = sbr.rel (!%p13_p4) target bundleno = 1 (0x1), region = 74 }

// kernel: _lambda_.18
= control target key start
LH: loop header
LB: loop body
LE: loop exit
PB: predicated region body
PF: predicated region fallthrough
CT: control target
= control target key end

     0   :  { %s1889_s21 = smov 0   ;;  %s2216_s0 = inlined_call_operand.vmem [shape: bf16[2,48,128], index: 0, kind: input, shape index: {}]   ;;  %s2217_s1 = inlined_call_operand.vmem [shape: bf16[1152,128], index: 1, kind: input, shape index: {}]   ;;  %s2218_s2 = inlined_call_operand.vmem [shape: f32[1,128], index: 2, kind: input, shape index: {}]   ;;  %s2219_s3 = inlined_call_operand.vmem [shape: f32[1,128], index: 3, kind: input, shape index: {}]   ;;  %s2220_s4 = inlined_call_operand.vmem [shape: f32[24,1], index: 4, kind: input, shape index: {}]   ;;  %s2221_s5 = inlined_call_operand.vmem [shape: bf16[128,128], index: 5, kind: input, shape index: {}]   ;;  %s2222_s6 = inlined_call_operand.vmem [shape: bf16[2,24,128], index: 6, kind: output, shape index: {}]  }
   0x1 LB: > { %s1445_s22 = sadd.s32 4294967295, %s1849_s21   ;;  %p1449_p0 = scmp.ge.s32.totalorder %s1849_s21, 1  ;;  %s1849_s21 = sphi %s1889_s21, %s16_s21  }
   0x2   : > { %p212_p1 = scmp.lt.s32.totalorder %s1849_s21, 3 }
   0x4   : > { %p213_p2 = pnand %p1449_p0, %p212_p1 }
   0x5   : > { %v1746_v0 = vld [vmem:[%s2217_s1 + $0x40] sm:$0xff] (!%p213_p2)   ;;  %v1750_v4 = vld [vmem:[%s2217_s1 + $0x48] sm:$0xff] (!%p213_p2)   ;;  %v1851_v8 = vmov (!%p213_p2), 0   ;;  %v1754_v9 = vld [vmem:[%s2217_s1 + $0x50] sm:$0xff] (!%p213_p2)   ;;  %p242_p3 = scmp.lt.s32.totalorder (!%p213_p2), %s1445_s22, 1  ;;  %vm311_vm0 = vcmask (!%p213_p2), 1044480  }
   0x6   : > { %216 = sbr.rel (%p213_p2) target bundleno = 595 (0x253), region = 44  ;;  %v1747_v1 = vld [vmem:[%s2217_s1 + $0xc0] sm:$0xff] (!%p213_p2)   ;;  %1560 = vmatprep.subr.bf16.mxu0 (!%p213_p2), %v1746_v0  ;;  %v1751_v5 = vld [vmem:[%s2217_s1 + $0xc8] sm:$0xff] (!%p213_p2)   ;;  %1744 = vset.pattern.permute.xlu0 (!%p213_p2), %v1851_v8  ;;  %v1755_v10 = vld [vmem:[%s2217_s1 + $0xd0] sm:$0xff] (!%p213_p2)   ;;  %vm299_vm1 = vcmask (!%p213_p2), 1046528   ;;  %vm350_vm4 = vcmask (!%p213_p2), 1045504  }
   0x7   : > { %v1748_v2 = vld [vmem:[%s2217_s1] sm:$0xff] (!%p213_p2)   ;;  %1588 = vmatprep.subr.bf16.mxu1 (!%p213_p2), %v1747_v1  ;;  %v1752_v6 = vld [vmem:[%s2217_s1 + $0x8] sm:$0xff] (!%p213_p2)   ;;  %1745 = vset.pattern.permute.xlu1 (!%p213_p2), %v1851_v8  ;;  %v1756_v11 = vld [vmem:[%s2217_s1 + $0x10] sm:$0xff] (!%p213_p2)   ;;  %vm278_vm2 = vsmask.f32 (!%p213_p2), 7424  ;;  %vm1853_vm6 = vmmov (!%p213_p2), 0  }
   0x8   : > { %v1749_v3 = vld [vmem:[%s2217_s1 + $0x80] sm:$0xff] (!%p213_p2)   ;;  %1561 = vmatpush3.bf16.msra.mxu0 (!%p213_p2), %v1748_v2  ;;  %v1753_v7 = vld [vmem:[%s2217_s1 + $0x88] sm:$0xff] (!%p213_p2)   ;;  %v1757_v12 = vld [vmem:[%s2217_s1 + $0x90] sm:$0xff] (!%p213_p2)   ;;  %vm320_vm3 = vsmask.f32 (!%p213_p2), 4352 }
   0x9   : > { %1589 = vmatpush3.bf16.msra.mxu1 (!%p213_p2), %v1749_v3  ;;  %1562 = vmatprep.subr.bf16.mxu0 (!%p213_p2), %v1750_v4  ;;  %v1758_v13 = vld [vmem:[%s2217_s1 + $0x58] sm:$0xff] (!%p213_p2)   ;;  %v1762_v17 = vld [vmem:[%s2217_s1 + $0x60] sm:$0xff] (!%p213_p2)   ;;  %v1766_v21 = vld [vmem:[%s2217_s1 + $0x68] sm:$0xff] (!%p213_p2)   ;;  %vm359_vm5 = vsmask.f32 (!%p213_p2), 5376 }
   0xa   : > { %1590 = vmatprep.subr.bf16.mxu1 (!%p213_p2), %v1751_v5  ;;  %v1759_v14 = vld [vmem:[%s2217_s1 + $0xd8] sm:$0xff] (!%p213_p2)   ;;  %v1763_v18 = vld [vmem:[%s2217_s1 + $0xe0] sm:$0xff] (!%p213_p2)   ;;  %v1767_v22 = vld [vmem:[%s2217_s1 + $0xe8] sm:$0xff] (!%p213_p2)  }
   0xb   : > { %v1760_v15 = vld [vmem:[%s2217_s1 + $0x18] sm:$0xff] (!%p213_p2)   ;;  %v1764_v19 = vld [vmem:[%s2217_s1 + $0x20] sm:$0xff] (!%p213_p2)   ;;  %v1768_v23 = vld [vmem:[%s2217_s1 + $0x28] sm:$0xff] (!%p213_p2)  }
   0xc   : > { %1563 = vmatpush3.bf16.msra.mxu0 (!%p213_p2), %v1752_v6  ;;  %v1761_v16 = vld [vmem:[%s2217_s1 + $0x98] sm:$0xff] (!%p213_p2)   ;;  %v1765_v20 = vld [vmem:[%s2217_s1 + $0xa0] sm:$0xff] (!%p213_p2)   ;;  %v1769_v24 = vld [vmem:[%s2217_s1 + $0xa8] sm:$0xff] (!%p213_p2)  }
   0xd   : > { %1591 = vmatpush3.bf16.msra.mxu1 %v1753_v7  ;;  %1564 = vmatprep.subr.bf16.mxu0 %v1754_v9  ;;  %s2224_s22 = smov (!%p242_p3, %s1445_s22), 1  ;;  %v1770_v25 = vld [vmem:[%s2217_s1 + $0x70] sm:$0xff]   ;;  %v1774_v29 = vld [vmem:[%s2217_s1 + $0x78] sm:$0xff]   ;;  %v1783_v47 = vld [vmem:[%s2217_s1 + $0x140] sm:$0xff]  }
   0xe   : > { %1592 = vmatprep.subr.bf16.mxu1 %v1755_v10  ;;  %v1771_v26 = vld [vmem:[%s2217_s1 + $0xf0] sm:$0xff]   ;;  %s1731_s7 = smul.u32 24, %s2224_s22  ;;  %v1775_v30 = vld [vmem:[%s2217_s1 + $0xf8] sm:$0xff]   ;;  %v1785_v51 = vld [vmem:[%s2217_s1 + $0x1c0] sm:$0xff]  }
   0xf   : > { %v1772_v27 = vld [vmem:[%s2217_s1 + $0x30] sm:$0xff]   ;;  %v1776_v31 = vld [vmem:[%s2217_s1 + $0x38] sm:$0xff]   ;;  %v1784_v56 = vld [vmem:[%s2217_s1 + $0x100] sm:$0xff]   ;;  %s1732_s24 = smul.u32 12, %s2224_s22 }
  0x10   : > { %1565 = vmatpush3.bf16.msra.mxu0 %v1756_v11  ;;  %v1773_v28 = vld [vmem:[%s2217_s1 + $0xb0] sm:$0xff]   ;;  %s1997_s18 = scalar_lea.vmem %s2216_s0, %s1731_s7  ;;  %v1777_v32 = vld [vmem:[%s2217_s1 + $0xb8] sm:$0xff]   ;;  %v1786_v57 = vld [vmem:[%s2217_s1 + $0x180] sm:$0xff]  }
  0x11   : > { %1593 = vmatpush3.bf16.msra.mxu1 %v1757_v12  ;;  %1566 = vmatprep.subr.bf16.mxu0 %v1758_v13  ;;  %v253_v33 = vld [vmem:[%s1997_s18] sm:$0xf]  ;;  %v2007_v34 = vld [vmem:[%s1997_s18 + $0x4] sm:$0xf]  ;;  %v2010_v35 = vld [vmem:[%s1997_s18 + $0x8] sm:$0xf]  ;;  %s251_s27 = scalar_lea.vmem %s2222_s6, %s1732_s24 }
  0x12   : > { %1594 = vmatprep.subr.bf16.mxu1 %v1759_v14  ;;  %v256_v36 = vld [vmem:[%s1997_s18 + $0xc] sm:$0x1]  ;;  %v1452_v37 = vcombine.low %v253_v33, %v2007_v34  ;;  %v258_v38 = vld [vmem:[%s1997_s18] sm:$0x8]  ;;  %v1791_v4 = vld [vmem:[%s2217_s1 + $0x150] sm:$0xff]   ;;  %v1453_v7 = vcombine.low %v2010_v35, %v2010_v35  ;;  %v1459_v10 = vcombine.low %v2007_v34, %v2010_v35 }
  0x13   : > { %v1454_v39 = vcombine.low %v2010_v35, %v256_v36  ;;  %v259_v40 = vld [vmem:[%s1997_s18 + $0xc] sm:$0x7]  ;;  %v2018_v41 = vcombine.low %v258_v38, %v2007_v34  ;;  %v257_v42 = vld [vmem:[%s1997_s18] sm:$0xe]  ;;  %v1793_v5 = vld [vmem:[%s2217_s1 + $0x1d0] sm:$0xff]  }
  0x14   : > { %1567 = vmatpush3.bf16.msra.mxu0 %v1760_v15  ;;  %v280_v43 = vshrl.u32 %v1452_v37, 16  ;;  %v282_v44 = vshll.u32 %v1452_v37, 16  ;;  %v1457_v45 = vcombine.low %v2010_v35, %v259_v40  ;;  %v1455_v46 = vcombine.low %v257_v42, %v2007_v34  ;;  %v1787_v62 = vld [vmem:[%s2217_s1 + $0x148] sm:$0xff]   ;;  %v1794_v6 = vld [vmem:[%s2217_s1 + $0x190] sm:$0xff]   ;;  %v1795_v9 = vld [vmem:[%s2217_s1 + $0x158] sm:$0xff]  }
  0x15   : > { %1595 = vmatpush3.bf16.msra.mxu1 %v1761_v16  ;;  %1568 = vmatprep.subr.bf16.mxu0 %v1762_v17  ;;  %v287_v48 = vshll.u32 %v1454_v39, 16  ;;  %v312_v49 = vrot.slane %v2018_v41, 3  ;;  %v301_v50 = vrot.slane %v1454_v39, 1  ;;  %v291_v63 = vshrl.u32 %v1454_v39, 16  ;;  %v1789_v0 = vld [vmem:[%s2217_s1 + $0x1c8] sm:$0xff]   ;;  %v1792_v8 = vld [vmem:[%s2217_s1 + $0x110] sm:$0xff]  }
  0x16   : > { %1596 = vmatprep.subr.bf16.mxu1 %v1763_v18  ;;  %v284_v52 = vrot.slane %v282_v44, 1  ;;  %v313_v53 = vrot.slane %v1457_v45, 3  ;;  %v300_v54 = vrot.slane %v1455_v46, 1  ;;  %v1790_v1 = vld [vmem:[%s2217_s1 + $0x188] sm:$0xff]   ;;  %v1797_v11 = vld [vmem:[%s2217_s1 + $0x1d8] sm:$0xff]   ;;  %v1799_v14 = vld [vmem:[%s2217_s1 + $0x160] sm:$0xff]  }
  0x17   : > { %v289_v55 = vrot.slane %v287_v48, 1  ;;  %v1788_v3 = vld [vmem:[%s2217_s1 + $0x108] sm:$0xff]   ;;  %v1798_v12 = vld [vmem:[%s2217_s1 + $0x198] sm:$0xff]   ;;  %v1801_v15 = vld [vmem:[%s2217_s1 + $0x1e0] sm:$0xff]  }
  0x18   : > { %1569 = vmatpush3.bf16.msra.mxu0 %v1764_v19  ;;  %v285_v58 = vor.u32 %v284_v52, %v280_v43  ;;  %v314_v59 = vsel %vm311_vm0, %v312_v49, %v313_v53  ;;  %v302_v60 = vsel %vm299_vm1, %v300_v54, %v301_v50  ;;  %v1796_v13 = vld [vmem:[%s2217_s1 + $0x118] sm:$0xff]   ;;  %v1802_v16 = vld [vmem:[%s2217_s1 + $0x1a0] sm:$0xff]   ;;  %v1803_v18 = vld [vmem:[%s2217_s1 + $0x168] sm:$0xff]  }
  0x19   : > { %1597 = vmatpush3.bf16.msra.mxu1 %v1765_v20  ;;  %1570 = vmatprep.subr.bf16.mxu0 %v1766_v21  ;;  %v293_v2 = vor.u32 %v291_v63, %v289_v55  ;;  %v1800_v17 = vld [vmem:[%s2217_s1 + $0x120] sm:$0xff]   ;;  %v1806_v19 = vld [vmem:[%s2217_s1 + $0x1e8] sm:$0xff]   ;;  %v1816_v33 = vld [vmem:[%s2217_s1 + $0x1b8] sm:$0xff]  }
  0x1a   : > { %1598 = vmatprep.subr.bf16.mxu1 %v1767_v22  ;;  %1043 = vmatprep.mubr.bf16.mxu1 %v314_v59  ;;  %v290_v61 = vsel %vm278_vm2, %v285_v58, %v289_v55  ;;  %v1807_v20 = vld [vmem:[%s2217_s1 + $0x1a8] sm:$0xff]   ;;  %v1808_v22 = vld [vmem:[%s2217_s1 + $0x170] sm:$0xff]   ;;  %v1818_v38 = vld [vmem:[%s2217_s1 + $0x200] sm:$0xff]  }
  0x1b   : > { %995 = vmatprep.mubr.bf16.mxu0 %v290_v61  ;;  %v1804_v21 = vld [vmem:[%s2217_s1 + $0x128] sm:$0xff]   ;;  %v263_v39 = vld [vmem:[%s1997_s18 + $0x10] sm:$0x7] }
  0x1c   : > { %1571 = vmatpush3.bf16.msra.mxu0 %v1768_v23  ;;  %v322_v23 = vshrl.u32 %v2018_v41, 16  ;;  %v260_v34 = vld [vmem:[%s1997_s18 + $0xc] sm:$0xf] }
  0x1d   : > { %1599 = vmatpush3.bf16.msra.mxu1 %v1769_v24  ;;  %1572 = vmatprep.subr.bf16.mxu0 %v1770_v25  ;;  %v1810_v24 = vld [vmem:[%s2217_s1 + $0x1f0] sm:$0xff]   ;;  %v325_v25 = vshll.u32 %v2018_v41, 16  ;;  %v1458_v36 = vcombine.low %v2010_v35, %v260_v34  ;;  %v2138_v44 = vcombine.low %v260_v34, %v263_v39  ;;  %v1460_v61 = vcombine.low %v260_v34, %v260_v34 }
  0x1e   : > { %1600 = vmatprep.subr.bf16.mxu1 %v1771_v26  ;;  %v1811_v26 = vld [vmem:[%s2217_s1 + $0x1b0] sm:$0xff]  }
  0x1f   : > { %v262_v41 = vld [vmem:[%s1997_s18 + $0x10] sm:$0x3]  ;;  %v330_v42 = vshrl.u32 %v1458_v36, 16  ;;  %v333_v43 = vshll.u32 %v1458_v36, 16  ;;  %v372_v52 = vshll.u32 %v2138_v44, 16 }
  0x20   : > { %1573 = vmatpush3.bf16.msra.mxu0 %v1772_v27  ;;  %v1809_v27 = vld [vmem:[%s2217_s1 + $0x130] sm:$0xff]   ;;  %v1462_v45 = vcombine.low %v260_v34, %v262_v41 }
  0x21   : > { %1601 = vmatpush3.bf16.msra.mxu1 %v1773_v28  ;;  %1574 = vmatprep.subr.bf16.mxu0 %v1774_v29  ;;  %v1812_v28 = vld [vmem:[%s2217_s1 + $0x178] sm:$0xff]   ;;  %v324_v29 = vrot.slane %v322_v23, 3  ;;  %v332_v49 = vrot.slane %v330_v42, 3  ;;  %v374_v59 = vrot.slane %v372_v52, 3  ;;  %v1837_v23 = vld [vmem:[%s2221_s5 + $0x30] sm:$0xff]  }
  0x22   : > { %1602 = vmatprep.subr.bf16.mxu1 %v1775_v30  ;;  %v1814_v30 = vld [vmem:[%s2217_s1 + $0x1f8] sm:$0xff]  }
  0x24   : > { %1575 = vmatpush3.bf16.msra.mxu0 %v1776_v31  ;;  %v327_v31 = vrot.slane %v325_v25, 4 }
  0x25   : > { %1603 = vmatpush3.bf16.msra.mxu1 %v1777_v32  ;;  %1616 = vmatprep.subr.bf16.mxu0 %v1783_v47  ;;  %v1813_v32 = vld [vmem:[%s2217_s1 + $0x138] sm:$0xff]  }
  0x26   : > { %1644 = vmatprep.subr.bf16.mxu1 %v1785_v51  ;;  %v328_v46 = vor.u32 %v327_v31, %v324_v29  ;;  %v369_v51 = vshrl.u32 %v2138_v44, 16 }
  0x27   : > { %996 = vmatmul.mubr.bf16.vlgmr.msra.gmra.mrb[0].mxu0 %v1452_v37  ;;  %v261_v37 = vld [vmem:[%s1997_s18 + $0x4] sm:$0xc] }
  0x28   : > { %1044 = vmatmul.mubr.bf16.vlgmr.msra.gmra.mrb[0].mxu1 %v302_v60  ;;  %1617 = vmatpush3.bf16.msra.mxu0 %v1784_v56  ;;  %v1461_v40 = vcombine.low %v261_v37, %v2010_v35  ;;  %v352_v56 = vrot.slane %v1462_v45, 2  ;;  %v371_v58 = vrot.slane %v369_v51, 2  ;;  %v1822_v60 = vld [vmem:[%s2217_s1 + $0x208] sm:$0xff]  }
  0x29   : > { %1645 = vmatpush3.bf16.msra.mxu1 %v1786_v57  ;;  %1051 = vmatprep.mubr.bf16.mxu1 %v313_v53 }
  0x2a   : > { %1646 = vmatprep.subr.bf16.mxu1 %v1789_v0  ;;  %1618 = vmatprep.subr.bf16.mxu0 %v1787_v62  ;;  %v361_v47 = vshrl.u32 %v1461_v40, 16  ;;  %v364_v48 = vshll.u32 %v1461_v40, 16  ;;  %v351_v55 = vrot.slane %v1461_v40, 2  ;;  %v375_v0 = vor.u32 %v374_v59, %v371_v58 }
  0x2b   : > { %1003 = vmatprep.mubr.bf16.mxu0 %v293_v2 }
  0x2c   : > { %1619 = vmatpush3.bf16.msra.mxu0 %v1788_v3  ;;  %v363_v53 = vrot.slane %v361_v47, 2  ;;  %v366_v54 = vrot.slane %v364_v48, 3  ;;  %v264_v3 = vld [vmem:[%s1997_s18 + $0x4] sm:$0x8] }
  0x2d   : > { %1647 = vmatpush3.bf16.msra.mxu1 %v1790_v1  ;;  %1620 = vmatprep.subr.bf16.mxu0 %v1791_v4  ;;  %v353_v1 = vsel %vm350_vm4, %v351_v55, %v352_v56  ;;  %v1824_v4 = vld [vmem:[%s2217_s1 + $0x210] sm:$0xff]  }
  0x2e   : > { %1648 = vmatprep.subr.bf16.mxu1 %v1793_v5  ;;  %v367_v62 = vor.u32 %v366_v54, %v363_v53  ;;  %v1464_v5 = vcombine.low %v264_v3, %v2010_v35  ;;  %v1227_v35 = vld [vmem:[%s2220_s4 + $0x8] sm:$0xff] }
  0x2f   : > { %1004 = vmatmul.mubr.bf16.gmra.mrb[4].mxu0 %v1453_v7  ;;  %v1226_v7 = vld [vmem:[%s2220_s4] sm:$0xff] }
  0x30   : > { %1052 = vmatmul.mubr.bf16.gmra.mrb[4].mxu1 %v301_v50  ;;  %1621 = vmatpush3.bf16.msra.mxu0 %v1792_v8  ;;  %v335_v50 = vrot.slane %v333_v43, 4  ;;  %v376_v2 = vsel %vm359_vm5, %v367_v62, %v375_v0  ;;  %v1228_v8 = vld [vmem:[%s2220_s4 + $0x10] sm:$0xff] }
  0x31   : > { %1649 = vmatpush3.bf16.msra.mxu1 %v1794_v6  ;;  %1622 = vmatprep.subr.bf16.mxu0 %v1795_v9  ;;  %v383_v6 = vrot.slane %v2138_v44, 3  ;;  %v1825_v9 = vld [vmem:[%s2217_s1 + $0x218] sm:$0xff]  }
  0x32   : > { %1650 = vmatprep.subr.bf16.mxu1 %v1797_v11  ;;  %1091 = vmatprep.mubr.bf16.mxu0 %v1459_v10  ;;  %v336_v57 = vor.u32 %v335_v50, %v332_v49  ;;  %v382_v10 = vrot.slane %v1464_v5, 3 }
  0x33   : > { %1139 = vmatprep.mubr.bf16.mxu1 %v376_v2  ;;  %1231 = vperm.xlu0 %1744, %v1226_v7  }
  0x34   : > { %1623 = vmatpush3.bf16.msra.mxu0 %v1796_v13  ;;  %v337_v63 = vsel %vm320_vm3, %v328_v46, %v336_v57  ;;  %1241 = vperm.xlu1 %1745, %v1228_v8   ;;  %v384_v11 = vsel %vm311_vm0, %v382_v10, %v383_v6  ;;  %v1827_v13 = vld [vmem:[%s2217_s1 + $0x228] sm:$0xff]  }
  0x35   : > { %1651 = vmatpush3.bf16.msra.mxu1 %v1798_v12  ;;  %1624 = vmatprep.subr.bf16.mxu0 %v1799_v14  ;;  %v1826_v12 = vld [vmem:[%s2217_s1 + $0x220] sm:$0xff]   ;;  %v1828_v14 = vld [vmem:[%s2217_s1 + $0x230] sm:$0xff]  }
  0x36   : > { %1652 = vmatprep.subr.bf16.mxu1 %v1801_v15  ;;  %v1829_v15 = vld [vmem:[%s2217_s1 + $0x238] sm:$0xff]  }
  0x37   : > { %1236 = vperm.xlu0 %1744, %v1227_v35  }
  0x38   : > { %1625 = vmatpush3.bf16.msra.mxu0 %v1800_v17  ;;  %v1852_v17 = vmov 0.0  }
  0x39   : > { %1653 = vmatpush3.bf16.msra.mxu1 %v1802_v16  ;;  %1626 = vmatprep.subr.bf16.mxu0 %v1803_v18  ;;  %v1831_v16 = vld [vmem:[%s2221_s5] sm:$0xff]   ;;  %v1832_v18 = vld [vmem:[%s2221_s5 + $0x8] sm:$0xff]  }
  0x3a   : > { %1654 = vmatprep.subr.bf16.mxu1 %v1806_v19  ;;  %v1833_v19 = vld [vmem:[%s2221_s5 + $0x10] sm:$0xff]  }
  0x3c   : > { %1627 = vmatpush3.bf16.msra.mxu0 %v1804_v21  ;;  %v1835_v21 = vld [vmem:[%s2221_s5 + $0x20] sm:$0xff]  }
  0x3d   : > { %1655 = vmatpush3.bf16.msra.mxu1 %v1807_v20  ;;  %1628 = vmatprep.subr.bf16.mxu0 %v1808_v22  ;;  %v1834_v20 = vld [vmem:[%s2221_s5 + $0x18] sm:$0xff]   ;;  %v1836_v22 = vld [vmem:[%s2221_s5 + $0x28] sm:$0xff]  }
  0x3e   : > { %1656 = vmatprep.subr.bf16.mxu1 %v1810_v24  ;;  %v1838_v24 = vld [vmem:[%s2221_s5 + $0x38] sm:$0xff]  }
  0x40   : > { %1629 = vmatpush3.bf16.msra.mxu0 %v1809_v27 }
  0x41   : > { %1657 = vmatpush3.bf16.msra.mxu1 %v1811_v26  ;;  %1630 = vmatprep.subr.bf16.mxu0 %v1812_v28 }
  0x42   : > { %1658 = vmatprep.subr.bf16.mxu1 %v1814_v30 }
  0x44   : > { %1631 = vmatpush3.bf16.msra.mxu0 %v1813_v32 }
  0x45   : > { %1659 = vmatpush3.bf16.msra.mxu1 %v1816_v33  ;;  %1691 = vmatprep.subr.bf16.mxu0 %v1818_v38 }
  0x46   : > { %1711 = vmatprep.subr.bf16.mxu1 %v1852_v17 }
  0x47   : > { %1092 = vmatmul.mubr.bf16.vlgmr.msra.gmra.mrb[8].mxu0 %v337_v63 }
  0x48   : > { %1692 = vmatpush3.bf16.msra.mxu0 %v1818_v38  ;;  %1099 = vmatprep.mubr.bf16.mxu0 %v1460_v61 }
  0x49   : > { %1693 = vmatprep.subr.bf16.mxu0 %v1822_v60  ;;  %1140 = vmatmul.mubr.bf16.vlgmr.msra.gmra.mrb[8].mxu1 %v353_v1 }
  0x4a   : > { %1147 = vmatprep.mubr.bf16.mxu1 %v375_v0  ;;  %1712 = vmatpush3.bf16.msra.mxu1 %v1831_v16 }
  0x4b   : > { %1713 = vmatprep.subr.bf16.mxu1 %v1852_v17 }
  0x4c   : > { %1694 = vmatpush3.bf16.msra.mxu0 %v1822_v60 }
  0x4d   : > { %1695 = vmatprep.subr.bf16.mxu0 %v1824_v4 }
  0x4e   : > { %1714 = vmatpush3.bf16.msra.mxu1 %v1832_v18 }
  0x4f   : > { %1100 = vmatmul.mubr.bf16.gmra.mrb[12].mxu0 %v336_v57  ;;  %1715 = vmatprep.subr.bf16.mxu1 %v1852_v17 }
  0x50   : > { %1696 = vmatpush3.bf16.msra.mxu0 %v1824_v4  ;;  %1707 = vmatprep.mubr.bf16.mxu0 %v384_v11 }
  0x51   : > { %1697 = vmatprep.subr.bf16.mxu0 %v1825_v9  ;;  %1148 = vmatmul.mubr.bf16.gmra.mrb[12].mxu1 %v352_v56 }
  0x52   : > { %1716 = vmatpush3.bf16.msra.mxu1 %v1833_v19  ;;  %1727 = vmatprep.mubr.msk.bf16.mxu1 %vm1853_vm6, %v1852_v17 }
  0x53   : > { %1717 = vmatprep.subr.bf16.mxu1 %v1852_v17 }
  0x54   : > { %1698 = vmatpush3.bf16.msra.mxu0 %v1825_v9 }
  0x55   : > { %1699 = vmatprep.subr.bf16.mxu0 %v1826_v12 }
  0x56   : > { %1718 = vmatpush3.bf16.msra.mxu1 %v1834_v20 }
  0x57   : > { %1719 = vmatprep.subr.bf16.mxu1 %v1852_v17 }
  0x58   : > { %1700 = vmatpush3.bf16.msra.mxu0 %v1826_v12 }
  0x59   : > { %1701 = vmatprep.subr.bf16.mxu0 %v1827_v13 }
  0x5a   : > { %1720 = vmatpush3.bf16.msra.mxu1 %v1835_v21  ;;  %v1538_v21 = vld [vmem:[%s2219_s3] ss:$0 sm:$0xff] }
  0x5b   : > { %1721 = vmatprep.subr.bf16.mxu1 %v1852_v17 }
  0x5c   : > { %1702 = vmatpush3.bf16.msra.mxu0 %v1827_v13 }
  0x5d   : > { %1703 = vmatprep.subr.bf16.mxu0 %v1828_v14 }
  0x5e   : > { %1722 = vmatpush3.bf16.msra.mxu1 %v1836_v22 }
  0x5f   : > { %1723 = vmatprep.subr.bf16.mxu1 %v1852_v17 }
  0x60   : > { %1704 = vmatpush3.bf16.msra.mxu0 %v1828_v14 }
  0x61   : > { %1705 = vmatprep.subr.bf16.mxu0 %v1829_v15 }
  0x62   : > { %1724 = vmatpush3.bf16.msra.mxu1 %v1837_v23 }
  0x63   : > { %1725 = vmatprep.subr.bf16.mxu1 %v1852_v17 }
  0x64   : > { %1706 = vmatpush3.bf16.msra.mxu0 %v1829_v15  ;;  %v1537_v15 = vld [vmem:[%s2218_s2] ss:$0 sm:$0xff] }
  0x66   : > { %1726 = vmatpush3.bf16.msra.mxu1 %v1838_v24 }
  0x67   : > { %1708 = vmatmul.mubr.bf16.vlgmr.msra.gmra.mrb[16].mxu0 %v383_v6 }
  0xfa   : > { %v1576_v27 = vpop.f32.mrb[0].mxu0 }
  0xfb   : > { %v1604_v25 = vpop.f32.mrb[0].mxu1  ;;  %v1577_v30 = vpop.f32.mrb[1].mxu0 }
  0xfc   : > { %v1605_v26 = vpop.f32.mrb[1].mxu1  ;;  %v1578_v32 = vadd.f32 %v1577_v30, %v1576_v27  ;;  %v1579_v33 = vpop.f32.mrb[2].mxu0 }
  0xfd   : > { %v1606_v28 = vadd.f32 %v1605_v26, %v1604_v25  ;;  %v1607_v29 = vpop.f32.mrb[2].mxu1  ;;  %v1580_v36 = vpop.f32.mrb[3].mxu0 }
  0xfe   : > { %v1608_v31 = vpop.f32.mrb[3].mxu1  ;;  %v1581_v38 = vadd.f32 %v1580_v36, %v1579_v33  ;;  %v1232_v25 = vpop.permute.xlu0 %1231 }
  0xff   : > { %v1609_v34 = vadd.f32 %v1608_v31, %v1607_v29  ;;  %v1046_v37 = vadd.f32 %v1606_v28, %v1578_v32 }
 0x101   : > { %v1049_v39 = vadd.f32 %v1609_v34, %v1581_v38  ;;  %v1242_v34 = vpop.permute.xlu1 %1241 }
 0x102   : > { %v1582_v42 = vpop.f32.mrb[4].mxu0  ;;  %v1237_v33 = vpop.permute.xlu0 %1236 }
 0x103   : > { %v1610_v40 = vpop.f32.mrb[4].mxu1  ;;  %v1583_v45 = vpop.f32.mrb[5].mxu0 }
 0x104   : > { %v1611_v41 = vpop.f32.mrb[5].mxu1  ;;  %v1584_v47 = vadd.f32 %v1583_v45, %v1582_v42  ;;  %v1585_v48 = vpop.f32.mrb[6].mxu0 }
 0x105   : > { %v1612_v43 = vadd.f32 %v1611_v41, %v1610_v40  ;;  %v1613_v44 = vpop.f32.mrb[6].mxu1  ;;  %v1586_v49 = vpop.f32.mrb[7].mxu0 }
 0x106   : > { %v1614_v46 = vpop.f32.mrb[7].mxu1 }
 0x107   : > { %v1054_v50 = vadd.f32 %v1612_v43, %v1584_v47 }
 0x11a   : > { %v1632_v51 = vpop.f32.mrb[8].mxu0 }
 0x11b   : > { %v1633_v52 = vpop.f32.mrb[9].mxu0 }
 0x11c   : > { %v1634_v53 = vadd.f32 %v1633_v52, %v1632_v51  ;;  %v1635_v54 = vpop.f32.mrb[10].mxu0  ;;  %v1660_v55 = vpop.f32.mrb[8].mxu1 }
 0x11d   : > { %v1636_v56 = vpop.f32.mrb[11].mxu0  ;;  %v1661_v59 = vpop.f32.mrb[9].mxu1 }
 0x11e   : > { %v1094_v57 = vadd.f32 %v1634_v53, %v1046_v37  ;;  %v1637_v58 = vadd.f32 %v1636_v56, %v1635_v54  ;;  %v1662_v60 = vadd.f32 %v1661_v59, %v1660_v55  ;;  %v1663_v61 = vpop.f32.mrb[10].mxu1 }
 0x11f   : > { %v1664_v63 = vpop.f32.mrb[11].mxu1 }
 0x120   : > { %v1097_v62 = vadd.f32 %v1637_v58, %v1049_v39  ;;  %v1665_v0 = vadd.f32 %v1664_v63, %v1663_v61  ;;  %v1142_v1 = vadd.f32 %v1662_v60, %v1094_v57  ;;  %v1367_v57 = vlaneseq }
 0x122   : > { %v1638_v2 = vpop.f32.mrb[12].mxu0  ;;  %v1145_v4 = vadd.f32 %v1665_v0, %v1097_v62  ;;  %v1368_v58 = vshrl.u32 %v1367_v57, 7 }
 0x123   : > { %v1639_v3 = vpop.f32.mrb[13].mxu0 }
 0x124   : > { %v1640_v5 = vadd.f32 %v1639_v3, %v1638_v2  ;;  %v1641_v6 = vpop.f32.mrb[14].mxu0  ;;  %v1666_v7 = vpop.f32.mrb[12].mxu1  ;;  %v1369_v59 = vsub.s32 0, %v1368_v58 }
 0x125   : > { %v1642_v8 = vpop.f32.mrb[15].mxu0  ;;  %v1667_v10 = vpop.f32.mrb[13].mxu1 }
 0x126   : > { %v1102_v9 = vadd.f32 %v1640_v5, %v1054_v50  ;;  %v1668_v35 = vadd.f32 %v1667_v10, %v1666_v7  ;;  %v1669_v11 = vpop.f32.mrb[14].mxu1 }
 0x127   : > { %v1670_v12 = vpop.f32.mrb[15].mxu1 }
 0x128   : > { %v1150_v13 = vadd.f32 %v1668_v35, %v1102_v9 }
 0x13a   : > { %v1709_v14 = vpop.f32.mrb[16].mxu0 }
 0x13b   : > { %v1198_v16 = vadd.f32 %v1709_v14, %v1150_v13  ;;  %v1189_v17 = vpop.f32.mrb[17].mxu0 }
 0x13c   : > { %v1190_v18 = vadd.f32 %v1189_v17, %v1142_v1  ;;  %v1710_v19 = vpop.f32.mrb[18].mxu0 }
 0x13d   : > { %v1212_v20 = vmul.f32 %v1537_v15, %v1198_v16  ;;  %v1192_v22 = vpop.f32.mrb[19].mxu0 }
 0x13e   : > { %v1210_v23 = vmul.f32 %v1537_v15, %v1190_v18  ;;  %v1193_v24 = vadd.f32 %v1192_v22, %v1145_v4 }
 0x13f   : > { %v1222_v28 = vadd.f32 %v1538_v21, %v1212_v20 }
 0x140   : > { %v1220_v26 = vadd.f32 %v1538_v21, %v1210_v23  ;;  %v1211_v27 = vmul.f32 %v1537_v15, %v1193_v24 }
 0x141   : > { %v1225_v32 = vmax.f32 %v1222_v28, 0.0 }
 0x142   : > { %v1223_v29 = vmax.f32 %v1220_v26, 0.0  ;;  %v1221_v30 = vadd.f32 %v1538_v21, %v1211_v27 }
 0x143   : > { %v1246_v39 = vmul.f32 %v1242_v34, %v1225_v32 }
 0x144   : > { %v1224_v31 = vmax.f32 %v1221_v30, 0.0  ;;  %v1244_v36 = vmul.f32 %v1232_v25, %v1223_v29 }
 0x146   : > { %v1245_v37 = vmul.f32 %v1237_v33, %v1224_v31 }
 0x148   : > { %v1247_v38 = vadd.f32 %v1245_v37, %v1244_v36 }
 0x14a   : > { %v1248_v40 = vadd.f32 %v1247_v38, %v1246_v39 }
 0x14c   : > { %v1249_v41 = vrot.slane %v1248_v40, 4 }
 0x14e   : > { %v1250_v42 = vadd.f32 %v1249_v41, %v1248_v40 }
 0x150   : > { %v1251_v43 = vrot.slane %v1250_v42, 2 }
 0x152   : > { %v1252_v44 = vadd.f32 %v1251_v43, %v1250_v42 }
 0x154   : > { %v1253_v45 = vrot.slane %v1252_v44, 1 }
 0x156   : > { %v1254_v46 = vadd.f32 %v1253_v45, %v1252_v44 }
 0x158   : > { %v1255_v47 = vmul.f32 0.0625, %v1254_v46 }
 0x15a   : > { %v1256_v48 = vpack.c.bf16 %v1255_v47, %v1255_v47 }
 0x15c   : > { %1728 = vmatmul.mubr.bf16.vlgmr.msra.gmra.mrb[16].mxu1 %v1256_v48 }
 0x22f   : > { %v1355_v49 = vpop.f32.mrb[16].mxu1 }
 0x230   : > { %v1361_v50 = vsub.f32 0.0, %v1355_v49  ;;  %v1729_v51 = vpop.f32.mrb[17].mxu1 }
 0x231   : > { %v1358_v52 = vpop.f32.mrb[18].mxu1 }
 0x232   : > { %v1362_v53 = vmul.f32 1.442695, %v1361_v50  ;;  %v1730_v54 = vpop.f32.mrb[19].mxu1 }
 0x234   : > { %1839 = vpow2.f32 %v1362_v53 }
 0x23e   : > { %v1840_v55 = vpop.eup %1839 }
 0x23f   : > { %v1364_v56 = vadd.f32 1.0, %v1840_v55 }
 0x241   : > { %1841 = vrcp.f32 %v1364_v56 }
 0x24b   : > { %v1842_v60 = vpop.eup %1841 }
 0x24c   : > { %v1370_v61 = vrot.slane %v1842_v60, %v1369_v59 }
 0x24e   : > { %v1371_v62 = vmul.f32 %v1370_v61, %v1244_v36  ;;  %v1372_v63 = vmul.f32 %v1370_v61, %v1245_v37  ;;  %v1373_v0 = vmul.f32 %v1370_v61, %v1246_v39 }
 0x250   : > { %v1554_v1 = vpack.c.bf16 %v1373_v0, %v1373_v0  ;;  %v1558_v2 = vpack.c.bf16 %v1372_v63, %v1371_v62 }
 0x252   : > { %1559 = vst [vmem:[%s251_s27] sm:$0xff] %v1558_v2   ;;  %1389 = vst [vmem:[%s251_s27 + $0x8] sm:$0xf] %v1554_v1 }
 0x253 PF: > { %s16_s21 = sadd.s32 1, %s1849_s21  }
 0x254   : > { %p13_p4 = scmp.ge.s32.totalorder %s16_s21, 4  }
 0x256   :  { %15 = sbr.rel (!%p13_p4) target bundleno = 1 (0x1), region = 74 }

// kernel: _lambda_.17
= control target key start
LH: loop header
LB: loop body
LE: loop exit
PB: predicated region body
PF: predicated region fallthrough
CT: control target
= control target key end

     0   :  { %s2841_s21 = smov 0   ;;  %s3373_s0 = inlined_call_operand.vmem [shape: bf16[2,32,512], index: 0, kind: input, shape index: {}]   ;;  %s3374_s1 = inlined_call_operand.vmem [shape: bf16[2048,128], index: 1, kind: input, shape index: {}]   ;;  %s3375_s2 = inlined_call_operand.vmem [shape: f32[1,128], index: 2, kind: input, shape index: {}]   ;;  %s3376_s3 = inlined_call_operand.vmem [shape: f32[1,128], index: 3, kind: input, shape index: {}]   ;;  %s3377_s4 = inlined_call_operand.vmem [shape: f32[20,1], index: 4, kind: input, shape index: {}]   ;;  %s3378_s5 = inlined_call_operand.vmem [shape: bf16[128,128], index: 5, kind: input, shape index: {}]   ;;  %s3379_s6 = inlined_call_operand.vmem [shape: bf16[2,20,128], index: 6, kind: output, shape index: {}]  }
   0x1 LB: > { %s2176_s22 = sadd.s32 4294967295, %s2801_s21   ;;  %p2180_p0 = scmp.ge.s32.totalorder %s2801_s21, 1  ;;  %s2801_s21 = sphi %s2841_s21, %s16_s21  }
   0x2   : > { %p212_p1 = scmp.lt.s32.totalorder %s2801_s21, 3 }
   0x4   : > { %p213_p2 = pnand %p2180_p0, %p212_p1 }
   0x5   : > { %v2627_v0 = vld [vmem:[%s3374_s1 + $0x40] sm:$0xff] (!%p213_p2)   ;;  %v2631_v4 = vld [vmem:[%s3374_s1 + $0x48] sm:$0xff] (!%p213_p2)   ;;  %v2635_v8 = vld [vmem:[%s3374_s1 + $0x50] sm:$0xff] (!%p213_p2)   ;;  %p242_p3 = scmp.lt.s32.totalorder (!%p213_p2), %s2176_s22, 1  ;;  %v2803_v35 = vmov (!%p213_p2), 0   ;;  %vm503_vm2 = vcmask (!%p213_p2), 1044480  }
   0x6   : > { %216 = sbr.rel (%p213_p2) target bundleno = 636 (0x27c), region = 44  ;;  %v2628_v1 = vld [vmem:[%s3374_s1 + $0xc0] sm:$0xff] (!%p213_p2)   ;;  %2360 = vmatprep.subr.bf16.mxu0 (!%p213_p2), %v2627_v0  ;;  %v2632_v5 = vld [vmem:[%s3374_s1 + $0xc8] sm:$0xff] (!%p213_p2)   ;;  %v2636_v9 = vld [vmem:[%s3374_s1 + $0xd0] sm:$0xff] (!%p213_p2)   ;;  %2625 = vset.pattern.permute.xlu0 (!%p213_p2), %v2803_v35  ;;  %vm315_vm0 = vsmask.f32 (!%p213_p2), 7424 }
   0x7   : > { %v2629_v2 = vld [vmem:[%s3374_s1] sm:$0xff] (!%p213_p2)   ;;  %2388 = vmatprep.subr.bf16.mxu1 (!%p213_p2), %v2628_v1  ;;  %v2633_v6 = vld [vmem:[%s3374_s1 + $0x8] sm:$0xff] (!%p213_p2)   ;;  %v2637_v10 = vld [vmem:[%s3374_s1 + $0x10] sm:$0xff] (!%p213_p2)   ;;  %2626 = vset.pattern.permute.xlu1 (!%p213_p2), %v2803_v35  ;;  %vm416_vm1 = vsmask.f32 (!%p213_p2), 5376  ;;  %vm2805_vm3 = vmmov (!%p213_p2), 0  }
   0x8   : > { %v2630_v3 = vld [vmem:[%s3374_s1 + $0x80] sm:$0xff] (!%p213_p2)   ;;  %2361 = vmatpush3.bf16.msra.mxu0 (!%p213_p2), %v2629_v2  ;;  %v2634_v7 = vld [vmem:[%s3374_s1 + $0x88] sm:$0xff] (!%p213_p2)   ;;  %v2638_v11 = vld [vmem:[%s3374_s1 + $0x90] sm:$0xff] (!%p213_p2)   ;;  %vm1977_vm4 = vcmask (!%p213_p2), 1043456  }
   0x9   : > { %2389 = vmatpush3.bf16.msra.mxu1 (!%p213_p2), %v2630_v3  ;;  %2362 = vmatprep.subr.bf16.mxu0 (!%p213_p2), %v2631_v4  ;;  %v2639_v12 = vld [vmem:[%s3374_s1 + $0x58] sm:$0xff] (!%p213_p2)   ;;  %v2643_v16 = vld [vmem:[%s3374_s1 + $0x60] sm:$0xff] (!%p213_p2)   ;;  %v2647_v20 = vld [vmem:[%s3374_s1 + $0x68] sm:$0xff] (!%p213_p2)  }
   0xa   : > { %2390 = vmatprep.subr.bf16.mxu1 (!%p213_p2), %v2632_v5  ;;  %v2640_v13 = vld [vmem:[%s3374_s1 + $0xd8] sm:$0xff] (!%p213_p2)   ;;  %v2644_v17 = vld [vmem:[%s3374_s1 + $0xe0] sm:$0xff] (!%p213_p2)   ;;  %v2648_v21 = vld [vmem:[%s3374_s1 + $0xe8] sm:$0xff] (!%p213_p2)  }
   0xb   : > { %v2641_v14 = vld [vmem:[%s3374_s1 + $0x18] sm:$0xff] (!%p213_p2)   ;;  %v2645_v18 = vld [vmem:[%s3374_s1 + $0x20] sm:$0xff] (!%p213_p2)   ;;  %v2649_v22 = vld [vmem:[%s3374_s1 + $0x28] sm:$0xff] (!%p213_p2)  }
   0xc   : > { %2363 = vmatpush3.bf16.msra.mxu0 (!%p213_p2), %v2633_v6  ;;  %v2642_v15 = vld [vmem:[%s3374_s1 + $0x98] sm:$0xff] (!%p213_p2)   ;;  %v2646_v19 = vld [vmem:[%s3374_s1 + $0xa0] sm:$0xff] (!%p213_p2)   ;;  %v2650_v23 = vld [vmem:[%s3374_s1 + $0xa8] sm:$0xff] (!%p213_p2)  }
   0xd   : > { %2391 = vmatpush3.bf16.msra.mxu1 %v2634_v7  ;;  %2364 = vmatprep.subr.bf16.mxu0 %v2635_v8  ;;  %s3381_s22 = smov (!%p242_p3, %s2176_s22), 1  ;;  %v2651_v24 = vld [vmem:[%s3374_s1 + $0x70] sm:$0xff]   ;;  %v2655_v28 = vld [vmem:[%s3374_s1 + $0x78] sm:$0xff]   ;;  %v2663_v41 = vld [vmem:[%s3374_s1 + $0x140] sm:$0xff]  }
   0xe   : > { %2392 = vmatprep.subr.bf16.mxu1 %v2636_v9  ;;  %v2652_v25 = vld [vmem:[%s3374_s1 + $0xf0] sm:$0xff]   ;;  %s2351_s9 = sshll.u32 %s3381_s22, 6  ;;  %v2656_v29 = vld [vmem:[%s3374_s1 + $0xf8] sm:$0xff]   ;;  %v2664_v42 = vld [vmem:[%s3374_s1 + $0x1c0] sm:$0xff]   ;;  %s2613_s8 = smul.u32 12, %s3381_s22 }
   0xf   : > { %v2653_v26 = vld [vmem:[%s3374_s1 + $0x30] sm:$0xff]   ;;  %s2949_s18 = scalar_lea.vmem %s3373_s0, %s2351_s9  ;;  %v2657_v30 = vld [vmem:[%s3374_s1 + $0x38] sm:$0xff]   ;;  %v2665_v43 = vld [vmem:[%s3374_s1 + $0x100] sm:$0xff]  }
  0x10   : > { %2365 = vmatpush3.bf16.msra.mxu0 %v2637_v10  ;;  %v2654_v27 = vld [vmem:[%s3374_s1 + $0xb0] sm:$0xff]   ;;  %v2658_v31 = vld [vmem:[%s3374_s1 + $0xb8] sm:$0xff]   ;;  %v253_v32 = vld [vmem:[%s2949_s18] sm:$0xff]  ;;  %s251_s10 = scalar_lea.vmem %s3379_s6, %s2613_s8 }
  0x11   : > { %2393 = vmatpush3.bf16.msra.mxu1 %v2638_v11  ;;  %2366 = vmatprep.subr.bf16.mxu0 %v2639_v12  ;;  %v2959_v33 = vld [vmem:[%s2949_s18 + $0x10] sm:$0xff]  ;;  %v254_v34 = vld [vmem:[%s2949_s18 + $0x8] sm:$0xff]  ;;  %v2966_v37 = vld [vmem:[%s2949_s18 + $0x18] sm:$0xff] }
  0x12   : > { %2394 = vmatprep.subr.bf16.mxu1 %v2640_v13  ;;  %v2963_v36 = vcombine.high %v253_v32, %v2959_v33  ;;  %v2969_v38 = vcombine.low %v253_v32, %v2959_v33  ;;  %v2972_v39 = vcombine.high %v254_v34, %v2966_v37  ;;  %v2975_v40 = vcombine.low %v254_v34, %v2966_v37  ;;  %v2666_v44 = vld [vmem:[%s3374_s1 + $0x180] sm:$0xff]   ;;  %v2667_v45 = vld [vmem:[%s3374_s1 + $0x148] sm:$0xff]   ;;  %v2671_v49 = vld [vmem:[%s3374_s1 + $0x150] sm:$0xff]  }
  0x13   : > { %v2668_v46 = vld [vmem:[%s3374_s1 + $0x1c8] sm:$0xff]   ;;  %v2672_v50 = vld [vmem:[%s3374_s1 + $0x1d0] sm:$0xff]   ;;  %v2675_v53 = vld [vmem:[%s3374_s1 + $0x158] sm:$0xff]  }
  0x14   : > { %2367 = vmatpush3.bf16.msra.mxu0 %v2641_v14  ;;  %1580 = vmatprep.mubr.bf16.mxu0 %v2963_v36  ;;  %v2669_v47 = vld [vmem:[%s3374_s1 + $0x108] sm:$0xff]   ;;  %v2673_v51 = vld [vmem:[%s3374_s1 + $0x110] sm:$0xff]   ;;  %v2676_v54 = vld [vmem:[%s3374_s1 + $0x1d8] sm:$0xff]   ;;  %v331_v61 = vshll.u32 %v2963_v36, 16  ;;  %v317_v63 = vshrl.u32 %v2969_v38, 16  ;;  %v319_v2 = vshll.u32 %v2969_v38, 16 }
  0x15   : > { %2395 = vmatpush3.bf16.msra.mxu1 %v2642_v15  ;;  %2368 = vmatprep.subr.bf16.mxu0 %v2643_v16  ;;  %v2670_v48 = vld [vmem:[%s3374_s1 + $0x188] sm:$0xff]   ;;  %v2674_v52 = vld [vmem:[%s3374_s1 + $0x190] sm:$0xff]   ;;  %v2677_v55 = vld [vmem:[%s3374_s1 + $0x118] sm:$0xff]   ;;  %v343_v6 = vshll.u32 %v2975_v40, 16  ;;  %v355_v9 = vshll.u32 %v2972_v39, 16  ;;  %v341_v13 = vshrl.u32 %v2975_v40, 16 }
  0x16   : > { %2396 = vmatprep.subr.bf16.mxu1 %v2644_v17  ;;  %1628 = vmatprep.mubr.bf16.mxu1 %v2972_v39  ;;  %v2678_v56 = vld [vmem:[%s3374_s1 + $0x198] sm:$0xff]   ;;  %v2679_v57 = vld [vmem:[%s3374_s1 + $0x160] sm:$0xff]   ;;  %v2683_v62 = vld [vmem:[%s3374_s1 + $0x168] sm:$0xff]   ;;  %v321_v15 = vrot.slane %v319_v2, 1 }
  0x17   : > { %v2680_v58 = vld [vmem:[%s3374_s1 + $0x1e0] sm:$0xff]   ;;  %v2684_v0 = vld [vmem:[%s3374_s1 + $0x1e8] sm:$0xff]   ;;  %v2691_v12 = vld [vmem:[%s3374_s1 + $0x170] sm:$0xff]   ;;  %v345_v17 = vrot.slane %v343_v6, 1 }
  0x18   : > { %2369 = vmatpush3.bf16.msra.mxu0 %v2645_v18  ;;  %v2681_v59 = vld [vmem:[%s3374_s1 + $0x120] sm:$0xff]   ;;  %v2686_v4 = vld [vmem:[%s3374_s1 + $0x128] sm:$0xff]   ;;  %v2692_v14 = vld [vmem:[%s3374_s1 + $0x1f0] sm:$0xff]  }
  0x19   : > { %2397 = vmatpush3.bf16.msra.mxu1 %v2646_v19  ;;  %2370 = vmatprep.subr.bf16.mxu0 %v2647_v20  ;;  %v2682_v60 = vld [vmem:[%s3374_s1 + $0x1a0] sm:$0xff]   ;;  %v2687_v7 = vld [vmem:[%s3374_s1 + $0x1a8] sm:$0xff]   ;;  %v2693_v16 = vld [vmem:[%s3374_s1 + $0x130] sm:$0xff]   ;;  %v329_v20 = vshrl.u32 %v2963_v36, 16 }
  0x1a   : > { %2398 = vmatprep.subr.bf16.mxu1 %v2648_v21  ;;  %v257_v1 = vld [vmem:[%s2949_s18 + $0x20] sm:$0x33]  ;;  %v258_v8 = vld [vmem:[%s2949_s18 + $0x28] sm:$0x33]  ;;  %v2694_v18 = vld [vmem:[%s3374_s1 + $0x1b0] sm:$0xff]  }
  0x1b   : > { %v2189_v3 = vcombine.high %v257_v1, %v257_v1  ;;  %v2188_v5 = vcombine.low %v257_v1, %v257_v1  ;;  %v2191_v10 = vcombine.high %v258_v8, %v258_v8  ;;  %v2190_v11 = vcombine.low %v258_v8, %v258_v8  ;;  %v2695_v19 = vld [vmem:[%s3374_s1 + $0x178] sm:$0xff]   ;;  %v2703_v34 = vld [vmem:[%s3374_s1 + $0x240] sm:$0xff]   ;;  %v2712_v2 = vld [vmem:[%s3374_s1 + $0x2d0] sm:$0xff]  }
  0x1c   : > { %2371 = vmatpush3.bf16.msra.mxu0 %v2649_v22  ;;  %v2696_v21 = vld [vmem:[%s3374_s1 + $0x1f8] sm:$0xff]   ;;  %v333_v22 = vrot.slane %v331_v61, 1 }
  0x1d   : > { %2399 = vmatpush3.bf16.msra.mxu1 %v2650_v23  ;;  %2372 = vmatprep.subr.bf16.mxu0 %v2651_v24  ;;  %v2697_v23 = vld [vmem:[%s3374_s1 + $0x138] sm:$0xff]   ;;  %v353_v24 = vshrl.u32 %v2972_v39, 16 }
  0x1e   : > { %2400 = vmatprep.subr.bf16.mxu1 %v2652_v25  ;;  %v2698_v25 = vld [vmem:[%s3374_s1 + $0x1b8] sm:$0xff]   ;;  %v334_v35 = vor.u32 %v333_v22, %v329_v20  ;;  %v2728_v20 = vld [vmem:[%s3374_s1 + $0x2f0] sm:$0xff]  }
  0x1f   : > { %v2716_v8 = vld [vmem:[%s3374_s1 + $0x2d8] sm:$0xff]   ;;  %v2730_v22 = vld [vmem:[%s3374_s1 + $0x2b0] sm:$0xff]  }
  0x20   : > { %2373 = vmatpush3.bf16.msra.mxu0 %v2653_v26  ;;  %v259_v26 = vld [vmem:[%s2949_s18 + $0x20] sm:$0x77] }
  0x21   : > { %2401 = vmatpush3.bf16.msra.mxu1 %v2654_v27  ;;  %2374 = vmatprep.subr.bf16.mxu0 %v2655_v28  ;;  %v357_v27 = vrot.slane %v355_v9, 1  ;;  %v2192_v28 = vcombine.low %v259_v26, %v259_v26  ;;  %v2717_v9 = vld [vmem:[%s3374_s1 + $0x218] sm:$0xff]  }
  0x22   : > { %2402 = vmatprep.subr.bf16.mxu1 %v2656_v29  ;;  %v2193_v29 = vcombine.high %v259_v26, %v259_v26  ;;  %v261_v26 = vld [vmem:[%s2949_s18] sm:$0xcc] }
  0x23   : > { %v324_v39 = vshll.u32 %v2192_v28, 16 }
  0x24   : > { %2375 = vmatpush3.bf16.msra.mxu0 %v2657_v30  ;;  %v260_v30 = vld [vmem:[%s2949_s18 + $0x28] sm:$0x77]  ;;  %v336_v36 = vshll.u32 %v2193_v29, 16 }
  0x25   : > { %2403 = vmatpush3.bf16.msra.mxu1 %v2658_v31  ;;  %2416 = vmatprep.subr.bf16.mxu0 %v2663_v41  ;;  %v2194_v31 = vcombine.low %v260_v30, %v260_v30  ;;  %v2195_v32 = vcombine.high %v260_v30, %v260_v30  ;;  %v358_v41 = vor.u32 %v357_v27, %v353_v24  ;;  %v2732_v24 = vld [vmem:[%s3374_s1 + $0x2f8] sm:$0xff]  }
  0x26   : > { %2444 = vmatprep.subr.bf16.mxu1 %v2664_v42  ;;  %v2734_v27 = vld [vmem:[%s3374_s1 + $0x2b8] sm:$0xff]   ;;  %v2196_v30 = vcombine.low %v261_v26, %v2959_v33 }
  0x27   : > { %1581 = vmatmul.mubr.bf16.vlgmr.msra.gmra.mrb[0].mxu0 %v2969_v38  ;;  %v322_v38 = vor.u32 %v321_v15, %v317_v63  ;;  %v360_v42 = vshll.u32 %v2195_v32, 16  ;;  %v373_v61 = vshrl.u32 %v2195_v32, 16  ;;  %v370_v63 = vshrl.u32 %v2194_v31, 16  ;;  %v2723_v15 = vld [vmem:[%s3374_s1 + $0x268] sm:$0xff]   ;;  %v2745_v32 = vld [vmem:[%s3374_s1 + $0x340] sm:$0xff]  }
  0x28   : > { %1629 = vmatmul.mubr.bf16.vlgmr.msra.gmra.mrb[0].mxu1 %v2975_v40  ;;  %2417 = vmatpush3.bf16.msra.mxu0 %v2665_v43  ;;  %v2704_v40 = vld [vmem:[%s3374_s1 + $0x2c0] sm:$0xff]   ;;  %v346_v43 = vor.u32 %v345_v17, %v341_v13  ;;  %v2725_v17 = vld [vmem:[%s3374_s1 + $0x228] sm:$0xff]  }
  0x29   : > { %2445 = vmatpush3.bf16.msra.mxu1 %v2666_v44  ;;  %2418 = vmatprep.subr.bf16.mxu0 %v2667_v45  ;;  %v348_v44 = vshll.u32 %v2194_v31, 16  ;;  %v2705_v45 = vld [vmem:[%s3374_s1 + $0x200] sm:$0xff]   ;;  %v262_v31 = vld [vmem:[%s2949_s18 + $0x8] sm:$0xcc] }
  0x2a   : > { %2446 = vmatprep.subr.bf16.mxu1 %v2668_v46  ;;  %1588 = vmatprep.mubr.bf16.mxu0 %v2189_v3  ;;  %v338_v46 = vrot.slane %v336_v36, 1  ;;  %v2721_v13 = vld [vmem:[%s3374_s1 + $0x220] sm:$0xff]  }
  0x2b   : > { %1636 = vmatprep.mubr.bf16.mxu1 %v2191_v10  ;;  %v2718_v10 = vld [vmem:[%s3374_s1 + $0x298] sm:$0xff]  }
  0x2c   : > { %2419 = vmatpush3.bf16.msra.mxu0 %v2669_v47  ;;  %v326_v47 = vrot.slane %v324_v39, 1 }
  0x2d   : > { %2447 = vmatpush3.bf16.msra.mxu1 %v2670_v48  ;;  %2420 = vmatprep.subr.bf16.mxu0 %v2671_v49  ;;  %v2706_v48 = vld [vmem:[%s3374_s1 + $0x280] sm:$0xff]   ;;  %v2707_v49 = vld [vmem:[%s3374_s1 + $0x248] sm:$0xff]  }
  0x2e   : > { %2448 = vmatprep.subr.bf16.mxu1 %v2672_v50  ;;  %v362_v50 = vrot.slane %v360_v42, 1 }
  0x2f   : > { %1589 = vmatmul.mubr.bf16.gmra.mrb[4].mxu0 %v2188_v5  ;;  %v2714_v5 = vld [vmem:[%s3374_s1 + $0x290] sm:$0xff]  }
  0x30   : > { %2421 = vmatpush3.bf16.msra.mxu0 %v2673_v51  ;;  %1637 = vmatmul.mubr.bf16.gmra.mrb[4].mxu1 %v2190_v11  ;;  %v350_v51 = vrot.slane %v348_v44, 1  ;;  %v375_v1 = vor.u32 %v373_v61, %v362_v50  ;;  %v2719_v11 = vld [vmem:[%s3374_s1 + $0x260] sm:$0xff]  }
  0x31   : > { %2449 = vmatpush3.bf16.msra.mxu1 %v2674_v52  ;;  %2422 = vmatprep.subr.bf16.mxu0 %v2675_v53  ;;  %v339_v52 = vsel %vm315_vm0, %v334_v35, %v338_v46  ;;  %v327_v53 = vsel %vm315_vm0, %v322_v38, %v326_v47 }
  0x32   : > { %2450 = vmatprep.subr.bf16.mxu1 %v2676_v54  ;;  %v2708_v54 = vld [vmem:[%s3374_s1 + $0x2c8] sm:$0xff]   ;;  %1676 = vmatprep.mubr.bf16.mxu0 %v339_v52  ;;  %v372_v6 = vor.u32 %v370_v63, %v350_v51 }
  0x34   : > { %2423 = vmatpush3.bf16.msra.mxu0 %v2677_v55  ;;  %v367_v55 = vshrl.u32 %v2193_v29, 16  ;;  %v3192_v29 = vld [vmem:[%s2949_s18 + $0x24] ss:$16 sps:$4 sm:$0x1f]  }
  0x35   : > { %2451 = vmatpush3.bf16.msra.mxu1 %v2678_v56  ;;  %2424 = vmatprep.subr.bf16.mxu0 %v2679_v57  ;;  %v363_v56 = vsel %vm315_vm0, %v358_v41, %v362_v50  ;;  %v351_v57 = vsel %vm315_vm0, %v346_v43, %v350_v51  ;;  %v443_v38 = vshrl.u32 %v3192_v29, 16  ;;  %v446_v39 = vshll.u32 %v3192_v29, 16  ;;  %v3207_v41 = vld [vmem:[%s2949_s18 + $0x2c] ss:$16 sps:$4 sm:$0x1f]  }
  0x36   : > { %2452 = vmatprep.subr.bf16.mxu1 %v2680_v58  ;;  %v2709_v58 = vld [vmem:[%s3374_s1 + $0x208] sm:$0xff]   ;;  %1724 = vmatprep.mubr.bf16.mxu1 %v363_v56  ;;  %v480_v50 = vshll.u32 %v3207_v41, 16 }
  0x37   : > { %v445_v44 = vrot.slane %v443_v38, 2  ;;  %v2762_v38 = vld [vmem:[%s3374_s1 + $0x3e0] sm:$0xff]  }
  0x38   : > { %2425 = vmatpush3.bf16.msra.mxu0 %v2681_v59  ;;  %v369_v59 = vor.u32 %v367_v55, %v338_v46  ;;  %v3210_v46 = vld [vmem:[%s2949_s18 + $0x28] ss:$16 sps:$4 sm:$0x1f]  }
  0x39   : > { %2453 = vmatpush3.bf16.msra.mxu1 %v2682_v60  ;;  %2426 = vmatprep.subr.bf16.mxu0 %v2683_v62  ;;  %v364_v60 = vshrl.u32 %v2192_v28, 16  ;;  %v2710_v62 = vld [vmem:[%s3374_s1 + $0x288] sm:$0xff]   ;;  %v2197_v28 = vcombine.high %v261_v26, %v2959_v33  ;;  %v2199_v33 = vcombine.high %v262_v31, %v2966_v37  ;;  %v2754_v26 = vld [vmem:[%s3374_s1 + $0x3d0] sm:$0xff]  }
  0x3a   : > { %2454 = vmatprep.subr.bf16.mxu1 %v2684_v0  ;;  %v2711_v0 = vld [vmem:[%s3374_s1 + $0x250] sm:$0xff]  }
  0x3b   : > { %v366_v3 = vor.u32 %v364_v60, %v326_v47  ;;  %v435_v35 = vshrl.u32 %v2197_v28, 16  ;;  %v438_v36 = vshll.u32 %v2197_v28, 16  ;;  %v469_v47 = vshrl.u32 %v2199_v33, 16  ;;  %v2756_v28 = vld [vmem:[%s3374_s1 + $0x390] sm:$0xff]  }
  0x3c   : > { %2427 = vmatpush3.bf16.msra.mxu0 %v2686_v4  ;;  %v2713_v4 = vld [vmem:[%s3374_s1 + $0x210] sm:$0xff]  }
  0x3d   : > { %2455 = vmatpush3.bf16.msra.mxu1 %v2687_v7  ;;  %2428 = vmatprep.subr.bf16.mxu0 %v2691_v12  ;;  %v2715_v7 = vld [vmem:[%s3374_s1 + $0x258] sm:$0xff]   ;;  %v2720_v12 = vld [vmem:[%s3374_s1 + $0x2e0] sm:$0xff]   ;;  %v437_v42 = vrot.slane %v435_v35, 2  ;;  %v440_v43 = vrot.slane %v438_v36, 3 }
  0x3e   : > { %2456 = vmatprep.subr.bf16.mxu1 %v2692_v14  ;;  %v2722_v14 = vld [vmem:[%s3374_s1 + $0x2a0] sm:$0xff]   ;;  %v2760_v35 = vld [vmem:[%s3374_s1 + $0x398] sm:$0xff]  }
  0x3f   : > { %v441_v51 = vor.u32 %v440_v43, %v437_v42  ;;  %v2761_v36 = vld [vmem:[%s3374_s1 + $0x360] sm:$0xff]   ;;  %v2766_v42 = vld [vmem:[%s3374_s1 + $0x3e8] sm:$0xff]  }
  0x40   : > { %2429 = vmatpush3.bf16.msra.mxu0 %v2693_v16  ;;  %v2724_v16 = vld [vmem:[%s3374_s1 + $0x2e8] sm:$0xff]  }
  0x41   : > { %2457 = vmatpush3.bf16.msra.mxu1 %v2694_v18  ;;  %2430 = vmatprep.subr.bf16.mxu0 %v2695_v19  ;;  %v2726_v18 = vld [vmem:[%s3374_s1 + $0x2a8] sm:$0xff]   ;;  %v2727_v19 = vld [vmem:[%s3374_s1 + $0x270] sm:$0xff]  }
  0x42   : > { %2458 = vmatprep.subr.bf16.mxu1 %v2696_v21  ;;  %v2729_v21 = vld [vmem:[%s3374_s1 + $0x230] sm:$0xff]   ;;  %v2767_v43 = vld [vmem:[%s3374_s1 + $0x328] sm:$0xff]  }
  0x44   : > { %2431 = vmatpush3.bf16.msra.mxu0 %v2697_v23  ;;  %v2731_v23 = vld [vmem:[%s3374_s1 + $0x278] sm:$0xff]  }
  0x45   : > { %2459 = vmatpush3.bf16.msra.mxu1 %v2698_v25  ;;  %2472 = vmatprep.subr.bf16.mxu0 %v2703_v34  ;;  %v2733_v25 = vld [vmem:[%s3374_s1 + $0x238] sm:$0xff]   ;;  %v3200_v34 = vld [vmem:[%s2949_s18 + $0x20] ss:$16 sps:$4 sm:$0x1f]  }
  0x46   : > { %2500 = vmatprep.subr.bf16.mxu1 %v2704_v40  ;;  %v2198_v40 = vcombine.low %v262_v31, %v2966_v37  ;;  %v421_v37 = vshll.u32 %v2196_v30, 16  ;;  %v2758_v31 = vld [vmem:[%s3374_s1 + $0x3d8] sm:$0xff]  }
  0x47   : > { %1677 = vmatmul.mubr.bf16.vlgmr.msra.gmra.mrb[8].mxu0 %v327_v53  ;;  %v418_v53 = vshrl.u32 %v2196_v30, 16  ;;  %v2757_v30 = vld [vmem:[%s3374_s1 + $0x358] sm:$0xff]  }
  0x48   : > { %1725 = vmatmul.mubr.bf16.vlgmr.msra.gmra.mrb[8].mxu1 %v351_v57  ;;  %2473 = vmatpush3.bf16.msra.mxu0 %v2705_v45  ;;  %v448_v45 = vrot.slane %v446_v39, 3  ;;  %v482_v57 = vrot.slane %v480_v50, 3  ;;  %v423_v61 = vrot.slane %v421_v37, 3  ;;  %v2763_v39 = vld [vmem:[%s3374_s1 + $0x320] sm:$0xff]   ;;  %v2772_v50 = vld [vmem:[%s3374_s1 + $0x3b0] sm:$0xff]  }
  0x49   : > { %2501 = vmatpush3.bf16.msra.mxu1 %v2706_v48  ;;  %2474 = vmatprep.subr.bf16.mxu0 %v2707_v49  ;;  %v472_v48 = vshll.u32 %v2199_v33, 16  ;;  %v477_v49 = vshrl.u32 %v3207_v41, 16  ;;  %v420_v60 = vrot.slane %v418_v53, 2  ;;  %v2765_v33 = vld [vmem:[%s3374_s1 + $0x368] sm:$0xff]   ;;  %v505_v53 = vrot.slane %v3200_v34, 3 }
  0x4a   : > { %2502 = vmatprep.subr.bf16.mxu1 %v2708_v54  ;;  %1684 = vmatprep.mubr.bf16.mxu0 %v369_v59  ;;  %v449_v52 = vor.u32 %v448_v45, %v445_v44  ;;  %v471_v54 = vrot.slane %v469_v47, 2  ;;  %v2768_v44 = vld [vmem:[%s3374_s1 + $0x3a8] sm:$0xff]   ;;  %v2769_v45 = vld [vmem:[%s3374_s1 + $0x370] sm:$0xff]   ;;  %v269_v37 = vld [vmem:[%s2949_s18] sm:$0x88] }
  0x4b   : > { %1732 = vmatprep.mubr.bf16.mxu1 %v375_v1  ;;  %v474_v55 = vrot.slane %v472_v48, 3  ;;  %v479_v56 = vrot.slane %v477_v49, 2  ;;  %v429_v1 = vshll.u32 %v3200_v34, 16  ;;  %v2770_v47 = vld [vmem:[%s3374_s1 + $0x3f0] sm:$0xff]   ;;  %v508_v49 = vrot.slane %v3192_v29, 3  ;;  %v2774_v29 = vld [vmem:[%s3374_s1 + $0x3f8] sm:$0xff]  }
  0x4c   : > { %2475 = vmatpush3.bf16.msra.mxu0 %v2709_v58  ;;  %v2746_v58 = vld [vmem:[%s3374_s1 + $0x3c0] sm:$0xff]   ;;  %v450_v59 = vsel %vm416_vm1, %v441_v51, %v449_v52  ;;  %v2771_v48 = vld [vmem:[%s3374_s1 + $0x330] sm:$0xff]   ;;  %v514_v51 = vrot.slane %v3207_v41, 3  ;;  %v2775_v41 = vld [vmem:[%s3374_s1 + $0x338] sm:$0xff]  }
  0x4d   : > { %2503 = vmatpush3.bf16.msra.mxu1 %v2710_v62  ;;  %2476 = vmatprep.subr.bf16.mxu0 %v2711_v0  ;;  %v426_v62 = vshrl.u32 %v3200_v34, 16  ;;  %v475_v63 = vor.u32 %v474_v55, %v471_v54  ;;  %v483_v0 = vor.u32 %v482_v57, %v479_v56  ;;  %v270_v54 = vld [vmem:[%s2949_s18 + $0x8] sm:$0x88]  ;;  %v511_v55 = vrot.slane %v3210_v46, 3  ;;  %v2793_v56 = vld [vmem:[%s2949_s18 + $0x10] sm:$0xff] }
  0x4e   : > { %2504 = vmatprep.subr.bf16.mxu1 %v2712_v2  ;;  %v452_v2 = vshrl.u32 %v2198_v40, 16  ;;  %v2204_v57 = vcombine.low %v269_v37, %v2793_v56 }
  0x4f   : > { %1685 = vmatmul.mubr.bf16.gmra.mrb[12].mxu0 %v366_v3  ;;  %v424_v3 = vor.u32 %v423_v61, %v420_v60  ;;  %v1955_v61 = vld [vmem:[%s3377_s4] sm:$0xff] }
  0x50   : > { %2477 = vmatpush3.bf16.msra.mxu0 %v2713_v4  ;;  %1733 = vmatmul.mubr.bf16.gmra.mrb[12].mxu1 %v372_v6  ;;  %v428_v4 = vrot.slane %v426_v62, 2  ;;  %v460_v6 = vshrl.u32 %v3210_v46, 16  ;;  %v1957_v62 = vld [vmem:[%s3377_s4 + $0x10] sm:$0xf] }
  0x51   : > { %2505 = vmatpush3.bf16.msra.mxu1 %v2714_v5  ;;  %2478 = vmatprep.subr.bf16.mxu0 %v2715_v7  ;;  %v455_v5 = vshll.u32 %v2198_v40, 16  ;;  %v484_v7 = vsel %vm416_vm1, %v475_v63, %v483_v0  ;;  %v2764_v40 = vld [vmem:[%s3374_s1 + $0x3a0] sm:$0xff]   ;;  %v1956_v63 = vld [vmem:[%s3377_s4 + $0x8] sm:$0xff] }
  0x52   : > { %2506 = vmatprep.subr.bf16.mxu1 %v2716_v8  ;;  %1772 = vmatprep.mubr.bf16.mxu0 %v450_v59  ;;  %v431_v8 = vrot.slane %v429_v1, 3  ;;  %v2794_v59 = vld [vmem:[%s2949_s18 + $0x18] sm:$0xff] }
  0x53   : > { %1820 = vmatprep.mubr.bf16.mxu1 %v484_v7  ;;  %v2206_v60 = vcombine.low %v270_v54, %v2794_v59  ;;  %v2207_v34 = vcombine.high %v270_v54, %v2794_v59  ;;  %1960 = vperm.xlu0 %2625, %v1955_v61  }
  0x54   : > { %2479 = vmatpush3.bf16.msra.mxu0 %v2717_v9  ;;  %v454_v9 = vrot.slane %v452_v2, 2  ;;  %1970 = vperm.xlu1 %2626, %v1957_v62  }
  0x55   : > { %2507 = vmatpush3.bf16.msra.mxu1 %v2718_v10  ;;  %2480 = vmatprep.subr.bf16.mxu0 %v2719_v11  ;;  %v463_v10 = vshll.u32 %v3210_v46, 16  ;;  %v2747_v11 = vld [vmem:[%s3374_s1 + $0x300] sm:$0xff]   ;;  %v2776_v46 = vld [vmem:[%s3374_s1 + $0x3b8] sm:$0xff]   ;;  %v510_v2 = vrot.slane %v2206_v60, 3 }
  0x56   : > { %2508 = vmatprep.subr.bf16.mxu1 %v2720_v12  ;;  %v457_v12 = vrot.slane %v455_v5, 3 }
  0x57   : > { %1965 = vperm.xlu0 %2625, %v1956_v63   ;;  %v512_v7 = vsel %vm503_vm2, %v510_v2, %v511_v55 }
  0x58   : > { %2481 = vmatpush3.bf16.msra.mxu0 %v2721_v13  ;;  %v462_v13 = vrot.slane %v460_v6, 2 }
  0x59   : > { %2509 = vmatpush3.bf16.msra.mxu1 %v2722_v14  ;;  %2482 = vmatprep.subr.bf16.mxu0 %v2723_v15  ;;  %v432_v14 = vor.u32 %v431_v8, %v428_v4  ;;  %v465_v15 = vrot.slane %v463_v10, 3  ;;  %v2781_v8 = vld [vmem:[%s3378_s5] sm:$0xff]  }
  0x5a   : > { %2510 = vmatprep.subr.bf16.mxu1 %v2724_v16  ;;  %v2748_v16 = vld [vmem:[%s3374_s1 + $0x380] sm:$0xff]  }
  0x5c   : > { %2483 = vmatpush3.bf16.msra.mxu0 %v2725_v17  ;;  %v2749_v17 = vld [vmem:[%s3374_s1 + $0x348] sm:$0xff]  }
  0x5d   : > { %2511 = vmatpush3.bf16.msra.mxu1 %v2726_v18  ;;  %2484 = vmatprep.subr.bf16.mxu0 %v2727_v19  ;;  %v458_v18 = vor.u32 %v457_v12, %v454_v9  ;;  %v433_v19 = vsel %vm416_vm1, %v424_v3, %v432_v14  ;;  %v513_v3 = vrot.slane %v2207_v34, 3  ;;  %v2804_v9 = vmov 0.0  }
  0x5e   : > { %2512 = vmatprep.subr.bf16.mxu1 %v2728_v20  ;;  %v466_v20 = vor.u32 %v465_v15, %v462_v13  ;;  %v2782_v13 = vld [vmem:[%s3378_s5 + $0x8] sm:$0xff]  }
  0x5f   : > { %v515_v5 = vsel %vm503_vm2, %v513_v3, %v514_v51 }
  0x60   : > { %2485 = vmatpush3.bf16.msra.mxu0 %v2729_v21  ;;  %v2750_v21 = vld [vmem:[%s3374_s1 + $0x3c8] sm:$0xff]  }
  0x61   : > { %2513 = vmatpush3.bf16.msra.mxu1 %v2730_v22  ;;  %2486 = vmatprep.subr.bf16.mxu0 %v2731_v23  ;;  %v2751_v22 = vld [vmem:[%s3374_s1 + $0x308] sm:$0xff]   ;;  %v467_v23 = vsel %vm416_vm1, %v458_v18, %v466_v20 }
  0x62   : > { %2514 = vmatprep.subr.bf16.mxu1 %v2732_v24  ;;  %v2752_v24 = vld [vmem:[%s3374_s1 + $0x388] sm:$0xff]  }
  0x64   : > { %2487 = vmatpush3.bf16.msra.mxu0 %v2733_v25  ;;  %v2753_v25 = vld [vmem:[%s3374_s1 + $0x350] sm:$0xff]  }
  0x65   : > { %2515 = vmatpush3.bf16.msra.mxu1 %v2734_v27  ;;  %2528 = vmatprep.subr.bf16.mxu0 %v2745_v32  ;;  %v2755_v27 = vld [vmem:[%s3374_s1 + $0x310] sm:$0xff]   ;;  %v2759_v32 = vld [vmem:[%s3374_s1 + $0x318] sm:$0xff]  }
  0x66   : > { %2556 = vmatprep.subr.bf16.mxu1 %v2746_v58  ;;  %v2205_v58 = vcombine.high %v269_v37, %v2793_v56 }
  0x67   : > { %1773 = vmatmul.mubr.bf16.vlgmr.msra.gmra.mrb[16].mxu0 %v433_v19 }
  0x68   : > { %2529 = vmatpush3.bf16.msra.mxu0 %v2747_v11  ;;  %1780 = vmatprep.mubr.bf16.mxu0 %v449_v52  ;;  %v2773_v52 = vld [vmem:[%s3374_s1 + $0x378] sm:$0xff]   ;;  %v507_v1 = vrot.slane %v2205_v58, 3 }
  0x69   : > { %1821 = vmatmul.mubr.bf16.vlgmr.msra.gmra.mrb[16].mxu1 %v467_v23  ;;  %2530 = vmatprep.subr.bf16.mxu0 %v2749_v17 }
  0x6a   : > { %2557 = vmatpush3.bf16.msra.mxu1 %v2748_v16  ;;  %1828 = vmatprep.mubr.bf16.mxu1 %v483_v0  ;;  %v504_v0 = vrot.slane %v2204_v57, 3  ;;  %v509_v4 = vsel %vm503_vm2, %v507_v1, %v508_v49 }
  0x6b   : > { %2558 = vmatprep.subr.bf16.mxu1 %v2750_v21 }
  0x6c   : > { %2531 = vmatpush3.bf16.msra.mxu0 %v2751_v22  ;;  %v506_v6 = vsel %vm503_vm2, %v504_v0, %v505_v53 }
  0x6d   : > { %2532 = vmatprep.subr.bf16.mxu0 %v2753_v25 }
  0x6e   : > { %2559 = vmatpush3.bf16.msra.mxu1 %v2752_v24 }
  0x6f   : > { %1781 = vmatmul.mubr.bf16.gmra.mrb[20].mxu0 %v432_v14  ;;  %2560 = vmatprep.subr.bf16.mxu1 %v2754_v26  ;;  %v2784_v26 = vld [vmem:[%s3378_s5 + $0x18] sm:$0xff]  }
  0x70   : > { %2533 = vmatpush3.bf16.msra.mxu0 %v2755_v27  ;;  %1868 = vmatprep.mubr.bf16.mxu0 %v509_v4  ;;  %v2785_v27 = vld [vmem:[%s3378_s5 + $0x20] sm:$0xff]  }
  0x71   : > { %1829 = vmatmul.mubr.bf16.gmra.mrb[20].mxu1 %v466_v20  ;;  %2534 = vmatprep.subr.bf16.mxu0 %v2757_v30  ;;  %v2783_v20 = vld [vmem:[%s3378_s5 + $0x10] sm:$0xff]  }
  0x72   : > { %2561 = vmatpush3.bf16.msra.mxu1 %v2756_v28  ;;  %1916 = vmatprep.mubr.bf16.mxu1 %v515_v5  ;;  %v2786_v28 = vld [vmem:[%s3378_s5 + $0x28] sm:$0xff]   ;;  %v2787_v30 = vld [vmem:[%s3378_s5 + $0x30] sm:$0xff]  }
  0x73   : > { %2562 = vmatprep.subr.bf16.mxu1 %v2758_v31 }
  0x74   : > { %2535 = vmatpush3.bf16.msra.mxu0 %v2759_v32 }
  0x75   : > { %2536 = vmatprep.subr.bf16.mxu0 %v2761_v36 }
  0x76   : > { %2563 = vmatpush3.bf16.msra.mxu1 %v2760_v35  ;;  %v2788_v35 = vld [vmem:[%s3378_s5 + $0x38] sm:$0xff]  }
  0x77   : > { %2564 = vmatprep.subr.bf16.mxu1 %v2762_v38 }
  0x78   : > { %2537 = vmatpush3.bf16.msra.mxu0 %v2763_v39 }
  0x79   : > { %2538 = vmatprep.subr.bf16.mxu0 %v2765_v33 }
  0x7a   : > { %2565 = vmatpush3.bf16.msra.mxu1 %v2764_v40 }
  0x7b   : > { %2566 = vmatprep.subr.bf16.mxu1 %v2766_v42 }
  0x7c   : > { %2539 = vmatpush3.bf16.msra.mxu0 %v2767_v43 }
  0x7d   : > { %2540 = vmatprep.subr.bf16.mxu0 %v2769_v45 }
  0x7e   : > { %2567 = vmatpush3.bf16.msra.mxu1 %v2768_v44 }
  0x7f   : > { %2568 = vmatprep.subr.bf16.mxu1 %v2770_v47 }
  0x80   : > { %2541 = vmatpush3.bf16.msra.mxu0 %v2771_v48 }
  0x81   : > { %2542 = vmatprep.subr.bf16.mxu0 %v2773_v52 }
  0x82   : > { %2569 = vmatpush3.bf16.msra.mxu1 %v2772_v50 }
  0x83   : > { %2570 = vmatprep.subr.bf16.mxu1 %v2774_v29 }
  0x84   : > { %2543 = vmatpush3.bf16.msra.mxu0 %v2775_v41 }
  0x85   : > { %2593 = vmatprep.subr.bf16.mxu0 %v2804_v9 }
  0x86   : > { %2571 = vmatpush3.bf16.msra.mxu1 %v2776_v46 }
  0x87   : > { %1869 = vmatmul.mubr.bf16.vlgmr.msra.gmra.mrb[24].mxu0 %v506_v6 }
  0x88   : > { %1876 = vmatprep.mubr.bf16.mxu0 %v508_v49  ;;  %2594 = vmatpush3.bf16.msra.mxu0 %v2781_v8 }
  0x89   : > { %1917 = vmatmul.mubr.bf16.vlgmr.msra.gmra.mrb[24].mxu1 %v512_v7  ;;  %2595 = vmatprep.subr.bf16.mxu0 %v2804_v9 }
  0x8a   : > { %1924 = vmatprep.mubr.bf16.mxu1 %v514_v51 }
  0x8c   : > { %2596 = vmatpush3.bf16.msra.mxu0 %v2782_v13 }
  0x8d   : > { %2597 = vmatprep.subr.bf16.mxu0 %v2804_v9 }
  0x8f   : > { %1877 = vmatmul.mubr.bf16.gmra.mrb[28].mxu0 %v505_v53 }
  0x90   : > { %2598 = vmatpush3.bf16.msra.mxu0 %v2783_v20  ;;  %2609 = vmatprep.mubr.msk.bf16.mxu0 %vm2805_vm3, %v2804_v9 }
  0x91   : > { %1925 = vmatmul.mubr.bf16.gmra.mrb[28].mxu1 %v511_v55  ;;  %2599 = vmatprep.subr.bf16.mxu0 %v2804_v9 }
  0x94   : > { %2600 = vmatpush3.bf16.msra.mxu0 %v2784_v26 }
  0x95   : > { %2601 = vmatprep.subr.bf16.mxu0 %v2804_v9 }
  0x98   : > { %2602 = vmatpush3.bf16.msra.mxu0 %v2785_v27 }
  0x99   : > { %2603 = vmatprep.subr.bf16.mxu0 %v2804_v9 }
  0x9c   : > { %2604 = vmatpush3.bf16.msra.mxu0 %v2786_v28 }
  0x9d   : > { %2605 = vmatprep.subr.bf16.mxu0 %v2804_v9 }
  0xa0   : > { %2606 = vmatpush3.bf16.msra.mxu0 %v2787_v30 }
  0xa1   : > { %2607 = vmatprep.subr.bf16.mxu0 %v2804_v9 }
  0xa4   : > { %2608 = vmatpush3.bf16.msra.mxu0 %v2788_v35 }
  0xfa   : > { %v2376_v10 = vpop.f32.mrb[0].mxu0 }
  0xfb   : > { %v2404_v11 = vpop.f32.mrb[0].mxu1  ;;  %v2377_v12 = vpop.f32.mrb[1].mxu0 }
  0xfc   : > { %v2378_v14 = vadd.f32 %v2377_v12, %v2376_v10  ;;  %v2405_v15 = vpop.f32.mrb[1].mxu1  ;;  %v2379_v16 = vpop.f32.mrb[2].mxu0 }
  0xfd   : > { %v2406_v17 = vadd.f32 %v2405_v15, %v2404_v11  ;;  %v2407_v18 = vpop.f32.mrb[2].mxu1  ;;  %v2380_v19 = vpop.f32.mrb[3].mxu0 }
  0xfe   : > { %v2381_v21 = vadd.f32 %v2380_v19, %v2379_v16  ;;  %v2408_v22 = vpop.f32.mrb[3].mxu1 }
  0xff   : > { %v1631_v23 = vadd.f32 %v2406_v17, %v2378_v14  ;;  %v2409_v24 = vadd.f32 %v2408_v22, %v2407_v18 }
 0x101   : > { %v1634_v25 = vadd.f32 %v2409_v24, %v2381_v21 }
 0x102   : > { %v2382_v31 = vpop.f32.mrb[4].mxu0 }
 0x103   : > { %v2383_v32 = vpop.f32.mrb[5].mxu0  ;;  %v2410_v39 = vpop.f32.mrb[4].mxu1 }
 0x104   : > { %v2384_v36 = vadd.f32 %v2383_v32, %v2382_v31  ;;  %v2385_v38 = vpop.f32.mrb[6].mxu0  ;;  %v2411_v33 = vpop.f32.mrb[5].mxu1 }
 0x105   : > { %v2386_v40 = vpop.f32.mrb[7].mxu0  ;;  %v2412_v42 = vadd.f32 %v2411_v33, %v2410_v39  ;;  %v2413_v43 = vpop.f32.mrb[6].mxu1 }
 0x106   : > { %v2414_v44 = vpop.f32.mrb[7].mxu1 }
 0x107   : > { %v1639_v45 = vadd.f32 %v2412_v42, %v2384_v36 }
 0x11a   : > { %v2432_v47 = vpop.f32.mrb[8].mxu0 }
 0x11b   : > { %v2460_v48 = vpop.f32.mrb[8].mxu1  ;;  %v2433_v49 = vpop.f32.mrb[9].mxu0 }
 0x11c   : > { %v2434_v50 = vadd.f32 %v2433_v49, %v2432_v47  ;;  %v2461_v51 = vpop.f32.mrb[9].mxu1  ;;  %v2435_v52 = vpop.f32.mrb[10].mxu0 }
 0x11d   : > { %v2462_v53 = vadd.f32 %v2461_v51, %v2460_v48  ;;  %v2463_v29 = vpop.f32.mrb[10].mxu1  ;;  %v2436_v37 = vpop.f32.mrb[11].mxu0 }
 0x11e   : > { %v1679_v54 = vadd.f32 %v2434_v50, %v1631_v23  ;;  %v2437_v55 = vadd.f32 %v2436_v37, %v2435_v52  ;;  %v2464_v41 = vpop.f32.mrb[11].mxu1  ;;  %v2336_v52 = vld [vmem:[%s3375_s2] ss:$0 sm:$0xff] }
 0x11f   : > { %v2465_v56 = vadd.f32 %v2464_v41, %v2463_v29 }
 0x120   : > { %v1727_v57 = vadd.f32 %v2462_v53, %v1679_v54  ;;  %v1682_v58 = vadd.f32 %v2437_v55, %v1634_v25 }
 0x122   : > { %v1730_v59 = vadd.f32 %v2465_v56, %v1682_v58  ;;  %v2438_v60 = vpop.f32.mrb[12].mxu0  ;;  %v1961_v56 = vpop.permute.xlu0 %1960 }
 0x123   : > { %v2439_v34 = vpop.f32.mrb[13].mxu0  ;;  %v2466_v61 = vpop.f32.mrb[12].mxu1 }
 0x124   : > { %v2440_v62 = vadd.f32 %v2439_v34, %v2438_v60  ;;  %v2467_v46 = vpop.f32.mrb[13].mxu1  ;;  %v2441_v63 = vpop.f32.mrb[14].mxu0  ;;  %v2337_v34 = vld [vmem:[%s3376_s3] ss:$0 sm:$0xff] }
 0x125   : > { %v2468_v0 = vadd.f32 %v2467_v46, %v2466_v61  ;;  %v2442_v1 = vpop.f32.mrb[15].mxu0  ;;  %v2469_v2 = vpop.f32.mrb[14].mxu1 }
 0x126   : > { %v1687_v3 = vadd.f32 %v2440_v62, %v1639_v45  ;;  %v2470_v4 = vpop.f32.mrb[15].mxu1 }
 0x128   : > { %v1735_v5 = vadd.f32 %v2468_v0, %v1687_v3 }
 0x13a   : > { %v2488_v6 = vpop.f32.mrb[16].mxu0 }
 0x13b   : > { %v2489_v7 = vpop.f32.mrb[17].mxu0 }
 0x13c   : > { %v2516_v8 = vpop.f32.mrb[16].mxu1  ;;  %v2490_v9 = vadd.f32 %v2489_v7, %v2488_v6  ;;  %v2491_v10 = vpop.f32.mrb[18].mxu0 }
 0x13d   : > { %v2517_v11 = vpop.f32.mrb[17].mxu1  ;;  %v2492_v12 = vpop.f32.mrb[19].mxu0 }
 0x13e   : > { %v1775_v13 = vadd.f32 %v2490_v9, %v1727_v57  ;;  %v2518_v14 = vadd.f32 %v2517_v11, %v2516_v8  ;;  %v2519_v15 = vpop.f32.mrb[18].mxu1  ;;  %v2493_v16 = vadd.f32 %v2492_v12, %v2491_v10  ;;  %v1966_v7 = vpop.permute.xlu0 %1965 }
 0x13f   : > { %v2520_v17 = vpop.f32.mrb[19].mxu1  ;;  %v1971_v11 = vpop.permute.xlu1 %1970 }
 0x140   : > { %v1823_v18 = vadd.f32 %v2518_v14, %v1775_v13  ;;  %v1778_v19 = vadd.f32 %v2493_v16, %v1730_v59  ;;  %v2521_v20 = vadd.f32 %v2520_v17, %v2519_v15 }
 0x142   : > { %v1826_v21 = vadd.f32 %v2521_v20, %v1778_v19  ;;  %v2494_v22 = vpop.f32.mrb[20].mxu0 }
 0x143   : > { %v2495_v23 = vpop.f32.mrb[21].mxu0 }
 0x144   : > { %v2496_v24 = vadd.f32 %v2495_v23, %v2494_v22  ;;  %v2522_v25 = vpop.f32.mrb[20].mxu1  ;;  %v2497_v26 = vpop.f32.mrb[22].mxu0 }
 0x145   : > { %v2523_v27 = vpop.f32.mrb[21].mxu1  ;;  %v2498_v28 = vpop.f32.mrb[23].mxu0 }
 0x146   : > { %v1783_v30 = vadd.f32 %v2496_v24, %v1735_v5  ;;  %v2524_v31 = vadd.f32 %v2523_v27, %v2522_v25  ;;  %v2525_v32 = vpop.f32.mrb[22].mxu1 }
 0x147   : > { %v2526_v35 = vpop.f32.mrb[23].mxu1 }
 0x148   : > { %v1831_v36 = vadd.f32 %v2524_v31, %v1783_v30 }
 0x15a   : > { %v2544_v38 = vpop.f32.mrb[24].mxu0 }
 0x15b   : > { %v2545_v39 = vpop.f32.mrb[25].mxu0 }
 0x15c   : > { %v2572_v40 = vpop.f32.mrb[24].mxu1  ;;  %v2546_v33 = vadd.f32 %v2545_v39, %v2544_v38  ;;  %v2547_v42 = vpop.f32.mrb[26].mxu0  ;;  %v2098_v38 = vlaneseq }
 0x15d   : > { %v2573_v43 = vpop.f32.mrb[25].mxu1  ;;  %v2548_v44 = vpop.f32.mrb[27].mxu0 }
 0x15e   : > { %v1871_v45 = vadd.f32 %v2546_v33, %v1823_v18  ;;  %v2574_v47 = vadd.f32 %v2573_v43, %v2572_v40  ;;  %v2575_v48 = vpop.f32.mrb[26].mxu1  ;;  %v2549_v49 = vadd.f32 %v2548_v44, %v2547_v42  ;;  %v2099_v39 = vshrl.u32 %v2098_v38, 7 }
 0x15f   : > { %v2576_v50 = vpop.f32.mrb[27].mxu1 }
 0x160   : > { %v1919_v51 = vadd.f32 %v2574_v47, %v1871_v45  ;;  %v1874_v53 = vadd.f32 %v2549_v49, %v1826_v21  ;;  %v2577_v29 = vadd.f32 %v2576_v50, %v2575_v48  ;;  %v2100_v40 = vsub.s32 0, %v2099_v39 }
 0x162   : > { %v1922_v37 = vadd.f32 %v2577_v29, %v1874_v53  ;;  %v2550_v54 = vpop.f32.mrb[28].mxu0  ;;  %v1939_v55 = vmul.f32 %v2336_v52, %v1919_v51 }
 0x163   : > { %v2551_v41 = vpop.f32.mrb[29].mxu0 }
 0x164   : > { %v1940_v57 = vmul.f32 %v2336_v52, %v1922_v37  ;;  %v2578_v58 = vpop.f32.mrb[28].mxu1  ;;  %v2552_v59 = vadd.f32 %v2551_v41, %v2550_v54  ;;  %v2553_v60 = vpop.f32.mrb[30].mxu0  ;;  %v1949_v2 = vadd.f32 %v2337_v34, %v1939_v55 }
 0x165   : > { %v2579_v61 = vpop.f32.mrb[29].mxu1  ;;  %v2554_v62 = vpop.f32.mrb[31].mxu0 }
 0x166   : > { %v1879_v46 = vadd.f32 %v2552_v59, %v1831_v36  ;;  %v2580_v63 = vadd.f32 %v2579_v61, %v2578_v58  ;;  %v2581_v0 = vpop.f32.mrb[30].mxu1  ;;  %v1950_v1 = vadd.f32 %v2337_v34, %v1940_v57  ;;  %v1952_v8 = vmax.f32 %v1949_v2, 0.0 }
 0x167   : > { %v2582_v3 = vpop.f32.mrb[31].mxu1 }
 0x168   : > { %v1927_v4 = vadd.f32 %v2580_v63, %v1879_v46  ;;  %v1953_v5 = vmax.f32 %v1950_v1, 0.0  ;;  %v1973_v13 = vmul.f32 %v1961_v56, %v1952_v8 }
 0x16a   : > { %v1941_v6 = vmul.f32 %v2336_v52, %v1927_v4  ;;  %v1974_v10 = vmul.f32 %v1966_v7, %v1953_v5 }
 0x16c   : > { %v1951_v9 = vadd.f32 %v2337_v34, %v1941_v6  ;;  %v1976_v15 = vadd.f32 %v1974_v10, %v1973_v13 }
 0x16e   : > { %v1954_v12 = vmax.f32 %v1951_v9, 0.0 }
 0x170   : > { %v1975_v14 = vmul.f32 %v1971_v11, %v1954_v12 }
 0x172   : > { %v1978_v16 = vsel %vm1977_vm4, %v1975_v14, 0.0 }
 0x173   : > { %v1979_v17 = vadd.f32 %v1978_v16, %v1976_v15 }
 0x175   : > { %v1980_v18 = vrot.slane %v1979_v17, 4 }
 0x177   : > { %v1981_v19 = vadd.f32 %v1980_v18, %v1979_v17 }
 0x179   : > { %v1982_v20 = vrot.slane %v1981_v19, 2 }
 0x17b   : > { %v1983_v21 = vadd.f32 %v1982_v20, %v1981_v19 }
 0x17d   : > { %v1984_v22 = vrot.slane %v1983_v21, 1 }
 0x17f   : > { %v1985_v23 = vadd.f32 %v1984_v22, %v1983_v21 }
 0x181   : > { %v1986_v24 = vmul.f32 0.0625, %v1985_v23 }
 0x183   : > { %v1987_v25 = vpack.c.bf16 %v1986_v24, %v1986_v24 }
 0x185   : > { %2610 = vmatmul.mubr.bf16.vlgmr.msra.gmra.mrb[32].mxu0 %v1987_v25 }
 0x258   : > { %v2086_v26 = vpop.f32.mrb[32].mxu0 }
 0x259   : > { %v2092_v27 = vsub.f32 0.0, %v2086_v26  ;;  %v2611_v28 = vpop.f32.mrb[33].mxu0 }
 0x25a   : > { %v2089_v30 = vpop.f32.mrb[34].mxu0 }
 0x25b   : > { %v2093_v31 = vmul.f32 1.442695, %v2092_v27  ;;  %v2612_v32 = vpop.f32.mrb[35].mxu0 }
 0x25d   : > { %2789 = vpow2.f32 %v2093_v31 }
 0x267   : > { %v2790_v35 = vpop.eup %2789 }
 0x268   : > { %v2095_v36 = vadd.f32 1.0, %v2790_v35 }
 0x26a   : > { %2791 = vrcp.f32 %v2095_v36 }
 0x274   : > { %v2792_v33 = vpop.eup %2791 }
 0x275   : > { %v2101_v42 = vrot.slane %v2792_v33, %v2100_v40 }
 0x277   : > { %v2102_v43 = vmul.f32 %v2101_v42, %v1973_v13  ;;  %v2103_v44 = vmul.f32 %v2101_v42, %v1974_v10  ;;  %v2104_v45 = vmul.f32 %v2101_v42, %v1975_v14 }
 0x279   : > { %v2354_v47 = vpack.c.bf16 %v2104_v45, %v2104_v45  ;;  %v2358_v48 = vpack.c.bf16 %v2103_v44, %v2102_v43 }
 0x27b   : > { %2359 = vst [vmem:[%s251_s10] sm:$0xff] %v2358_v48   ;;  %2120 = vst [vmem:[%s251_s10 + $0x8] sm:$0x3] %v2354_v47 }
 0x27c PF: > { %s16_s21 = sadd.s32 1, %s2801_s21  }
 0x27d   : > { %p13_p4 = scmp.ge.s32.totalorder %s16_s21, 4  }
 0x27f   :  { %15 = sbr.rel (!%p13_p4) target bundleno = 1 (0x1), region = 74 }

// kernel: _lambda_.21
= control target key start
LH: loop header
LB: loop body
LE: loop exit
PB: predicated region body
PF: predicated region fallthrough
CT: control target
= control target key end

     0   :  { %s725_s21 = smov 0   ;;  %s807_s0 = inlined_call_operand.vmem [shape: bf16[2,16,128], index: 0, kind: input, shape index: {}]   ;;  %s808_s1 = inlined_call_operand.vmem [shape: bf16[128,128], index: 1, kind: input, shape index: {}]   ;;  %s809_s2 = inlined_call_operand.vmem [shape: f32[1,128], index: 2, kind: input, shape index: {}]   ;;  %s810_s3 = inlined_call_operand.vmem [shape: f32[1,128], index: 3, kind: input, shape index: {}]   ;;  %s811_s4 = inlined_call_operand.vmem [shape: f32[4,1], index: 4, kind: input, shape index: {}]   ;;  %s812_s5 = inlined_call_operand.vmem [shape: bf16[128,128], index: 5, kind: input, shape index: {}]   ;;  %s813_s6 = inlined_call_operand.vmem [shape: bf16[2,4,128], index: 6, kind: output, shape index: {}]  }
   0x1 LB: > { %s560_s22 = sadd.s32 4294967295, %s685_s21   ;;  %p564_p0 = scmp.ge.s32.totalorder %s685_s21, 1  ;;  %s685_s21 = sphi %s725_s21, %s16_s21  }
   0x2   : > { %p212_p1 = scmp.lt.s32.totalorder %s685_s21, 3 }
   0x4   : > { %p213_p2 = pnand %p564_p0, %p212_p1 }
   0x5   : > { %v659_v0 = vld [vmem:[%s808_s1] sm:$0xff] (!%p213_p2)   ;;  %v687_v1 = vmov (!%p213_p2), 0.0   ;;  %v660_v2 = vld [vmem:[%s808_s1 + $0x8] sm:$0xff] (!%p213_p2)   ;;  %vm688_vm0 = vmmov (!%p213_p2), 0   ;;  %v689_v3 = vmov (!%p213_p2), 0   ;;  %v661_v4 = vld [vmem:[%s808_s1 + $0x10] sm:$0xff] (!%p213_p2)   ;;  %v500_v48 = vlaneseq (!%p213_p2) }
   0x6   : > { %216 = sbr.rel (%p213_p2) target bundleno = 522 (0x20a), region = 44  ;;  %607 = vmatprep.subr.bf16.mxu0 (!%p213_p2), %v687_v1  ;;  %627 = vmatprep.subr.bf16.mxu1 (!%p213_p2), %v687_v1  ;;  %v662_v5 = vld [vmem:[%s808_s1 + $0x18] sm:$0xff] (!%p213_p2)   ;;  %v373_v6 = vld [vmem:[%s811_s4] sm:$0xf] (!%p213_p2)  ;;  %v668_v8 = vld [vmem:[%s812_s5 + $0x8] sm:$0xff] (!%p213_p2)   ;;  %p241_p3 = scmp.lt.s32.totalorder (!%p213_p2), %s560_s22, 1 }
   0x7   : > { %608 = vmatpush3.bf16.msra.mxu0 (!%p213_p2), %v659_v0  ;;  %623 = vmatprep.mubr.msk.bf16.mxu0 (!%p213_p2), %vm688_vm0, %v687_v1  ;;  %v667_v7 = vld [vmem:[%s812_s5] sm:$0xff] (!%p213_p2)   ;;  %v664_v10 = vld [vmem:[%s808_s1 + $0x28] sm:$0xff] (!%p213_p2)   ;;  %v665_v11 = vld [vmem:[%s808_s1 + $0x30] sm:$0xff] (!%p213_p2)   ;;  %vm380_vm1 = vcmask (!%p213_p2), 1043456   ;;  %v501_v49 = vshrl.u32 (!%p213_p2), %v500_v48, 7 }
   0x8   : > { %609 = vmatprep.subr.bf16.mxu0 (!%p213_p2), %v687_v1  ;;  %643 = vmatprep.mubr.msk.bf16.mxu1 (!%p213_p2), %vm688_vm0, %v687_v1  ;;  %v663_v9 = vld [vmem:[%s808_s1 + $0x20] sm:$0xff] (!%p213_p2)   ;;  %v666_v12 = vld [vmem:[%s808_s1 + $0x38] sm:$0xff] (!%p213_p2)   ;;  %v669_v14 = vld [vmem:[%s812_s5 + $0x10] sm:$0xff] (!%p213_p2)  }
   0x9   : > { %658 = vset.pattern.permute.xlu0 (!%p213_p2), %v689_v3  ;;  %628 = vmatpush3.bf16.msra.mxu1 (!%p213_p2), %v667_v7  ;;  %v670_v15 = vld [vmem:[%s812_s5 + $0x18] sm:$0xff] (!%p213_p2)   ;;  %v671_v16 = vld [vmem:[%s812_s5 + $0x20] sm:$0xff] (!%p213_p2)   ;;  %v672_v17 = vld [vmem:[%s812_s5 + $0x28] sm:$0xff] (!%p213_p2)   ;;  %v502_v50 = vsub.s32 (!%p213_p2), 0, %v501_v49 }
   0xa   : > { %376 = vperm.xlu0 (!%p213_p2), %658, %v373_v6   ;;  %629 = vmatprep.subr.bf16.mxu1 (!%p213_p2), %v687_v1  ;;  %v673_v18 = vld [vmem:[%s812_s5 + $0x30] sm:$0xff] (!%p213_p2)   ;;  %v674_v19 = vld [vmem:[%s812_s5 + $0x38] sm:$0xff] (!%p213_p2)   ;;  %v576_v20 = vld [vmem:[%s809_s2] ss:$0 sm:$0xff] (!%p213_p2) }
   0xb   : > { %610 = vmatpush3.bf16.msra.mxu0 (!%p213_p2), %v660_v2  ;;  %v577_v22 = vld [vmem:[%s810_s3] ss:$0 sm:$0xff] (!%p213_p2) }
   0xc   : > { %611 = vmatprep.subr.bf16.mxu0 (!%p213_p2), %v687_v1 }
   0xd   : > { %630 = vmatpush3.bf16.msra.mxu1 %v668_v8  ;;  %s815_s22 = smov (!%p241_p3, %s560_s22), 1 }
   0xe   : > { %631 = vmatprep.subr.bf16.mxu1 %v687_v1  ;;  %s588_s19 = sshll.u32 %s815_s22, 3 }
   0xf   : > { %612 = vmatpush3.bf16.msra.mxu0 %v661_v4  ;;  %s245_s26 = scalar_lea.vmem %s807_s0, %s588_s19  ;;  %s567_s19 = sshll.u32 %s815_s22, 1 }
  0x10   : > { %613 = vmatprep.subr.bf16.mxu0 %v687_v1  ;;  %v251_v13 = vld [vmem:[%s245_s26] sm:$0x3]  ;;  %s249_s24 = scalar_lea.vmem %s813_s6, %s567_s19 }
  0x11   : > { %632 = vmatpush3.bf16.msra.mxu1 %v669_v14 }
  0x12   : > { %633 = vmatprep.subr.bf16.mxu1 %v687_v1 }
  0x13   : > { %614 = vmatpush3.bf16.msra.mxu0 %v662_v5 }
  0x14   : > { %615 = vmatprep.subr.bf16.mxu0 %v687_v1 }
  0x15   : > { %634 = vmatpush3.bf16.msra.mxu1 %v670_v15 }
  0x16   : > { %635 = vmatprep.subr.bf16.mxu1 %v687_v1 }
  0x17   : > { %616 = vmatpush3.bf16.msra.mxu0 %v663_v9 }
  0x18   : > { %617 = vmatprep.subr.bf16.mxu0 %v687_v1 }
  0x19   : > { %636 = vmatpush3.bf16.msra.mxu1 %v671_v16 }
  0x1a   : > { %637 = vmatprep.subr.bf16.mxu1 %v687_v1 }
  0x1b   : > { %618 = vmatpush3.bf16.msra.mxu0 %v664_v10 }
  0x1c   : > { %619 = vmatprep.subr.bf16.mxu0 %v687_v1 }
  0x1d   : > { %638 = vmatpush3.bf16.msra.mxu1 %v672_v17 }
  0x1e   : > { %639 = vmatprep.subr.bf16.mxu1 %v687_v1 }
  0x1f   : > { %620 = vmatpush3.bf16.msra.mxu0 %v665_v11 }
  0x20   : > { %621 = vmatprep.subr.bf16.mxu0 %v687_v1 }
  0x21   : > { %640 = vmatpush3.bf16.msra.mxu1 %v673_v18 }
  0x22   : > { %641 = vmatprep.subr.bf16.mxu1 %v687_v1 }
  0x23   : > { %622 = vmatpush3.bf16.msra.mxu0 %v666_v12 }
  0x25   : > { %642 = vmatpush3.bf16.msra.mxu1 %v674_v19 }
  0x26   : > { %624 = vmatmul.mubr.bf16.vlgmr.msra.gmra.mrb[0].mxu0 %v251_v13 }
  0x89   : > { %v377_v28 = vpop.permute.xlu0 %376 }
  0xf9   : > { %v350_v21 = vpop.f32.mrb[0].mxu0 }
  0xfa   : > { %v363_v23 = vmul.f32 %v576_v20, %v350_v21  ;;  %v625_v24 = vpop.f32.mrb[1].mxu0 }
  0xfb   : > { %v353_v25 = vpop.f32.mrb[2].mxu0 }
  0xfc   : > { %v371_v26 = vadd.f32 %v577_v22, %v363_v23  ;;  %v626_v27 = vpop.f32.mrb[3].mxu0 }
  0xfe   : > { %v372_v29 = vmax.f32 %v371_v26, 0.0 }
 0x100   : > { %v379_v30 = vmul.f32 %v377_v28, %v372_v29 }
 0x102   : > { %v381_v31 = vsel %vm380_vm1, %v379_v30, 0.0 }
 0x103   : > { %v382_v32 = vrot.slane %v381_v31, 4 }
 0x105   : > { %v383_v33 = vadd.f32 %v382_v32, %v381_v31 }
 0x107   : > { %v384_v34 = vrot.slane %v383_v33, 2 }
 0x109   : > { %v385_v35 = vadd.f32 %v384_v34, %v383_v33 }
 0x10b   : > { %v386_v36 = vrot.slane %v385_v35, 1 }
 0x10d   : > { %v387_v37 = vadd.f32 %v386_v36, %v385_v35 }
 0x10f   : > { %v388_v38 = vmul.f32 0.25, %v387_v37 }
 0x111   : > { %v389_v39 = vpack.c.bf16 %v388_v38, %v388_v38 }
 0x113   : > { %644 = vmatmul.mubr.bf16.vlgmr.msra.gmra.mrb[0].mxu1 %v389_v39 }
 0x1e6   : > { %v488_v40 = vpop.f32.mrb[0].mxu1 }
 0x1e7   : > { %v494_v41 = vsub.f32 0.0, %v488_v40  ;;  %v645_v42 = vpop.f32.mrb[1].mxu1 }
 0x1e8   : > { %v491_v43 = vpop.f32.mrb[2].mxu1 }
 0x1e9   : > { %v495_v44 = vmul.f32 1.442695, %v494_v41  ;;  %v646_v45 = vpop.f32.mrb[3].mxu1 }
 0x1eb   : > { %675 = vpow2.f32 %v495_v44 }
 0x1f5   : > { %v676_v46 = vpop.eup %675 }
 0x1f6   : > { %v497_v47 = vadd.f32 1.0, %v676_v46 }
 0x1f8   : > { %677 = vrcp.f32 %v497_v47 }
 0x202   : > { %v678_v51 = vpop.eup %677 }
 0x203   : > { %v503_v52 = vrot.slane %v678_v51, %v502_v50 }
 0x205   : > { %v504_v53 = vmul.f32 %v503_v52, %v379_v30 }
 0x207   : > { %v505_v54 = vpack.c.bf16 %v504_v53, %v504_v53 }
 0x209   : > { %506 = vst [vmem:[%s249_s24] sm:$0x3] %v505_v54 }
 0x20a PF: > { %s16_s21 = sadd.s32 1, %s685_s21  }
 0x20b   : > { %p13_p4 = scmp.ge.s32.totalorder %s16_s21, 4  }
 0x20d   :  { %15 = sbr.rel (!%p13_p4) target bundleno = 1 (0x1), region = 74 }

// kernel: _lambda_.20
= control target key start
LH: loop header
LB: loop body
LE: loop exit
PB: predicated region body
PF: predicated region fallthrough
CT: control target
= control target key end

     0   :  { %s1694_s21 = smov 0   ;;  %s1980_s0 = inlined_call_operand.vmem [shape: bf16[2,32,128], index: 0, kind: input, shape index: {}]   ;;  %s1981_s1 = inlined_call_operand.vmem [shape: bf16[1152,128], index: 1, kind: input, shape index: {}]   ;;  %s1982_s2 = inlined_call_operand.vmem [shape: f32[1,128], index: 2, kind: input, shape index: {}]   ;;  %s1983_s3 = inlined_call_operand.vmem [shape: f32[1,128], index: 3, kind: input, shape index: {}]   ;;  %s1984_s4 = inlined_call_operand.vmem [shape: f32[8,1], index: 4, kind: input, shape index: {}]   ;;  %s1985_s5 = inlined_call_operand.vmem [shape: bf16[128,128], index: 5, kind: input, shape index: {}]   ;;  %s1986_s6 = inlined_call_operand.vmem [shape: bf16[2,8,128], index: 6, kind: output, shape index: {}]  }
   0x1 LB: > { %s1299_s22 = sadd.s32 4294967295, %s1654_s21   ;;  %p1303_p0 = scmp.ge.s32.totalorder %s1654_s21, 1  ;;  %s1654_s21 = sphi %s1694_s21, %s16_s21  }
   0x2   : > { %p212_p1 = scmp.lt.s32.totalorder %s1654_s21, 3 }
   0x4   : > { %p213_p2 = pnand %p1303_p0, %p212_p1 }
   0x5   : > { %v1557_v0 = vld [vmem:[%s1981_s1 + $0x40] sm:$0xff] (!%p213_p2)   ;;  %v1561_v4 = vld [vmem:[%s1981_s1 + $0x48] sm:$0xff] (!%p213_p2)   ;;  %v1656_v7 = vmov (!%p213_p2), 0   ;;  %v1565_v9 = vld [vmem:[%s1981_s1 + $0x50] sm:$0xff] (!%p213_p2)   ;;  %p241_p3 = scmp.lt.s32.totalorder (!%p213_p2), %s1299_s22, 1  ;;  %vm1658_vm0 = vmmov (!%p213_p2), 0  }
   0x6   : > { %216 = sbr.rel (%p213_p2) target bundleno = 588 (0x24c), region = 44  ;;  %v1558_v1 = vld [vmem:[%s1981_s1 + $0xc0] sm:$0xff] (!%p213_p2)   ;;  %1399 = vmatprep.subr.bf16.mxu0 (!%p213_p2), %v1557_v0  ;;  %v1562_v5 = vld [vmem:[%s1981_s1 + $0xc8] sm:$0xff] (!%p213_p2)   ;;  %1556 = vset.pattern.permute.xlu0 (!%p213_p2), %v1656_v7  ;;  %v1566_v10 = vld [vmem:[%s1981_s1 + $0xd0] sm:$0xff] (!%p213_p2)  }
   0x7   : > { %v1559_v2 = vld [vmem:[%s1981_s1] sm:$0xff] (!%p213_p2)   ;;  %1421 = vmatprep.subr.bf16.mxu1 (!%p213_p2), %v1558_v1  ;;  %v1563_v6 = vld [vmem:[%s1981_s1 + $0x8] sm:$0xff] (!%p213_p2)   ;;  %v1567_v11 = vld [vmem:[%s1981_s1 + $0x10] sm:$0xff] (!%p213_p2)  }
   0x8   : > { %v1560_v3 = vld [vmem:[%s1981_s1 + $0x80] sm:$0xff] (!%p213_p2)   ;;  %1400 = vmatpush3.bf16.msra.mxu0 (!%p213_p2), %v1559_v2  ;;  %v1564_v8 = vld [vmem:[%s1981_s1 + $0x88] sm:$0xff] (!%p213_p2)   ;;  %v1568_v12 = vld [vmem:[%s1981_s1 + $0x90] sm:$0xff] (!%p213_p2)  }
   0x9   : > { %1422 = vmatpush3.bf16.msra.mxu1 (!%p213_p2), %v1560_v3  ;;  %1401 = vmatprep.subr.bf16.mxu0 (!%p213_p2), %v1561_v4  ;;  %v1569_v13 = vld [vmem:[%s1981_s1 + $0x58] sm:$0xff] (!%p213_p2)   ;;  %v1573_v17 = vld [vmem:[%s1981_s1 + $0x60] sm:$0xff] (!%p213_p2)   ;;  %v1577_v21 = vld [vmem:[%s1981_s1 + $0x68] sm:$0xff] (!%p213_p2)  }
   0xa   : > { %1423 = vmatprep.subr.bf16.mxu1 (!%p213_p2), %v1562_v5  ;;  %v1570_v14 = vld [vmem:[%s1981_s1 + $0xd8] sm:$0xff] (!%p213_p2)   ;;  %v1574_v18 = vld [vmem:[%s1981_s1 + $0xe0] sm:$0xff] (!%p213_p2)   ;;  %v1578_v22 = vld [vmem:[%s1981_s1 + $0xe8] sm:$0xff] (!%p213_p2)  }
   0xb   : > { %v1571_v15 = vld [vmem:[%s1981_s1 + $0x18] sm:$0xff] (!%p213_p2)   ;;  %v1575_v19 = vld [vmem:[%s1981_s1 + $0x20] sm:$0xff] (!%p213_p2)   ;;  %v1579_v23 = vld [vmem:[%s1981_s1 + $0x28] sm:$0xff] (!%p213_p2)  }
   0xc   : > { %1402 = vmatpush3.bf16.msra.mxu0 (!%p213_p2), %v1563_v6  ;;  %v1572_v16 = vld [vmem:[%s1981_s1 + $0x98] sm:$0xff] (!%p213_p2)   ;;  %v1576_v20 = vld [vmem:[%s1981_s1 + $0xa0] sm:$0xff] (!%p213_p2)   ;;  %v1580_v24 = vld [vmem:[%s1981_s1 + $0xa8] sm:$0xff] (!%p213_p2)  }
   0xd   : > { %1424 = vmatpush3.bf16.msra.mxu1 %v1564_v8  ;;  %1403 = vmatprep.subr.bf16.mxu0 %v1565_v9  ;;  %s1988_s22 = smov (!%p241_p3, %s1299_s22), 1  ;;  %v1581_v25 = vld [vmem:[%s1981_s1 + $0x70] sm:$0xff]   ;;  %v1585_v29 = vld [vmem:[%s1981_s1 + $0x78] sm:$0xff]   ;;  %v1593_v41 = vld [vmem:[%s1981_s1 + $0x140] sm:$0xff]  }
   0xe   : > { %1425 = vmatprep.subr.bf16.mxu1 %v1566_v10  ;;  %v1582_v26 = vld [vmem:[%s1981_s1 + $0xf0] sm:$0xff]   ;;  %s1398_s9 = sshll.u32 %s1988_s22, 4  ;;  %v1586_v30 = vld [vmem:[%s1981_s1 + $0xf8] sm:$0xff]   ;;  %v1595_v46 = vld [vmem:[%s1981_s1 + $0x1c0] sm:$0xff]   ;;  %s1306_s19 = sshll.u32 %s1988_s22, 2 }
   0xf   : > { %v1583_v27 = vld [vmem:[%s1981_s1 + $0x30] sm:$0xff]   ;;  %s1802_s18 = scalar_lea.vmem %s1980_s0, %s1398_s9  ;;  %v1587_v31 = vld [vmem:[%s1981_s1 + $0x38] sm:$0xff]   ;;  %v1596_v48 = vld [vmem:[%s1981_s1 + $0x180] sm:$0xff]   ;;  %s249_s24 = scalar_lea.vmem %s1986_s6, %s1306_s19 }
  0x10   : > { %1404 = vmatpush3.bf16.msra.mxu0 %v1567_v11  ;;  %v1584_v28 = vld [vmem:[%s1981_s1 + $0xb0] sm:$0xff]   ;;  %v1588_v32 = vld [vmem:[%s1981_s1 + $0xb8] sm:$0xff]   ;;  %v251_v33 = vld [vmem:[%s1802_s18] sm:$0xf] }
  0x11   : > { %1426 = vmatpush3.bf16.msra.mxu1 %v1568_v12  ;;  %1405 = vmatprep.subr.bf16.mxu0 %v1569_v13  ;;  %v252_v34 = vld [vmem:[%s1802_s18 + $0x4] sm:$0x1]  ;;  %v254_v35 = vld [vmem:[%s1802_s18] sm:$0xc]  ;;  %v1597_v51 = vld [vmem:[%s1981_s1 + $0x148] sm:$0xff]  }
  0x12   : > { %1427 = vmatprep.subr.bf16.mxu1 %v1570_v14  ;;  %v1307_v36 = vcombine.low %v251_v33, %v252_v34  ;;  %v255_v37 = vld [vmem:[%s1802_s18 + $0x4] sm:$0x3]  ;;  %v253_v38 = vld [vmem:[%s1802_s18] sm:$0xe]  ;;  %v1599_v52 = vld [vmem:[%s1981_s1 + $0x1c8] sm:$0xff]  }
  0x13   : > { %v1309_v39 = vcombine.low %v254_v35, %v255_v37  ;;  %v1308_v40 = vcombine.low %v253_v38, %v252_v34  ;;  %v1594_v50 = vld [vmem:[%s1981_s1 + $0x100] sm:$0xff]   ;;  %v1600_v53 = vld [vmem:[%s1981_s1 + $0x188] sm:$0xff]   ;;  %v1601_v55 = vld [vmem:[%s1981_s1 + $0x150] sm:$0xff]  }
  0x14   : > { %1406 = vmatpush3.bf16.msra.mxu0 %v1571_v15  ;;  %v267_v42 = vshrl.u32 %v1307_v36, 16  ;;  %v269_v43 = vshll.u32 %v1307_v36, 16  ;;  %v1598_v54 = vld [vmem:[%s1981_s1 + $0x108] sm:$0xff]   ;;  %v1603_v56 = vld [vmem:[%s1981_s1 + $0x1d0] sm:$0xff]   ;;  %v1605_v59 = vld [vmem:[%s1981_s1 + $0x158] sm:$0xff]  }
  0x15   : > { %1428 = vmatpush3.bf16.msra.mxu1 %v1572_v16  ;;  %1407 = vmatprep.subr.bf16.mxu0 %v1573_v17  ;;  %v284_v44 = vrot.slane %v1309_v39, 2  ;;  %v277_v45 = vrot.slane %v1308_v40, 1  ;;  %v1604_v57 = vld [vmem:[%s1981_s1 + $0x190] sm:$0xff]   ;;  %v1607_v60 = vld [vmem:[%s1981_s1 + $0x1d8] sm:$0xff]   ;;  %v256_v62 = vld [vmem:[%s1802_s18 + $0x4] sm:$0x7] }
  0x16   : > { %1429 = vmatprep.subr.bf16.mxu1 %v1574_v18  ;;  %v271_v47 = vrot.slane %v269_v43, 1  ;;  %v1602_v58 = vld [vmem:[%s1981_s1 + $0x110] sm:$0xff]   ;;  %v1608_v61 = vld [vmem:[%s1981_s1 + $0x198] sm:$0xff]   ;;  %v1609_v0 = vld [vmem:[%s1981_s1 + $0x160] sm:$0xff]   ;;  %v1310_v4 = vcombine.low %v254_v35, %v256_v62 }
  0x17   : > { %969 = vmatprep.mubr.bf16.mxu1 %v284_v44  ;;  %v1606_v63 = vld [vmem:[%s1981_s1 + $0x118] sm:$0xff]   ;;  %v1611_v1 = vld [vmem:[%s1981_s1 + $0x1e0] sm:$0xff]   ;;  %v1613_v5 = vld [vmem:[%s1981_s1 + $0x168] sm:$0xff]  }
  0x18   : > { %1408 = vmatpush3.bf16.msra.mxu0 %v1575_v19  ;;  %v272_v49 = vor.u32 %v271_v47, %v267_v42  ;;  %v1612_v2 = vld [vmem:[%s1981_s1 + $0x1a0] sm:$0xff]   ;;  %v1615_v6 = vld [vmem:[%s1981_s1 + $0x1e8] sm:$0xff]   ;;  %v290_v9 = vshrl.u32 %v1310_v4, 16  ;;  %v1617_v10 = vld [vmem:[%s1981_s1 + $0x170] sm:$0xff]   ;;  %v293_v11 = vshll.u32 %v1310_v4, 16 }
  0x19   : > { %1430 = vmatpush3.bf16.msra.mxu1 %v1576_v20  ;;  %1409 = vmatprep.subr.bf16.mxu0 %v1577_v21  ;;  %v1610_v3 = vld [vmem:[%s1981_s1 + $0x120] sm:$0xff]   ;;  %v1616_v7 = vld [vmem:[%s1981_s1 + $0x1a8] sm:$0xff]   ;;  %v1619_v12 = vld [vmem:[%s1981_s1 + $0x1f0] sm:$0xff]  }
  0x1a   : > { %1431 = vmatprep.subr.bf16.mxu1 %v1578_v22  ;;  %929 = vmatprep.mubr.bf16.mxu0 %v272_v49  ;;  %v1614_v8 = vld [vmem:[%s1981_s1 + $0x128] sm:$0xff]   ;;  %v1620_v13 = vld [vmem:[%s1981_s1 + $0x1b0] sm:$0xff]   ;;  %v292_v15 = vrot.slane %v290_v9, 2  ;;  %v1621_v16 = vld [vmem:[%s1981_s1 + $0x178] sm:$0xff]   ;;  %v295_v17 = vrot.slane %v293_v11, 3 }
  0x1b   : > { %v1618_v14 = vld [vmem:[%s1981_s1 + $0x130] sm:$0xff]   ;;  %v1622_v18 = vld [vmem:[%s1981_s1 + $0x138] sm:$0xff]   ;;  %v257_v20 = vld [vmem:[%s1802_s18] sm:$0x8] }
  0x1c   : > { %1410 = vmatpush3.bf16.msra.mxu0 %v1579_v23  ;;  %v1623_v19 = vld [vmem:[%s1981_s1 + $0x1f8] sm:$0xff]   ;;  %v1311_v21 = vcombine.low %v257_v20, %v256_v62  ;;  %v258_v23 = vld [vmem:[%s1802_s18 + $0x4] sm:$0xf]  ;;  %v1628_v34 = vld [vmem:[%s1981_s1 + $0x208] sm:$0xff]  }
  0x1d   : > { %1432 = vmatpush3.bf16.msra.mxu1 %v1580_v24  ;;  %1411 = vmatprep.subr.bf16.mxu0 %v1581_v25  ;;  %v1625_v22 = vld [vmem:[%s1981_s1 + $0x1b8] sm:$0xff]   ;;  %v259_v24 = vld [vmem:[%s1802_s18 + $0x8] sm:$0x1]  ;;  %v1114_v35 = vld [vmem:[%s1984_s4] sm:$0xff] }
  0x1e   : > { %1433 = vmatprep.subr.bf16.mxu1 %v1582_v26  ;;  %v1312_v25 = vcombine.low %v258_v23, %v259_v24  ;;  %v301_v26 = vrot.slane %v1311_v21, 3  ;;  %1117 = vperm.xlu0 %1556, %v1114_v35   ;;  %v1629_v36 = vld [vmem:[%s1981_s1 + $0x210] sm:$0xff]   ;;  %v1630_v37 = vld [vmem:[%s1981_s1 + $0x218] sm:$0xff]   ;;  %v1631_v38 = vld [vmem:[%s1981_s1 + $0x220] sm:$0xff]  }
  0x1f   : > { %v1632_v39 = vld [vmem:[%s1981_s1 + $0x228] sm:$0xff]   ;;  %v1633_v40 = vld [vmem:[%s1981_s1 + $0x230] sm:$0xff]   ;;  %v1634_v43 = vld [vmem:[%s1981_s1 + $0x238] sm:$0xff]  }
  0x20   : > { %1412 = vmatpush3.bf16.msra.mxu0 %v1583_v27  ;;  %v296_v27 = vor.u32 %v295_v17, %v292_v15  ;;  %v1638_v47 = vld [vmem:[%s1985_s5 + $0x10] sm:$0xff]   ;;  %v1640_v49 = vld [vmem:[%s1985_s5 + $0x20] sm:$0xff]  }
  0x21   : > { %1434 = vmatpush3.bf16.msra.mxu1 %v1584_v28  ;;  %1413 = vmatprep.subr.bf16.mxu0 %v1585_v29  ;;  %v309_v28 = vshrl.u32 %v1312_v25, 16  ;;  %v311_v29 = vshll.u32 %v1312_v25, 16  ;;  %v1387_v17 = vld [vmem:[%s1983_s3] ss:$0 sm:$0xff] }
  0x22   : > { %1435 = vmatprep.subr.bf16.mxu1 %v1586_v30  ;;  %v1657_v30 = vmov 0.0  }
  0x24   : > { %1414 = vmatpush3.bf16.msra.mxu0 %v1587_v31  ;;  %v1627_v31 = vld [vmem:[%s1981_s1 + $0x200] sm:$0xff]  }
  0x25   : > { %1436 = vmatpush3.bf16.msra.mxu1 %v1588_v32  ;;  %1443 = vmatprep.subr.bf16.mxu0 %v1593_v41  ;;  %v313_v32 = vrot.slane %v311_v29, 1  ;;  %v260_v41 = vld [vmem:[%s1802_s18 + $0x4] sm:$0xe] }
  0x26   : > { %1465 = vmatprep.subr.bf16.mxu1 %v1595_v46  ;;  %v1313_v42 = vcombine.low %v260_v41, %v259_v24  ;;  %v1637_v46 = vld [vmem:[%s1985_s5 + $0x8] sm:$0xff]  }
  0x27   : > { %930 = vmatmul.mubr.bf16.vlgmr.msra.gmra.mrb[0].mxu0 %v251_v33  ;;  %v314_v33 = vor.u32 %v313_v32, %v309_v28 }
  0x28   : > { %970 = vmatmul.mubr.bf16.vlgmr.msra.gmra.mrb[0].mxu1 %v277_v45  ;;  %1444 = vmatpush3.bf16.msra.mxu0 %v1594_v50  ;;  %v319_v44 = vrot.slane %v1313_v42, 1  ;;  %v1636_v45 = vld [vmem:[%s1985_s5] sm:$0xff]   ;;  %v1641_v50 = vld [vmem:[%s1985_s5 + $0x28] sm:$0xff]  }
  0x29   : > { %1466 = vmatpush3.bf16.msra.mxu1 %v1596_v48  ;;  %1445 = vmatprep.subr.bf16.mxu0 %v1597_v51  ;;  %v1639_v48 = vld [vmem:[%s1985_s5 + $0x18] sm:$0xff]   ;;  %v1642_v51 = vld [vmem:[%s1985_s5 + $0x30] sm:$0xff]  }
  0x2a   : > { %1467 = vmatprep.subr.bf16.mxu1 %v1599_v52  ;;  %1009 = vmatprep.mubr.bf16.mxu0 %v301_v26  ;;  %v1643_v52 = vld [vmem:[%s1985_s5 + $0x38] sm:$0xff]  }
  0x2b   : > { %1049 = vmatprep.mubr.bf16.mxu1 %v314_v33 }
  0x2c   : > { %1446 = vmatpush3.bf16.msra.mxu0 %v1598_v54 }
  0x2d   : > { %1468 = vmatpush3.bf16.msra.mxu1 %v1600_v53  ;;  %1447 = vmatprep.subr.bf16.mxu0 %v1601_v55 }
  0x2e   : > { %1469 = vmatprep.subr.bf16.mxu1 %v1603_v56 }
  0x30   : > { %1448 = vmatpush3.bf16.msra.mxu0 %v1602_v58 }
  0x31   : > { %1470 = vmatpush3.bf16.msra.mxu1 %v1604_v57  ;;  %1449 = vmatprep.subr.bf16.mxu0 %v1605_v59 }
  0x32   : > { %1471 = vmatprep.subr.bf16.mxu1 %v1607_v60 }
  0x34   : > { %1450 = vmatpush3.bf16.msra.mxu0 %v1606_v63 }
  0x35   : > { %1472 = vmatpush3.bf16.msra.mxu1 %v1608_v61  ;;  %1451 = vmatprep.subr.bf16.mxu0 %v1609_v0 }
  0x36   : > { %1473 = vmatprep.subr.bf16.mxu1 %v1611_v1 }
  0x38   : > { %1452 = vmatpush3.bf16.msra.mxu0 %v1610_v3 }
  0x39   : > { %1474 = vmatpush3.bf16.msra.mxu1 %v1612_v2  ;;  %1453 = vmatprep.subr.bf16.mxu0 %v1613_v5 }
  0x3a   : > { %1475 = vmatprep.subr.bf16.mxu1 %v1615_v6 }
  0x3c   : > { %1454 = vmatpush3.bf16.msra.mxu0 %v1614_v8 }
  0x3d   : > { %1476 = vmatpush3.bf16.msra.mxu1 %v1616_v7  ;;  %1455 = vmatprep.subr.bf16.mxu0 %v1617_v10 }
  0x3e   : > { %1477 = vmatprep.subr.bf16.mxu1 %v1619_v12 }
  0x40   : > { %1456 = vmatpush3.bf16.msra.mxu0 %v1618_v14 }
  0x41   : > { %1478 = vmatpush3.bf16.msra.mxu1 %v1620_v13  ;;  %1457 = vmatprep.subr.bf16.mxu0 %v1621_v16  ;;  %v1386_v13 = vld [vmem:[%s1982_s2] ss:$0 sm:$0xff] }
  0x42   : > { %1479 = vmatprep.subr.bf16.mxu1 %v1623_v19 }
  0x44   : > { %1458 = vmatpush3.bf16.msra.mxu0 %v1622_v18 }
  0x45   : > { %1480 = vmatpush3.bf16.msra.mxu1 %v1625_v22  ;;  %1505 = vmatprep.subr.bf16.mxu0 %v1657_v30 }
  0x46   : > { %1525 = vmatprep.subr.bf16.mxu1 %v1657_v30 }
  0x47   : > { %1010 = vmatmul.mubr.bf16.vlgmr.msra.gmra.mrb[4].mxu0 %v296_v27 }
  0x48   : > { %1506 = vmatpush3.bf16.msra.mxu0 %v1627_v31  ;;  %1521 = vmatprep.mubr.msk.bf16.mxu0 %vm1658_vm0, %v1657_v30 }
  0x49   : > { %1507 = vmatprep.subr.bf16.mxu0 %v1657_v30  ;;  %1050 = vmatmul.mubr.bf16.vlgmr.msra.gmra.mrb[4].mxu1 %v258_v23 }
  0x4a   : > { %1541 = vmatprep.mubr.msk.bf16.mxu1 %vm1658_vm0, %v1657_v30  ;;  %1526 = vmatpush3.bf16.msra.mxu1 %v1636_v45 }
  0x4b   : > { %1527 = vmatprep.subr.bf16.mxu1 %v1657_v30 }
  0x4c   : > { %1508 = vmatpush3.bf16.msra.mxu0 %v1628_v34 }
  0x4d   : > { %1509 = vmatprep.subr.bf16.mxu0 %v1657_v30 }
  0x4e   : > { %1528 = vmatpush3.bf16.msra.mxu1 %v1637_v46 }
  0x4f   : > { %1529 = vmatprep.subr.bf16.mxu1 %v1657_v30 }
  0x50   : > { %1510 = vmatpush3.bf16.msra.mxu0 %v1629_v36 }
  0x51   : > { %1511 = vmatprep.subr.bf16.mxu0 %v1657_v30 }
  0x52   : > { %1530 = vmatpush3.bf16.msra.mxu1 %v1638_v47 }
  0x53   : > { %1531 = vmatprep.subr.bf16.mxu1 %v1657_v30 }
  0x54   : > { %1512 = vmatpush3.bf16.msra.mxu0 %v1630_v37 }
  0x55   : > { %1513 = vmatprep.subr.bf16.mxu0 %v1657_v30 }
  0x56   : > { %1532 = vmatpush3.bf16.msra.mxu1 %v1639_v48 }
  0x57   : > { %1533 = vmatprep.subr.bf16.mxu1 %v1657_v30 }
  0x58   : > { %1514 = vmatpush3.bf16.msra.mxu0 %v1631_v38 }
  0x59   : > { %1515 = vmatprep.subr.bf16.mxu0 %v1657_v30 }
  0x5a   : > { %1534 = vmatpush3.bf16.msra.mxu1 %v1640_v49 }
  0x5b   : > { %1535 = vmatprep.subr.bf16.mxu1 %v1657_v30 }
  0x5c   : > { %1516 = vmatpush3.bf16.msra.mxu0 %v1632_v39 }
  0x5d   : > { %1517 = vmatprep.subr.bf16.mxu0 %v1657_v30 }
  0x5e   : > { %1536 = vmatpush3.bf16.msra.mxu1 %v1641_v50 }
  0x5f   : > { %1537 = vmatprep.subr.bf16.mxu1 %v1657_v30 }
  0x60   : > { %1518 = vmatpush3.bf16.msra.mxu0 %v1633_v40  ;;  %v1239_v40 = vlaneseq }
  0x61   : > { %1519 = vmatprep.subr.bf16.mxu0 %v1657_v30 }
  0x62   : > { %1538 = vmatpush3.bf16.msra.mxu1 %v1642_v51  ;;  %v1240_v41 = vshrl.u32 %v1239_v40, 7 }
  0x63   : > { %1539 = vmatprep.subr.bf16.mxu1 %v1657_v30 }
  0x64   : > { %1520 = vmatpush3.bf16.msra.mxu0 %v1634_v43  ;;  %v1241_v42 = vsub.s32 0, %v1240_v41 }
  0x66   : > { %1540 = vmatpush3.bf16.msra.mxu1 %v1643_v52 }
  0x67   : > { %1522 = vmatmul.mubr.bf16.vlgmr.msra.gmra.mrb[8].mxu0 %v319_v44 }
  0x9d   : > { %v1118_v21 = vpop.permute.xlu0 %1117 }
  0xfa   : > { %v1415_v57 = vpop.f32.mrb[0].mxu0 }
  0xfb   : > { %v1437_v53 = vpop.f32.mrb[0].mxu1  ;;  %v1416_v59 = vpop.f32.mrb[1].mxu0 }
  0xfc   : > { %v1438_v54 = vpop.f32.mrb[1].mxu1  ;;  %v1417_v60 = vadd.f32 %v1416_v59, %v1415_v57  ;;  %v1418_v61 = vpop.f32.mrb[2].mxu0 }
  0xfd   : > { %v1439_v55 = vadd.f32 %v1438_v54, %v1437_v53  ;;  %v1440_v56 = vpop.f32.mrb[2].mxu1  ;;  %v1419_v62 = vpop.f32.mrb[3].mxu0 }
  0xfe   : > { %v1441_v58 = vpop.f32.mrb[3].mxu1 }
  0xff   : > { %v972_v63 = vadd.f32 %v1439_v55, %v1417_v60 }
 0x11a   : > { %v1459_v0 = vpop.f32.mrb[4].mxu0 }
 0x11b   : > { %v1460_v1 = vpop.f32.mrb[5].mxu0 }
 0x11c   : > { %v1461_v2 = vadd.f32 %v1460_v1, %v1459_v0  ;;  %v1462_v3 = vpop.f32.mrb[6].mxu0  ;;  %v1481_v4 = vpop.f32.mrb[4].mxu1 }
 0x11d   : > { %v1463_v5 = vpop.f32.mrb[7].mxu0  ;;  %v1482_v7 = vpop.f32.mrb[5].mxu1 }
 0x11e   : > { %v1012_v6 = vadd.f32 %v1461_v2, %v972_v63  ;;  %v1483_v8 = vadd.f32 %v1482_v7, %v1481_v4  ;;  %v1484_v9 = vpop.f32.mrb[6].mxu1 }
 0x11f   : > { %v1485_v10 = vpop.f32.mrb[7].mxu1 }
 0x120   : > { %v1052_v11 = vadd.f32 %v1483_v8, %v1012_v6 }
 0x13a   : > { %v1091_v12 = vpop.f32.mrb[8].mxu0 }
 0x13b   : > { %v1092_v14 = vadd.f32 %v1091_v12, %v1052_v11  ;;  %v1523_v15 = vpop.f32.mrb[9].mxu0 }
 0x13c   : > { %v1094_v16 = vpop.f32.mrb[10].mxu0 }
 0x13d   : > { %v1104_v18 = vmul.f32 %v1386_v13, %v1092_v14  ;;  %v1524_v19 = vpop.f32.mrb[11].mxu0 }
 0x13f   : > { %v1112_v20 = vadd.f32 %v1387_v17, %v1104_v18 }
 0x141   : > { %v1113_v22 = vmax.f32 %v1112_v20, 0.0 }
 0x143   : > { %v1120_v23 = vmul.f32 %v1118_v21, %v1113_v22 }
 0x145   : > { %v1121_v24 = vrot.slane %v1120_v23, 4 }
 0x147   : > { %v1122_v25 = vadd.f32 %v1121_v24, %v1120_v23 }
 0x149   : > { %v1123_v26 = vrot.slane %v1122_v25, 2 }
 0x14b   : > { %v1124_v27 = vadd.f32 %v1123_v26, %v1122_v25 }
 0x14d   : > { %v1125_v28 = vrot.slane %v1124_v27, 1 }
 0x14f   : > { %v1126_v29 = vadd.f32 %v1125_v28, %v1124_v27 }
 0x151   : > { %v1127_v30 = vmul.f32 0.25, %v1126_v29 }
 0x153   : > { %v1128_v31 = vpack.c.bf16 %v1127_v30, %v1127_v30 }
 0x155   : > { %1542 = vmatmul.mubr.bf16.vlgmr.msra.gmra.mrb[8].mxu1 %v1128_v31 }
 0x228   : > { %v1227_v32 = vpop.f32.mrb[8].mxu1 }
 0x229   : > { %v1233_v33 = vsub.f32 0.0, %v1227_v32  ;;  %v1543_v34 = vpop.f32.mrb[9].mxu1 }
 0x22a   : > { %v1230_v35 = vpop.f32.mrb[10].mxu1 }
 0x22b   : > { %v1234_v36 = vmul.f32 1.442695, %v1233_v33  ;;  %v1544_v37 = vpop.f32.mrb[11].mxu1 }
 0x22d   : > { %1644 = vpow2.f32 %v1234_v36 }
 0x237   : > { %v1645_v38 = vpop.eup %1644 }
 0x238   : > { %v1236_v39 = vadd.f32 1.0, %v1645_v38 }
 0x23a   : > { %1646 = vrcp.f32 %v1236_v39 }
 0x244   : > { %v1647_v43 = vpop.eup %1646 }
 0x245   : > { %v1242_v44 = vrot.slane %v1647_v43, %v1241_v42 }
 0x247   : > { %v1243_v45 = vmul.f32 %v1242_v44, %v1120_v23 }
 0x249   : > { %v1244_v46 = vpack.c.bf16 %v1243_v45, %v1243_v45 }
 0x24b   : > { %1245 = vst [vmem:[%s249_s24] sm:$0xf] %v1244_v46 }
 0x24c PF: > { %s16_s21 = sadd.s32 1, %s1654_s21  }
 0x24d   : > { %p13_p4 = scmp.ge.s32.totalorder %s16_s21, 4  }
 0x24f   :  { %15 = sbr.rel (!%p13_p4) target bundleno = 1 (0x1), region = 74 }

// kernel: _lambda_.19
= control target key start
LH: loop header
LB: loop body
LE: loop exit
PB: predicated region body
PF: predicated region fallthrough
CT: control target
= control target key end

     0   :  { %s2519_s21 = smov 0   ;;  %s2985_s0 = inlined_call_operand.vmem [shape: bf16[2,16,512], index: 0, kind: input, shape index: {}]   ;;  %s2986_s1 = inlined_call_operand.vmem [shape: bf16[2048,128], index: 1, kind: input, shape index: {}]   ;;  %s2987_s2 = inlined_call_operand.vmem [shape: f32[1,128], index: 2, kind: input, shape index: {}]   ;;  %s2988_s3 = inlined_call_operand.vmem [shape: f32[1,128], index: 3, kind: input, shape index: {}]   ;;  %s2989_s4 = inlined_call_operand.vmem [shape: f32[6,1], index: 4, kind: input, shape index: {}]   ;;  %s2990_s5 = inlined_call_operand.vmem [shape: bf16[128,128], index: 5, kind: input, shape index: {}]   ;;  %s2991_s6 = inlined_call_operand.vmem [shape: bf16[2,6,128], index: 6, kind: output, shape index: {}]  }
   0x1 LB: > { %s1935_s22 = sadd.s32 4294967295, %s2479_s21   ;;  %p1939_p0 = scmp.ge.s32.totalorder %s2479_s21, 1  ;;  %s2479_s21 = sphi %s2519_s21, %s16_s21  }
   0x2   : > { %p212_p1 = scmp.lt.s32.totalorder %s2479_s21, 3 }
   0x4   : > { %p213_p2 = pnand %p1939_p0, %p212_p1 }
   0x5   : > { %v2317_v0 = vld [vmem:[%s2986_s1 + $0x40] sm:$0xff] (!%p213_p2)   ;;  %v2321_v4 = vld [vmem:[%s2986_s1 + $0x48] sm:$0xff] (!%p213_p2)   ;;  %v2325_v8 = vld [vmem:[%s2986_s1 + $0x50] sm:$0xff] (!%p213_p2)   ;;  %v2481_v16 = vmov (!%p213_p2), 0   ;;  %p241_p3 = scmp.lt.s32.totalorder (!%p213_p2), %s1935_s22, 1  ;;  %vm2483_vm0 = vmmov (!%p213_p2), 0  }
   0x6   : > { %216 = sbr.rel (%p213_p2) target bundleno = 626 (0x272), region = 44  ;;  %v2318_v1 = vld [vmem:[%s2986_s1 + $0xc0] sm:$0xff] (!%p213_p2)   ;;  %2100 = vmatprep.subr.bf16.mxu0 (!%p213_p2), %v2317_v0  ;;  %v2322_v5 = vld [vmem:[%s2986_s1 + $0xc8] sm:$0xff] (!%p213_p2)   ;;  %v2326_v9 = vld [vmem:[%s2986_s1 + $0xd0] sm:$0xff] (!%p213_p2)   ;;  %2316 = vset.pattern.permute.xlu0 (!%p213_p2), %v2481_v16  ;;  %vm1755_vm1 = vcmask (!%p213_p2), 1045504  }
   0x7   : > { %v2319_v2 = vld [vmem:[%s2986_s1] sm:$0xff] (!%p213_p2)   ;;  %2122 = vmatprep.subr.bf16.mxu1 (!%p213_p2), %v2318_v1  ;;  %v2323_v6 = vld [vmem:[%s2986_s1 + $0x8] sm:$0xff] (!%p213_p2)   ;;  %v2327_v10 = vld [vmem:[%s2986_s1 + $0x10] sm:$0xff] (!%p213_p2)  }
   0x8   : > { %v2320_v3 = vld [vmem:[%s2986_s1 + $0x80] sm:$0xff] (!%p213_p2)   ;;  %2101 = vmatpush3.bf16.msra.mxu0 (!%p213_p2), %v2319_v2  ;;  %v2324_v7 = vld [vmem:[%s2986_s1 + $0x88] sm:$0xff] (!%p213_p2)   ;;  %v2328_v11 = vld [vmem:[%s2986_s1 + $0x90] sm:$0xff] (!%p213_p2)  }
   0x9   : > { %2123 = vmatpush3.bf16.msra.mxu1 (!%p213_p2), %v2320_v3  ;;  %2102 = vmatprep.subr.bf16.mxu0 (!%p213_p2), %v2321_v4  ;;  %v2329_v12 = vld [vmem:[%s2986_s1 + $0x58] sm:$0xff] (!%p213_p2)   ;;  %v2333_v17 = vld [vmem:[%s2986_s1 + $0x60] sm:$0xff] (!%p213_p2)   ;;  %v2337_v21 = vld [vmem:[%s2986_s1 + $0x68] sm:$0xff] (!%p213_p2)  }
   0xa   : > { %2124 = vmatprep.subr.bf16.mxu1 (!%p213_p2), %v2322_v5  ;;  %v2330_v13 = vld [vmem:[%s2986_s1 + $0xd8] sm:$0xff] (!%p213_p2)   ;;  %v2334_v18 = vld [vmem:[%s2986_s1 + $0xe0] sm:$0xff] (!%p213_p2)   ;;  %v2338_v22 = vld [vmem:[%s2986_s1 + $0xe8] sm:$0xff] (!%p213_p2)  }
   0xb   : > { %v2331_v14 = vld [vmem:[%s2986_s1 + $0x18] sm:$0xff] (!%p213_p2)   ;;  %v2335_v19 = vld [vmem:[%s2986_s1 + $0x20] sm:$0xff] (!%p213_p2)   ;;  %v2339_v23 = vld [vmem:[%s2986_s1 + $0x28] sm:$0xff] (!%p213_p2)  }
   0xc   : > { %2103 = vmatpush3.bf16.msra.mxu0 (!%p213_p2), %v2323_v6  ;;  %v2332_v15 = vld [vmem:[%s2986_s1 + $0x98] sm:$0xff] (!%p213_p2)   ;;  %v2336_v20 = vld [vmem:[%s2986_s1 + $0xa0] sm:$0xff] (!%p213_p2)   ;;  %v2340_v24 = vld [vmem:[%s2986_s1 + $0xa8] sm:$0xff] (!%p213_p2)  }
   0xd   : > { %2125 = vmatpush3.bf16.msra.mxu1 %v2324_v7  ;;  %2104 = vmatprep.subr.bf16.mxu0 %v2325_v8  ;;  %s2993_s22 = smov (!%p241_p3, %s1935_s22), 1  ;;  %v2341_v25 = vld [vmem:[%s2986_s1 + $0x70] sm:$0xff]   ;;  %v2345_v29 = vld [vmem:[%s2986_s1 + $0x78] sm:$0xff]   ;;  %v2353_v39 = vld [vmem:[%s2986_s1 + $0x140] sm:$0xff]  }
   0xe   : > { %2126 = vmatprep.subr.bf16.mxu1 %v2326_v9  ;;  %v2342_v26 = vld [vmem:[%s2986_s1 + $0xf0] sm:$0xff]   ;;  %s2099_s9 = sshll.u32 %s2993_s22, 5  ;;  %v2346_v30 = vld [vmem:[%s2986_s1 + $0xf8] sm:$0xff]   ;;  %v2354_v40 = vld [vmem:[%s2986_s1 + $0x1c0] sm:$0xff]   ;;  %s1942_s28 = sshll.u32 %s2993_s22, 2 }
   0xf   : > { %v2343_v27 = vld [vmem:[%s2986_s1 + $0x30] sm:$0xff]   ;;  %s2627_s18 = scalar_lea.vmem %s2985_s0, %s2099_s9  ;;  %v2347_v31 = vld [vmem:[%s2986_s1 + $0x38] sm:$0xff]   ;;  %v2355_v41 = vld [vmem:[%s2986_s1 + $0x100] sm:$0xff]   ;;  %s249_s30 = scalar_lea.vmem %s2991_s6, %s1942_s28 }
  0x10   : > { %2105 = vmatpush3.bf16.msra.mxu0 %v2327_v10  ;;  %v2344_v28 = vld [vmem:[%s2986_s1 + $0xb0] sm:$0xff]   ;;  %v2348_v32 = vld [vmem:[%s2986_s1 + $0xb8] sm:$0xff]   ;;  %v251_v33 = vld [vmem:[%s2627_s18] sm:$0x77] }
  0x11   : > { %2127 = vmatpush3.bf16.msra.mxu1 %v2328_v11  ;;  %2106 = vmatprep.subr.bf16.mxu0 %v2329_v12  ;;  %v252_v34 = vld [vmem:[%s2627_s18 + $0x8] sm:$0x77]  ;;  %v1943_v35 = vcombine.low %v251_v33, %v251_v33  ;;  %v1944_v36 = vcombine.high %v251_v33, %v251_v33  ;;  %v2356_v42 = vld [vmem:[%s2986_s1 + $0x180] sm:$0xff]   ;;  %v2361_v47 = vld [vmem:[%s2986_s1 + $0x150] sm:$0xff]  }
  0x12   : > { %2128 = vmatprep.subr.bf16.mxu1 %v2330_v13  ;;  %v1945_v37 = vcombine.low %v252_v34, %v252_v34  ;;  %v1946_v38 = vcombine.high %v252_v34, %v252_v34  ;;  %v2357_v43 = vld [vmem:[%s2986_s1 + $0x148] sm:$0xff]   ;;  %v2362_v48 = vld [vmem:[%s2986_s1 + $0x1d0] sm:$0xff]   ;;  %v2365_v51 = vld [vmem:[%s2986_s1 + $0x158] sm:$0xff]  }
  0x13   : > { %1443 = vmatprep.mubr.bf16.mxu0 %v1944_v36  ;;  %v2358_v44 = vld [vmem:[%s2986_s1 + $0x1c8] sm:$0xff]   ;;  %v2363_v49 = vld [vmem:[%s2986_s1 + $0x110] sm:$0xff]   ;;  %v2366_v52 = vld [vmem:[%s2986_s1 + $0x1d8] sm:$0xff]  }
  0x14   : > { %2107 = vmatpush3.bf16.msra.mxu0 %v2331_v14  ;;  %1483 = vmatprep.mubr.bf16.mxu1 %v1946_v38  ;;  %v2359_v45 = vld [vmem:[%s2986_s1 + $0x108] sm:$0xff]   ;;  %v2364_v50 = vld [vmem:[%s2986_s1 + $0x190] sm:$0xff]   ;;  %v2367_v53 = vld [vmem:[%s2986_s1 + $0x118] sm:$0xff]  }
  0x15   : > { %2129 = vmatpush3.bf16.msra.mxu1 %v2332_v15  ;;  %2108 = vmatprep.subr.bf16.mxu0 %v2333_v17  ;;  %v2360_v46 = vld [vmem:[%s2986_s1 + $0x188] sm:$0xff]   ;;  %v2368_v54 = vld [vmem:[%s2986_s1 + $0x198] sm:$0xff]   ;;  %v2369_v55 = vld [vmem:[%s2986_s1 + $0x160] sm:$0xff]  }
  0x16   : > { %2130 = vmatprep.subr.bf16.mxu1 %v2334_v18  ;;  %v2370_v56 = vld [vmem:[%s2986_s1 + $0x1e0] sm:$0xff]   ;;  %v2373_v59 = vld [vmem:[%s2986_s1 + $0x168] sm:$0xff]   ;;  %v2377_v63 = vld [vmem:[%s2986_s1 + $0x170] sm:$0xff]  }
  0x17   : > { %v2371_v57 = vld [vmem:[%s2986_s1 + $0x120] sm:$0xff]   ;;  %v2374_v60 = vld [vmem:[%s2986_s1 + $0x1e8] sm:$0xff]   ;;  %v2378_v0 = vld [vmem:[%s2986_s1 + $0x1f0] sm:$0xff]  }
  0x18   : > { %2109 = vmatpush3.bf16.msra.mxu0 %v2335_v19  ;;  %v2372_v58 = vld [vmem:[%s2986_s1 + $0x1a0] sm:$0xff]   ;;  %v2375_v61 = vld [vmem:[%s2986_s1 + $0x128] sm:$0xff]   ;;  %v2379_v1 = vld [vmem:[%s2986_s1 + $0x130] sm:$0xff]  }
  0x19   : > { %2131 = vmatpush3.bf16.msra.mxu1 %v2336_v20  ;;  %2110 = vmatprep.subr.bf16.mxu0 %v2337_v21  ;;  %v2376_v62 = vld [vmem:[%s2986_s1 + $0x1a8] sm:$0xff]   ;;  %v2380_v2 = vld [vmem:[%s2986_s1 + $0x1b0] sm:$0xff]   ;;  %v2381_v3 = vld [vmem:[%s2986_s1 + $0x178] sm:$0xff]  }
  0x1a   : > { %2132 = vmatprep.subr.bf16.mxu1 %v2338_v22  ;;  %v2382_v4 = vld [vmem:[%s2986_s1 + $0x1f8] sm:$0xff]   ;;  %v253_v7 = vld [vmem:[%s2627_s18] sm:$0xff]  ;;  %v254_v10 = vld [vmem:[%s2627_s18 + $0x8] sm:$0xff] }
  0x1b   : > { %v2383_v5 = vld [vmem:[%s2986_s1 + $0x138] sm:$0xff]   ;;  %v1947_v8 = vcombine.low %v253_v7, %v253_v7  ;;  %v1948_v9 = vcombine.high %v253_v7, %v253_v7  ;;  %v1949_v11 = vcombine.low %v254_v10, %v254_v10  ;;  %v1950_v12 = vcombine.high %v254_v10, %v254_v10  ;;  %v2389_v13 = vld [vmem:[%s2986_s1 + $0x240] sm:$0xff]   ;;  %v2394_v34 = vld [vmem:[%s2986_s1 + $0x2c8] sm:$0xff]  }
  0x1c   : > { %2111 = vmatpush3.bf16.msra.mxu0 %v2339_v23  ;;  %v2384_v6 = vld [vmem:[%s2986_s1 + $0x1b8] sm:$0xff]   ;;  %v2390_v18 = vld [vmem:[%s2986_s1 + $0x2c0] sm:$0xff]   ;;  %v2396_v36 = vld [vmem:[%s2986_s1 + $0x288] sm:$0xff]  }
  0x1d   : > { %2133 = vmatpush3.bf16.msra.mxu1 %v2340_v24  ;;  %2112 = vmatprep.subr.bf16.mxu0 %v2341_v25  ;;  %v293_v14 = vshrl.u32 %v1948_v9, 16  ;;  %v295_v15 = vshll.u32 %v1948_v9, 16  ;;  %v286_v16 = vshrl.u32 %v1947_v8, 16  ;;  %v288_v17 = vshll.u32 %v1947_v8, 16  ;;  %v2391_v25 = vld [vmem:[%s2986_s1 + $0x200] sm:$0xff]   ;;  %v2398_v38 = vld [vmem:[%s2986_s1 + $0x2d0] sm:$0xff]  }
  0x1e   : > { %2134 = vmatprep.subr.bf16.mxu1 %v2342_v26  ;;  %v307_v19 = vshrl.u32 %v1950_v12, 16  ;;  %v309_v20 = vshll.u32 %v1950_v12, 16  ;;  %v300_v21 = vshrl.u32 %v1949_v11, 16  ;;  %v302_v22 = vshll.u32 %v1949_v11, 16 }
  0x1f   : > { %v297_v23 = vrot.slane %v295_v15, 1  ;;  %v290_v24 = vrot.slane %v288_v17, 1 }
  0x20   : > { %2113 = vmatpush3.bf16.msra.mxu0 %v2343_v27  ;;  %v311_v26 = vrot.slane %v309_v20, 1  ;;  %v304_v27 = vrot.slane %v302_v22, 1 }
  0x21   : > { %2135 = vmatpush3.bf16.msra.mxu1 %v2344_v28  ;;  %2114 = vmatprep.subr.bf16.mxu0 %v2345_v29  ;;  %v2392_v28 = vld [vmem:[%s2986_s1 + $0x280] sm:$0xff]   ;;  %v2393_v29 = vld [vmem:[%s2986_s1 + $0x248] sm:$0xff]  }
  0x22   : > { %2136 = vmatprep.subr.bf16.mxu1 %v2346_v30  ;;  %v298_v30 = vor.u32 %v297_v23, %v293_v14  ;;  %v305_v33 = vor.u32 %v304_v27, %v300_v21 }
  0x24   : > { %2115 = vmatpush3.bf16.msra.mxu0 %v2347_v31  ;;  %v291_v31 = vor.u32 %v290_v24, %v286_v16  ;;  %v2428_v24 = vld [vmem:[%s2986_s1 + $0x380] sm:$0xff]  }
  0x25   : > { %2137 = vmatpush3.bf16.msra.mxu1 %v2348_v32  ;;  %2144 = vmatprep.subr.bf16.mxu0 %v2353_v39  ;;  %v312_v32 = vor.u32 %v311_v26, %v307_v19  ;;  %v2399_v39 = vld [vmem:[%s2986_s1 + $0x210] sm:$0xff]   ;;  %v2427_v19 = vld [vmem:[%s2986_s1 + $0x300] sm:$0xff]  }
  0x26   : > { %2166 = vmatprep.subr.bf16.mxu1 %v2354_v40  ;;  %v2400_v40 = vld [vmem:[%s2986_s1 + $0x290] sm:$0xff]  }
  0x27   : > { %1444 = vmatmul.mubr.bf16.vlgmr.msra.gmra.mrb[0].mxu0 %v1943_v35  ;;  %v2395_v35 = vld [vmem:[%s2986_s1 + $0x208] sm:$0xff]  }
  0x28   : > { %1484 = vmatmul.mubr.bf16.vlgmr.msra.gmra.mrb[0].mxu1 %v1945_v37  ;;  %2145 = vmatpush3.bf16.msra.mxu0 %v2355_v41  ;;  %v2397_v37 = vld [vmem:[%s2986_s1 + $0x250] sm:$0xff]   ;;  %v2401_v41 = vld [vmem:[%s2986_s1 + $0x258] sm:$0xff]  }
  0x29   : > { %2167 = vmatpush3.bf16.msra.mxu1 %v2356_v42  ;;  %2146 = vmatprep.subr.bf16.mxu0 %v2357_v43  ;;  %v2402_v42 = vld [vmem:[%s2986_s1 + $0x2d8] sm:$0xff]  }
  0x2a   : > { %2168 = vmatprep.subr.bf16.mxu1 %v2358_v44  ;;  %1523 = vmatprep.mubr.bf16.mxu0 %v298_v30  ;;  %v2403_v43 = vld [vmem:[%s2986_s1 + $0x218] sm:$0xff]   ;;  %v2430_v30 = vld [vmem:[%s2986_s1 + $0x3c8] sm:$0xff]  }
  0x2b   : > { %1563 = vmatprep.mubr.bf16.mxu1 %v312_v32  ;;  %v2404_v44 = vld [vmem:[%s2986_s1 + $0x298] sm:$0xff]   ;;  %v2432_v32 = vld [vmem:[%s2986_s1 + $0x388] sm:$0xff]  }
  0x2c   : > { %2147 = vmatpush3.bf16.msra.mxu0 %v2359_v45  ;;  %v2405_v45 = vld [vmem:[%s2986_s1 + $0x260] sm:$0xff]  }
  0x2d   : > { %2169 = vmatpush3.bf16.msra.mxu1 %v2360_v46  ;;  %2148 = vmatprep.subr.bf16.mxu0 %v2361_v47  ;;  %v2406_v46 = vld [vmem:[%s2986_s1 + $0x2e0] sm:$0xff]  }
  0x2e   : > { %2170 = vmatprep.subr.bf16.mxu1 %v2362_v48  ;;  %v2407_v47 = vld [vmem:[%s2986_s1 + $0x220] sm:$0xff]  }
  0x2f   : > { %v2408_v48 = vld [vmem:[%s2986_s1 + $0x2a0] sm:$0xff]  }
  0x30   : > { %2149 = vmatpush3.bf16.msra.mxu0 %v2363_v49  ;;  %v2409_v49 = vld [vmem:[%s2986_s1 + $0x268] sm:$0xff]  }
  0x31   : > { %2171 = vmatpush3.bf16.msra.mxu1 %v2364_v50  ;;  %2150 = vmatprep.subr.bf16.mxu0 %v2365_v51  ;;  %v2410_v50 = vld [vmem:[%s2986_s1 + $0x2e8] sm:$0xff]  }
  0x32   : > { %2172 = vmatprep.subr.bf16.mxu1 %v2366_v52  ;;  %v2411_v51 = vld [vmem:[%s2986_s1 + $0x228] sm:$0xff]  }
  0x33   : > { %v2412_v52 = vld [vmem:[%s2986_s1 + $0x2a8] sm:$0xff]  }
  0x34   : > { %2151 = vmatpush3.bf16.msra.mxu0 %v2367_v53  ;;  %v2413_v53 = vld [vmem:[%s2986_s1 + $0x270] sm:$0xff]  }
  0x35   : > { %2173 = vmatpush3.bf16.msra.mxu1 %v2368_v54  ;;  %2152 = vmatprep.subr.bf16.mxu0 %v2369_v55  ;;  %v2414_v54 = vld [vmem:[%s2986_s1 + $0x2f0] sm:$0xff]  }
  0x36   : > { %2174 = vmatprep.subr.bf16.mxu1 %v2370_v56  ;;  %v2415_v55 = vld [vmem:[%s2986_s1 + $0x230] sm:$0xff]  }
  0x37   : > { %v2416_v56 = vld [vmem:[%s2986_s1 + $0x2b0] sm:$0xff]  }
  0x38   : > { %2153 = vmatpush3.bf16.msra.mxu0 %v2371_v57  ;;  %v2417_v57 = vld [vmem:[%s2986_s1 + $0x278] sm:$0xff]  }
  0x39   : > { %2175 = vmatpush3.bf16.msra.mxu1 %v2372_v58  ;;  %2154 = vmatprep.subr.bf16.mxu0 %v2373_v59  ;;  %v2418_v58 = vld [vmem:[%s2986_s1 + $0x2f8] sm:$0xff]  }
  0x3a   : > { %2176 = vmatprep.subr.bf16.mxu1 %v2374_v60  ;;  %v2419_v59 = vld [vmem:[%s2986_s1 + $0x238] sm:$0xff]  }
  0x3b   : > { %v2420_v60 = vld [vmem:[%s2986_s1 + $0x2b8] sm:$0xff]  }
  0x3c   : > { %2155 = vmatpush3.bf16.msra.mxu0 %v2375_v61  ;;  %v255_v61 = vld [vmem:[%s2627_s18] sm:$0xee] }
  0x3d   : > { %2177 = vmatpush3.bf16.msra.mxu1 %v2376_v62  ;;  %2156 = vmatprep.subr.bf16.mxu0 %v2377_v63  ;;  %v2833_v62 = vld [vmem:[%s2627_s18 + $0x10] sm:$0x11]  ;;  %v256_v63 = vld [vmem:[%s2627_s18 + $0x8] sm:$0xee] }
  0x3e   : > { %2178 = vmatprep.subr.bf16.mxu1 %v2378_v0  ;;  %v2837_v0 = vld [vmem:[%s2627_s18 + $0x18] sm:$0x11] }
  0x40   : > { %2157 = vmatpush3.bf16.msra.mxu0 %v2379_v1  ;;  %v1951_v1 = vcombine.low %v255_v61, %v2833_v62 }
  0x41   : > { %2179 = vmatpush3.bf16.msra.mxu1 %v2380_v2  ;;  %2158 = vmatprep.subr.bf16.mxu0 %v2381_v3  ;;  %v1952_v2 = vcombine.high %v255_v61, %v2833_v62  ;;  %v1953_v3 = vcombine.low %v256_v63, %v2837_v0 }
  0x42   : > { %2180 = vmatprep.subr.bf16.mxu1 %v2382_v4  ;;  %v2425_v4 = vld [vmem:[%s2986_s1 + $0x340] sm:$0xff]   ;;  %v334_v9 = vshrl.u32 %v1951_v1, 16  ;;  %v337_v10 = vshll.u32 %v1951_v1, 16 }
  0x43   : > { %v342_v7 = vshrl.u32 %v1952_v2, 16  ;;  %v345_v8 = vshll.u32 %v1952_v2, 16  ;;  %v353_v14 = vshll.u32 %v1953_v3, 16 }
  0x44   : > { %2159 = vmatpush3.bf16.msra.mxu0 %v2383_v5  ;;  %v1954_v5 = vcombine.high %v256_v63, %v2837_v0  ;;  %v336_v17 = vrot.slane %v334_v9, 1  ;;  %v1748_v63 = vld [vmem:[%s2989_s4] sm:$0x3f] }
  0x45   : > { %2181 = vmatpush3.bf16.msra.mxu1 %v2384_v6  ;;  %2188 = vmatprep.subr.bf16.mxu0 %v2389_v13  ;;  %v2426_v6 = vld [vmem:[%s2986_s1 + $0x3c0] sm:$0xff]   ;;  %v350_v13 = vshrl.u32 %v1953_v3, 16  ;;  %v344_v15 = vrot.slane %v342_v7, 1  ;;  %v347_v16 = vrot.slane %v345_v8, 2  ;;  %v355_v23 = vrot.slane %v353_v14, 2  ;;  %v2463_v7 = vld [vmem:[%s2990_s5 + $0x10] sm:$0xff]  }
  0x46   : > { %2210 = vmatprep.subr.bf16.mxu1 %v2390_v18  ;;  %v358_v11 = vshrl.u32 %v1954_v5, 16  ;;  %v361_v12 = vshll.u32 %v1954_v5, 16  ;;  %v339_v18 = vrot.slane %v337_v10, 2  ;;  %1751 = vperm.xlu0 %2316, %v1748_v63   ;;  %v2464_v8 = vld [vmem:[%s2990_s5 + $0x18] sm:$0xff]   ;;  %v2465_v9 = vld [vmem:[%s2990_s5 + $0x20] sm:$0xff]   ;;  %v2466_v10 = vld [vmem:[%s2990_s5 + $0x28] sm:$0xff]  }
  0x47   : > { %1524 = vmatmul.mubr.bf16.vlgmr.msra.gmra.mrb[4].mxu0 %v291_v31  ;;  %v352_v22 = vrot.slane %v350_v13, 1  ;;  %v2431_v31 = vld [vmem:[%s2986_s1 + $0x308] sm:$0xff]  }
  0x48   : > { %1564 = vmatmul.mubr.bf16.vlgmr.msra.gmra.mrb[4].mxu1 %v305_v33  ;;  %2189 = vmatpush3.bf16.msra.mxu0 %v2391_v25  ;;  %v360_v20 = vrot.slane %v358_v11, 1  ;;  %v363_v21 = vrot.slane %v361_v12, 2  ;;  %v348_v25 = vor.u32 %v347_v16, %v344_v15  ;;  %v340_v26 = vor.u32 %v339_v18, %v336_v17  ;;  %v2433_v33 = vld [vmem:[%s2986_s1 + $0x350] sm:$0xff]  }
  0x49   : > { %2211 = vmatpush3.bf16.msra.mxu1 %v2392_v28  ;;  %2190 = vmatprep.subr.bf16.mxu0 %v2393_v29  ;;  %v356_v28 = vor.u32 %v355_v23, %v352_v22  ;;  %v2429_v29 = vld [vmem:[%s2986_s1 + $0x348] sm:$0xff]   ;;  %v2468_v23 = vld [vmem:[%s2990_s5 + $0x38] sm:$0xff]  }
  0x4a   : > { %2212 = vmatprep.subr.bf16.mxu1 %v2394_v34  ;;  %v364_v27 = vor.u32 %v363_v21, %v360_v20  ;;  %1603 = vmatprep.mubr.bf16.mxu0 %v348_v25  ;;  %v2434_v34 = vld [vmem:[%s2986_s1 + $0x3d0] sm:$0xff]  }
  0x4c   : > { %2191 = vmatpush3.bf16.msra.mxu0 %v2395_v35  ;;  %1643 = vmatprep.mubr.bf16.mxu1 %v364_v27  ;;  %v2435_v35 = vld [vmem:[%s2986_s1 + $0x310] sm:$0xff]  }
  0x4d   : > { %2213 = vmatpush3.bf16.msra.mxu1 %v2396_v36  ;;  %2192 = vmatprep.subr.bf16.mxu0 %v2397_v37  ;;  %v2436_v36 = vld [vmem:[%s2986_s1 + $0x390] sm:$0xff]   ;;  %v2437_v37 = vld [vmem:[%s2986_s1 + $0x358] sm:$0xff]  }
  0x4e   : > { %2214 = vmatprep.subr.bf16.mxu1 %v2398_v38  ;;  %v2438_v38 = vld [vmem:[%s2986_s1 + $0x3d8] sm:$0xff]  }
  0x50   : > { %2193 = vmatpush3.bf16.msra.mxu0 %v2399_v39  ;;  %v2439_v39 = vld [vmem:[%s2986_s1 + $0x318] sm:$0xff]  }
  0x51   : > { %2215 = vmatpush3.bf16.msra.mxu1 %v2400_v40  ;;  %2194 = vmatprep.subr.bf16.mxu0 %v2401_v41  ;;  %v2440_v40 = vld [vmem:[%s2986_s1 + $0x398] sm:$0xff]   ;;  %v2441_v41 = vld [vmem:[%s2986_s1 + $0x360] sm:$0xff]  }
  0x52   : > { %2216 = vmatprep.subr.bf16.mxu1 %v2402_v42  ;;  %v2442_v42 = vld [vmem:[%s2986_s1 + $0x3e0] sm:$0xff]  }
  0x54   : > { %2195 = vmatpush3.bf16.msra.mxu0 %v2403_v43  ;;  %v2443_v43 = vld [vmem:[%s2986_s1 + $0x320] sm:$0xff]  }
  0x55   : > { %2217 = vmatpush3.bf16.msra.mxu1 %v2404_v44  ;;  %2196 = vmatprep.subr.bf16.mxu0 %v2405_v45  ;;  %v2444_v44 = vld [vmem:[%s2986_s1 + $0x3a0] sm:$0xff]   ;;  %v2445_v45 = vld [vmem:[%s2986_s1 + $0x368] sm:$0xff]  }
  0x56   : > { %2218 = vmatprep.subr.bf16.mxu1 %v2406_v46  ;;  %v2446_v46 = vld [vmem:[%s2986_s1 + $0x3e8] sm:$0xff]  }
  0x58   : > { %2197 = vmatpush3.bf16.msra.mxu0 %v2407_v47  ;;  %v2447_v47 = vld [vmem:[%s2986_s1 + $0x328] sm:$0xff]  }
  0x59   : > { %2219 = vmatpush3.bf16.msra.mxu1 %v2408_v48  ;;  %2198 = vmatprep.subr.bf16.mxu0 %v2409_v49  ;;  %v2448_v48 = vld [vmem:[%s2986_s1 + $0x3a8] sm:$0xff]   ;;  %v2449_v49 = vld [vmem:[%s2986_s1 + $0x370] sm:$0xff]  }
  0x5a   : > { %2220 = vmatprep.subr.bf16.mxu1 %v2410_v50  ;;  %v2450_v50 = vld [vmem:[%s2986_s1 + $0x3f0] sm:$0xff]  }
  0x5c   : > { %2199 = vmatpush3.bf16.msra.mxu0 %v2411_v51  ;;  %v2451_v51 = vld [vmem:[%s2986_s1 + $0x330] sm:$0xff]  }
  0x5d   : > { %2221 = vmatpush3.bf16.msra.mxu1 %v2412_v52  ;;  %2200 = vmatprep.subr.bf16.mxu0 %v2413_v53  ;;  %v2452_v52 = vld [vmem:[%s2986_s1 + $0x3b0] sm:$0xff]   ;;  %v2453_v53 = vld [vmem:[%s2986_s1 + $0x378] sm:$0xff]  }
  0x5e   : > { %2222 = vmatprep.subr.bf16.mxu1 %v2414_v54  ;;  %v2454_v54 = vld [vmem:[%s2986_s1 + $0x3f8] sm:$0xff]  }
  0x60   : > { %2201 = vmatpush3.bf16.msra.mxu0 %v2415_v55  ;;  %v2455_v55 = vld [vmem:[%s2986_s1 + $0x338] sm:$0xff]  }
  0x61   : > { %2223 = vmatpush3.bf16.msra.mxu1 %v2416_v56  ;;  %2202 = vmatprep.subr.bf16.mxu0 %v2417_v57  ;;  %v2456_v56 = vld [vmem:[%s2986_s1 + $0x3b8] sm:$0xff]   ;;  %v259_v57 = vld [vmem:[%s2627_s18] sm:$0xcc] }
  0x62   : > { %2224 = vmatprep.subr.bf16.mxu1 %v2418_v58  ;;  %v260_v58 = vld [vmem:[%s2627_s18 + $0x8] sm:$0xcc] }
  0x63   : > { %v1957_v61 = vcombine.low %v260_v58, %v2837_v0  ;;  %v1958_v1 = vcombine.high %v260_v58, %v2837_v0  ;;  %v2462_v0 = vld [vmem:[%s2990_s5 + $0x8] sm:$0xff]  }
  0x64   : > { %2203 = vmatpush3.bf16.msra.mxu0 %v2419_v59  ;;  %v1955_v59 = vcombine.low %v259_v57, %v2833_v62 }
  0x65   : > { %2225 = vmatpush3.bf16.msra.mxu1 %v2420_v60  ;;  %2232 = vmatprep.subr.bf16.mxu0 %v2425_v4  ;;  %v1956_v60 = vcombine.high %v259_v57, %v2833_v62  ;;  %v381_v4 = vrot.slane %v1957_v61, 2  ;;  %v382_v5 = vrot.slane %v1958_v1, 2  ;;  %v2461_v62 = vld [vmem:[%s2990_s5] sm:$0xff]  }
  0x66   : > { %2254 = vmatprep.subr.bf16.mxu1 %v2426_v6  ;;  %v379_v2 = vrot.slane %v1955_v59, 2  ;;  %v2482_v6 = vmov 0.0   ;;  %v2087_v59 = vld [vmem:[%s2987_s2] ss:$0 sm:$0xff] }
  0x67   : > { %1604 = vmatmul.mubr.bf16.vlgmr.msra.gmra.mrb[8].mxu0 %v340_v26  ;;  %v380_v3 = vrot.slane %v1956_v60, 2  ;;  %v2088_v61 = vld [vmem:[%s2988_s3] ss:$0 sm:$0xff] }
  0x68   : > { %1644 = vmatmul.mubr.bf16.vlgmr.msra.gmra.mrb[8].mxu1 %v356_v28  ;;  %2233 = vmatpush3.bf16.msra.mxu0 %v2427_v19  ;;  %v2467_v19 = vld [vmem:[%s2990_s5 + $0x30] sm:$0xff]  }
  0x69   : > { %2255 = vmatpush3.bf16.msra.mxu1 %v2428_v24  ;;  %2234 = vmatprep.subr.bf16.mxu0 %v2429_v29 }
  0x6a   : > { %2256 = vmatprep.subr.bf16.mxu1 %v2430_v30  ;;  %1683 = vmatprep.mubr.bf16.mxu0 %v380_v3 }
  0x6b   : > { %1723 = vmatprep.mubr.bf16.mxu1 %v382_v5 }
  0x6c   : > { %2235 = vmatpush3.bf16.msra.mxu0 %v2431_v31 }
  0x6d   : > { %2257 = vmatpush3.bf16.msra.mxu1 %v2432_v32  ;;  %2236 = vmatprep.subr.bf16.mxu0 %v2433_v33 }
  0x6e   : > { %2258 = vmatprep.subr.bf16.mxu1 %v2434_v34 }
  0x70   : > { %2237 = vmatpush3.bf16.msra.mxu0 %v2435_v35 }
  0x71   : > { %2259 = vmatpush3.bf16.msra.mxu1 %v2436_v36  ;;  %2238 = vmatprep.subr.bf16.mxu0 %v2437_v37 }
  0x72   : > { %2260 = vmatprep.subr.bf16.mxu1 %v2438_v38 }
  0x74   : > { %2239 = vmatpush3.bf16.msra.mxu0 %v2439_v39 }
  0x75   : > { %2261 = vmatpush3.bf16.msra.mxu1 %v2440_v40  ;;  %2240 = vmatprep.subr.bf16.mxu0 %v2441_v41 }
  0x76   : > { %2262 = vmatprep.subr.bf16.mxu1 %v2442_v42 }
  0x78   : > { %2241 = vmatpush3.bf16.msra.mxu0 %v2443_v43 }
  0x79   : > { %2263 = vmatpush3.bf16.msra.mxu1 %v2444_v44  ;;  %2242 = vmatprep.subr.bf16.mxu0 %v2445_v45 }
  0x7a   : > { %2264 = vmatprep.subr.bf16.mxu1 %v2446_v46 }
  0x7c   : > { %2243 = vmatpush3.bf16.msra.mxu0 %v2447_v47 }
  0x7d   : > { %2265 = vmatpush3.bf16.msra.mxu1 %v2448_v48  ;;  %2244 = vmatprep.subr.bf16.mxu0 %v2449_v49 }
  0x7e   : > { %2266 = vmatprep.subr.bf16.mxu1 %v2450_v50 }
  0x80   : > { %2245 = vmatpush3.bf16.msra.mxu0 %v2451_v51 }
  0x81   : > { %2267 = vmatpush3.bf16.msra.mxu1 %v2452_v52  ;;  %2246 = vmatprep.subr.bf16.mxu0 %v2453_v53 }
  0x82   : > { %2268 = vmatprep.subr.bf16.mxu1 %v2454_v54 }
  0x84   : > { %2247 = vmatpush3.bf16.msra.mxu0 %v2455_v55 }
  0x85   : > { %2269 = vmatpush3.bf16.msra.mxu1 %v2456_v56  ;;  %2285 = vmatprep.subr.bf16.mxu0 %v2482_v6 }
  0x87   : > { %1684 = vmatmul.mubr.bf16.vlgmr.msra.gmra.mrb[12].mxu0 %v379_v2 }
  0x88   : > { %1724 = vmatmul.mubr.bf16.vlgmr.msra.gmra.mrb[12].mxu1 %v381_v4  ;;  %2286 = vmatpush3.bf16.msra.mxu0 %v2461_v62 }
  0x89   : > { %2287 = vmatprep.subr.bf16.mxu0 %v2482_v6  ;;  %2301 = vmatprep.mubr.msk.bf16.mxu0 %vm2483_vm0, %v2482_v6 }
  0x8c   : > { %2288 = vmatpush3.bf16.msra.mxu0 %v2462_v0 }
  0x8d   : > { %2289 = vmatprep.subr.bf16.mxu0 %v2482_v6 }
  0x90   : > { %2290 = vmatpush3.bf16.msra.mxu0 %v2463_v7 }
  0x91   : > { %2291 = vmatprep.subr.bf16.mxu0 %v2482_v6 }
  0x94   : > { %2292 = vmatpush3.bf16.msra.mxu0 %v2464_v8 }
  0x95   : > { %2293 = vmatprep.subr.bf16.mxu0 %v2482_v6 }
  0x98   : > { %2294 = vmatpush3.bf16.msra.mxu0 %v2465_v9 }
  0x99   : > { %2295 = vmatprep.subr.bf16.mxu0 %v2482_v6 }
  0x9c   : > { %2296 = vmatpush3.bf16.msra.mxu0 %v2466_v10 }
  0x9d   : > { %2297 = vmatprep.subr.bf16.mxu0 %v2482_v6 }
  0xa0   : > { %2298 = vmatpush3.bf16.msra.mxu0 %v2467_v19 }
  0xa1   : > { %2299 = vmatprep.subr.bf16.mxu0 %v2482_v6 }
  0xa4   : > { %2300 = vmatpush3.bf16.msra.mxu0 %v2468_v23 }
  0xc5   : > { %v1752_v2 = vpop.permute.xlu0 %1751 }
  0xfa   : > { %v2116_v11 = vpop.f32.mrb[0].mxu0 }
  0xfb   : > { %v2138_v12 = vpop.f32.mrb[0].mxu1  ;;  %v2117_v13 = vpop.f32.mrb[1].mxu0 }
  0xfc   : > { %v2139_v14 = vpop.f32.mrb[1].mxu1  ;;  %v2118_v15 = vadd.f32 %v2117_v13, %v2116_v11  ;;  %v2119_v17 = vpop.f32.mrb[2].mxu0 }
  0xfd   : > { %v2140_v16 = vadd.f32 %v2139_v14, %v2138_v12  ;;  %v2141_v18 = vpop.f32.mrb[2].mxu1  ;;  %v2120_v20 = vpop.f32.mrb[3].mxu0 }
  0xfe   : > { %v2142_v21 = vpop.f32.mrb[3].mxu1  ;;  %v1875_v20 = vlaneseq }
  0xff   : > { %v1486_v22 = vadd.f32 %v2140_v16, %v2118_v15 }
 0x100   : > { %v1876_v21 = vshrl.u32 %v1875_v20, 7 }
 0x11a   : > { %v2160_v24 = vpop.f32.mrb[4].mxu0 }
 0x11b   : > { %v2182_v25 = vpop.f32.mrb[4].mxu1  ;;  %v2161_v26 = vpop.f32.mrb[5].mxu0 }
 0x11c   : > { %v2162_v27 = vadd.f32 %v2161_v26, %v2160_v24  ;;  %v2183_v28 = vpop.f32.mrb[5].mxu1  ;;  %v2163_v29 = vpop.f32.mrb[6].mxu0 }
 0x11d   : > { %v2184_v30 = vadd.f32 %v2183_v28, %v2182_v25  ;;  %v2185_v31 = vpop.f32.mrb[6].mxu1  ;;  %v2164_v32 = vpop.f32.mrb[7].mxu0 }
 0x11e   : > { %v1526_v33 = vadd.f32 %v2162_v27, %v1486_v22  ;;  %v2186_v34 = vpop.f32.mrb[7].mxu1  ;;  %v1877_v22 = vsub.s32 0, %v1876_v21 }
 0x120   : > { %v1566_v35 = vadd.f32 %v2184_v30, %v1526_v33 }
 0x13a   : > { %v2204_v36 = vpop.f32.mrb[8].mxu0 }
 0x13b   : > { %v2226_v37 = vpop.f32.mrb[8].mxu1  ;;  %v2205_v38 = vpop.f32.mrb[9].mxu0 }
 0x13c   : > { %v2206_v39 = vadd.f32 %v2205_v38, %v2204_v36  ;;  %v2227_v40 = vpop.f32.mrb[9].mxu1  ;;  %v2207_v41 = vpop.f32.mrb[10].mxu0 }
 0x13d   : > { %v2228_v42 = vadd.f32 %v2227_v40, %v2226_v37  ;;  %v2229_v43 = vpop.f32.mrb[10].mxu1  ;;  %v2208_v44 = vpop.f32.mrb[11].mxu0 }
 0x13e   : > { %v1606_v45 = vadd.f32 %v2206_v39, %v1566_v35  ;;  %v2230_v46 = vpop.f32.mrb[11].mxu1 }
 0x140   : > { %v1646_v47 = vadd.f32 %v2228_v42, %v1606_v45 }
 0x15a   : > { %v2248_v48 = vpop.f32.mrb[12].mxu0 }
 0x15b   : > { %v2270_v49 = vpop.f32.mrb[12].mxu1  ;;  %v2249_v50 = vpop.f32.mrb[13].mxu0 }
 0x15c   : > { %v2250_v51 = vadd.f32 %v2249_v50, %v2248_v48  ;;  %v2271_v52 = vpop.f32.mrb[13].mxu1  ;;  %v2251_v53 = vpop.f32.mrb[14].mxu0 }
 0x15d   : > { %v2272_v54 = vadd.f32 %v2271_v52, %v2270_v49  ;;  %v2273_v55 = vpop.f32.mrb[14].mxu1  ;;  %v2252_v56 = vpop.f32.mrb[15].mxu0 }
 0x15e   : > { %v1686_v57 = vadd.f32 %v2250_v51, %v1646_v47  ;;  %v2274_v58 = vpop.f32.mrb[15].mxu1 }
 0x160   : > { %v1726_v60 = vadd.f32 %v2272_v54, %v1686_v57 }
 0x162   : > { %v1738_v63 = vmul.f32 %v2087_v59, %v1726_v60 }
 0x164   : > { %v1746_v1 = vadd.f32 %v2088_v61, %v1738_v63 }
 0x166   : > { %v1747_v3 = vmax.f32 %v1746_v1, 0.0 }
 0x168   : > { %v1754_v4 = vmul.f32 %v1752_v2, %v1747_v3 }
 0x16a   : > { %v1756_v5 = vsel %vm1755_vm1, %v1754_v4, 0.0 }
 0x16b   : > { %v1757_v62 = vrot.slane %v1756_v5, 4 }
 0x16d   : > { %v1758_v6 = vadd.f32 %v1757_v62, %v1756_v5 }
 0x16f   : > { %v1759_v0 = vrot.slane %v1758_v6, 2 }
 0x171   : > { %v1760_v7 = vadd.f32 %v1759_v0, %v1758_v6 }
 0x173   : > { %v1761_v8 = vrot.slane %v1760_v7, 1 }
 0x175   : > { %v1762_v9 = vadd.f32 %v1761_v8, %v1760_v7 }
 0x177   : > { %v1763_v10 = vmul.f32 0.25, %v1762_v9 }
 0x179   : > { %v1764_v11 = vpack.c.bf16 %v1763_v10, %v1763_v10 }
 0x17b   : > { %2302 = vmatmul.mubr.bf16.vlgmr.msra.gmra.mrb[16].mxu0 %v1764_v11 }
 0x24e   : > { %v1863_v12 = vpop.f32.mrb[16].mxu0 }
 0x24f   : > { %v1869_v13 = vsub.f32 0.0, %v1863_v12  ;;  %v2303_v14 = vpop.f32.mrb[17].mxu0 }
 0x250   : > { %v1866_v15 = vpop.f32.mrb[18].mxu0 }
 0x251   : > { %v1870_v16 = vmul.f32 1.442695, %v1869_v13  ;;  %v2304_v17 = vpop.f32.mrb[19].mxu0 }
 0x253   : > { %2469 = vpow2.f32 %v1870_v16 }
 0x25d   : > { %v2470_v18 = vpop.eup %2469 }
 0x25e   : > { %v1872_v19 = vadd.f32 1.0, %v2470_v18 }
 0x260   : > { %2471 = vrcp.f32 %v1872_v19 }
 0x26a   : > { %v2472_v23 = vpop.eup %2471 }
 0x26b   : > { %v1878_v24 = vrot.slane %v2472_v23, %v1877_v22 }
 0x26d   : > { %v1879_v25 = vmul.f32 %v1878_v24, %v1754_v4 }
 0x26f   : > { %v1880_v26 = vpack.c.bf16 %v1879_v25, %v1879_v25 }
 0x271   : > { %1881 = vst [vmem:[%s249_s30] sm:$0x7] %v1880_v26 }
 0x272 PF: > { %s16_s21 = sadd.s32 1, %s2479_s21  }
 0x273   : > { %p13_p4 = scmp.ge.s32.totalorder %s16_s21, 4  }
 0x275   :  { %15 = sbr.rel (!%p13_p4) target bundleno = 1 (0x1), region = 74 }

// kernel: _lambda_.23
= control target key start
LH: loop header
LB: loop body
LE: loop exit
PB: predicated region body
PF: predicated region fallthrough
CT: control target
= control target key end

     0   :  { %s768_s21 = smov 0   ;;  %s852_s0 = inlined_call_operand.vmem [shape: bf16[2,16,128], index: 0, kind: input, shape index: {}]   ;;  %s853_s1 = inlined_call_operand.vmem [shape: bf16[128,128], index: 1, kind: input, shape index: {}]   ;;  %s854_s2 = inlined_call_operand.vmem [shape: f32[1,128], index: 2, kind: input, shape index: {}]   ;;  %s855_s3 = inlined_call_operand.vmem [shape: f32[1,128], index: 3, kind: input, shape index: {}]   ;;  %s856_s4 = inlined_call_operand.vmem [shape: f32[16,1], index: 4, kind: input, shape index: {}]   ;;  %s857_s5 = inlined_call_operand.vmem [shape: bf16[128,128], index: 5, kind: input, shape index: {}]   ;;  %s858_s6 = inlined_call_operand.vmem [shape: bf16[2,16,128], index: 6, kind: output, shape index: {}]  }
   0x1 LB: > { %s590_s22 = sadd.s32 4294967295, %s728_s21   ;;  %p594_p0 = scmp.ge.s32.totalorder %s728_s21, 1  ;;  %s728_s21 = sphi %s768_s21, %s16_s21  }
   0x2   : > { %p212_p1 = scmp.lt.s32.totalorder %s728_s21, 3 }
   0x4   : > { %p213_p2 = pnand %p594_p0, %p212_p1 }
   0x5   : > { %v701_v0 = vld [vmem:[%s853_s1] sm:$0xff] (!%p213_p2)   ;;  %v730_v1 = vmov (!%p213_p2), 0.0   ;;  %v702_v2 = vld [vmem:[%s853_s1 + $0x8] sm:$0xff] (!%p213_p2)   ;;  %vm731_vm0 = vmmov (!%p213_p2), 0   ;;  %p242_p3 = scmp.lt.s32.totalorder (!%p213_p2), %s590_s22, 1  ;;  %v732_v3 = vmov (!%p213_p2), 0   ;;  %v519_v54 = vlaneseq (!%p213_p2) }
   0x6   : > { %216 = sbr.rel (%p213_p2) target bundleno = 525 (0x20d), region = 44  ;;  %649 = vmatprep.subr.bf16.mxu0 (!%p213_p2), %v730_v1  ;;  %669 = vmatprep.subr.bf16.mxu1 (!%p213_p2), %v730_v1  ;;  %v703_v4 = vld [vmem:[%s853_s1 + $0x10] sm:$0xff] (!%p213_p2)   ;;  %v704_v5 = vld [vmem:[%s853_s1 + $0x18] sm:$0xff] (!%p213_p2)   ;;  %v386_v6 = vld [vmem:[%s856_s4] sm:$0xff] (!%p213_p2) }
   0x7   : > { %650 = vmatpush3.bf16.msra.mxu0 (!%p213_p2), %v701_v0  ;;  %665 = vmatprep.mubr.msk.bf16.mxu0 (!%p213_p2), %vm731_vm0, %v730_v1  ;;  %v387_v7 = vld [vmem:[%s856_s4 + $0x8] sm:$0xff] (!%p213_p2)  ;;  %v710_v8 = vld [vmem:[%s857_s5] sm:$0xff] (!%p213_p2)   ;;  %v707_v11 = vld [vmem:[%s853_s1 + $0x30] sm:$0xff] (!%p213_p2)   ;;  %v520_v55 = vshrl.u32 (!%p213_p2), %v519_v54, 7 }
   0x8   : > { %651 = vmatprep.subr.bf16.mxu0 (!%p213_p2), %v730_v1  ;;  %685 = vmatprep.mubr.msk.bf16.mxu1 (!%p213_p2), %vm731_vm0, %v730_v1  ;;  %v705_v9 = vld [vmem:[%s853_s1 + $0x20] sm:$0xff] (!%p213_p2)   ;;  %v706_v10 = vld [vmem:[%s853_s1 + $0x28] sm:$0xff] (!%p213_p2)   ;;  %v708_v12 = vld [vmem:[%s853_s1 + $0x38] sm:$0xff] (!%p213_p2)  }
   0x9   : > { %700 = vset.pattern.permute.xlu0 (!%p213_p2), %v732_v3  ;;  %670 = vmatpush3.bf16.msra.mxu1 (!%p213_p2), %v710_v8  ;;  %v711_v14 = vld [vmem:[%s857_s5 + $0x8] sm:$0xff] (!%p213_p2)   ;;  %v712_v15 = vld [vmem:[%s857_s5 + $0x10] sm:$0xff] (!%p213_p2)   ;;  %v713_v16 = vld [vmem:[%s857_s5 + $0x18] sm:$0xff] (!%p213_p2)   ;;  %v521_v56 = vsub.s32 (!%p213_p2), 0, %v520_v55 }
   0xa   : > { %390 = vperm.xlu0 (!%p213_p2), %700, %v386_v6   ;;  %671 = vmatprep.subr.bf16.mxu1 (!%p213_p2), %v730_v1  ;;  %v714_v17 = vld [vmem:[%s857_s5 + $0x20] sm:$0xff] (!%p213_p2)   ;;  %v715_v18 = vld [vmem:[%s857_s5 + $0x28] sm:$0xff] (!%p213_p2)   ;;  %v716_v19 = vld [vmem:[%s857_s5 + $0x30] sm:$0xff] (!%p213_p2)  }
   0xb   : > { %652 = vmatpush3.bf16.msra.mxu0 (!%p213_p2), %v702_v2  ;;  %v717_v20 = vld [vmem:[%s857_s5 + $0x38] sm:$0xff] (!%p213_p2)   ;;  %v608_v21 = vld [vmem:[%s854_s2] ss:$0 sm:$0xff] (!%p213_p2) }
   0xc   : > { %653 = vmatprep.subr.bf16.mxu0 (!%p213_p2), %v730_v1  ;;  %v609_v23 = vld [vmem:[%s855_s3] ss:$0 sm:$0xff] (!%p213_p2) }
   0xd   : > { %s860_s22 = smov (!%p242_p3, %s590_s22), 1  ;;  %672 = vmatpush3.bf16.msra.mxu1 %v711_v14 }
   0xe   : > { %s622_s29 = sshll.u32 %s860_s22, 3  ;;  %395 = vperm.xlu0 %700, %v387_v7   ;;  %673 = vmatprep.subr.bf16.mxu1 %v730_v1 }
   0xf   : > { %s246_s8 = scalar_lea.vmem %s852_s0, %s622_s29  ;;  %654 = vmatpush3.bf16.msra.mxu0 %v703_v4  ;;  %s251_s26 = scalar_lea.vmem %s858_s6, %s622_s29 }
  0x10   : > { %655 = vmatprep.subr.bf16.mxu0 %v730_v1  ;;  %v709_v13 = vld [vmem:[%s246_s8] sm:$0xff]  }
  0x11   : > { %674 = vmatpush3.bf16.msra.mxu1 %v712_v15 }
  0x12   : > { %675 = vmatprep.subr.bf16.mxu1 %v730_v1 }
  0x13   : > { %656 = vmatpush3.bf16.msra.mxu0 %v704_v5 }
  0x14   : > { %657 = vmatprep.subr.bf16.mxu0 %v730_v1 }
  0x15   : > { %676 = vmatpush3.bf16.msra.mxu1 %v713_v16 }
  0x16   : > { %677 = vmatprep.subr.bf16.mxu1 %v730_v1 }
  0x17   : > { %658 = vmatpush3.bf16.msra.mxu0 %v705_v9 }
  0x18   : > { %659 = vmatprep.subr.bf16.mxu0 %v730_v1 }
  0x19   : > { %678 = vmatpush3.bf16.msra.mxu1 %v714_v17 }
  0x1a   : > { %679 = vmatprep.subr.bf16.mxu1 %v730_v1 }
  0x1b   : > { %660 = vmatpush3.bf16.msra.mxu0 %v706_v10 }
  0x1c   : > { %661 = vmatprep.subr.bf16.mxu0 %v730_v1 }
  0x1d   : > { %680 = vmatpush3.bf16.msra.mxu1 %v715_v18 }
  0x1e   : > { %681 = vmatprep.subr.bf16.mxu1 %v730_v1 }
  0x1f   : > { %662 = vmatpush3.bf16.msra.mxu0 %v707_v11 }
  0x20   : > { %663 = vmatprep.subr.bf16.mxu0 %v730_v1 }
  0x21   : > { %682 = vmatpush3.bf16.msra.mxu1 %v716_v19 }
  0x22   : > { %683 = vmatprep.subr.bf16.mxu1 %v730_v1 }
  0x23   : > { %664 = vmatpush3.bf16.msra.mxu0 %v708_v12 }
  0x25   : > { %684 = vmatpush3.bf16.msra.mxu1 %v717_v20 }
  0x26   : > { %666 = vmatmul.mubr.bf16.vlgmr.msra.gmra.mrb[0].mxu0 %v709_v13 }
  0x89   : > { %v391_v26 = vpop.permute.xlu0 %390 }
  0x8d   : > { %v396_v34 = vpop.permute.xlu0 %395 }
  0xf9   : > { %v359_v22 = vpop.f32.mrb[0].mxu0 }
  0xfa   : > { %v373_v24 = vmul.f32 %v608_v21, %v359_v22  ;;  %v667_v25 = vpop.f32.mrb[1].mxu0 }
  0xfb   : > { %v362_v27 = vpop.f32.mrb[2].mxu0 }
  0xfc   : > { %v382_v28 = vadd.f32 %v609_v23, %v373_v24  ;;  %v374_v29 = vmul.f32 %v608_v21, %v362_v27  ;;  %v668_v30 = vpop.f32.mrb[3].mxu0 }
  0xfe   : > { %v384_v31 = vmax.f32 %v382_v28, 0.0  ;;  %v383_v32 = vadd.f32 %v609_v23, %v374_v29 }
 0x100   : > { %v385_v33 = vmax.f32 %v383_v32, 0.0  ;;  %v398_v35 = vmul.f32 %v391_v26, %v384_v31 }
 0x102   : > { %v399_v36 = vmul.f32 %v396_v34, %v385_v33 }
 0x104   : > { %v400_v37 = vadd.f32 %v399_v36, %v398_v35 }
 0x106   : > { %v401_v38 = vrot.slane %v400_v37, 4 }
 0x108   : > { %v402_v39 = vadd.f32 %v401_v38, %v400_v37 }
 0x10a   : > { %v403_v40 = vrot.slane %v402_v39, 2 }
 0x10c   : > { %v404_v41 = vadd.f32 %v403_v40, %v402_v39 }
 0x10e   : > { %v405_v42 = vrot.slane %v404_v41, 1 }
 0x110   : > { %v406_v43 = vadd.f32 %v405_v42, %v404_v41 }
 0x112   : > { %v407_v44 = vmul.f32 0.0625, %v406_v43 }
 0x114   : > { %v408_v45 = vpack.c.bf16 %v407_v44, %v407_v44 }
 0x116   : > { %686 = vmatmul.mubr.bf16.vlgmr.msra.gmra.mrb[0].mxu1 %v408_v45 }
 0x1e9   : > { %v507_v46 = vpop.f32.mrb[0].mxu1 }
 0x1ea   : > { %v513_v47 = vsub.f32 0.0, %v507_v46  ;;  %v687_v48 = vpop.f32.mrb[1].mxu1 }
 0x1eb   : > { %v510_v49 = vpop.f32.mrb[2].mxu1 }
 0x1ec   : > { %v514_v50 = vmul.f32 1.442695, %v513_v47  ;;  %v688_v51 = vpop.f32.mrb[3].mxu1 }
 0x1ee   : > { %718 = vpow2.f32 %v514_v50 }
 0x1f8   : > { %v719_v52 = vpop.eup %718 }
 0x1f9   : > { %v516_v53 = vadd.f32 1.0, %v719_v52 }
 0x1fb   : > { %720 = vrcp.f32 %v516_v53 }
 0x205   : > { %v721_v57 = vpop.eup %720 }
 0x206   : > { %v522_v58 = vrot.slane %v721_v57, %v521_v56 }
 0x208   : > { %v523_v59 = vmul.f32 %v522_v58, %v398_v35  ;;  %v524_v60 = vmul.f32 %v522_v58, %v399_v36 }
 0x20a   : > { %v629_v61 = vpack.c.bf16 %v524_v60, %v523_v59 }
 0x20c   : > { %630 = vst [vmem:[%s251_s26] sm:$0xff] %v629_v61  }
 0x20d PF: > { %s16_s21 = sadd.s32 1, %s728_s21  }
 0x20e   : > { %p13_p4 = scmp.ge.s32.totalorder %s16_s21, 4  }
 0x210   :  { %15 = sbr.rel (!%p13_p4) target bundleno = 1 (0x1), region = 74 }

// kernel: _lambda_.25
= control target key start
LH: loop header
LB: loop body
LE: loop exit
PB: predicated region body
PF: predicated region fallthrough
CT: control target
= control target key end

     0   :  { %s962_s21 = smov 0   ;;  %s1070_s0 = inlined_call_operand.vmem [shape: bf16[2,64,128], index: 0, kind: input, shape index: {}]   ;;  %s1071_s1 = inlined_call_operand.vmem [shape: bf16[128,128], index: 1, kind: input, shape index: {}]   ;;  %s1072_s2 = inlined_call_operand.vmem [shape: f32[1,128], index: 2, kind: input, shape index: {}]   ;;  %s1073_s3 = inlined_call_operand.vmem [shape: f32[1,128], index: 3, kind: input, shape index: {}]   ;;  %s1074_s4 = inlined_call_operand.vmem [shape: f32[64,1], index: 4, kind: input, shape index: {}]   ;;  %s1075_s5 = inlined_call_operand.vmem [shape: bf16[128,128], index: 5, kind: input, shape index: {}]   ;;  %s1076_s6 = inlined_call_operand.vmem [shape: bf16[2,64,128], index: 6, kind: output, shape index: {}]  }
   0x1 LB: > { %s740_s22 = sadd.s32 4294967295, %s922_s21   ;;  %p744_p0 = scmp.ge.s32.totalorder %s922_s21, 1  ;;  %s922_s21 = sphi %s962_s21, %s16_s21  }
   0x2   : > { %p212_p1 = scmp.lt.s32.totalorder %s922_s21, 3 }
   0x4   : > { %p213_p2 = pnand %p744_p0, %p212_p1 }
   0x5   : > { %v892_v0 = vld [vmem:[%s1071_s1] sm:$0xff] (!%p213_p2)   ;;  %p242_p3 = scmp.lt.s32.totalorder (!%p213_p2), %s740_s22, 1  ;;  %v893_v1 = vld [vmem:[%s1071_s1 + $0x8] sm:$0xff] (!%p213_p2)   ;;  %v924_v2 = vmov (!%p213_p2), 0   ;;  %v894_v3 = vld [vmem:[%s1071_s1 + $0x10] sm:$0xff] (!%p213_p2)   ;;  %v925_v22 = vmov (!%p213_p2), 0.0  }
   0x6   : > { %216 = sbr.rel (%p213_p2) target bundleno = 539 (0x21b), region = 44  ;;  %835 = vmatprep.subr.bf16.mxu0 (!%p213_p2), %v892_v0  ;;  %890 = vset.pattern.permute.xlu0 (!%p213_p2), %v924_v2  ;;  %v895_v4 = vld [vmem:[%s1071_s1 + $0x18] sm:$0xff] (!%p213_p2)   ;;  %v896_v6 = vld [vmem:[%s1071_s1 + $0x20] sm:$0xff] (!%p213_p2)   ;;  %v454_v8 = vld [vmem:[%s1074_s4 + $0x10] sm:$0xff] (!%p213_p2)  ;;  %vm926_vm0 = vmmov (!%p213_p2), 0  }
   0x7   : > { %836 = vmatpush3.bf16.msra.mxu0 (!%p213_p2), %v892_v0  ;;  %891 = vset.pattern.permute.xlu1 (!%p213_p2), %v924_v2  ;;  %v452_v7 = vld [vmem:[%s1074_s4] sm:$0xff] (!%p213_p2)  ;;  %v897_v9 = vld [vmem:[%s1071_s1 + $0x28] sm:$0xff] (!%p213_p2)   ;;  %v455_v11 = vld [vmem:[%s1074_s4 + $0x18] sm:$0xff] (!%p213_p2) }
   0x8   : > { %837 = vmatprep.subr.bf16.mxu0 (!%p213_p2), %v893_v1  ;;  %462 = vperm.xlu0 (!%p213_p2), %890, %v452_v7   ;;  %v453_v10 = vld [vmem:[%s1074_s4 + $0x8] sm:$0xff] (!%p213_p2)  ;;  %v456_v12 = vld [vmem:[%s1074_s4 + $0x20] sm:$0xff] (!%p213_p2)  ;;  %v898_v14 = vld [vmem:[%s1071_s1 + $0x30] sm:$0xff] (!%p213_p2)  }
   0x9   : > { %472 = vperm.xlu1 (!%p213_p2), %891, %v454_v8   ;;  %v457_v13 = vld [vmem:[%s1074_s4 + $0x28] sm:$0xff] (!%p213_p2)  ;;  %v458_v15 = vld [vmem:[%s1074_s4 + $0x30] sm:$0xff] (!%p213_p2)  ;;  %v459_v16 = vld [vmem:[%s1074_s4 + $0x38] sm:$0xff] (!%p213_p2)  ;;  %859 = vmatprep.subr.bf16.mxu1 (!%p213_p2), %v925_v22 }
   0xa   : > { %v899_v17 = vld [vmem:[%s1071_s1 + $0x38] sm:$0xff] (!%p213_p2)   ;;  %v904_v21 = vld [vmem:[%s1075_s5] sm:$0xff] (!%p213_p2)   ;;  %v905_v23 = vld [vmem:[%s1075_s5 + $0x8] sm:$0xff] (!%p213_p2)   ;;  %875 = vmatprep.mubr.msk.bf16.mxu1 (!%p213_p2), %vm926_vm0, %v925_v22 }
   0xb   : > { %838 = vmatpush3.bf16.msra.mxu0 (!%p213_p2), %v893_v1  ;;  %860 = vmatpush3.bf16.msra.mxu1 (!%p213_p2), %v904_v21  ;;  %v906_v24 = vld [vmem:[%s1075_s5 + $0x10] sm:$0xff] (!%p213_p2)   ;;  %v907_v25 = vld [vmem:[%s1075_s5 + $0x18] sm:$0xff] (!%p213_p2)   ;;  %v908_v26 = vld [vmem:[%s1075_s5 + $0x20] sm:$0xff] (!%p213_p2)  }
   0xc   : > { %839 = vmatprep.subr.bf16.mxu0 (!%p213_p2), %v894_v3  ;;  %467 = vperm.xlu0 (!%p213_p2), %890, %v453_v10   ;;  %v909_v27 = vld [vmem:[%s1075_s5 + $0x28] sm:$0xff] (!%p213_p2)   ;;  %v910_v28 = vld [vmem:[%s1075_s5 + $0x30] sm:$0xff] (!%p213_p2)   ;;  %v911_v29 = vld [vmem:[%s1075_s5 + $0x38] sm:$0xff] (!%p213_p2)  }
   0xd   : > { %s1078_s22 = smov (!%p242_p3, %s740_s22), 1  ;;  %477 = vperm.xlu1 %891, %v455_v11   ;;  %861 = vmatprep.subr.bf16.mxu1 %v925_v22  ;;  %v761_v30 = vld [vmem:[%s1072_s2] ss:$0 sm:$0xff] }
   0xe   : > { %s781_s29 = sshll.u32 %s1078_s22, 5  ;;  %v762_v32 = vld [vmem:[%s1073_s3] ss:$0 sm:$0xff] }
   0xf   : > { %s987_s8 = scalar_lea.vmem %s1070_s0, %s781_s29  ;;  %840 = vmatpush3.bf16.msra.mxu0 %v894_v3  ;;  %862 = vmatpush3.bf16.msra.mxu1 %v905_v23  ;;  %s251_s16 = scalar_lea.vmem %s1076_s6, %s781_s29 }
  0x10   : > { %v900_v5 = vld [vmem:[%s987_s8] sm:$0xff]   ;;  %841 = vmatprep.subr.bf16.mxu0 %v895_v4  ;;  %482 = vperm.xlu0 %890, %v456_v12   ;;  %v901_v18 = vld [vmem:[%s987_s8 + $0x8] sm:$0xff]   ;;  %v902_v19 = vld [vmem:[%s987_s8 + $0x10] sm:$0xff]  }
  0x11   : > { %851 = vmatprep.mubr.bf16.mxu0 %v900_v5  ;;  %487 = vperm.xlu1 %891, %v457_v13   ;;  %v903_v20 = vld [vmem:[%s987_s8 + $0x18] sm:$0xff]  }
  0x12   : > { %863 = vmatprep.subr.bf16.mxu1 %v925_v22 }
  0x13   : > { %842 = vmatpush3.bf16.msra.mxu0 %v895_v4  ;;  %864 = vmatpush3.bf16.msra.mxu1 %v906_v24 }
  0x14   : > { %843 = vmatprep.subr.bf16.mxu0 %v896_v6  ;;  %492 = vperm.xlu0 %890, %v458_v15  }
  0x15   : > { %497 = vperm.xlu1 %891, %v459_v16   ;;  %865 = vmatprep.subr.bf16.mxu1 %v925_v22 }
  0x17   : > { %844 = vmatpush3.bf16.msra.mxu0 %v896_v6  ;;  %866 = vmatpush3.bf16.msra.mxu1 %v907_v25 }
  0x18   : > { %845 = vmatprep.subr.bf16.mxu0 %v897_v9  ;;  %867 = vmatprep.subr.bf16.mxu1 %v925_v22 }
  0x1b   : > { %846 = vmatpush3.bf16.msra.mxu0 %v897_v9  ;;  %868 = vmatpush3.bf16.msra.mxu1 %v908_v26 }
  0x1c   : > { %847 = vmatprep.subr.bf16.mxu0 %v898_v14  ;;  %869 = vmatprep.subr.bf16.mxu1 %v925_v22 }
  0x1f   : > { %848 = vmatpush3.bf16.msra.mxu0 %v898_v14  ;;  %870 = vmatpush3.bf16.msra.mxu1 %v909_v27 }
  0x20   : > { %849 = vmatprep.subr.bf16.mxu0 %v899_v17  ;;  %871 = vmatprep.subr.bf16.mxu1 %v925_v22 }
  0x23   : > { %850 = vmatpush3.bf16.msra.mxu0 %v899_v17  ;;  %872 = vmatpush3.bf16.msra.mxu1 %v910_v28 }
  0x24   : > { %873 = vmatprep.subr.bf16.mxu1 %v925_v22 }
  0x26   : > { %852 = vmatmul.mubr.bf16.vlgmr.msra.gmra.mrb[0].mxu0 %v901_v18 }
  0x27   : > { %855 = vmatprep.mubr.bf16.mxu0 %v902_v19  ;;  %874 = vmatpush3.bf16.msra.mxu1 %v911_v29 }
  0x2e   : > { %856 = vmatmul.mubr.bf16.gmra.mrb[4].mxu0 %v903_v20 }
  0x87   : > { %v463_v33 = vpop.permute.xlu0 %462 }
  0x88   : > { %v473_v38 = vpop.permute.xlu1 %472 }
  0x8b   : > { %v468_v47 = vpop.permute.xlu0 %467 }
  0x8c   : > { %v478_v51 = vpop.permute.xlu1 %477 }
  0x8f   : > { %v483_v2 = vpop.permute.xlu0 %482 }
  0x90   : > { %v488_v8 = vpop.permute.xlu1 %487 }
  0x93   : > { %v493_v16 = vpop.permute.xlu0 %492 }
  0x94   : > { %v498_v19 = vpop.permute.xlu1 %497 }
  0xf9   : > { %v853_v31 = vpop.f32.mrb[0].mxu0 }
  0xfa   : > { %v423_v34 = vmul.f32 %v853_v31, %v761_v30  ;;  %v383_v35 = vpop.f32.mrb[1].mxu0 }
  0xfb   : > { %v421_v36 = vmul.f32 %v761_v30, %v383_v35  ;;  %v854_v37 = vpop.f32.mrb[2].mxu0 }
  0xfc   : > { %v438_v39 = vadd.f32 %v762_v32, %v423_v34  ;;  %v424_v40 = vmul.f32 %v854_v37, %v761_v30  ;;  %v386_v41 = vpop.f32.mrb[3].mxu0 }
  0xfd   : > { %v436_v42 = vadd.f32 %v762_v32, %v421_v36  ;;  %v422_v43 = vmul.f32 %v761_v30, %v386_v41 }
  0xfe   : > { %v439_v44 = vadd.f32 %v762_v32, %v424_v40  ;;  %v446_v48 = vmax.f32 %v438_v39, 0.0  ;;  %v633_v39 = vlaneseq }
  0xff   : > { %v444_v45 = vmax.f32 %v436_v42, 0.0  ;;  %v437_v46 = vadd.f32 %v762_v32, %v422_v43 }
 0x100   : > { %v447_v52 = vmax.f32 %v439_v44, 0.0  ;;  %v502_v59 = vmul.f32 %v473_v38, %v446_v48  ;;  %v634_v40 = vshrl.u32 %v633_v39, 7 }
 0x101   : > { %v445_v49 = vmax.f32 %v437_v46, 0.0  ;;  %v857_v50 = vpop.f32.mrb[4].mxu0  ;;  %v500_v55 = vmul.f32 %v463_v33, %v444_v45 }
 0x102   : > { %v427_v53 = vmul.f32 %v857_v50, %v761_v30  ;;  %v399_v54 = vpop.f32.mrb[5].mxu0  ;;  %v503_v3 = vmul.f32 %v478_v51, %v447_v52  ;;  %v635_v41 = vsub.s32 0, %v634_v40 }
 0x103   : > { %v501_v56 = vmul.f32 %v468_v47, %v445_v49  ;;  %v425_v57 = vmul.f32 %v761_v30, %v399_v54  ;;  %v858_v58 = vpop.f32.mrb[6].mxu0 }
 0x104   : > { %v428_v60 = vmul.f32 %v858_v58, %v761_v30  ;;  %v402_v61 = vpop.f32.mrb[7].mxu0  ;;  %v442_v63 = vadd.f32 %v762_v32, %v427_v53 }
 0x105   : > { %v508_v62 = vadd.f32 %v501_v56, %v500_v55  ;;  %v440_v0 = vadd.f32 %v762_v32, %v425_v57  ;;  %v426_v1 = vmul.f32 %v761_v30, %v402_v61 }
 0x106   : > { %v443_v6 = vadd.f32 %v762_v32, %v428_v60  ;;  %v450_v9 = vmax.f32 %v442_v63, 0.0 }
 0x107   : > { %v509_v4 = vadd.f32 %v508_v62, %v502_v59  ;;  %v448_v5 = vmax.f32 %v440_v0, 0.0  ;;  %v441_v7 = vadd.f32 %v762_v32, %v426_v1 }
 0x108   : > { %v451_v14 = vmax.f32 %v443_v6, 0.0  ;;  %v506_v17 = vmul.f32 %v493_v16, %v450_v9 }
 0x109   : > { %v504_v10 = vmul.f32 %v483_v2, %v448_v5  ;;  %v510_v11 = vadd.f32 %v509_v4, %v503_v3  ;;  %v449_v12 = vmax.f32 %v441_v7, 0.0 }
 0x10a   : > { %v507_v20 = vmul.f32 %v498_v19, %v451_v14 }
 0x10b   : > { %v511_v13 = vadd.f32 %v510_v11, %v504_v10  ;;  %v505_v15 = vmul.f32 %v488_v8, %v449_v12 }
 0x10d   : > { %v512_v18 = vadd.f32 %v511_v13, %v505_v15 }
 0x10f   : > { %v513_v21 = vadd.f32 %v512_v18, %v506_v17 }
 0x111   : > { %v514_v22 = vadd.f32 %v513_v21, %v507_v20 }
 0x113   : > { %v515_v23 = vrot.slane %v514_v22, 4 }
 0x115   : > { %v516_v24 = vadd.f32 %v515_v23, %v514_v22 }
 0x117   : > { %v517_v25 = vrot.slane %v516_v24, 2 }
 0x119   : > { %v518_v26 = vadd.f32 %v517_v25, %v516_v24 }
 0x11b   : > { %v519_v27 = vrot.slane %v518_v26, 1 }
 0x11d   : > { %v520_v28 = vadd.f32 %v519_v27, %v518_v26 }
 0x11f   : > { %v521_v29 = vmul.f32 0.015625, %v520_v28 }
 0x121   : > { %v522_v30 = vpack.c.bf16 %v521_v29, %v521_v29 }
 0x123   : > { %876 = vmatmul.mubr.bf16.vlgmr.msra.gmra.mrb[0].mxu1 %v522_v30 }
 0x1f6   : > { %v621_v31 = vpop.f32.mrb[0].mxu1 }
 0x1f7   : > { %v627_v32 = vsub.f32 0.0, %v621_v31  ;;  %v877_v33 = vpop.f32.mrb[1].mxu1 }
 0x1f8   : > { %v624_v34 = vpop.f32.mrb[2].mxu1 }
 0x1f9   : > { %v628_v35 = vmul.f32 1.442695, %v627_v32  ;;  %v878_v36 = vpop.f32.mrb[3].mxu1 }
 0x1fb   : > { %912 = vpow2.f32 %v628_v35 }
 0x205   : > { %v913_v37 = vpop.eup %912 }
 0x206   : > { %v630_v38 = vadd.f32 1.0, %v913_v37 }
 0x208   : > { %914 = vrcp.f32 %v630_v38 }
 0x212   : > { %v915_v42 = vpop.eup %914 }
 0x213   : > { %v636_v43 = vrot.slane %v915_v42, %v635_v41 }
 0x215   : > { %v637_v44 = vmul.f32 %v636_v43, %v500_v55  ;;  %v638_v45 = vmul.f32 %v636_v43, %v501_v56  ;;  %v639_v46 = vmul.f32 %v636_v43, %v502_v59  ;;  %v640_v47 = vmul.f32 %v636_v43, %v503_v3 }
 0x216   : > { %v641_v48 = vmul.f32 %v636_v43, %v504_v10  ;;  %v642_v49 = vmul.f32 %v636_v43, %v505_v15  ;;  %v643_v50 = vmul.f32 %v636_v43, %v506_v17  ;;  %v644_v51 = vmul.f32 %v636_v43, %v507_v20 }
 0x217   : > { %v794_v52 = vpack.c.bf16 %v638_v45, %v637_v44  ;;  %v799_v53 = vpack.c.bf16 %v640_v47, %v639_v46 }
 0x218   : > { %v804_v54 = vpack.c.bf16 %v642_v49, %v641_v48  ;;  %v809_v57 = vpack.c.bf16 %v644_v51, %v643_v50 }
 0x219   : > { %795 = vst [vmem:[%s251_s16] sm:$0xff] %v794_v52   ;;  %811 = vst [vmem:[%s251_s16 + $0x8] sm:$0xff] %v799_v53  }
 0x21a   : > { %812 = vst [vmem:[%s251_s16 + $0x10] sm:$0xff] %v804_v54   ;;  %813 = vst [vmem:[%s251_s16 + $0x18] sm:$0xff] %v809_v57  }
 0x21b PF: > { %s16_s21 = sadd.s32 1, %s922_s21  }
 0x21c   : > { %p13_p4 = scmp.ge.s32.totalorder %s16_s21, 4  }
 0x21e   :  { %15 = sbr.rel (!%p13_p4) target bundleno = 1 (0x1), region = 74 }

// kernel: _lambda_.27
= control target key start
LH: loop header
LB: loop body
LE: loop exit
PB: predicated region body
PF: predicated region fallthrough
CT: control target
= control target key end

     0   :  { %s1710_s21 = smov 0   ;;  %s2104_s0 = inlined_call_operand.vmem [shape: bf16[2,256,128], index: 0, kind: input, shape index: {}]   ;;  %s2105_s1 = inlined_call_operand.vmem [shape: bf16[128,128], index: 1, kind: input, shape index: {}]   ;;  %s2106_s2 = inlined_call_operand.vmem [shape: f32[1,128], index: 2, kind: input, shape index: {}]   ;;  %s2107_s3 = inlined_call_operand.vmem [shape: f32[1,128], index: 3, kind: input, shape index: {}]   ;;  %s2108_s4 = inlined_call_operand.vmem [shape: f32[256,1], index: 4, kind: input, shape index: {}]   ;;  %s2109_s5 = inlined_call_operand.vmem [shape: bf16[128,128], index: 5, kind: input, shape index: {}]   ;;  %s2110_s6 = inlined_call_operand.vmem [shape: bf16[2,256,128], index: 6, kind: output, shape index: {}]  }
   0x1 LB: > { %s1308_s22 = sadd.s32 4294967295, %s1670_s21   ;;  %p1312_p0 = scmp.ge.s32.totalorder %s1670_s21, 1  ;;  %s1670_s21 = sphi %s1710_s21, %s16_s21  }
   0x2   : > { %p212_p1 = scmp.lt.s32.totalorder %s1670_s21, 3 }
   0x4   : > { %p213_p2 = pnand %p1312_p0, %p212_p1 }
   0x5   : > { %v1628_v0 = vld [vmem:[%s2105_s1] sm:$0xff] (!%p213_p2)   ;;  %p242_p3 = scmp.lt.s32.totalorder (!%p213_p2), %s1308_s22, 1  ;;  %v1629_v1 = vld [vmem:[%s2105_s1 + $0x8] sm:$0xff] (!%p213_p2)   ;;  %v1672_v2 = vmov (!%p213_p2), 0   ;;  %v1630_v3 = vld [vmem:[%s2105_s1 + $0x10] sm:$0xff] (!%p213_p2)   ;;  %v1673_v58 = vmov (!%p213_p2), 0.0  }
   0x6   : > { %216 = sbr.rel (%p213_p2) target bundleno = 597 (0x255), region = 44  ;;  %1547 = vmatprep.subr.bf16.mxu0 (!%p213_p2), %v1628_v0  ;;  %1626 = vset.pattern.permute.xlu0 (!%p213_p2), %v1672_v2  ;;  %v1631_v4 = vld [vmem:[%s2105_s1 + $0x18] sm:$0xff] (!%p213_p2)   ;;  %v1632_v6 = vld [vmem:[%s2105_s1 + $0x20] sm:$0xff] (!%p213_p2)   ;;  %v1633_v7 = vld [vmem:[%s2105_s1 + $0x28] sm:$0xff] (!%p213_p2)   ;;  %vm1674_vm0 = vmmov (!%p213_p2), 0  }
   0x7   : > { %1548 = vmatpush3.bf16.msra.mxu0 (!%p213_p2), %v1628_v0  ;;  %1627 = vset.pattern.permute.xlu1 (!%p213_p2), %v1672_v2  ;;  %v684_v8 = vld [vmem:[%s2108_s4] sm:$0xff] (!%p213_p2)  ;;  %v686_v9 = vld [vmem:[%s2108_s4 + $0x10] sm:$0xff] (!%p213_p2)  ;;  %v685_v10 = vld [vmem:[%s2108_s4 + $0x8] sm:$0xff] (!%p213_p2) }
   0x8   : > { %1549 = vmatprep.subr.bf16.mxu0 (!%p213_p2), %v1629_v1  ;;  %718 = vperm.xlu0 (!%p213_p2), %1626, %v684_v8   ;;  %v687_v11 = vld [vmem:[%s2108_s4 + $0x18] sm:$0xff] (!%p213_p2)  ;;  %v1634_v12 = vld [vmem:[%s2105_s1 + $0x30] sm:$0xff] (!%p213_p2)   ;;  %v688_v13 = vld [vmem:[%s2108_s4 + $0x20] sm:$0xff] (!%p213_p2) }
   0x9   : > { %728 = vperm.xlu1 (!%p213_p2), %1627, %v686_v9   ;;  %v689_v14 = vld [vmem:[%s2108_s4 + $0x28] sm:$0xff] (!%p213_p2)  ;;  %v1635_v15 = vld [vmem:[%s2105_s1 + $0x38] sm:$0xff] (!%p213_p2)   ;;  %v690_v16 = vld [vmem:[%s2108_s4 + $0x30] sm:$0xff] (!%p213_p2)  ;;  %1595 = vmatprep.subr.bf16.mxu1 (!%p213_p2), %v1673_v58 }
   0xa   : > { %v691_v17 = vld [vmem:[%s2108_s4 + $0x38] sm:$0xff] (!%p213_p2)  ;;  %v692_v19 = vld [vmem:[%s2108_s4 + $0x40] sm:$0xff] (!%p213_p2)  ;;  %v693_v20 = vld [vmem:[%s2108_s4 + $0x48] sm:$0xff] (!%p213_p2)  ;;  %1611 = vmatprep.mubr.msk.bf16.mxu1 (!%p213_p2), %vm1674_vm0, %v1673_v58 }
   0xb   : > { %1550 = vmatpush3.bf16.msra.mxu0 (!%p213_p2), %v1629_v1  ;;  %v694_v22 = vld [vmem:[%s2108_s4 + $0x50] sm:$0xff] (!%p213_p2)  ;;  %v695_v23 = vld [vmem:[%s2108_s4 + $0x58] sm:$0xff] (!%p213_p2)  ;;  %v696_v25 = vld [vmem:[%s2108_s4 + $0x60] sm:$0xff] (!%p213_p2) }
   0xc   : > { %1551 = vmatprep.subr.bf16.mxu0 (!%p213_p2), %v1630_v3  ;;  %723 = vperm.xlu0 (!%p213_p2), %1626, %v685_v10   ;;  %v697_v26 = vld [vmem:[%s2108_s4 + $0x68] sm:$0xff] (!%p213_p2)  ;;  %v698_v28 = vld [vmem:[%s2108_s4 + $0x70] sm:$0xff] (!%p213_p2)  ;;  %v699_v29 = vld [vmem:[%s2108_s4 + $0x78] sm:$0xff] (!%p213_p2) }
   0xd   : > { %s2112_s22 = smov (!%p242_p3, %s1308_s22), 1  ;;  %733 = vperm.xlu1 %1627, %v687_v11   ;;  %v700_v31 = vld [vmem:[%s2108_s4 + $0x80] sm:$0xff]  ;;  %v701_v32 = vld [vmem:[%s2108_s4 + $0x88] sm:$0xff]  ;;  %v702_v34 = vld [vmem:[%s2108_s4 + $0x90] sm:$0xff] }
   0xe   : > { %s1385_s29 = sshll.u32 %s2112_s22, 7  ;;  %v703_v35 = vld [vmem:[%s2108_s4 + $0x98] sm:$0xff]  ;;  %v704_v37 = vld [vmem:[%s2108_s4 + $0xa0] sm:$0xff]  ;;  %v705_v38 = vld [vmem:[%s2108_s4 + $0xa8] sm:$0xff] }
   0xf   : > { %s1735_s8 = scalar_lea.vmem %s2104_s0, %s1385_s29  ;;  %1552 = vmatpush3.bf16.msra.mxu0 %v1630_v3  ;;  %v706_v40 = vld [vmem:[%s2108_s4 + $0xb0] sm:$0xff]  ;;  %v707_v41 = vld [vmem:[%s2108_s4 + $0xb8] sm:$0xff]  ;;  %v708_v43 = vld [vmem:[%s2108_s4 + $0xc0] sm:$0xff]  ;;  %s2082_s26 = scalar_lea.vmem %s2110_s6, %s1385_s29 }
  0x10   : > { %v1636_v5 = vld [vmem:[%s1735_s8] sm:$0xff]   ;;  %1553 = vmatprep.subr.bf16.mxu0 %v1631_v4  ;;  %738 = vperm.xlu0 %1626, %v688_v13   ;;  %v1637_v18 = vld [vmem:[%s1735_s8 + $0x8] sm:$0xff]   ;;  %v1638_v21 = vld [vmem:[%s1735_s8 + $0x10] sm:$0xff]  }
  0x11   : > { %1563 = vmatprep.mubr.bf16.mxu0 %v1636_v5  ;;  %743 = vperm.xlu1 %1627, %v689_v14   ;;  %v1639_v24 = vld [vmem:[%s1735_s8 + $0x18] sm:$0xff]   ;;  %v1640_v27 = vld [vmem:[%s1735_s8 + $0x20] sm:$0xff]   ;;  %v1641_v30 = vld [vmem:[%s1735_s8 + $0x28] sm:$0xff]  }
  0x12   : > { %v1642_v33 = vld [vmem:[%s1735_s8 + $0x30] sm:$0xff]   ;;  %v1643_v36 = vld [vmem:[%s1735_s8 + $0x38] sm:$0xff]   ;;  %v1644_v39 = vld [vmem:[%s1735_s8 + $0x40] sm:$0xff]  }
  0x13   : > { %1554 = vmatpush3.bf16.msra.mxu0 %v1631_v4  ;;  %v1645_v42 = vld [vmem:[%s1735_s8 + $0x48] sm:$0xff]   ;;  %v1646_v45 = vld [vmem:[%s1735_s8 + $0x50] sm:$0xff]   ;;  %v711_v47 = vld [vmem:[%s2108_s4 + $0xd8] sm:$0xff] }
  0x14   : > { %1555 = vmatprep.subr.bf16.mxu0 %v1632_v6  ;;  %748 = vperm.xlu0 %1626, %v690_v16   ;;  %v709_v44 = vld [vmem:[%s2108_s4 + $0xc8] sm:$0xff]  ;;  %v710_v46 = vld [vmem:[%s2108_s4 + $0xd0] sm:$0xff]  ;;  %v1647_v48 = vld [vmem:[%s1735_s8 + $0x58] sm:$0xff]  }
  0x15   : > { %753 = vperm.xlu1 %1627, %v691_v17   ;;  %v712_v49 = vld [vmem:[%s2108_s4 + $0xe0] sm:$0xff]  ;;  %v713_v50 = vld [vmem:[%s2108_s4 + $0xe8] sm:$0xff]  ;;  %v714_v52 = vld [vmem:[%s2108_s4 + $0xf0] sm:$0xff] }
  0x16   : > { %v1648_v51 = vld [vmem:[%s1735_s8 + $0x60] sm:$0xff]   ;;  %v715_v53 = vld [vmem:[%s2108_s4 + $0xf8] sm:$0xff]  ;;  %v1649_v54 = vld [vmem:[%s1735_s8 + $0x68] sm:$0xff]  }
  0x17   : > { %1556 = vmatpush3.bf16.msra.mxu0 %v1632_v6  ;;  %v1650_v55 = vld [vmem:[%s1735_s8 + $0x70] sm:$0xff]   ;;  %v1651_v56 = vld [vmem:[%s1735_s8 + $0x78] sm:$0xff]   ;;  %v1652_v57 = vld [vmem:[%s2109_s5] sm:$0xff]  }
  0x18   : > { %1557 = vmatprep.subr.bf16.mxu0 %v1633_v7  ;;  %758 = vperm.xlu0 %1626, %v692_v19   ;;  %v1653_v59 = vld [vmem:[%s2109_s5 + $0x8] sm:$0xff]   ;;  %v1654_v60 = vld [vmem:[%s2109_s5 + $0x10] sm:$0xff]   ;;  %v1655_v61 = vld [vmem:[%s2109_s5 + $0x18] sm:$0xff]  }
  0x19   : > { %763 = vperm.xlu1 %1627, %v693_v20   ;;  %1596 = vmatpush3.bf16.msra.mxu1 %v1652_v57  ;;  %v1656_v62 = vld [vmem:[%s2109_s5 + $0x20] sm:$0xff]   ;;  %v1657_v63 = vld [vmem:[%s2109_s5 + $0x28] sm:$0xff]   ;;  %v1658_v0 = vld [vmem:[%s2109_s5 + $0x30] sm:$0xff]  }
  0x1a   : > { %1597 = vmatprep.subr.bf16.mxu1 %v1673_v58  ;;  %v1659_v1 = vld [vmem:[%s2109_s5 + $0x38] sm:$0xff]   ;;  %v1891_v11 = vld [vmem:[%s2106_s2] ss:$0 sm:$0xff] }
  0x1b   : > { %1558 = vmatpush3.bf16.msra.mxu0 %v1633_v7  ;;  %v1896_v14 = vld [vmem:[%s2107_s3] ss:$0 sm:$0xff] }
  0x1c   : > { %1559 = vmatprep.subr.bf16.mxu0 %v1634_v12  ;;  %768 = vperm.xlu0 %1626, %v694_v22  }
  0x1d   : > { %773 = vperm.xlu1 %1627, %v695_v23   ;;  %1598 = vmatpush3.bf16.msra.mxu1 %v1653_v59 }
  0x1e   : > { %1599 = vmatprep.subr.bf16.mxu1 %v1673_v58 }
  0x1f   : > { %1560 = vmatpush3.bf16.msra.mxu0 %v1634_v12 }
  0x20   : > { %1561 = vmatprep.subr.bf16.mxu0 %v1635_v15  ;;  %778 = vperm.xlu0 %1626, %v696_v25  }
  0x21   : > { %783 = vperm.xlu1 %1627, %v697_v26   ;;  %1600 = vmatpush3.bf16.msra.mxu1 %v1654_v60 }
  0x22   : > { %1601 = vmatprep.subr.bf16.mxu1 %v1673_v58 }
  0x23   : > { %1562 = vmatpush3.bf16.msra.mxu0 %v1635_v15 }
  0x24   : > { %788 = vperm.xlu0 %1626, %v698_v28  }
  0x25   : > { %793 = vperm.xlu1 %1627, %v699_v29   ;;  %1602 = vmatpush3.bf16.msra.mxu1 %v1655_v61 }
  0x26   : > { %1564 = vmatmul.mubr.bf16.vlgmr.msra.gmra.mrb[0].mxu0 %v1637_v18  ;;  %1603 = vmatprep.subr.bf16.mxu1 %v1673_v58 }
  0x27   : > { %1567 = vmatprep.mubr.bf16.mxu0 %v1638_v21 }
  0x28   : > { %798 = vperm.xlu0 %1626, %v700_v31  }
  0x29   : > { %803 = vperm.xlu1 %1627, %v701_v32   ;;  %1604 = vmatpush3.bf16.msra.mxu1 %v1656_v62 }
  0x2a   : > { %1605 = vmatprep.subr.bf16.mxu1 %v1673_v58 }
  0x2c   : > { %808 = vperm.xlu0 %1626, %v702_v34  }
  0x2d   : > { %813 = vperm.xlu1 %1627, %v703_v35   ;;  %1606 = vmatpush3.bf16.msra.mxu1 %v1657_v63 }
  0x2e   : > { %1568 = vmatmul.mubr.bf16.gmra.mrb[4].mxu0 %v1639_v24  ;;  %1607 = vmatprep.subr.bf16.mxu1 %v1673_v58 }
  0x2f   : > { %1571 = vmatprep.mubr.bf16.mxu0 %v1640_v27 }
  0x30   : > { %818 = vperm.xlu0 %1626, %v704_v37  }
  0x31   : > { %823 = vperm.xlu1 %1627, %v705_v38   ;;  %1608 = vmatpush3.bf16.msra.mxu1 %v1658_v0 }
  0x32   : > { %1609 = vmatprep.subr.bf16.mxu1 %v1673_v58 }
  0x34   : > { %828 = vperm.xlu0 %1626, %v706_v40  }
  0x35   : > { %833 = vperm.xlu1 %1627, %v707_v41   ;;  %1610 = vmatpush3.bf16.msra.mxu1 %v1659_v1 }
  0x36   : > { %1572 = vmatmul.mubr.bf16.gmra.mrb[8].mxu0 %v1641_v30 }
  0x37   : > { %1575 = vmatprep.mubr.bf16.mxu0 %v1642_v33 }
  0x38   : > { %838 = vperm.xlu0 %1626, %v708_v43  }
  0x39   : > { %843 = vperm.xlu1 %1627, %v709_v44  }
  0x3c   : > { %848 = vperm.xlu0 %1626, %v710_v46  }
  0x3d   : > { %853 = vperm.xlu1 %1627, %v711_v47  }
  0x3e   : > { %1576 = vmatmul.mubr.bf16.gmra.mrb[12].mxu0 %v1643_v36 }
  0x3f   : > { %1579 = vmatprep.mubr.bf16.mxu0 %v1644_v39 }
  0x40   : > { %858 = vperm.xlu0 %1626, %v712_v49  }
  0x41   : > { %863 = vperm.xlu1 %1627, %v713_v50  }
  0x44   : > { %868 = vperm.xlu0 %1626, %v714_v52  }
  0x45   : > { %873 = vperm.xlu1 %1627, %v715_v53  }
  0x46   : > { %1580 = vmatmul.mubr.bf16.gmra.mrb[16].mxu0 %v1645_v42 }
  0x47   : > { %1583 = vmatprep.mubr.bf16.mxu0 %v1646_v45 }
  0x4e   : > { %1584 = vmatmul.mubr.bf16.gmra.mrb[20].mxu0 %v1647_v48 }
  0x4f   : > { %1587 = vmatprep.mubr.bf16.mxu0 %v1648_v51 }
  0x56   : > { %1588 = vmatmul.mubr.bf16.gmra.mrb[24].mxu0 %v1649_v54 }
  0x57   : > { %1591 = vmatprep.mubr.bf16.mxu0 %v1650_v55 }
  0x5e   : > { %1592 = vmatmul.mubr.bf16.gmra.mrb[28].mxu0 %v1651_v56 }
  0x87   : > { %v719_v2 = vpop.permute.xlu0 %718 }
  0x88   : > { %v729_v3 = vpop.permute.xlu1 %728 }
  0x8b   : > { %v724_v4 = vpop.permute.xlu0 %723 }
  0x8c   : > { %v734_v5 = vpop.permute.xlu1 %733 }
  0x8f   : > { %v739_v6 = vpop.permute.xlu0 %738 }
  0x90   : > { %v744_v7 = vpop.permute.xlu1 %743 }
  0x93   : > { %v749_v8 = vpop.permute.xlu0 %748 }
  0x94   : > { %v754_v9 = vpop.permute.xlu1 %753 }
  0x97   : > { %v759_v10 = vpop.permute.xlu0 %758 }
  0x98   : > { %v764_v13 = vpop.permute.xlu1 %763 }
  0x9b   : > { %v769_v23 = vpop.permute.xlu0 %768 }
  0x9c   : > { %v774_v26 = vpop.permute.xlu1 %773 }
  0x9f   : > { %v779_v37 = vpop.permute.xlu0 %778 }
  0xa0   : > { %v784_v44 = vpop.permute.xlu1 %783 }
  0xa3   : > { %v789_v53 = vpop.permute.xlu0 %788 }
  0xa4   : > { %v794_v60 = vpop.permute.xlu1 %793 }
  0xf9   : > { %v1565_v12 = vpop.f32.mrb[0].mxu0 }
  0xfa   : > { %v479_v15 = vpop.f32.mrb[1].mxu0  ;;  %v615_v16 = vmul.f32 %v1565_v12, %v1891_v11 }
  0xfb   : > { %v613_v17 = vmul.f32 %v1891_v11, %v479_v15  ;;  %v1566_v18 = vpop.f32.mrb[2].mxu0 }
  0xfc   : > { %v616_v19 = vmul.f32 %v1566_v18, %v1891_v11  ;;  %v482_v20 = vpop.f32.mrb[3].mxu0  ;;  %v654_v24 = vadd.f32 %v1896_v14, %v615_v16  ;;  %v804_v16 = vpop.permute.xlu1 %803 }
  0xfd   : > { %v652_v21 = vadd.f32 %v1896_v14, %v613_v17  ;;  %v614_v22 = vmul.f32 %v1891_v11, %v482_v20 }
  0xfe   : > { %v655_v27 = vadd.f32 %v1896_v14, %v616_v19  ;;  %v1910_v32 = vmul.f32 %v729_v3, %v654_v24 }
  0xff   : > { %v653_v25 = vadd.f32 %v1896_v14, %v614_v22  ;;  %v1906_v28 = vmul.f32 %v719_v2, %v652_v21 }
 0x100   : > { %v1916_v38 = vmul.f32 %v734_v5, %v655_v27 }
 0x101   : > { %v1908_v29 = vmul.f32 %v724_v4, %v653_v25  ;;  %v1569_v30 = vpop.f32.mrb[4].mxu0 }
 0x102   : > { %v495_v31 = vpop.f32.mrb[5].mxu0  ;;  %v619_v34 = vmul.f32 %v1569_v30, %v1891_v11 }
 0x103   : > { %v908_v33 = vadd.f32 %v1908_v29, %v1906_v28  ;;  %v617_v35 = vmul.f32 %v1891_v11, %v495_v31  ;;  %v1570_v36 = vpop.f32.mrb[6].mxu0 }
 0x104   : > { %v498_v39 = vpop.f32.mrb[7].mxu0  ;;  %v620_v42 = vmul.f32 %v1570_v36, %v1891_v11  ;;  %v658_v45 = vadd.f32 %v1896_v14, %v619_v34 }
 0x105   : > { %v909_v40 = vadd.f32 %v908_v33, %v1910_v32  ;;  %v656_v41 = vadd.f32 %v1896_v14, %v617_v35  ;;  %v618_v43 = vmul.f32 %v1891_v11, %v498_v39 }
 0x106   : > { %v659_v50 = vadd.f32 %v1896_v14, %v620_v42  ;;  %v1931_v55 = vmul.f32 %v749_v8, %v658_v45 }
 0x107   : > { %v1923_v46 = vmul.f32 %v739_v6, %v656_v41  ;;  %v910_v47 = vadd.f32 %v909_v40, %v1916_v38  ;;  %v657_v48 = vadd.f32 %v1896_v14, %v618_v43 }
 0x108   : > { %v1937_v63 = vmul.f32 %v754_v9, %v659_v50 }
 0x109   : > { %v911_v49 = vadd.f32 %v910_v47, %v1923_v46  ;;  %v1929_v51 = vmul.f32 %v744_v7, %v657_v48  ;;  %v1573_v52 = vpop.f32.mrb[8].mxu0  ;;  %v799_v7 = vpop.permute.xlu0 %798 }
 0x10a   : > { %v511_v54 = vpop.f32.mrb[9].mxu0  ;;  %v623_v57 = vmul.f32 %v1573_v52, %v1891_v11 }
 0x10b   : > { %v912_v56 = vadd.f32 %v911_v49, %v1929_v51  ;;  %v621_v58 = vmul.f32 %v1891_v11, %v511_v54  ;;  %v1574_v59 = vpop.f32.mrb[10].mxu0 }
 0x10c   : > { %v624_v61 = vmul.f32 %v1574_v59, %v1891_v11  ;;  %v514_v62 = vpop.f32.mrb[11].mxu0  ;;  %v662_v3 = vadd.f32 %v1896_v14, %v623_v57 }
 0x10d   : > { %v913_v0 = vadd.f32 %v912_v56, %v1931_v55  ;;  %v660_v1 = vadd.f32 %v1896_v14, %v621_v58  ;;  %v622_v2 = vmul.f32 %v1891_v11, %v514_v62 }
 0x10e   : > { %v663_v8 = vadd.f32 %v1896_v14, %v624_v61  ;;  %v1951_v18 = vmul.f32 %v769_v23, %v662_v3  ;;  %v809_v23 = vpop.permute.xlu0 %808 }
 0x10f   : > { %v1943_v4 = vmul.f32 %v759_v10, %v660_v1  ;;  %v914_v5 = vadd.f32 %v913_v0, %v1937_v63  ;;  %v661_v6 = vadd.f32 %v1896_v14, %v622_v2 }
 0x110   : > { %v1956_v22 = vmul.f32 %v774_v26, %v663_v8  ;;  %v814_v26 = vpop.permute.xlu1 %813 }
 0x111   : > { %v915_v9 = vadd.f32 %v914_v5, %v1943_v4  ;;  %v1949_v12 = vmul.f32 %v764_v13, %v661_v6  ;;  %v1577_v15 = vpop.f32.mrb[12].mxu0 }
 0x112   : > { %v527_v17 = vpop.f32.mrb[13].mxu0  ;;  %v627_v10 = vmul.f32 %v1577_v15, %v1891_v11  ;;  %v819_v49 = vpop.permute.xlu0 %818 }
 0x113   : > { %v916_v19 = vadd.f32 %v915_v9, %v1949_v12  ;;  %v625_v20 = vmul.f32 %v1891_v11, %v527_v17  ;;  %v1578_v21 = vpop.f32.mrb[14].mxu0 }
 0x114   : > { %v530_v24 = vpop.f32.mrb[15].mxu0  ;;  %v628_v27 = vmul.f32 %v1578_v21, %v1891_v11  ;;  %v666_v31 = vadd.f32 %v1896_v14, %v627_v10  ;;  %v824_v57 = vpop.permute.xlu1 %823 }
 0x115   : > { %v917_v25 = vadd.f32 %v916_v19, %v1951_v18  ;;  %v664_v13 = vadd.f32 %v1896_v14, %v625_v20  ;;  %v626_v30 = vmul.f32 %v1891_v11, %v530_v24 }
 0x116   : > { %v667_v39 = vadd.f32 %v1896_v14, %v628_v27  ;;  %v1971_v43 = vmul.f32 %v789_v53, %v666_v31  ;;  %v829_v3 = vpop.permute.xlu0 %828 }
 0x117   : > { %v1963_v33 = vmul.f32 %v779_v37, %v664_v13  ;;  %v918_v34 = vadd.f32 %v917_v25, %v1956_v22  ;;  %v665_v35 = vadd.f32 %v1896_v14, %v626_v30 }
 0x118   : > { %v1977_v54 = vmul.f32 %v794_v60, %v667_v39  ;;  %v834_v17 = vpop.permute.xlu1 %833 }
 0x119   : > { %v919_v36 = vadd.f32 %v918_v34, %v1963_v33  ;;  %v1969_v40 = vmul.f32 %v784_v44, %v665_v35  ;;  %v1581_v41 = vpop.f32.mrb[16].mxu0 }
 0x11a   : > { %v543_v42 = vpop.f32.mrb[17].mxu0  ;;  %v631_v37 = vmul.f32 %v1581_v41, %v1891_v11 }
 0x11b   : > { %v920_v45 = vadd.f32 %v919_v36, %v1969_v40  ;;  %v629_v47 = vmul.f32 %v1891_v11, %v543_v42  ;;  %v1582_v48 = vpop.f32.mrb[18].mxu0 }
 0x11c   : > { %v632_v50 = vmul.f32 %v1582_v48, %v1891_v11  ;;  %v546_v52 = vpop.f32.mrb[19].mxu0  ;;  %v670_v58 = vadd.f32 %v1896_v14, %v631_v37  ;;  %v844_v36 = vpop.permute.xlu1 %843 }
 0x11d   : > { %v921_v44 = vadd.f32 %v920_v45, %v1971_v43  ;;  %v668_v56 = vadd.f32 %v1896_v14, %v629_v47  ;;  %v630_v53 = vmul.f32 %v1891_v11, %v546_v52 }
 0x11e   : > { %v671_v0 = vadd.f32 %v1896_v14, %v632_v50  ;;  %v1991_v6 = vmul.f32 %v809_v23, %v670_v58  ;;  %v839_v23 = vpop.permute.xlu0 %838 }
 0x11f   : > { %v1983_v59 = vmul.f32 %v799_v7, %v668_v56  ;;  %v922_v61 = vadd.f32 %v921_v44, %v1977_v54  ;;  %v669_v62 = vadd.f32 %v1896_v14, %v630_v53 }
 0x120   : > { %v1996_v19 = vmul.f32 %v814_v26, %v671_v0  ;;  %v854_v0 = vpop.permute.xlu1 %853 }
 0x121   : > { %v923_v60 = vadd.f32 %v922_v61, %v1983_v59  ;;  %v1989_v1 = vmul.f32 %v804_v16, %v669_v62  ;;  %v1585_v2 = vpop.f32.mrb[20].mxu0 }
 0x122   : > { %v559_v5 = vpop.f32.mrb[21].mxu0  ;;  %v635_v7 = vmul.f32 %v1585_v2, %v1891_v11  ;;  %v849_v53 = vpop.permute.xlu0 %848 }
 0x123   : > { %v924_v8 = vadd.f32 %v923_v60, %v1989_v1  ;;  %v633_v9 = vmul.f32 %v1891_v11, %v559_v5  ;;  %v1586_v15 = vpop.f32.mrb[22].mxu0 }
 0x124   : > { %v562_v10 = vpop.f32.mrb[23].mxu0  ;;  %v636_v21 = vmul.f32 %v1586_v15, %v1891_v11  ;;  %v674_v25 = vadd.f32 %v1896_v14, %v635_v7 }
 0x125   : > { %v925_v20 = vadd.f32 %v924_v8, %v1991_v6  ;;  %v672_v16 = vadd.f32 %v1896_v14, %v633_v9  ;;  %v634_v24 = vmul.f32 %v1891_v11, %v562_v10 }
 0x126   : > { %v675_v34 = vadd.f32 %v1896_v14, %v636_v21  ;;  %v2011_v41 = vmul.f32 %v829_v3, %v674_v25 }
 0x127   : > { %v2003_v13 = vmul.f32 %v819_v49, %v672_v16  ;;  %v926_v27 = vadd.f32 %v925_v20, %v1996_v19  ;;  %v673_v30 = vadd.f32 %v1896_v14, %v634_v24  ;;  %v859_v20 = vpop.permute.xlu0 %858 }
 0x128   : > { %v2017_v50 = vmul.f32 %v834_v17, %v675_v34 }
 0x129   : > { %v927_v31 = vadd.f32 %v926_v27, %v2003_v13  ;;  %v2009_v35 = vmul.f32 %v824_v57, %v673_v30  ;;  %v1589_v26 = vpop.f32.mrb[24].mxu0 }
 0x12a   : > { %v575_v39 = vpop.f32.mrb[25].mxu0  ;;  %v639_v45 = vmul.f32 %v1589_v26, %v1891_v11 }
 0x12b   : > { %v928_v42 = vadd.f32 %v927_v31, %v2009_v35  ;;  %v637_v37 = vmul.f32 %v1891_v11, %v575_v39  ;;  %v1590_v47 = vpop.f32.mrb[26].mxu0 }
 0x12c   : > { %v640_v48 = vmul.f32 %v1590_v47, %v1891_v11  ;;  %v578_v49 = vpop.f32.mrb[27].mxu0  ;;  %v678_v57 = vadd.f32 %v1896_v14, %v639_v45 }
 0x12d   : > { %v929_v52 = vadd.f32 %v928_v42, %v2011_v41  ;;  %v676_v44 = vadd.f32 %v1896_v14, %v637_v37  ;;  %v638_v56 = vmul.f32 %v1891_v11, %v578_v49  ;;  %v869_v37 = vpop.permute.xlu0 %868 }
 0x12e   : > { %v679_v60 = vadd.f32 %v1896_v14, %v640_v48  ;;  %v2031_v7 = vmul.f32 %v849_v53, %v678_v57 }
 0x12f   : > { %v2023_v58 = vmul.f32 %v839_v23, %v676_v44  ;;  %v930_v61 = vadd.f32 %v929_v52, %v2017_v50  ;;  %v677_v62 = vadd.f32 %v1896_v14, %v638_v56  ;;  %v864_v23 = vpop.permute.xlu1 %863 }
 0x130   : > { %v2036_v16 = vmul.f32 %v854_v0, %v679_v60 }
 0x131   : > { %v931_v2 = vadd.f32 %v930_v61, %v2023_v58  ;;  %v2029_v3 = vmul.f32 %v844_v36, %v677_v62  ;;  %v1593_v5 = vpop.f32.mrb[28].mxu0 }
 0x132   : > { %v591_v8 = vpop.f32.mrb[29].mxu0  ;;  %v643_v15 = vmul.f32 %v1593_v5, %v1891_v11 }
 0x133   : > { %v932_v9 = vadd.f32 %v931_v2, %v2029_v3  ;;  %v641_v17 = vmul.f32 %v1891_v11, %v591_v8  ;;  %v1594_v10 = vpop.f32.mrb[30].mxu0  ;;  %v874_v49 = vpop.permute.xlu1 %873 }
 0x134   : > { %v594_v21 = vpop.f32.mrb[31].mxu0  ;;  %v644_v27 = vmul.f32 %v1594_v10, %v1891_v11  ;;  %v682_v31 = vadd.f32 %v1896_v14, %v643_v15 }
 0x135   : > { %v933_v24 = vadd.f32 %v932_v9, %v2031_v7  ;;  %v680_v25 = vadd.f32 %v1896_v14, %v641_v17  ;;  %v642_v30 = vmul.f32 %v1891_v11, %v594_v21  ;;  %v1057_v21 = vlaneseq }
 0x136   : > { %v683_v42 = vadd.f32 %v1896_v14, %v644_v27  ;;  %v906_v47 = vmul.f32 %v869_v37, %v682_v31 }
 0x137   : > { %v2043_v34 = vmul.f32 %v859_v20, %v680_v25  ;;  %v934_v26 = vadd.f32 %v933_v24, %v2036_v16  ;;  %v681_v36 = vadd.f32 %v1896_v14, %v642_v30  ;;  %v1058_v24 = vshrl.u32 %v1057_v21, 7 }
 0x138   : > { %v907_v52 = vmul.f32 %v874_v49, %v683_v42 }
 0x139   : > { %v935_v39 = vadd.f32 %v934_v26, %v2043_v34  ;;  %v905_v45 = vmul.f32 %v864_v23, %v681_v36  ;;  %v1059_v25 = vsub.s32 0, %v1058_v24 }
 0x13b   : > { %v936_v48 = vadd.f32 %v935_v39, %v905_v45 }
 0x13d   : > { %v937_v11 = vadd.f32 %v936_v48, %v906_v47 }
 0x13f   : > { %v938_v44 = vadd.f32 %v937_v11, %v907_v52 }
 0x141   : > { %v939_v56 = vrot.slane %v938_v44, 4 }
 0x143   : > { %v940_v53 = vadd.f32 %v939_v56, %v938_v44 }
 0x145   : > { %v941_v57 = vrot.slane %v940_v53, 2 }
 0x147   : > { %v942_v61 = vadd.f32 %v941_v57, %v940_v53 }
 0x149   : > { %v943_v62 = vrot.slane %v942_v61, 1 }
 0x14b   : > { %v944_v0 = vadd.f32 %v943_v62, %v942_v61 }
 0x14d   : > { %v945_v60 = vmul.f32 0.00390625, %v944_v0 }
 0x14f   : > { %v946_v2 = vpack.c.bf16 %v945_v60, %v945_v60 }
 0x151   : > { %1612 = vmatmul.mubr.bf16.vlgmr.msra.gmra.mrb[0].mxu1 %v946_v2 }
 0x224   : > { %v1045_v5 = vpop.f32.mrb[0].mxu1 }
 0x225   : > { %v1051_v8 = vsub.f32 0.0, %v1045_v5  ;;  %v1613_v14 = vpop.f32.mrb[1].mxu1 }
 0x226   : > { %v1048_v9 = vpop.f32.mrb[2].mxu1 }
 0x227   : > { %v1052_v15 = vmul.f32 1.442695, %v1051_v8  ;;  %v1614_v17 = vpop.f32.mrb[3].mxu1 }
 0x229   : > { %1660 = vpow2.f32 %v1052_v15 }
 0x233   : > { %v1661_v10 = vpop.eup %1660 }
 0x234   : > { %v1054_v20 = vadd.f32 1.0, %v1661_v10 }
 0x236   : > { %1662 = vrcp.f32 %v1054_v20 }
 0x240   : > { %v1663_v27 = vpop.eup %1662 }
 0x241   : > { %v1060_v30 = vrot.slane %v1663_v27, %v1059_v25 }
 0x243   : > { %v1061_v23 = vmul.f32 %v1060_v30, %v1906_v28  ;;  %v1062_v31 = vmul.f32 %v1060_v30, %v1908_v29  ;;  %v1063_v26 = vmul.f32 %v1060_v30, %v1910_v32  ;;  %v1064_v36 = vmul.f32 %v1060_v30, %v1916_v38 }
 0x244   : > { %v1065_v39 = vmul.f32 %v1060_v30, %v1923_v46  ;;  %v1066_v42 = vmul.f32 %v1060_v30, %v1929_v51  ;;  %v1067_v37 = vmul.f32 %v1060_v30, %v1931_v55  ;;  %v1068_v48 = vmul.f32 %v1060_v30, %v1937_v63 }
 0x245   : > { %v1069_v49 = vmul.f32 %v1060_v30, %v1943_v4  ;;  %v1070_v11 = vmul.f32 %v1060_v30, %v1949_v12  ;;  %v1071_v28 = vmul.f32 %v1060_v30, %v1951_v18  ;;  %v1072_v29 = vmul.f32 %v1060_v30, %v1956_v22 }
 0x246   : > { %v1073_v32 = vmul.f32 %v1060_v30, %v1963_v33  ;;  %v1074_v38 = vmul.f32 %v1060_v30, %v1969_v40  ;;  %v1075_v46 = vmul.f32 %v1060_v30, %v1971_v43  ;;  %v1076_v51 = vmul.f32 %v1060_v30, %v1977_v54 }
 0x247   : > { %v1077_v55 = vmul.f32 %v1060_v30, %v1983_v59  ;;  %v1078_v63 = vmul.f32 %v1060_v30, %v1989_v1  ;;  %v1079_v4 = vmul.f32 %v1060_v30, %v1991_v6  ;;  %v1080_v12 = vmul.f32 %v1060_v30, %v1996_v19 }
 0x248   : > { %v1081_v18 = vmul.f32 %v1060_v30, %v2003_v13  ;;  %v1082_v22 = vmul.f32 %v1060_v30, %v2009_v35  ;;  %v1083_v33 = vmul.f32 %v1060_v30, %v2011_v41  ;;  %v1084_v40 = vmul.f32 %v1060_v30, %v2017_v50 }
 0x249   : > { %v1085_v43 = vmul.f32 %v1060_v30, %v2023_v58  ;;  %v1086_v54 = vmul.f32 %v1060_v30, %v2029_v3  ;;  %v1087_v59 = vmul.f32 %v1060_v30, %v2031_v7  ;;  %v1088_v1 = vmul.f32 %v1060_v30, %v2036_v16 }
 0x24a   : > { %v1089_v6 = vmul.f32 %v1060_v30, %v2043_v34  ;;  %v1090_v19 = vmul.f32 %v1060_v30, %v905_v45  ;;  %v1091_v13 = vmul.f32 %v1060_v30, %v906_v47  ;;  %v1092_v35 = vmul.f32 %v1060_v30, %v907_v52 }
 0x24b   : > { %v1422_v41 = vpack.c.bf16 %v1062_v31, %v1061_v23  ;;  %v1427_v50 = vpack.c.bf16 %v1064_v36, %v1063_v26  ;;  %v1432_v58 = vpack.c.bf16 %v1066_v42, %v1065_v39  ;;  %v1437_v3 = vpack.c.bf16 %v1068_v48, %v1067_v37 }
 0x24c   : > { %v1442_v7 = vpack.c.bf16 %v1070_v11, %v1069_v49  ;;  %v1447_v16 = vpack.c.bf16 %v1072_v29, %v1071_v28  ;;  %v1452_v44 = vpack.c.bf16 %v1074_v38, %v1073_v32  ;;  %v1457_v56 = vpack.c.bf16 %v1076_v51, %v1075_v46 }
 0x24d   : > { %1423 = vst [vmem:[%s2082_s26] sm:$0xff] %v1422_v41   ;;  %1499 = vst [vmem:[%s2082_s26 + $0x8] sm:$0xff] %v1427_v50   ;;  %v1462_v34 = vpack.c.bf16 %v1078_v63, %v1077_v55  ;;  %v1467_v45 = vpack.c.bf16 %v1080_v12, %v1079_v4  ;;  %v1472_v47 = vpack.c.bf16 %v1082_v22, %v1081_v18 }
 0x24e   : > { %1500 = vst [vmem:[%s2082_s26 + $0x10] sm:$0xff] %v1432_v58   ;;  %1501 = vst [vmem:[%s2082_s26 + $0x18] sm:$0xff] %v1437_v3   ;;  %v1477_v52 = vpack.c.bf16 %v1084_v40, %v1083_v33  ;;  %v1482_v53 = vpack.c.bf16 %v1086_v54, %v1085_v43  ;;  %v1487_v57 = vpack.c.bf16 %v1088_v1, %v1087_v59 }
 0x24f   : > { %1502 = vst [vmem:[%s2082_s26 + $0x20] sm:$0xff] %v1442_v7   ;;  %1503 = vst [vmem:[%s2082_s26 + $0x28] sm:$0xff] %v1447_v16   ;;  %v1492_v61 = vpack.c.bf16 %v1090_v19, %v1089_v6  ;;  %v1497_v62 = vpack.c.bf16 %v1092_v35, %v1091_v13 }
 0x250   : > { %1504 = vst [vmem:[%s2082_s26 + $0x30] sm:$0xff] %v1452_v44   ;;  %1505 = vst [vmem:[%s2082_s26 + $0x38] sm:$0xff] %v1457_v56  }
 0x251   : > { %1506 = vst [vmem:[%s2082_s26 + $0x40] sm:$0xff] %v1462_v34   ;;  %1507 = vst [vmem:[%s2082_s26 + $0x48] sm:$0xff] %v1467_v45  }
 0x252   : > { %1508 = vst [vmem:[%s2082_s26 + $0x50] sm:$0xff] %v1472_v47   ;;  %1509 = vst [vmem:[%s2082_s26 + $0x58] sm:$0xff] %v1477_v52  }
 0x253   : > { %1510 = vst [vmem:[%s2082_s26 + $0x60] sm:$0xff] %v1482_v53   ;;  %1511 = vst [vmem:[%s2082_s26 + $0x68] sm:$0xff] %v1487_v57  }
 0x254   : > { %1512 = vst [vmem:[%s2082_s26 + $0x70] sm:$0xff] %v1492_v61   ;;  %1513 = vst [vmem:[%s2082_s26 + $0x78] sm:$0xff] %v1497_v62  }
 0x255 PF: > { %s16_s21 = sadd.s32 1, %s1670_s21  }
 0x256   : > { %p13_p4 = scmp.ge.s32.totalorder %s16_s21, 4  }
 0x258   :  { %15 = sbr.rel (!%p13_p4) target bundleno = 1 (0x1), region = 74 }

</bundles_post_ra>
